<compile_context>
chip_gen: v7x
topology: tpu7x:2x2x1
jax: 0.10.0
libtpu: 0.0.40
codegen_flags: <defaults>
</compile_context>

<pallas_src>
import functools

import jax
import jax.numpy as jnp
from jax import lax
from jax.experimental import pallas as pl
from jax.experimental.pallas import tpu as pltpu

# ----------------------------- config -----------------------------
VOCAB_SIZE = 64
D_MODEL = 32
NHEAD = 4
NUM_ENC = 2
NUM_DEC = 2
DIM_FF = 64
MAX_SEQ_LEN = 16
PAD_TOKEN_ID = 0
LN_EPS = 1e-5
NEG_BIG = -1e9  # finite "minus infinity" for padding bias (avoids inf-inf NaNs)


# ----------------------------- in-kernel helpers -----------------------------
def _layernorm(z, g, b):
    """z: [N, D], g/b: [1, D]."""
    mean = jnp.mean(z, axis=-1, keepdims=True)
    zc = z - mean
    var = jnp.mean(zc * zc, axis=-1, keepdims=True)
    return zc * lax.rsqrt(var + LN_EPS) * g + b


def _mha(x_q, x_kv, w_in, b_in, w_out, b_out, bias, B, Sq, Sk):
    """Multi-head attention on VMEM-resident values.

    x_q:   [B*Sq, D]     query input
    x_kv:  [B*Sk, D] or None (None => self-attention, x_kv = x_q)
    w_in:  [D, 3D]  (pre-transposed in_proj weight), b_in: [1, 3D]
    w_out: [D, D]   (pre-transposed out_proj weight), b_out: [1, D]
    bias:  [B, Sq, Sk] additive mask or None
    """
    D = D_MODEL
    dh = D // NHEAD
    scale = 1.0 / float(dh) ** 0.5

    if x_kv is None:
        # fused QKV projection: one matmul [B*S, D] @ [D, 3D]
        qkv = jnp.dot(x_q, w_in, preferred_element_type=jnp.float32) + b_in
        q, k, v = qkv[:, :D], qkv[:, D:2 * D], qkv[:, 2 * D:]
    else:
        q = jnp.dot(x_q, w_in[:, :D], preferred_element_type=jnp.float32) + b_in[:, :D]
        k = jnp.dot(x_kv, w_in[:, D:2 * D], preferred_element_type=jnp.float32) + b_in[:, D:2 * D]
        v = jnp.dot(x_kv, w_in[:, 2 * D:], preferred_element_type=jnp.float32) + b_in[:, 2 * D:]

    acc = None
    for h in range(NHEAD):  # static unroll; heads folded into the out-proj accumulation
        sl = slice(h * dh, (h + 1) * dh)
        qh = q[:, sl].reshape(B, Sq, dh)
        kh = k[:, sl].reshape(B, Sk, dh)
        vh = v[:, sl].reshape(B, Sk, dh)

        s = jnp.einsum("bqd,bkd->bqk", qh, kh, preferred_element_type=jnp.float32) * scale
        if bias is not None:
            s = s + bias
        s = s - jnp.max(s, axis=-1, keepdims=True)
        e = jnp.exp(s)
        p = e * pl.reciprocal(jnp.sum(e, axis=-1, keepdims=True), approx=True)
        oh = jnp.einsum("bqk,bkd->bqd", p, vh, preferred_element_type=jnp.float32)

        # per-head slice of the output projection (avoids concat + extra matmul)
        contrib = jnp.dot(oh.reshape(B * Sq, dh), w_out[sl, :],
                          preferred_element_type=jnp.float32)
        acc = contrib if acc is None else acc + contrib
    return acc + b_out


def _ffn(x, w1, b1, w2, b2):
    h = jnp.maximum(jnp.dot(x, w1, preferred_element_type=jnp.float32) + b1, 0.0)
    return jnp.dot(h, w2, preferred_element_type=jnp.float32) + b2


def _encoder_layer(x, lp, l, bias, B, S):
    a = _mha(x, None, lp["in_w"][l], lp["in_b"][l], lp["out_w"][l], lp["out_b"][l],
             bias, B, S, S)
    x = _layernorm(x + a, lp["ln1_g"][l], lp["ln1_b"][l])
    f = _ffn(x, lp["lin1_w"][l], lp["lin1_b"][l], lp["lin2_w"][l], lp["lin2_b"][l])
    x = _layernorm(x + f, lp["ln2_g"][l], lp["ln2_b"][l])
    return x


def _decoder_layer(x, mem, lp, l, bias, B, St, Ss):
    # self-attention (tgt_key_padding_mask = src key-padding mask, no causal mask,
    # matching the reference module's forward)
    a = _mha(x, None, lp["sa_in_w"][l], lp["sa_in_b"][l], lp["sa_out_w"][l],
             lp["sa_out_b"][l], bias, B, St, St)
    x = _layernorm(x + a, lp["ln1_g"][l], lp["ln1_b"][l])
    # cross-attention (no memory mask in the reference module)
    a = _mha(x, mem, lp["ca_in_w"][l], lp["ca_in_b"][l], lp["ca_out_w"][l],
             lp["ca_out_b"][l], None, B, St, Ss)
    x = _layernorm(x + a, lp["ln2_g"][l], lp["ln2_b"][l])
    f = _ffn(x, lp["lin1_w"][l], lp["lin1_b"][l], lp["lin2_w"][l], lp["lin2_b"][l])
    x = _layernorm(x + f, lp["ln3_g"][l], lp["ln3_b"][l])
    return x


# ----------------------------- fused forward kernel -----------------------------
def _transformer_kernel(src_ref, tgt_ref, bias_ref, *rest,
                        treedef, n_params, B, Ss, St):
    param_refs = rest[:n_params]
    logits_ref = rest[n_params]
    p = jax.tree_util.tree_unflatten(treedef, list(param_refs))

    bias = bias_ref[...]          # [B, S, S] additive key-padding bias
    x = src_ref[...]              # [B*Ss, D]
    for l in range(NUM_ENC):
        x = _encoder_layer(x, p["enc"], l, bias, B, Ss)
    mem = _layernorm(x, p["enc_norm_g"][...], p["enc_norm_b"][...])

    y = tgt_ref[...]              # [B*St, D]
    for l in range(NUM_DEC):
        y = _decoder_layer(y, mem, p["dec"], l, bias, B, St, Ss)
    y = _layernorm(y, p["dec_norm_g"][...], p["dec_norm_b"][...])

    logits_ref[...] = (jnp.dot(y, p["out_w"][...], preferred_element_type=jnp.float32)
                       + p["out_b"][...])


# ----------------------------- host-side wrapper -----------------------------
def transformer_forward(params, input_ids, attention_mask, labels):
    B, Ss = input_ids.shape
    St = labels.shape[1]
    assert Ss == St, "demo assumes src/tgt have equal length (as in the reference usage)"
    D = D_MODEL

    emb = params["embedding"]
    src = jnp.take(emb, input_ids, axis=0) + params["pos"][:, :Ss, :]
    tgt = jnp.take(emb, labels, axis=0) + params["pos"][:, :St, :]

    # key-padding bias built once per forward (finite large negative, not -inf)
    bias = jnp.where((attention_mask == 0)[:, None, :],
                     jnp.float32(NEG_BIG), jnp.float32(0.0))
    bias = jnp.broadcast_to(bias, (B, Ss, Ss)).astype(jnp.float32)

    kparams = {k: v for k, v in params.items() if k not in ("embedding", "pos")}
    leaves, treedef = jax.tree_util.tree_flatten(kparams)

    kernel = functools.partial(_transformer_kernel, treedef=treedef,
                               n_params=len(leaves), B=B, Ss=Ss, St=St)

    logits = pl.pallas_call(
        kernel,
        out_shape=jax.ShapeDtypeStruct((B * St, VOCAB_SIZE), jnp.float32),
        compiler_params=pltpu.CompilerParams(vmem_limit_bytes=32 * 1024 * 1024),
    )(src.reshape(B * Ss, D), tgt.reshape(B * St, D), bias, *leaves)

    return logits.reshape(B, St, VOCAB_SIZE)


# ----------------------------- parameter init -----------------------------
def init_params(key):
    keys = iter(jax.random.split(key, 512))

    def nrm(shape, scale=0.02):
        return jax.random.normal(next(keys), shape, jnp.float32) * scale

    def attn(prefix):
        # weights stored pre-transposed as [K, N] (PyTorch keeps [N, K])
        return {
            f"{prefix}in_w": nrm((D_MODEL, 3 * D_MODEL)),
            f"{prefix}in_b": nrm((1, 3 * D_MODEL)),
            f"{prefix}out_w": nrm((D_MODEL, D_MODEL)),
            f"{prefix}out_b": nrm((1, D_MODEL)),
        }

    def ln(prefix):
        return {f"{prefix}g": jnp.ones((1, D_MODEL), jnp.float32),
                f"{prefix}b": jnp.zeros((1, D_MODEL), jnp.float32)}

    def ffn_params():
        return {"lin1_w": nrm((D_MODEL, DIM_FF)), "lin1_b": nrm((1, DIM_FF)),
                "lin2_w": nrm((DIM_FF, D_MODEL)), "lin2_b": nrm((1, D_MODEL))}

    def enc_layer():
        d = {}
        d.update(attn(""))
        d.update(ffn_params())
        d.update(ln("ln1_"))
        d.update(ln("ln2_"))
        return d

    def dec_layer():
        d = {}
        d.update(attn("sa_"))
        d.update(attn("ca_"))
        d.update(ffn_params())
        d.update(ln("ln1_"))
        d.update(ln("ln2_"))
        d.update(ln("ln3_"))
        return d

    enc_layers = [enc_layer() for _ in range(NUM_ENC)]
    dec_layers = [dec_layer() for _ in range(NUM_DEC)]
    # stack each weight across layers -> leading layer axis, indexed in-kernel
    enc = jax.tree_util.tree_map(lambda *xs: jnp.stack(xs, axis=0), *enc_layers)
    dec = jax.tree_util.tree_map(lambda *xs: jnp.stack(xs, axis=0), *dec_layers)

    emb = nrm((VOCAB_SIZE, D_MODEL))
    emb = emb.at[PAD_TOKEN_ID].set(0.0)   # padding_idx row is zero

    return {
        "embedding": emb,
        "pos": jnp.ones((1, MAX_SEQ_LEN, D_MODEL), jnp.float32),  # nn.Parameter(torch.ones(...))
        "enc": enc,
        "dec": dec,
        "enc_norm_g": jnp.ones((1, D_MODEL), jnp.float32),
        "enc_norm_b": jnp.zeros((1, D_MODEL), jnp.float32),
        "dec_norm_g": jnp.ones((1, D_MODEL), jnp.float32),
        "dec_norm_b": jnp.zeros((1, D_MODEL), jnp.float32),
        "out_w": nrm((D_MODEL, VOCAB_SIZE)),
        "out_b": nrm((1, VOCAB_SIZE)),
    }


# ----------------------------- main -----------------------------
if __name__ == "__main__":
    B, S = 2, 8

    key = jax.random.PRNGKey(0)
    kp, ki, kl = jax.random.split(key, 3)

    params = init_params(kp)

    input_ids = jax.random.randint(ki, (B, S), 1, VOCAB_SIZE, dtype=jnp.int32)
    labels = jax.random.randint(kl, (B, S), 1, VOCAB_SIZE, dtype=jnp.int32)

    # second sample has 2 padding positions at the end
    attention_mask = jnp.ones((B, S), jnp.int32)
    attention_mask = attention_mask.at[1, -2:].set(0)
    input_ids = jnp.where(attention_mask == 1, input_ids, PAD_TOKEN_ID)

    logits = jax.jit(transformer_forward)(params, input_ids, attention_mask, labels)
    logits = jax.block_until_ready(logits)

    assert logits.shape == (B, S, VOCAB_SIZE)
    assert bool(jnp.all(jnp.isfinite(logits)))
    print("KERNEL_OK")
</pallas_src>

<mosaic_0001>
module attributes {stable_mosaic.version = 11 : i64} {
  func.func @_transformer_kernel(%arg0: memref<16x32xf32, #tpu.memory_space<vmem>>, %arg1: memref<16x32xf32, #tpu.memory_space<vmem>>, %arg2: memref<2x8x8xf32, #tpu.memory_space<vmem>>, %arg3: memref<2x1x96xf32, #tpu.memory_space<vmem>>, %arg4: memref<2x32x96xf32, #tpu.memory_space<vmem>>, %arg5: memref<2x1x32xf32, #tpu.memory_space<vmem>>, %arg6: memref<2x32x32xf32, #tpu.memory_space<vmem>>, %arg7: memref<2x1x64xf32, #tpu.memory_space<vmem>>, %arg8: memref<2x32x64xf32, #tpu.memory_space<vmem>>, %arg9: memref<2x1x32xf32, #tpu.memory_space<vmem>>, %arg10: memref<2x64x32xf32, #tpu.memory_space<vmem>>, %arg11: memref<2x1x32xf32, #tpu.memory_space<vmem>>, %arg12: memref<2x1x32xf32, #tpu.memory_space<vmem>>, %arg13: memref<2x1x32xf32, #tpu.memory_space<vmem>>, %arg14: memref<2x1x32xf32, #tpu.memory_space<vmem>>, %arg15: memref<2x1x32xf32, #tpu.memory_space<vmem>>, %arg16: memref<2x1x32xf32, #tpu.memory_space<vmem>>, %arg17: memref<2x1x96xf32, #tpu.memory_space<vmem>>, %arg18: memref<2x32x96xf32, #tpu.memory_space<vmem>>, %arg19: memref<2x1x32xf32, #tpu.memory_space<vmem>>, %arg20: memref<2x32x32xf32, #tpu.memory_space<vmem>>, %arg21: memref<1x32xf32, #tpu.memory_space<vmem>>, %arg22: memref<1x32xf32, #tpu.memory_space<vmem>>, %arg23: memref<2x1x96xf32, #tpu.memory_space<vmem>>, %arg24: memref<2x32x96xf32, #tpu.memory_space<vmem>>, %arg25: memref<2x1x64xf32, #tpu.memory_space<vmem>>, %arg26: memref<2x32x64xf32, #tpu.memory_space<vmem>>, %arg27: memref<2x1x32xf32, #tpu.memory_space<vmem>>, %arg28: memref<2x64x32xf32, #tpu.memory_space<vmem>>, %arg29: memref<2x1x32xf32, #tpu.memory_space<vmem>>, %arg30: memref<2x1x32xf32, #tpu.memory_space<vmem>>, %arg31: memref<2x1x32xf32, #tpu.memory_space<vmem>>, %arg32: memref<2x1x32xf32, #tpu.memory_space<vmem>>, %arg33: memref<2x1x32xf32, #tpu.memory_space<vmem>>, %arg34: memref<2x32x32xf32, #tpu.memory_space<vmem>>, %arg35: memref<1x32xf32, #tpu.memory_space<vmem>>, %arg36: memref<1x32xf32, #tpu.memory_space<vmem>>, %arg37: memref<1x64xf32, #tpu.memory_space<vmem>>, %arg38: memref<32x64xf32, #tpu.memory_space<vmem>>, %arg39: memref<16x64xf32, #tpu.memory_space<vmem>>) attributes {dimension_semantics = [], scalar_prefetch = 0 : i64, scratch_operands = 0 : i64, tpu.core_type = #tpu.core_type<tc>} {
    %c0 = arith.constant 0 : index
    %c0_0 = arith.constant 0 : index
    %c0_1 = arith.constant 0 : index
    %0 = vector.load %arg2[%c0, %c0_0, %c0_1] : memref<2x8x8xf32, #tpu.memory_space<vmem>>, vector<2x8x8xf32>
    %c0_2 = arith.constant 0 : index
    %c0_3 = arith.constant 0 : index
    %1 = vector.load %arg0[%c0_2, %c0_3] : memref<16x32xf32, #tpu.memory_space<vmem>>, vector<16x32xf32>
    %c0_4 = arith.constant 0 : index
    %c0_5 = arith.constant 0 : index
    %c0_6 = arith.constant 0 : index
    %2 = vector.load %arg24[%c0_4, %c0_5, %c0_6] : memref<2x32x96xf32, #tpu.memory_space<vmem>>, vector<1x32x96xf32>
    %3 = vector.shape_cast %2 : vector<1x32x96xf32> to vector<32x96xf32>
    %c0_7 = arith.constant 0 : index
    %c0_8 = arith.constant 0 : index
    %c0_9 = arith.constant 0 : index
    %4 = vector.load %arg23[%c0_7, %c0_8, %c0_9] : memref<2x1x96xf32, #tpu.memory_space<vmem>>, vector<1x1x96xf32>
    %5 = vector.shape_cast %4 : vector<1x1x96xf32> to vector<1x96xf32>
    %c0_10 = arith.constant 0 : index
    %c0_11 = arith.constant 0 : index
    %c0_12 = arith.constant 0 : index
    %6 = vector.load %arg34[%c0_10, %c0_11, %c0_12] : memref<2x32x32xf32, #tpu.memory_space<vmem>>, vector<1x32x32xf32>
    %7 = vector.shape_cast %6 : vector<1x32x32xf32> to vector<32x32xf32>
    %c0_13 = arith.constant 0 : index
    %c0_14 = arith.constant 0 : index
    %c0_15 = arith.constant 0 : index
    %8 = vector.load %arg33[%c0_13, %c0_14, %c0_15] : memref<2x1x32xf32, #tpu.memory_space<vmem>>, vector<1x1x32xf32>
    %9 = vector.shape_cast %8 : vector<1x1x32xf32> to vector<1x32xf32>
    %cst = arith.constant dense<0.000000e+00> : vector<16x96xf32>
    %10 = tpu.matmul %1, %3, %cst {dimension_numbers = #tpu.dot_dimension_numbers<[1], [0], [0], [1], [0, 0, 1, 1], [], []>} : vector<16x32xf32>, vector<32x96xf32>, vector<16x96xf32> -> vector<16x96xf32>
    %11 = vector.broadcast %5 : vector<1x96xf32> to vector<16x96xf32>
    %12 = arith.addf %10, %11 : vector<16x96xf32>
    %13 = vector.extract_strided_slice %12 {offsets = [0, 0], sizes = [16, 32], strides = [1, 1]} : vector<16x96xf32> to vector<16x32xf32>
    %14 = vector.extract_strided_slice %12 {offsets = [0, 32], sizes = [16, 32], strides = [1, 1]} : vector<16x96xf32> to vector<16x32xf32>
    %15 = vector.extract_strided_slice %12 {offsets = [0, 64], sizes = [16, 32], strides = [1, 1]} : vector<16x96xf32> to vector<16x32xf32>
    %16 = vector.extract_strided_slice %13 {offsets = [0, 0], sizes = [16, 8], strides = [1, 1]} : vector<16x32xf32> to vector<16x8xf32>
    %17 = vector.shape_cast %16 : vector<16x8xf32> to vector<2x8x8xf32>
    %18 = vector.extract_strided_slice %14 {offsets = [0, 0], sizes = [16, 8], strides = [1, 1]} : vector<16x32xf32> to vector<16x8xf32>
    %19 = vector.shape_cast %18 : vector<16x8xf32> to vector<2x8x8xf32>
    %20 = vector.extract_strided_slice %15 {offsets = [0, 0], sizes = [16, 8], strides = [1, 1]} : vector<16x32xf32> to vector<16x8xf32>
    %21 = vector.shape_cast %20 : vector<16x8xf32> to vector<2x8x8xf32>
    "tpu.trace_start"() <{level = 10 : i32, message = "bqd,bkd->bqk"}> : () -> ()
    %cst_16 = arith.constant dense<0.000000e+00> : vector<2x8x8xf32>
    %22 = tpu.matmul %17, %19, %cst_16 {dimension_numbers = #tpu.dot_dimension_numbers<[2], [2], [1], [1], [0, 0, 0, 1, 1, 1], [0], [0]>} : vector<2x8x8xf32>, vector<2x8x8xf32>, vector<2x8x8xf32> -> vector<2x8x8xf32>
    "tpu.trace_stop"() : () -> ()
    %cst_17 = arith.constant 0.353553385 : f32
    %23 = vector.broadcast %cst_17 : f32 to vector<2x8x8xf32>
    %24 = arith.mulf %22, %23 : vector<2x8x8xf32>
    %25 = arith.addf %24, %0 : vector<2x8x8xf32>
    %cst_18 = arith.constant dense<0xFF800000> : vector<2x8xf32>
    %26 = vector.multi_reduction <maximumf>, %25, %cst_18 [2] : vector<2x8x8xf32> to vector<2x8xf32>
    %27 = vector.shape_cast %26 : vector<2x8xf32> to vector<2x8x1xf32>
    %28 = vector.broadcast %27 : vector<2x8x1xf32> to vector<2x8x8xf32>
    %29 = arith.subf %25, %28 : vector<2x8x8xf32>
    %30 = math.exp %29 : vector<2x8x8xf32>
    %cst_19 = arith.constant dense<0.000000e+00> : vector<2x8xf32>
    %31 = vector.multi_reduction <add>, %30, %cst_19 [2] : vector<2x8x8xf32> to vector<2x8xf32>
    %32 = vector.shape_cast %31 : vector<2x8xf32> to vector<2x8x1xf32>
    %33 = tpu.reciprocal %32 {approx = true} : vector<2x8x1xf32> -> vector<2x8x1xf32>
    %34 = vector.broadcast %33 : vector<2x8x1xf32> to vector<2x8x8xf32>
    %35 = arith.mulf %30, %34 : vector<2x8x8xf32>
    "tpu.trace_start"() <{level = 10 : i32, message = "bqk,bkd->bqd"}> : () -> ()
    %cst_20 = arith.constant dense<0.000000e+00> : vector<2x8x8xf32>
    %36 = tpu.matmul %35, %21, %cst_20 {dimension_numbers = #tpu.dot_dimension_numbers<[2], [1], [1], [2], [0, 0, 0, 1, 1, 2], [0], [0]>} : vector<2x8x8xf32>, vector<2x8x8xf32>, vector<2x8x8xf32> -> vector<2x8x8xf32>
    "tpu.trace_stop"() : () -> ()
    %37 = vector.shape_cast %36 : vector<2x8x8xf32> to vector<16x8xf32>
    %38 = vector.extract_strided_slice %7 {offsets = [0, 0], sizes = [8, 32], strides = [1, 1]} : vector<32x32xf32> to vector<8x32xf32>
    %cst_21 = arith.constant dense<0.000000e+00> : vector<16x32xf32>
    %39 = tpu.matmul %37, %38, %cst_21 {dimension_numbers = #tpu.dot_dimension_numbers<[1], [0], [0], [1], [0, 0, 1, 1], [], []>} : vector<16x8xf32>, vector<8x32xf32>, vector<16x32xf32> -> vector<16x32xf32>
    %40 = vector.extract_strided_slice %13 {offsets = [0, 8], sizes = [16, 8], strides = [1, 1]} : vector<16x32xf32> to vector<16x8xf32>
    %41 = vector.shape_cast %40 : vector<16x8xf32> to vector<2x8x8xf32>
    %42 = vector.extract_strided_slice %14 {offsets = [0, 8], sizes = [16, 8], strides = [1, 1]} : vector<16x32xf32> to vector<16x8xf32>
    %43 = vector.shape_cast %42 : vector<16x8xf32> to vector<2x8x8xf32>
    %44 = vector.extract_strided_slice %15 {offsets = [0, 8], sizes = [16, 8], strides = [1, 1]} : vector<16x32xf32> to vector<16x8xf32>
    %45 = vector.shape_cast %44 : vector<16x8xf32> to vector<2x8x8xf32>
    "tpu.trace_start"() <{level = 10 : i32, message = "bqd,bkd->bqk"}> : () -> ()
    %cst_22 = arith.constant dense<0.000000e+00> : vector<2x8x8xf32>
    %46 = tpu.matmul %41, %43, %cst_22 {dimension_numbers = #tpu.dot_dimension_numbers<[2], [2], [1], [1], [0, 0, 0, 1, 1, 1], [0], [0]>} : vector<2x8x8xf32>, vector<2x8x8xf32>, vector<2x8x8xf32> -> vector<2x8x8xf32>
    "tpu.trace_stop"() : () -> ()
    %cst_23 = arith.constant 0.353553385 : f32
    %47 = vector.broadcast %cst_23 : f32 to vector<2x8x8xf32>
    %48 = arith.mulf %46, %47 : vector<2x8x8xf32>
    %49 = arith.addf %48, %0 : vector<2x8x8xf32>
    %cst_24 = arith.constant dense<0xFF800000> : vector<2x8xf32>
    %50 = vector.multi_reduction <maximumf>, %49, %cst_24 [2] : vector<2x8x8xf32> to vector<2x8xf32>
    %51 = vector.shape_cast %50 : vector<2x8xf32> to vector<2x8x1xf32>
    %52 = vector.broadcast %51 : vector<2x8x1xf32> to vector<2x8x8xf32>
    %53 = arith.subf %49, %52 : vector<2x8x8xf32>
    %54 = math.exp %53 : vector<2x8x8xf32>
    %cst_25 = arith.constant dense<0.000000e+00> : vector<2x8xf32>
    %55 = vector.multi_reduction <add>, %54, %cst_25 [2] : vector<2x8x8xf32> to vector<2x8xf32>
    %56 = vector.shape_cast %55 : vector<2x8xf32> to vector<2x8x1xf32>
    %57 = tpu.reciprocal %56 {approx = true} : vector<2x8x1xf32> -> vector<2x8x1xf32>
    %58 = vector.broadcast %57 : vector<2x8x1xf32> to vector<2x8x8xf32>
    %59 = arith.mulf %54, %58 : vector<2x8x8xf32>
    "tpu.trace_start"() <{level = 10 : i32, message = "bqk,bkd->bqd"}> : () -> ()
    %cst_26 = arith.constant dense<0.000000e+00> : vector<2x8x8xf32>
    %60 = tpu.matmul %59, %45, %cst_26 {dimension_numbers = #tpu.dot_dimension_numbers<[2], [1], [1], [2], [0, 0, 0, 1, 1, 2], [0], [0]>} : vector<2x8x8xf32>, vector<2x8x8xf32>, vector<2x8x8xf32> -> vector<2x8x8xf32>
    "tpu.trace_stop"() : () -> ()
    %61 = vector.shape_cast %60 : vector<2x8x8xf32> to vector<16x8xf32>
    %62 = vector.extract_strided_slice %7 {offsets = [8, 0], sizes = [8, 32], strides = [1, 1]} : vector<32x32xf32> to vector<8x32xf32>
    %cst_27 = arith.constant dense<0.000000e+00> : vector<16x32xf32>
    %63 = tpu.matmul %61, %62, %cst_27 {dimension_numbers = #tpu.dot_dimension_numbers<[1], [0], [0], [1], [0, 0, 1, 1], [], []>} : vector<16x8xf32>, vector<8x32xf32>, vector<16x32xf32> -> vector<16x32xf32>
    %64 = arith.addf %39, %63 : vector<16x32xf32>
    %65 = vector.extract_strided_slice %13 {offsets = [0, 16], sizes = [16, 8], strides = [1, 1]} : vector<16x32xf32> to vector<16x8xf32>
    %66 = vector.shape_cast %65 : vector<16x8xf32> to vector<2x8x8xf32>
    %67 = vector.extract_strided_slice %14 {offsets = [0, 16], sizes = [16, 8], strides = [1, 1]} : vector<16x32xf32> to vector<16x8xf32>
    %68 = vector.shape_cast %67 : vector<16x8xf32> to vector<2x8x8xf32>
    %69 = vector.extract_strided_slice %15 {offsets = [0, 16], sizes = [16, 8], strides = [1, 1]} : vector<16x32xf32> to vector<16x8xf32>
    %70 = vector.shape_cast %69 : vector<16x8xf32> to vector<2x8x8xf32>
    "tpu.trace_start"() <{level = 10 : i32, message = "bqd,bkd->bqk"}> : () -> ()
    %cst_28 = arith.constant dense<0.000000e+00> : vector<2x8x8xf32>
    %71 = tpu.matmul %66, %68, %cst_28 {dimension_numbers = #tpu.dot_dimension_numbers<[2], [2], [1], [1], [0, 0, 0, 1, 1, 1], [0], [0]>} : vector<2x8x8xf32>, vector<2x8x8xf32>, vector<2x8x8xf32> -> vector<2x8x8xf32>
    "tpu.trace_stop"() : () -> ()
    %cst_29 = arith.constant 0.353553385 : f32
    %72 = vector.broadcast %cst_29 : f32 to vector<2x8x8xf32>
    %73 = arith.mulf %71, %72 : vector<2x8x8xf32>
    %74 = arith.addf %73, %0 : vector<2x8x8xf32>
    %cst_30 = arith.constant dense<0xFF800000> : vector<2x8xf32>
    %75 = vector.multi_reduction <maximumf>, %74, %cst_30 [2] : vector<2x8x8xf32> to vector<2x8xf32>
    %76 = vector.shape_cast %75 : vector<2x8xf32> to vector<2x8x1xf32>
    %77 = vector.broadcast %76 : vector<2x8x1xf32> to vector<2x8x8xf32>
    %78 = arith.subf %74, %77 : vector<2x8x8xf32>
    %79 = math.exp %78 : vector<2x8x8xf32>
    %cst_31 = arith.constant dense<0.000000e+00> : vector<2x8xf32>
    %80 = vector.multi_reduction <add>, %79, %cst_31 [2] : vector<2x8x8xf32> to vector<2x8xf32>
    %81 = vector.shape_cast %80 : vector<2x8xf32> to vector<2x8x1xf32>
    %82 = tpu.reciprocal %81 {approx = true} : vector<2x8x1xf32> -> vector<2x8x1xf32>
    %83 = vector.broadcast %82 : vector<2x8x1xf32> to vector<2x8x8xf32>
    %84 = arith.mulf %79, %83 : vector<2x8x8xf32>
    "tpu.trace_start"() <{level = 10 : i32, message = "bqk,bkd->bqd"}> : () -> ()
    %cst_32 = arith.constant dense<0.000000e+00> : vector<2x8x8xf32>
    %85 = tpu.matmul %84, %70, %cst_32 {dimension_numbers = #tpu.dot_dimension_numbers<[2], [1], [1], [2], [0, 0, 0, 1, 1, 2], [0], [0]>} : vector<2x8x8xf32>, vector<2x8x8xf32>, vector<2x8x8xf32> -> vector<2x8x8xf32>
    "tpu.trace_stop"() : () -> ()
    %86 = vector.shape_cast %85 : vector<2x8x8xf32> to vector<16x8xf32>
    %87 = vector.extract_strided_slice %7 {offsets = [16, 0], sizes = [8, 32], strides = [1, 1]} : vector<32x32xf32> to vector<8x32xf32>
    %cst_33 = arith.constant dense<0.000000e+00> : vector<16x32xf32>
    %88 = tpu.matmul %86, %87, %cst_33 {dimension_numbers = #tpu.dot_dimension_numbers<[1], [0], [0], [1], [0, 0, 1, 1], [], []>} : vector<16x8xf32>, vector<8x32xf32>, vector<16x32xf32> -> vector<16x32xf32>
    %89 = arith.addf %64, %88 : vector<16x32xf32>
    %90 = vector.extract_strided_slice %13 {offsets = [0, 24], sizes = [16, 8], strides = [1, 1]} : vector<16x32xf32> to vector<16x8xf32>
    %91 = vector.shape_cast %90 : vector<16x8xf32> to vector<2x8x8xf32>
    %92 = vector.extract_strided_slice %14 {offsets = [0, 24], sizes = [16, 8], strides = [1, 1]} : vector<16x32xf32> to vector<16x8xf32>
    %93 = vector.shape_cast %92 : vector<16x8xf32> to vector<2x8x8xf32>
    %94 = vector.extract_strided_slice %15 {offsets = [0, 24], sizes = [16, 8], strides = [1, 1]} : vector<16x32xf32> to vector<16x8xf32>
    %95 = vector.shape_cast %94 : vector<16x8xf32> to vector<2x8x8xf32>
    "tpu.trace_start"() <{level = 10 : i32, message = "bqd,bkd->bqk"}> : () -> ()
    %cst_34 = arith.constant dense<0.000000e+00> : vector<2x8x8xf32>
    %96 = tpu.matmul %91, %93, %cst_34 {dimension_numbers = #tpu.dot_dimension_numbers<[2], [2], [1], [1], [0, 0, 0, 1, 1, 1], [0], [0]>} : vector<2x8x8xf32>, vector<2x8x8xf32>, vector<2x8x8xf32> -> vector<2x8x8xf32>
    "tpu.trace_stop"() : () -> ()
    %cst_35 = arith.constant 0.353553385 : f32
    %97 = vector.broadcast %cst_35 : f32 to vector<2x8x8xf32>
    %98 = arith.mulf %96, %97 : vector<2x8x8xf32>
    %99 = arith.addf %98, %0 : vector<2x8x8xf32>
    %cst_36 = arith.constant dense<0xFF800000> : vector<2x8xf32>
    %100 = vector.multi_reduction <maximumf>, %99, %cst_36 [2] : vector<2x8x8xf32> to vector<2x8xf32>
    %101 = vector.shape_cast %100 : vector<2x8xf32> to vector<2x8x1xf32>
    %102 = vector.broadcast %101 : vector<2x8x1xf32> to vector<2x8x8xf32>
    %103 = arith.subf %99, %102 : vector<2x8x8xf32>
    %104 = math.exp %103 : vector<2x8x8xf32>
    %cst_37 = arith.constant dense<0.000000e+00> : vector<2x8xf32>
    %105 = vector.multi_reduction <add>, %104, %cst_37 [2] : vector<2x8x8xf32> to vector<2x8xf32>
    %106 = vector.shape_cast %105 : vector<2x8xf32> to vector<2x8x1xf32>
    %107 = tpu.reciprocal %106 {approx = true} : vector<2x8x1xf32> -> vector<2x8x1xf32>
    %108 = vector.broadcast %107 : vector<2x8x1xf32> to vector<2x8x8xf32>
    %109 = arith.mulf %104, %108 : vector<2x8x8xf32>
    "tpu.trace_start"() <{level = 10 : i32, message = "bqk,bkd->bqd"}> : () -> ()
    %cst_38 = arith.constant dense<0.000000e+00> : vector<2x8x8xf32>
    %110 = tpu.matmul %109, %95, %cst_38 {dimension_numbers = #tpu.dot_dimension_numbers<[2], [1], [1], [2], [0, 0, 0, 1, 1, 2], [0], [0]>} : vector<2x8x8xf32>, vector<2x8x8xf32>, vector<2x8x8xf32> -> vector<2x8x8xf32>
    "tpu.trace_stop"() : () -> ()
    %111 = vector.shape_cast %110 : vector<2x8x8xf32> to vector<16x8xf32>
    %112 = vector.extract_strided_slice %7 {offsets = [24, 0], sizes = [8, 32], strides = [1, 1]} : vector<32x32xf32> to vector<8x32xf32>
    %cst_39 = arith.constant dense<0.000000e+00> : vector<16x32xf32>
    %113 = tpu.matmul %111, %112, %cst_39 {dimension_numbers = #tpu.dot_dimension_numbers<[1], [0], [0], [1], [0, 0, 1, 1], [], []>} : vector<16x8xf32>, vector<8x32xf32>, vector<16x32xf32> -> vector<16x32xf32>
    %114 = arith.addf %89, %113 : vector<16x32xf32>
    %115 = vector.broadcast %9 : vector<1x32xf32> to vector<16x32xf32>
    %116 = arith.addf %114, %115 : vector<16x32xf32>
    %117 = arith.addf %1, %116 : vector<16x32xf32>
    %c0_40 = arith.constant 0 : index
    %c0_41 = arith.constant 0 : index
    %c0_42 = arith.constant 0 : index
    %118 = vector.load %arg30[%c0_40, %c0_41, %c0_42] : memref<2x1x32xf32, #tpu.memory_space<vmem>>, vector<1x1x32xf32>
    %119 = vector.shape_cast %118 : vector<1x1x32xf32> to vector<1x32xf32>
    %c0_43 = arith.constant 0 : index
    %c0_44 = arith.constant 0 : index
    %c0_45 = arith.constant 0 : index
    %120 = vector.load %arg29[%c0_43, %c0_44, %c0_45] : memref<2x1x32xf32, #tpu.memory_space<vmem>>, vector<1x1x32xf32>
    %121 = vector.shape_cast %120 : vector<1x1x32xf32> to vector<1x32xf32>
    %cst_46 = arith.constant dense<0.000000e+00> : vector<16xf32>
    %122 = vector.multi_reduction <add>, %117, %cst_46 [1] : vector<16x32xf32> to vector<16xf32>
    %123 = vector.shape_cast %122 : vector<16xf32> to vector<16x1xf32>
    %cst_47 = arith.constant 3.200000e+01 : f32
    %124 = vector.broadcast %cst_47 : f32 to vector<16x1xf32>
    %125 = arith.divf %123, %124 : vector<16x1xf32>
    %126 = vector.broadcast %125 : vector<16x1xf32> to vector<16x32xf32>
    %127 = arith.subf %117, %126 : vector<16x32xf32>
    %128 = arith.mulf %127, %127 : vector<16x32xf32>
    %cst_48 = arith.constant dense<0.000000e+00> : vector<16xf32>
    %129 = vector.multi_reduction <add>, %128, %cst_48 [1] : vector<16x32xf32> to vector<16xf32>
    %130 = vector.shape_cast %129 : vector<16xf32> to vector<16x1xf32>
    %cst_49 = arith.constant 3.200000e+01 : f32
    %131 = vector.broadcast %cst_49 : f32 to vector<16x1xf32>
    %132 = arith.divf %130, %131 : vector<16x1xf32>
    %cst_50 = arith.constant 9.99999974E-6 : f32
    %133 = vector.broadcast %cst_50 : f32 to vector<16x1xf32>
    %134 = arith.addf %132, %133 : vector<16x1xf32>
    %135 = math.rsqrt %134 : vector<16x1xf32>
    %136 = vector.broadcast %135 : vector<16x1xf32> to vector<16x32xf32>
    %137 = arith.mulf %127, %136 : vector<16x32xf32>
    %138 = vector.broadcast %119 : vector<1x32xf32> to vector<16x32xf32>
    %139 = arith.mulf %137, %138 : vector<16x32xf32>
    %140 = vector.broadcast %121 : vector<1x32xf32> to vector<16x32xf32>
    %141 = arith.addf %139, %140 : vector<16x32xf32>
    %c0_51 = arith.constant 0 : index
    %c0_52 = arith.constant 0 : index
    %c0_53 = arith.constant 0 : index
    %142 = vector.load %arg26[%c0_51, %c0_52, %c0_53] : memref<2x32x64xf32, #tpu.memory_space<vmem>>, vector<1x32x64xf32>
    %143 = vector.shape_cast %142 : vector<1x32x64xf32> to vector<32x64xf32>
    %c0_54 = arith.constant 0 : index
    %c0_55 = arith.constant 0 : index
    %c0_56 = arith.constant 0 : index
    %144 = vector.load %arg25[%c0_54, %c0_55, %c0_56] : memref<2x1x64xf32, #tpu.memory_space<vmem>>, vector<1x1x64xf32>
    %145 = vector.shape_cast %144 : vector<1x1x64xf32> to vector<1x64xf32>
    %c0_57 = arith.constant 0 : index
    %c0_58 = arith.constant 0 : index
    %c0_59 = arith.constant 0 : index
    %146 = vector.load %arg28[%c0_57, %c0_58, %c0_59] : memref<2x64x32xf32, #tpu.memory_space<vmem>>, vector<1x64x32xf32>
    %147 = vector.shape_cast %146 : vector<1x64x32xf32> to vector<64x32xf32>
    %c0_60 = arith.constant 0 : index
    %c0_61 = arith.constant 0 : index
    %c0_62 = arith.constant 0 : index
    %148 = vector.load %arg27[%c0_60, %c0_61, %c0_62] : memref<2x1x32xf32, #tpu.memory_space<vmem>>, vector<1x1x32xf32>
    %149 = vector.shape_cast %148 : vector<1x1x32xf32> to vector<1x32xf32>
    %cst_63 = arith.constant dense<0.000000e+00> : vector<16x64xf32>
    %150 = tpu.matmul %141, %143, %cst_63 {dimension_numbers = #tpu.dot_dimension_numbers<[1], [0], [0], [1], [0, 0, 1, 1], [], []>} : vector<16x32xf32>, vector<32x64xf32>, vector<16x64xf32> -> vector<16x64xf32>
    %151 = vector.broadcast %145 : vector<1x64xf32> to vector<16x64xf32>
    %152 = arith.addf %150, %151 : vector<16x64xf32>
    %cst_64 = arith.constant 0.000000e+00 : f32
    %153 = vector.broadcast %cst_64 : f32 to vector<16x64xf32>
    %154 = arith.maximumf %152, %153 : vector<16x64xf32>
    %cst_65 = arith.constant dense<0.000000e+00> : vector<16x32xf32>
    %155 = tpu.matmul %154, %147, %cst_65 {dimension_numbers = #tpu.dot_dimension_numbers<[1], [0], [0], [1], [0, 0, 1, 1], [], []>} : vector<16x64xf32>, vector<64x32xf32>, vector<16x32xf32> -> vector<16x32xf32>
    %156 = vector.broadcast %149 : vector<1x32xf32> to vector<16x32xf32>
    %157 = arith.addf %155, %156 : vector<16x32xf32>
    %158 = arith.addf %141, %157 : vector<16x32xf32>
    %c0_66 = arith.constant 0 : index
    %c0_67 = arith.constant 0 : index
    %c0_68 = arith.constant 0 : index
    %159 = vector.load %arg32[%c0_66, %c0_67, %c0_68] : memref<2x1x32xf32, #tpu.memory_space<vmem>>, vector<1x1x32xf32>
    %160 = vector.shape_cast %159 : vector<1x1x32xf32> to vector<1x32xf32>
    %c0_69 = arith.constant 0 : index
    %c0_70 = arith.constant 0 : index
    %c0_71 = arith.constant 0 : index
    %161 = vector.load %arg31[%c0_69, %c0_70, %c0_71] : memref<2x1x32xf32, #tpu.memory_space<vmem>>, vector<1x1x32xf32>
    %162 = vector.shape_cast %161 : vector<1x1x32xf32> to vector<1x32xf32>
    %cst_72 = arith.constant dense<0.000000e+00> : vector<16xf32>
    %163 = vector.multi_reduction <add>, %158, %cst_72 [1] : vector<16x32xf32> to vector<16xf32>
    %164 = vector.shape_cast %163 : vector<16xf32> to vector<16x1xf32>
    %cst_73 = arith.constant 3.200000e+01 : f32
    %165 = vector.broadcast %cst_73 : f32 to vector<16x1xf32>
    %166 = arith.divf %164, %165 : vector<16x1xf32>
    %167 = vector.broadcast %166 : vector<16x1xf32> to vector<16x32xf32>
    %168 = arith.subf %158, %167 : vector<16x32xf32>
    %169 = arith.mulf %168, %168 : vector<16x32xf32>
    %cst_74 = arith.constant dense<0.000000e+00> : vector<16xf32>
    %170 = vector.multi_reduction <add>, %169, %cst_74 [1] : vector<16x32xf32> to vector<16xf32>
    %171 = vector.shape_cast %170 : vector<16xf32> to vector<16x1xf32>
    %cst_75 = arith.constant 3.200000e+01 : f32
    %172 = vector.broadcast %cst_75 : f32 to vector<16x1xf32>
    %173 = arith.divf %171, %172 : vector<16x1xf32>
    %cst_76 = arith.constant 9.99999974E-6 : f32
    %174 = vector.broadcast %cst_76 : f32 to vector<16x1xf32>
    %175 = arith.addf %173, %174 : vector<16x1xf32>
    %176 = math.rsqrt %175 : vector<16x1xf32>
    %177 = vector.broadcast %176 : vector<16x1xf32> to vector<16x32xf32>
    %178 = arith.mulf %168, %177 : vector<16x32xf32>
    %179 = vector.broadcast %160 : vector<1x32xf32> to vector<16x32xf32>
    %180 = arith.mulf %178, %179 : vector<16x32xf32>
    %181 = vector.broadcast %162 : vector<1x32xf32> to vector<16x32xf32>
    %182 = arith.addf %180, %181 : vector<16x32xf32>
    %c1 = arith.constant 1 : index
    %c0_77 = arith.constant 0 : index
    %c0_78 = arith.constant 0 : index
    %183 = vector.load %arg24[%c1, %c0_77, %c0_78] : memref<2x32x96xf32, #tpu.memory_space<vmem>>, vector<1x32x96xf32>
    %184 = vector.shape_cast %183 : vector<1x32x96xf32> to vector<32x96xf32>
    %c1_79 = arith.constant 1 : index
    %c0_80 = arith.constant 0 : index
    %c0_81 = arith.constant 0 : index
    %185 = vector.load %arg23[%c1_79, %c0_80, %c0_81] : memref<2x1x96xf32, #tpu.memory_space<vmem>>, vector<1x1x96xf32>
    %186 = vector.shape_cast %185 : vector<1x1x96xf32> to vector<1x96xf32>
    %c1_82 = arith.constant 1 : index
    %c0_83 = arith.constant 0 : index
    %c0_84 = arith.constant 0 : index
    %187 = vector.load %arg34[%c1_82, %c0_83, %c0_84] : memref<2x32x32xf32, #tpu.memory_space<vmem>>, vector<1x32x32xf32>
    %188 = vector.shape_cast %187 : vector<1x32x32xf32> to vector<32x32xf32>
    %c1_85 = arith.constant 1 : index
    %c0_86 = arith.constant 0 : index
    %c0_87 = arith.constant 0 : index
    %189 = vector.load %arg33[%c1_85, %c0_86, %c0_87] : memref<2x1x32xf32, #tpu.memory_space<vmem>>, vector<1x1x32xf32>
    %190 = vector.shape_cast %189 : vector<1x1x32xf32> to vector<1x32xf32>
    %cst_88 = arith.constant dense<0.000000e+00> : vector<16x96xf32>
    %191 = tpu.matmul %182, %184, %cst_88 {dimension_numbers = #tpu.dot_dimension_numbers<[1], [0], [0], [1], [0, 0, 1, 1], [], []>} : vector<16x32xf32>, vector<32x96xf32>, vector<16x96xf32> -> vector<16x96xf32>
    %192 = vector.broadcast %186 : vector<1x96xf32> to vector<16x96xf32>
    %193 = arith.addf %191, %192 : vector<16x96xf32>
    %194 = vector.extract_strided_slice %193 {offsets = [0, 0], sizes = [16, 32], strides = [1, 1]} : vector<16x96xf32> to vector<16x32xf32>
    %195 = vector.extract_strided_slice %193 {offsets = [0, 32], sizes = [16, 32], strides = [1, 1]} : vector<16x96xf32> to vector<16x32xf32>
    %196 = vector.extract_strided_slice %193 {offsets = [0, 64], sizes = [16, 32], strides = [1, 1]} : vector<16x96xf32> to vector<16x32xf32>
    %197 = vector.extract_strided_slice %194 {offsets = [0, 0], sizes = [16, 8], strides = [1, 1]} : vector<16x32xf32> to vector<16x8xf32>
    %198 = vector.shape_cast %197 : vector<16x8xf32> to vector<2x8x8xf32>
    %199 = vector.extract_strided_slice %195 {offsets = [0, 0], sizes = [16, 8], strides = [1, 1]} : vector<16x32xf32> to vector<16x8xf32>
    %200 = vector.shape_cast %199 : vector<16x8xf32> to vector<2x8x8xf32>
    %201 = vector.extract_strided_slice %196 {offsets = [0, 0], sizes = [16, 8], strides = [1, 1]} : vector<16x32xf32> to vector<16x8xf32>
    %202 = vector.shape_cast %201 : vector<16x8xf32> to vector<2x8x8xf32>
    "tpu.trace_start"() <{level = 10 : i32, message = "bqd,bkd->bqk"}> : () -> ()
    %cst_89 = arith.constant dense<0.000000e+00> : vector<2x8x8xf32>
    %203 = tpu.matmul %198, %200, %cst_89 {dimension_numbers = #tpu.dot_dimension_numbers<[2], [2], [1], [1], [0, 0, 0, 1, 1, 1], [0], [0]>} : vector<2x8x8xf32>, vector<2x8x8xf32>, vector<2x8x8xf32> -> vector<2x8x8xf32>
    "tpu.trace_stop"() : () -> ()
    %cst_90 = arith.constant 0.353553385 : f32
    %204 = vector.broadcast %cst_90 : f32 to vector<2x8x8xf32>
    %205 = arith.mulf %203, %204 : vector<2x8x8xf32>
    %206 = arith.addf %205, %0 : vector<2x8x8xf32>
    %cst_91 = arith.constant dense<0xFF800000> : vector<2x8xf32>
    %207 = vector.multi_reduction <maximumf>, %206, %cst_91 [2] : vector<2x8x8xf32> to vector<2x8xf32>
    %208 = vector.shape_cast %207 : vector<2x8xf32> to vector<2x8x1xf32>
    %209 = vector.broadcast %208 : vector<2x8x1xf32> to vector<2x8x8xf32>
    %210 = arith.subf %206, %209 : vector<2x8x8xf32>
    %211 = math.exp %210 : vector<2x8x8xf32>
    %cst_92 = arith.constant dense<0.000000e+00> : vector<2x8xf32>
    %212 = vector.multi_reduction <add>, %211, %cst_92 [2] : vector<2x8x8xf32> to vector<2x8xf32>
    %213 = vector.shape_cast %212 : vector<2x8xf32> to vector<2x8x1xf32>
    %214 = tpu.reciprocal %213 {approx = true} : vector<2x8x1xf32> -> vector<2x8x1xf32>
    %215 = vector.broadcast %214 : vector<2x8x1xf32> to vector<2x8x8xf32>
    %216 = arith.mulf %211, %215 : vector<2x8x8xf32>
    "tpu.trace_start"() <{level = 10 : i32, message = "bqk,bkd->bqd"}> : () -> ()
    %cst_93 = arith.constant dense<0.000000e+00> : vector<2x8x8xf32>
    %217 = tpu.matmul %216, %202, %cst_93 {dimension_numbers = #tpu.dot_dimension_numbers<[2], [1], [1], [2], [0, 0, 0, 1, 1, 2], [0], [0]>} : vector<2x8x8xf32>, vector<2x8x8xf32>, vector<2x8x8xf32> -> vector<2x8x8xf32>
    "tpu.trace_stop"() : () -> ()
    %218 = vector.shape_cast %217 : vector<2x8x8xf32> to vector<16x8xf32>
    %219 = vector.extract_strided_slice %188 {offsets = [0, 0], sizes = [8, 32], strides = [1, 1]} : vector<32x32xf32> to vector<8x32xf32>
    %cst_94 = arith.constant dense<0.000000e+00> : vector<16x32xf32>
    %220 = tpu.matmul %218, %219, %cst_94 {dimension_numbers = #tpu.dot_dimension_numbers<[1], [0], [0], [1], [0, 0, 1, 1], [], []>} : vector<16x8xf32>, vector<8x32xf32>, vector<16x32xf32> -> vector<16x32xf32>
    %221 = vector.extract_strided_slice %194 {offsets = [0, 8], sizes = [16, 8], strides = [1, 1]} : vector<16x32xf32> to vector<16x8xf32>
    %222 = vector.shape_cast %221 : vector<16x8xf32> to vector<2x8x8xf32>
    %223 = vector.extract_strided_slice %195 {offsets = [0, 8], sizes = [16, 8], strides = [1, 1]} : vector<16x32xf32> to vector<16x8xf32>
    %224 = vector.shape_cast %223 : vector<16x8xf32> to vector<2x8x8xf32>
    %225 = vector.extract_strided_slice %196 {offsets = [0, 8], sizes = [16, 8], strides = [1, 1]} : vector<16x32xf32> to vector<16x8xf32>
    %226 = vector.shape_cast %225 : vector<16x8xf32> to vector<2x8x8xf32>
    "tpu.trace_start"() <{level = 10 : i32, message = "bqd,bkd->bqk"}> : () -> ()
    %cst_95 = arith.constant dense<0.000000e+00> : vector<2x8x8xf32>
    %227 = tpu.matmul %222, %224, %cst_95 {dimension_numbers = #tpu.dot_dimension_numbers<[2], [2], [1], [1], [0, 0, 0, 1, 1, 1], [0], [0]>} : vector<2x8x8xf32>, vector<2x8x8xf32>, vector<2x8x8xf32> -> vector<2x8x8xf32>
    "tpu.trace_stop"() : () -> ()
    %cst_96 = arith.constant 0.353553385 : f32
    %228 = vector.broadcast %cst_96 : f32 to vector<2x8x8xf32>
    %229 = arith.mulf %227, %228 : vector<2x8x8xf32>
    %230 = arith.addf %229, %0 : vector<2x8x8xf32>
    %cst_97 = arith.constant dense<0xFF800000> : vector<2x8xf32>
    %231 = vector.multi_reduction <maximumf>, %230, %cst_97 [2] : vector<2x8x8xf32> to vector<2x8xf32>
    %232 = vector.shape_cast %231 : vector<2x8xf32> to vector<2x8x1xf32>
    %233 = vector.broadcast %232 : vector<2x8x1xf32> to vector<2x8x8xf32>
    %234 = arith.subf %230, %233 : vector<2x8x8xf32>
    %235 = math.exp %234 : vector<2x8x8xf32>
    %cst_98 = arith.constant dense<0.000000e+00> : vector<2x8xf32>
    %236 = vector.multi_reduction <add>, %235, %cst_98 [2] : vector<2x8x8xf32> to vector<2x8xf32>
    %237 = vector.shape_cast %236 : vector<2x8xf32> to vector<2x8x1xf32>
    %238 = tpu.reciprocal %237 {approx = true} : vector<2x8x1xf32> -> vector<2x8x1xf32>
    %239 = vector.broadcast %238 : vector<2x8x1xf32> to vector<2x8x8xf32>
    %240 = arith.mulf %235, %239 : vector<2x8x8xf32>
    "tpu.trace_start"() <{level = 10 : i32, message = "bqk,bkd->bqd"}> : () -> ()
    %cst_99 = arith.constant dense<0.000000e+00> : vector<2x8x8xf32>
    %241 = tpu.matmul %240, %226, %cst_99 {dimension_numbers = #tpu.dot_dimension_numbers<[2], [1], [1], [2], [0, 0, 0, 1, 1, 2], [0], [0]>} : vector<2x8x8xf32>, vector<2x8x8xf32>, vector<2x8x8xf32> -> vector<2x8x8xf32>
    "tpu.trace_stop"() : () -> ()
    %242 = vector.shape_cast %241 : vector<2x8x8xf32> to vector<16x8xf32>
    %243 = vector.extract_strided_slice %188 {offsets = [8, 0], sizes = [8, 32], strides = [1, 1]} : vector<32x32xf32> to vector<8x32xf32>
    %cst_100 = arith.constant dense<0.000000e+00> : vector<16x32xf32>
    %244 = tpu.matmul %242, %243, %cst_100 {dimension_numbers = #tpu.dot_dimension_numbers<[1], [0], [0], [1], [0, 0, 1, 1], [], []>} : vector<16x8xf32>, vector<8x32xf32>, vector<16x32xf32> -> vector<16x32xf32>
    %245 = arith.addf %220, %244 : vector<16x32xf32>
    %246 = vector.extract_strided_slice %194 {offsets = [0, 16], sizes = [16, 8], strides = [1, 1]} : vector<16x32xf32> to vector<16x8xf32>
    %247 = vector.shape_cast %246 : vector<16x8xf32> to vector<2x8x8xf32>
    %248 = vector.extract_strided_slice %195 {offsets = [0, 16], sizes = [16, 8], strides = [1, 1]} : vector<16x32xf32> to vector<16x8xf32>
    %249 = vector.shape_cast %248 : vector<16x8xf32> to vector<2x8x8xf32>
    %250 = vector.extract_strided_slice %196 {offsets = [0, 16], sizes = [16, 8], strides = [1, 1]} : vector<16x32xf32> to vector<16x8xf32>
    %251 = vector.shape_cast %250 : vector<16x8xf32> to vector<2x8x8xf32>
    "tpu.trace_start"() <{level = 10 : i32, message = "bqd,bkd->bqk"}> : () -> ()
    %cst_101 = arith.constant dense<0.000000e+00> : vector<2x8x8xf32>
    %252 = tpu.matmul %247, %249, %cst_101 {dimension_numbers = #tpu.dot_dimension_numbers<[2], [2], [1], [1], [0, 0, 0, 1, 1, 1], [0], [0]>} : vector<2x8x8xf32>, vector<2x8x8xf32>, vector<2x8x8xf32> -> vector<2x8x8xf32>
    "tpu.trace_stop"() : () -> ()
    %cst_102 = arith.constant 0.353553385 : f32
    %253 = vector.broadcast %cst_102 : f32 to vector<2x8x8xf32>
    %254 = arith.mulf %252, %253 : vector<2x8x8xf32>
    %255 = arith.addf %254, %0 : vector<2x8x8xf32>
    %cst_103 = arith.constant dense<0xFF800000> : vector<2x8xf32>
    %256 = vector.multi_reduction <maximumf>, %255, %cst_103 [2] : vector<2x8x8xf32> to vector<2x8xf32>
    %257 = vector.shape_cast %256 : vector<2x8xf32> to vector<2x8x1xf32>
    %258 = vector.broadcast %257 : vector<2x8x1xf32> to vector<2x8x8xf32>
    %259 = arith.subf %255, %258 : vector<2x8x8xf32>
    %260 = math.exp %259 : vector<2x8x8xf32>
    %cst_104 = arith.constant dense<0.000000e+00> : vector<2x8xf32>
    %261 = vector.multi_reduction <add>, %260, %cst_104 [2] : vector<2x8x8xf32> to vector<2x8xf32>
    %262 = vector.shape_cast %261 : vector<2x8xf32> to vector<2x8x1xf32>
    %263 = tpu.reciprocal %262 {approx = true} : vector<2x8x1xf32> -> vector<2x8x1xf32>
    %264 = vector.broadcast %263 : vector<2x8x1xf32> to vector<2x8x8xf32>
    %265 = arith.mulf %260, %264 : vector<2x8x8xf32>
    "tpu.trace_start"() <{level = 10 : i32, message = "bqk,bkd->bqd"}> : () -> ()
    %cst_105 = arith.constant dense<0.000000e+00> : vector<2x8x8xf32>
    %266 = tpu.matmul %265, %251, %cst_105 {dimension_numbers = #tpu.dot_dimension_numbers<[2], [1], [1], [2], [0, 0, 0, 1, 1, 2], [0], [0]>} : vector<2x8x8xf32>, vector<2x8x8xf32>, vector<2x8x8xf32> -> vector<2x8x8xf32>
    "tpu.trace_stop"() : () -> ()
    %267 = vector.shape_cast %266 : vector<2x8x8xf32> to vector<16x8xf32>
    %268 = vector.extract_strided_slice %188 {offsets = [16, 0], sizes = [8, 32], strides = [1, 1]} : vector<32x32xf32> to vector<8x32xf32>
    %cst_106 = arith.constant dense<0.000000e+00> : vector<16x32xf32>
    %269 = tpu.matmul %267, %268, %cst_106 {dimension_numbers = #tpu.dot_dimension_numbers<[1], [0], [0], [1], [0, 0, 1, 1], [], []>} : vector<16x8xf32>, vector<8x32xf32>, vector<16x32xf32> -> vector<16x32xf32>
    %270 = arith.addf %245, %269 : vector<16x32xf32>
    %271 = vector.extract_strided_slice %194 {offsets = [0, 24], sizes = [16, 8], strides = [1, 1]} : vector<16x32xf32> to vector<16x8xf32>
    %272 = vector.shape_cast %271 : vector<16x8xf32> to vector<2x8x8xf32>
    %273 = vector.extract_strided_slice %195 {offsets = [0, 24], sizes = [16, 8], strides = [1, 1]} : vector<16x32xf32> to vector<16x8xf32>
    %274 = vector.shape_cast %273 : vector<16x8xf32> to vector<2x8x8xf32>
    %275 = vector.extract_strided_slice %196 {offsets = [0, 24], sizes = [16, 8], strides = [1, 1]} : vector<16x32xf32> to vector<16x8xf32>
    %276 = vector.shape_cast %275 : vector<16x8xf32> to vector<2x8x8xf32>
    "tpu.trace_start"() <{level = 10 : i32, message = "bqd,bkd->bqk"}> : () -> ()
    %cst_107 = arith.constant dense<0.000000e+00> : vector<2x8x8xf32>
    %277 = tpu.matmul %272, %274, %cst_107 {dimension_numbers = #tpu.dot_dimension_numbers<[2], [2], [1], [1], [0, 0, 0, 1, 1, 1], [0], [0]>} : vector<2x8x8xf32>, vector<2x8x8xf32>, vector<2x8x8xf32> -> vector<2x8x8xf32>
    "tpu.trace_stop"() : () -> ()
    %cst_108 = arith.constant 0.353553385 : f32
    %278 = vector.broadcast %cst_108 : f32 to vector<2x8x8xf32>
    %279 = arith.mulf %277, %278 : vector<2x8x8xf32>
    %280 = arith.addf %279, %0 : vector<2x8x8xf32>
    %cst_109 = arith.constant dense<0xFF800000> : vector<2x8xf32>
    %281 = vector.multi_reduction <maximumf>, %280, %cst_109 [2] : vector<2x8x8xf32> to vector<2x8xf32>
    %282 = vector.shape_cast %281 : vector<2x8xf32> to vector<2x8x1xf32>
    %283 = vector.broadcast %282 : vector<2x8x1xf32> to vector<2x8x8xf32>
    %284 = arith.subf %280, %283 : vector<2x8x8xf32>
    %285 = math.exp %284 : vector<2x8x8xf32>
    %cst_110 = arith.constant dense<0.000000e+00> : vector<2x8xf32>
    %286 = vector.multi_reduction <add>, %285, %cst_110 [2] : vector<2x8x8xf32> to vector<2x8xf32>
    %287 = vector.shape_cast %286 : vector<2x8xf32> to vector<2x8x1xf32>
    %288 = tpu.reciprocal %287 {approx = true} : vector<2x8x1xf32> -> vector<2x8x1xf32>
    %289 = vector.broadcast %288 : vector<2x8x1xf32> to vector<2x8x8xf32>
    %290 = arith.mulf %285, %289 : vector<2x8x8xf32>
    "tpu.trace_start"() <{level = 10 : i32, message = "bqk,bkd->bqd"}> : () -> ()
    %cst_111 = arith.constant dense<0.000000e+00> : vector<2x8x8xf32>
    %291 = tpu.matmul %290, %276, %cst_111 {dimension_numbers = #tpu.dot_dimension_numbers<[2], [1], [1], [2], [0, 0, 0, 1, 1, 2], [0], [0]>} : vector<2x8x8xf32>, vector<2x8x8xf32>, vector<2x8x8xf32> -> vector<2x8x8xf32>
    "tpu.trace_stop"() : () -> ()
    %292 = vector.shape_cast %291 : vector<2x8x8xf32> to vector<16x8xf32>
    %293 = vector.extract_strided_slice %188 {offsets = [24, 0], sizes = [8, 32], strides = [1, 1]} : vector<32x32xf32> to vector<8x32xf32>
    %cst_112 = arith.constant dense<0.000000e+00> : vector<16x32xf32>
    %294 = tpu.matmul %292, %293, %cst_112 {dimension_numbers = #tpu.dot_dimension_numbers<[1], [0], [0], [1], [0, 0, 1, 1], [], []>} : vector<16x8xf32>, vector<8x32xf32>, vector<16x32xf32> -> vector<16x32xf32>
    %295 = arith.addf %270, %294 : vector<16x32xf32>
    %296 = vector.broadcast %190 : vector<1x32xf32> to vector<16x32xf32>
    %297 = arith.addf %295, %296 : vector<16x32xf32>
    %298 = arith.addf %182, %297 : vector<16x32xf32>
    %c1_113 = arith.constant 1 : index
    %c0_114 = arith.constant 0 : index
    %c0_115 = arith.constant 0 : index
    %299 = vector.load %arg30[%c1_113, %c0_114, %c0_115] : memref<2x1x32xf32, #tpu.memory_space<vmem>>, vector<1x1x32xf32>
    %300 = vector.shape_cast %299 : vector<1x1x32xf32> to vector<1x32xf32>
    %c1_116 = arith.constant 1 : index
    %c0_117 = arith.constant 0 : index
    %c0_118 = arith.constant 0 : index
    %301 = vector.load %arg29[%c1_116, %c0_117, %c0_118] : memref<2x1x32xf32, #tpu.memory_space<vmem>>, vector<1x1x32xf32>
    %302 = vector.shape_cast %301 : vector<1x1x32xf32> to vector<1x32xf32>
    %cst_119 = arith.constant dense<0.000000e+00> : vector<16xf32>
    %303 = vector.multi_reduction <add>, %298, %cst_119 [1] : vector<16x32xf32> to vector<16xf32>
    %304 = vector.shape_cast %303 : vector<16xf32> to vector<16x1xf32>
    %cst_120 = arith.constant 3.200000e+01 : f32
    %305 = vector.broadcast %cst_120 : f32 to vector<16x1xf32>
    %306 = arith.divf %304, %305 : vector<16x1xf32>
    %307 = vector.broadcast %306 : vector<16x1xf32> to vector<16x32xf32>
    %308 = arith.subf %298, %307 : vector<16x32xf32>
    %309 = arith.mulf %308, %308 : vector<16x32xf32>
    %cst_121 = arith.constant dense<0.000000e+00> : vector<16xf32>
    %310 = vector.multi_reduction <add>, %309, %cst_121 [1] : vector<16x32xf32> to vector<16xf32>
    %311 = vector.shape_cast %310 : vector<16xf32> to vector<16x1xf32>
    %cst_122 = arith.constant 3.200000e+01 : f32
    %312 = vector.broadcast %cst_122 : f32 to vector<16x1xf32>
    %313 = arith.divf %311, %312 : vector<16x1xf32>
    %cst_123 = arith.constant 9.99999974E-6 : f32
    %314 = vector.broadcast %cst_123 : f32 to vector<16x1xf32>
    %315 = arith.addf %313, %314 : vector<16x1xf32>
    %316 = math.rsqrt %315 : vector<16x1xf32>
    %317 = vector.broadcast %316 : vector<16x1xf32> to vector<16x32xf32>
    %318 = arith.mulf %308, %317 : vector<16x32xf32>
    %319 = vector.broadcast %300 : vector<1x32xf32> to vector<16x32xf32>
    %320 = arith.mulf %318, %319 : vector<16x32xf32>
    %321 = vector.broadcast %302 : vector<1x32xf32> to vector<16x32xf32>
    %322 = arith.addf %320, %321 : vector<16x32xf32>
    %c1_124 = arith.constant 1 : index
    %c0_125 = arith.constant 0 : index
    %c0_126 = arith.constant 0 : index
    %323 = vector.load %arg26[%c1_124, %c0_125, %c0_126] : memref<2x32x64xf32, #tpu.memory_space<vmem>>, vector<1x32x64xf32>
    %324 = vector.shape_cast %323 : vector<1x32x64xf32> to vector<32x64xf32>
    %c1_127 = arith.constant 1 : index
    %c0_128 = arith.constant 0 : index
    %c0_129 = arith.constant 0 : index
    %325 = vector.load %arg25[%c1_127, %c0_128, %c0_129] : memref<2x1x64xf32, #tpu.memory_space<vmem>>, vector<1x1x64xf32>
    %326 = vector.shape_cast %325 : vector<1x1x64xf32> to vector<1x64xf32>
    %c1_130 = arith.constant 1 : index
    %c0_131 = arith.constant 0 : index
    %c0_132 = arith.constant 0 : index
    %327 = vector.load %arg28[%c1_130, %c0_131, %c0_132] : memref<2x64x32xf32, #tpu.memory_space<vmem>>, vector<1x64x32xf32>
    %328 = vector.shape_cast %327 : vector<1x64x32xf32> to vector<64x32xf32>
    %c1_133 = arith.constant 1 : index
    %c0_134 = arith.constant 0 : index
    %c0_135 = arith.constant 0 : index
    %329 = vector.load %arg27[%c1_133, %c0_134, %c0_135] : memref<2x1x32xf32, #tpu.memory_space<vmem>>, vector<1x1x32xf32>
    %330 = vector.shape_cast %329 : vector<1x1x32xf32> to vector<1x32xf32>
    %cst_136 = arith.constant dense<0.000000e+00> : vector<16x64xf32>
    %331 = tpu.matmul %322, %324, %cst_136 {dimension_numbers = #tpu.dot_dimension_numbers<[1], [0], [0], [1], [0, 0, 1, 1], [], []>} : vector<16x32xf32>, vector<32x64xf32>, vector<16x64xf32> -> vector<16x64xf32>
    %332 = vector.broadcast %326 : vector<1x64xf32> to vector<16x64xf32>
    %333 = arith.addf %331, %332 : vector<16x64xf32>
    %cst_137 = arith.constant 0.000000e+00 : f32
    %334 = vector.broadcast %cst_137 : f32 to vector<16x64xf32>
    %335 = arith.maximumf %333, %334 : vector<16x64xf32>
    %cst_138 = arith.constant dense<0.000000e+00> : vector<16x32xf32>
    %336 = tpu.matmul %335, %328, %cst_138 {dimension_numbers = #tpu.dot_dimension_numbers<[1], [0], [0], [1], [0, 0, 1, 1], [], []>} : vector<16x64xf32>, vector<64x32xf32>, vector<16x32xf32> -> vector<16x32xf32>
    %337 = vector.broadcast %330 : vector<1x32xf32> to vector<16x32xf32>
    %338 = arith.addf %336, %337 : vector<16x32xf32>
    %339 = arith.addf %322, %338 : vector<16x32xf32>
    %c1_139 = arith.constant 1 : index
    %c0_140 = arith.constant 0 : index
    %c0_141 = arith.constant 0 : index
    %340 = vector.load %arg32[%c1_139, %c0_140, %c0_141] : memref<2x1x32xf32, #tpu.memory_space<vmem>>, vector<1x1x32xf32>
    %341 = vector.shape_cast %340 : vector<1x1x32xf32> to vector<1x32xf32>
    %c1_142 = arith.constant 1 : index
    %c0_143 = arith.constant 0 : index
    %c0_144 = arith.constant 0 : index
    %342 = vector.load %arg31[%c1_142, %c0_143, %c0_144] : memref<2x1x32xf32, #tpu.memory_space<vmem>>, vector<1x1x32xf32>
    %343 = vector.shape_cast %342 : vector<1x1x32xf32> to vector<1x32xf32>
    %cst_145 = arith.constant dense<0.000000e+00> : vector<16xf32>
    %344 = vector.multi_reduction <add>, %339, %cst_145 [1] : vector<16x32xf32> to vector<16xf32>
    %345 = vector.shape_cast %344 : vector<16xf32> to vector<16x1xf32>
    %cst_146 = arith.constant 3.200000e+01 : f32
    %346 = vector.broadcast %cst_146 : f32 to vector<16x1xf32>
    %347 = arith.divf %345, %346 : vector<16x1xf32>
    %348 = vector.broadcast %347 : vector<16x1xf32> to vector<16x32xf32>
    %349 = arith.subf %339, %348 : vector<16x32xf32>
    %350 = arith.mulf %349, %349 : vector<16x32xf32>
    %cst_147 = arith.constant dense<0.000000e+00> : vector<16xf32>
    %351 = vector.multi_reduction <add>, %350, %cst_147 [1] : vector<16x32xf32> to vector<16xf32>
    %352 = vector.shape_cast %351 : vector<16xf32> to vector<16x1xf32>
    %cst_148 = arith.constant 3.200000e+01 : f32
    %353 = vector.broadcast %cst_148 : f32 to vector<16x1xf32>
    %354 = arith.divf %352, %353 : vector<16x1xf32>
    %cst_149 = arith.constant 9.99999974E-6 : f32
    %355 = vector.broadcast %cst_149 : f32 to vector<16x1xf32>
    %356 = arith.addf %354, %355 : vector<16x1xf32>
    %357 = math.rsqrt %356 : vector<16x1xf32>
    %358 = vector.broadcast %357 : vector<16x1xf32> to vector<16x32xf32>
    %359 = arith.mulf %349, %358 : vector<16x32xf32>
    %360 = vector.broadcast %341 : vector<1x32xf32> to vector<16x32xf32>
    %361 = arith.mulf %359, %360 : vector<16x32xf32>
    %362 = vector.broadcast %343 : vector<1x32xf32> to vector<16x32xf32>
    %363 = arith.addf %361, %362 : vector<16x32xf32>
    %c0_150 = arith.constant 0 : index
    %c0_151 = arith.constant 0 : index
    %364 = vector.load %arg36[%c0_150, %c0_151] : memref<1x32xf32, #tpu.memory_space<vmem>>, vector<1x32xf32>
    %c0_152 = arith.constant 0 : index
    %c0_153 = arith.constant 0 : index
    %365 = vector.load %arg35[%c0_152, %c0_153] : memref<1x32xf32, #tpu.memory_space<vmem>>, vector<1x32xf32>
    %cst_154 = arith.constant dense<0.000000e+00> : vector<16xf32>
    %366 = vector.multi_reduction <add>, %363, %cst_154 [1] : vector<16x32xf32> to vector<16xf32>
    %367 = vector.shape_cast %366 : vector<16xf32> to vector<16x1xf32>
    %cst_155 = arith.constant 3.200000e+01 : f32
    %368 = vector.broadcast %cst_155 : f32 to vector<16x1xf32>
    %369 = arith.divf %367, %368 : vector<16x1xf32>
    %370 = vector.broadcast %369 : vector<16x1xf32> to vector<16x32xf32>
    %371 = arith.subf %363, %370 : vector<16x32xf32>
    %372 = arith.mulf %371, %371 : vector<16x32xf32>
    %cst_156 = arith.constant dense<0.000000e+00> : vector<16xf32>
    %373 = vector.multi_reduction <add>, %372, %cst_156 [1] : vector<16x32xf32> to vector<16xf32>
    %374 = vector.shape_cast %373 : vector<16xf32> to vector<16x1xf32>
    %cst_157 = arith.constant 3.200000e+01 : f32
    %375 = vector.broadcast %cst_157 : f32 to vector<16x1xf32>
    %376 = arith.divf %374, %375 : vector<16x1xf32>
    %cst_158 = arith.constant 9.99999974E-6 : f32
    %377 = vector.broadcast %cst_158 : f32 to vector<16x1xf32>
    %378 = arith.addf %376, %377 : vector<16x1xf32>
    %379 = math.rsqrt %378 : vector<16x1xf32>
    %380 = vector.broadcast %379 : vector<16x1xf32> to vector<16x32xf32>
    %381 = arith.mulf %371, %380 : vector<16x32xf32>
    %382 = vector.broadcast %364 : vector<1x32xf32> to vector<16x32xf32>
    %383 = arith.mulf %381, %382 : vector<16x32xf32>
    %384 = vector.broadcast %365 : vector<1x32xf32> to vector<16x32xf32>
    %385 = arith.addf %383, %384 : vector<16x32xf32>
    %c0_159 = arith.constant 0 : index
    %c0_160 = arith.constant 0 : index
    %386 = vector.load %arg1[%c0_159, %c0_160] : memref<16x32xf32, #tpu.memory_space<vmem>>, vector<16x32xf32>
    %c0_161 = arith.constant 0 : index
    %c0_162 = arith.constant 0 : index
    %c0_163 = arith.constant 0 : index
    %387 = vector.load %arg18[%c0_161, %c0_162, %c0_163] : memref<2x32x96xf32, #tpu.memory_space<vmem>>, vector<1x32x96xf32>
    %388 = vector.shape_cast %387 : vector<1x32x96xf32> to vector<32x96xf32>
    %c0_164 = arith.constant 0 : index
    %c0_165 = arith.constant 0 : index
    %c0_166 = arith.constant 0 : index
    %389 = vector.load %arg17[%c0_164, %c0_165, %c0_166] : memref<2x1x96xf32, #tpu.memory_space<vmem>>, vector<1x1x96xf32>
    %390 = vector.shape_cast %389 : vector<1x1x96xf32> to vector<1x96xf32>
    %c0_167 = arith.constant 0 : index
    %c0_168 = arith.constant 0 : index
    %c0_169 = arith.constant 0 : index
    %391 = vector.load %arg20[%c0_167, %c0_168, %c0_169] : memref<2x32x32xf32, #tpu.memory_space<vmem>>, vector<1x32x32xf32>
    %392 = vector.shape_cast %391 : vector<1x32x32xf32> to vector<32x32xf32>
    %c0_170 = arith.constant 0 : index
    %c0_171 = arith.constant 0 : index
    %c0_172 = arith.constant 0 : index
    %393 = vector.load %arg19[%c0_170, %c0_171, %c0_172] : memref<2x1x32xf32, #tpu.memory_space<vmem>>, vector<1x1x32xf32>
    %394 = vector.shape_cast %393 : vector<1x1x32xf32> to vector<1x32xf32>
    %cst_173 = arith.constant dense<0.000000e+00> : vector<16x96xf32>
    %395 = tpu.matmul %386, %388, %cst_173 {dimension_numbers = #tpu.dot_dimension_numbers<[1], [0], [0], [1], [0, 0, 1, 1], [], []>} : vector<16x32xf32>, vector<32x96xf32>, vector<16x96xf32> -> vector<16x96xf32>
    %396 = vector.broadcast %390 : vector<1x96xf32> to vector<16x96xf32>
    %397 = arith.addf %395, %396 : vector<16x96xf32>
    %398 = vector.extract_strided_slice %397 {offsets = [0, 0], sizes = [16, 32], strides = [1, 1]} : vector<16x96xf32> to vector<16x32xf32>
    %399 = vector.extract_strided_slice %397 {offsets = [0, 32], sizes = [16, 32], strides = [1, 1]} : vector<16x96xf32> to vector<16x32xf32>
    %400 = vector.extract_strided_slice %397 {offsets = [0, 64], sizes = [16, 32], strides = [1, 1]} : vector<16x96xf32> to vector<16x32xf32>
    %401 = vector.extract_strided_slice %398 {offsets = [0, 0], sizes = [16, 8], strides = [1, 1]} : vector<16x32xf32> to vector<16x8xf32>
    %402 = vector.shape_cast %401 : vector<16x8xf32> to vector<2x8x8xf32>
    %403 = vector.extract_strided_slice %399 {offsets = [0, 0], sizes = [16, 8], strides = [1, 1]} : vector<16x32xf32> to vector<16x8xf32>
    %404 = vector.shape_cast %403 : vector<16x8xf32> to vector<2x8x8xf32>
    %405 = vector.extract_strided_slice %400 {offsets = [0, 0], sizes = [16, 8], strides = [1, 1]} : vector<16x32xf32> to vector<16x8xf32>
    %406 = vector.shape_cast %405 : vector<16x8xf32> to vector<2x8x8xf32>
    "tpu.trace_start"() <{level = 10 : i32, message = "bqd,bkd->bqk"}> : () -> ()
    %cst_174 = arith.constant dense<0.000000e+00> : vector<2x8x8xf32>
    %407 = tpu.matmul %402, %404, %cst_174 {dimension_numbers = #tpu.dot_dimension_numbers<[2], [2], [1], [1], [0, 0, 0, 1, 1, 1], [0], [0]>} : vector<2x8x8xf32>, vector<2x8x8xf32>, vector<2x8x8xf32> -> vector<2x8x8xf32>
    "tpu.trace_stop"() : () -> ()
    %cst_175 = arith.constant 0.353553385 : f32
    %408 = vector.broadcast %cst_175 : f32 to vector<2x8x8xf32>
    %409 = arith.mulf %407, %408 : vector<2x8x8xf32>
    %410 = arith.addf %409, %0 : vector<2x8x8xf32>
    %cst_176 = arith.constant dense<0xFF800000> : vector<2x8xf32>
    %411 = vector.multi_reduction <maximumf>, %410, %cst_176 [2] : vector<2x8x8xf32> to vector<2x8xf32>
    %412 = vector.shape_cast %411 : vector<2x8xf32> to vector<2x8x1xf32>
    %413 = vector.broadcast %412 : vector<2x8x1xf32> to vector<2x8x8xf32>
    %414 = arith.subf %410, %413 : vector<2x8x8xf32>
    %415 = math.exp %414 : vector<2x8x8xf32>
    %cst_177 = arith.constant dense<0.000000e+00> : vector<2x8xf32>
    %416 = vector.multi_reduction <add>, %415, %cst_177 [2] : vector<2x8x8xf32> to vector<2x8xf32>
    %417 = vector.shape_cast %416 : vector<2x8xf32> to vector<2x8x1xf32>
    %418 = tpu.reciprocal %417 {approx = true} : vector<2x8x1xf32> -> vector<2x8x1xf32>
    %419 = vector.broadcast %418 : vector<2x8x1xf32> to vector<2x8x8xf32>
    %420 = arith.mulf %415, %419 : vector<2x8x8xf32>
    "tpu.trace_start"() <{level = 10 : i32, message = "bqk,bkd->bqd"}> : () -> ()
    %cst_178 = arith.constant dense<0.000000e+00> : vector<2x8x8xf32>
    %421 = tpu.matmul %420, %406, %cst_178 {dimension_numbers = #tpu.dot_dimension_numbers<[2], [1], [1], [2], [0, 0, 0, 1, 1, 2], [0], [0]>} : vector<2x8x8xf32>, vector<2x8x8xf32>, vector<2x8x8xf32> -> vector<2x8x8xf32>
    "tpu.trace_stop"() : () -> ()
    %422 = vector.shape_cast %421 : vector<2x8x8xf32> to vector<16x8xf32>
    %423 = vector.extract_strided_slice %392 {offsets = [0, 0], sizes = [8, 32], strides = [1, 1]} : vector<32x32xf32> to vector<8x32xf32>
    %cst_179 = arith.constant dense<0.000000e+00> : vector<16x32xf32>
    %424 = tpu.matmul %422, %423, %cst_179 {dimension_numbers = #tpu.dot_dimension_numbers<[1], [0], [0], [1], [0, 0, 1, 1], [], []>} : vector<16x8xf32>, vector<8x32xf32>, vector<16x32xf32> -> vector<16x32xf32>
    %425 = vector.extract_strided_slice %398 {offsets = [0, 8], sizes = [16, 8], strides = [1, 1]} : vector<16x32xf32> to vector<16x8xf32>
    %426 = vector.shape_cast %425 : vector<16x8xf32> to vector<2x8x8xf32>
    %427 = vector.extract_strided_slice %399 {offsets = [0, 8], sizes = [16, 8], strides = [1, 1]} : vector<16x32xf32> to vector<16x8xf32>
    %428 = vector.shape_cast %427 : vector<16x8xf32> to vector<2x8x8xf32>
    %429 = vector.extract_strided_slice %400 {offsets = [0, 8], sizes = [16, 8], strides = [1, 1]} : vector<16x32xf32> to vector<16x8xf32>
    %430 = vector.shape_cast %429 : vector<16x8xf32> to vector<2x8x8xf32>
    "tpu.trace_start"() <{level = 10 : i32, message = "bqd,bkd->bqk"}> : () -> ()
    %cst_180 = arith.constant dense<0.000000e+00> : vector<2x8x8xf32>
    %431 = tpu.matmul %426, %428, %cst_180 {dimension_numbers = #tpu.dot_dimension_numbers<[2], [2], [1], [1], [0, 0, 0, 1, 1, 1], [0], [0]>} : vector<2x8x8xf32>, vector<2x8x8xf32>, vector<2x8x8xf32> -> vector<2x8x8xf32>
    "tpu.trace_stop"() : () -> ()
    %cst_181 = arith.constant 0.353553385 : f32
    %432 = vector.broadcast %cst_181 : f32 to vector<2x8x8xf32>
    %433 = arith.mulf %431, %432 : vector<2x8x8xf32>
    %434 = arith.addf %433, %0 : vector<2x8x8xf32>
    %cst_182 = arith.constant dense<0xFF800000> : vector<2x8xf32>
    %435 = vector.multi_reduction <maximumf>, %434, %cst_182 [2] : vector<2x8x8xf32> to vector<2x8xf32>
    %436 = vector.shape_cast %435 : vector<2x8xf32> to vector<2x8x1xf32>
    %437 = vector.broadcast %436 : vector<2x8x1xf32> to vector<2x8x8xf32>
    %438 = arith.subf %434, %437 : vector<2x8x8xf32>
    %439 = math.exp %438 : vector<2x8x8xf32>
    %cst_183 = arith.constant dense<0.000000e+00> : vector<2x8xf32>
    %440 = vector.multi_reduction <add>, %439, %cst_183 [2] : vector<2x8x8xf32> to vector<2x8xf32>
    %441 = vector.shape_cast %440 : vector<2x8xf32> to vector<2x8x1xf32>
    %442 = tpu.reciprocal %441 {approx = true} : vector<2x8x1xf32> -> vector<2x8x1xf32>
    %443 = vector.broadcast %442 : vector<2x8x1xf32> to vector<2x8x8xf32>
    %444 = arith.mulf %439, %443 : vector<2x8x8xf32>
    "tpu.trace_start"() <{level = 10 : i32, message = "bqk,bkd->bqd"}> : () -> ()
    %cst_184 = arith.constant dense<0.000000e+00> : vector<2x8x8xf32>
    %445 = tpu.matmul %444, %430, %cst_184 {dimension_numbers = #tpu.dot_dimension_numbers<[2], [1], [1], [2], [0, 0, 0, 1, 1, 2], [0], [0]>} : vector<2x8x8xf32>, vector<2x8x8xf32>, vector<2x8x8xf32> -> vector<2x8x8xf32>
    "tpu.trace_stop"() : () -> ()
    %446 = vector.shape_cast %445 : vector<2x8x8xf32> to vector<16x8xf32>
    %447 = vector.extract_strided_slice %392 {offsets = [8, 0], sizes = [8, 32], strides = [1, 1]} : vector<32x32xf32> to vector<8x32xf32>
    %cst_185 = arith.constant dense<0.000000e+00> : vector<16x32xf32>
    %448 = tpu.matmul %446, %447, %cst_185 {dimension_numbers = #tpu.dot_dimension_numbers<[1], [0], [0], [1], [0, 0, 1, 1], [], []>} : vector<16x8xf32>, vector<8x32xf32>, vector<16x32xf32> -> vector<16x32xf32>
    %449 = arith.addf %424, %448 : vector<16x32xf32>
    %450 = vector.extract_strided_slice %398 {offsets = [0, 16], sizes = [16, 8], strides = [1, 1]} : vector<16x32xf32> to vector<16x8xf32>
    %451 = vector.shape_cast %450 : vector<16x8xf32> to vector<2x8x8xf32>
    %452 = vector.extract_strided_slice %399 {offsets = [0, 16], sizes = [16, 8], strides = [1, 1]} : vector<16x32xf32> to vector<16x8xf32>
    %453 = vector.shape_cast %452 : vector<16x8xf32> to vector<2x8x8xf32>
    %454 = vector.extract_strided_slice %400 {offsets = [0, 16], sizes = [16, 8], strides = [1, 1]} : vector<16x32xf32> to vector<16x8xf32>
    %455 = vector.shape_cast %454 : vector<16x8xf32> to vector<2x8x8xf32>
    "tpu.trace_start"() <{level = 10 : i32, message = "bqd,bkd->bqk"}> : () -> ()
    %cst_186 = arith.constant dense<0.000000e+00> : vector<2x8x8xf32>
    %456 = tpu.matmul %451, %453, %cst_186 {dimension_numbers = #tpu.dot_dimension_numbers<[2], [2], [1], [1], [0, 0, 0, 1, 1, 1], [0], [0]>} : vector<2x8x8xf32>, vector<2x8x8xf32>, vector<2x8x8xf32> -> vector<2x8x8xf32>
    "tpu.trace_stop"() : () -> ()
    %cst_187 = arith.constant 0.353553385 : f32
    %457 = vector.broadcast %cst_187 : f32 to vector<2x8x8xf32>
    %458 = arith.mulf %456, %457 : vector<2x8x8xf32>
    %459 = arith.addf %458, %0 : vector<2x8x8xf32>
    %cst_188 = arith.constant dense<0xFF800000> : vector<2x8xf32>
    %460 = vector.multi_reduction <maximumf>, %459, %cst_188 [2] : vector<2x8x8xf32> to vector<2x8xf32>
    %461 = vector.shape_cast %460 : vector<2x8xf32> to vector<2x8x1xf32>
    %462 = vector.broadcast %461 : vector<2x8x1xf32> to vector<2x8x8xf32>
    %463 = arith.subf %459, %462 : vector<2x8x8xf32>
    %464 = math.exp %463 : vector<2x8x8xf32>
    %cst_189 = arith.constant dense<0.000000e+00> : vector<2x8xf32>
    %465 = vector.multi_reduction <add>, %464, %cst_189 [2] : vector<2x8x8xf32> to vector<2x8xf32>
    %466 = vector.shape_cast %465 : vector<2x8xf32> to vector<2x8x1xf32>
    %467 = tpu.reciprocal %466 {approx = true} : vector<2x8x1xf32> -> vector<2x8x1xf32>
    %468 = vector.broadcast %467 : vector<2x8x1xf32> to vector<2x8x8xf32>
    %469 = arith.mulf %464, %468 : vector<2x8x8xf32>
    "tpu.trace_start"() <{level = 10 : i32, message = "bqk,bkd->bqd"}> : () -> ()
    %cst_190 = arith.constant dense<0.000000e+00> : vector<2x8x8xf32>
    %470 = tpu.matmul %469, %455, %cst_190 {dimension_numbers = #tpu.dot_dimension_numbers<[2], [1], [1], [2], [0, 0, 0, 1, 1, 2], [0], [0]>} : vector<2x8x8xf32>, vector<2x8x8xf32>, vector<2x8x8xf32> -> vector<2x8x8xf32>
    "tpu.trace_stop"() : () -> ()
    %471 = vector.shape_cast %470 : vector<2x8x8xf32> to vector<16x8xf32>
    %472 = vector.extract_strided_slice %392 {offsets = [16, 0], sizes = [8, 32], strides = [1, 1]} : vector<32x32xf32> to vector<8x32xf32>
    %cst_191 = arith.constant dense<0.000000e+00> : vector<16x32xf32>
    %473 = tpu.matmul %471, %472, %cst_191 {dimension_numbers = #tpu.dot_dimension_numbers<[1], [0], [0], [1], [0, 0, 1, 1], [], []>} : vector<16x8xf32>, vector<8x32xf32>, vector<16x32xf32> -> vector<16x32xf32>
    %474 = arith.addf %449, %473 : vector<16x32xf32>
    %475 = vector.extract_strided_slice %398 {offsets = [0, 24], sizes = [16, 8], strides = [1, 1]} : vector<16x32xf32> to vector<16x8xf32>
    %476 = vector.shape_cast %475 : vector<16x8xf32> to vector<2x8x8xf32>
    %477 = vector.extract_strided_slice %399 {offsets = [0, 24], sizes = [16, 8], strides = [1, 1]} : vector<16x32xf32> to vector<16x8xf32>
    %478 = vector.shape_cast %477 : vector<16x8xf32> to vector<2x8x8xf32>
    %479 = vector.extract_strided_slice %400 {offsets = [0, 24], sizes = [16, 8], strides = [1, 1]} : vector<16x32xf32> to vector<16x8xf32>
    %480 = vector.shape_cast %479 : vector<16x8xf32> to vector<2x8x8xf32>
    "tpu.trace_start"() <{level = 10 : i32, message = "bqd,bkd->bqk"}> : () -> ()
    %cst_192 = arith.constant dense<0.000000e+00> : vector<2x8x8xf32>
    %481 = tpu.matmul %476, %478, %cst_192 {dimension_numbers = #tpu.dot_dimension_numbers<[2], [2], [1], [1], [0, 0, 0, 1, 1, 1], [0], [0]>} : vector<2x8x8xf32>, vector<2x8x8xf32>, vector<2x8x8xf32> -> vector<2x8x8xf32>
    "tpu.trace_stop"() : () -> ()
    %cst_193 = arith.constant 0.353553385 : f32
    %482 = vector.broadcast %cst_193 : f32 to vector<2x8x8xf32>
    %483 = arith.mulf %481, %482 : vector<2x8x8xf32>
    %484 = arith.addf %483, %0 : vector<2x8x8xf32>
    %cst_194 = arith.constant dense<0xFF800000> : vector<2x8xf32>
    %485 = vector.multi_reduction <maximumf>, %484, %cst_194 [2] : vector<2x8x8xf32> to vector<2x8xf32>
    %486 = vector.shape_cast %485 : vector<2x8xf32> to vector<2x8x1xf32>
    %487 = vector.broadcast %486 : vector<2x8x1xf32> to vector<2x8x8xf32>
    %488 = arith.subf %484, %487 : vector<2x8x8xf32>
    %489 = math.exp %488 : vector<2x8x8xf32>
    %cst_195 = arith.constant dense<0.000000e+00> : vector<2x8xf32>
    %490 = vector.multi_reduction <add>, %489, %cst_195 [2] : vector<2x8x8xf32> to vector<2x8xf32>
    %491 = vector.shape_cast %490 : vector<2x8xf32> to vector<2x8x1xf32>
    %492 = tpu.reciprocal %491 {approx = true} : vector<2x8x1xf32> -> vector<2x8x1xf32>
    %493 = vector.broadcast %492 : vector<2x8x1xf32> to vector<2x8x8xf32>
    %494 = arith.mulf %489, %493 : vector<2x8x8xf32>
    "tpu.trace_start"() <{level = 10 : i32, message = "bqk,bkd->bqd"}> : () -> ()
    %cst_196 = arith.constant dense<0.000000e+00> : vector<2x8x8xf32>
    %495 = tpu.matmul %494, %480, %cst_196 {dimension_numbers = #tpu.dot_dimension_numbers<[2], [1], [1], [2], [0, 0, 0, 1, 1, 2], [0], [0]>} : vector<2x8x8xf32>, vector<2x8x8xf32>, vector<2x8x8xf32> -> vector<2x8x8xf32>
    "tpu.trace_stop"() : () -> ()
    %496 = vector.shape_cast %495 : vector<2x8x8xf32> to vector<16x8xf32>
    %497 = vector.extract_strided_slice %392 {offsets = [24, 0], sizes = [8, 32], strides = [1, 1]} : vector<32x32xf32> to vector<8x32xf32>
    %cst_197 = arith.constant dense<0.000000e+00> : vector<16x32xf32>
    %498 = tpu.matmul %496, %497, %cst_197 {dimension_numbers = #tpu.dot_dimension_numbers<[1], [0], [0], [1], [0, 0, 1, 1], [], []>} : vector<16x8xf32>, vector<8x32xf32>, vector<16x32xf32> -> vector<16x32xf32>
    %499 = arith.addf %474, %498 : vector<16x32xf32>
    %500 = vector.broadcast %394 : vector<1x32xf32> to vector<16x32xf32>
    %501 = arith.addf %499, %500 : vector<16x32xf32>
    %502 = arith.addf %386, %501 : vector<16x32xf32>
    %c0_198 = arith.constant 0 : index
    %c0_199 = arith.constant 0 : index
    %c0_200 = arith.constant 0 : index
    %503 = vector.load %arg12[%c0_198, %c0_199, %c0_200] : memref<2x1x32xf32, #tpu.memory_space<vmem>>, vector<1x1x32xf32>
    %504 = vector.shape_cast %503 : vector<1x1x32xf32> to vector<1x32xf32>
    %c0_201 = arith.constant 0 : index
    %c0_202 = arith.constant 0 : index
    %c0_203 = arith.constant 0 : index
    %505 = vector.load %arg11[%c0_201, %c0_202, %c0_203] : memref<2x1x32xf32, #tpu.memory_space<vmem>>, vector<1x1x32xf32>
    %506 = vector.shape_cast %505 : vector<1x1x32xf32> to vector<1x32xf32>
    %cst_204 = arith.constant dense<0.000000e+00> : vector<16xf32>
    %507 = vector.multi_reduction <add>, %502, %cst_204 [1] : vector<16x32xf32> to vector<16xf32>
    %508 = vector.shape_cast %507 : vector<16xf32> to vector<16x1xf32>
    %cst_205 = arith.constant 3.200000e+01 : f32
    %509 = vector.broadcast %cst_205 : f32 to vector<16x1xf32>
    %510 = arith.divf %508, %509 : vector<16x1xf32>
    %511 = vector.broadcast %510 : vector<16x1xf32> to vector<16x32xf32>
    %512 = arith.subf %502, %511 : vector<16x32xf32>
    %513 = arith.mulf %512, %512 : vector<16x32xf32>
    %cst_206 = arith.constant dense<0.000000e+00> : vector<16xf32>
    %514 = vector.multi_reduction <add>, %513, %cst_206 [1] : vector<16x32xf32> to vector<16xf32>
    %515 = vector.shape_cast %514 : vector<16xf32> to vector<16x1xf32>
    %cst_207 = arith.constant 3.200000e+01 : f32
    %516 = vector.broadcast %cst_207 : f32 to vector<16x1xf32>
    %517 = arith.divf %515, %516 : vector<16x1xf32>
    %cst_208 = arith.constant 9.99999974E-6 : f32
    %518 = vector.broadcast %cst_208 : f32 to vector<16x1xf32>
    %519 = arith.addf %517, %518 : vector<16x1xf32>
    %520 = math.rsqrt %519 : vector<16x1xf32>
    %521 = vector.broadcast %520 : vector<16x1xf32> to vector<16x32xf32>
    %522 = arith.mulf %512, %521 : vector<16x32xf32>
    %523 = vector.broadcast %504 : vector<1x32xf32> to vector<16x32xf32>
    %524 = arith.mulf %522, %523 : vector<16x32xf32>
    %525 = vector.broadcast %506 : vector<1x32xf32> to vector<16x32xf32>
    %526 = arith.addf %524, %525 : vector<16x32xf32>
    %c0_209 = arith.constant 0 : index
    %c0_210 = arith.constant 0 : index
    %c0_211 = arith.constant 0 : index
    %527 = vector.load %arg4[%c0_209, %c0_210, %c0_211] : memref<2x32x96xf32, #tpu.memory_space<vmem>>, vector<1x32x96xf32>
    %528 = vector.shape_cast %527 : vector<1x32x96xf32> to vector<32x96xf32>
    %c0_212 = arith.constant 0 : index
    %c0_213 = arith.constant 0 : index
    %c0_214 = arith.constant 0 : index
    %529 = vector.load %arg3[%c0_212, %c0_213, %c0_214] : memref<2x1x96xf32, #tpu.memory_space<vmem>>, vector<1x1x96xf32>
    %530 = vector.shape_cast %529 : vector<1x1x96xf32> to vector<1x96xf32>
    %c0_215 = arith.constant 0 : index
    %c0_216 = arith.constant 0 : index
    %c0_217 = arith.constant 0 : index
    %531 = vector.load %arg6[%c0_215, %c0_216, %c0_217] : memref<2x32x32xf32, #tpu.memory_space<vmem>>, vector<1x32x32xf32>
    %532 = vector.shape_cast %531 : vector<1x32x32xf32> to vector<32x32xf32>
    %c0_218 = arith.constant 0 : index
    %c0_219 = arith.constant 0 : index
    %c0_220 = arith.constant 0 : index
    %533 = vector.load %arg5[%c0_218, %c0_219, %c0_220] : memref<2x1x32xf32, #tpu.memory_space<vmem>>, vector<1x1x32xf32>
    %534 = vector.shape_cast %533 : vector<1x1x32xf32> to vector<1x32xf32>
    %535 = vector.extract_strided_slice %528 {offsets = [0, 0], sizes = [32, 32], strides = [1, 1]} : vector<32x96xf32> to vector<32x32xf32>
    %cst_221 = arith.constant dense<0.000000e+00> : vector<16x32xf32>
    %536 = tpu.matmul %526, %535, %cst_221 {dimension_numbers = #tpu.dot_dimension_numbers<[1], [0], [0], [1], [0, 0, 1, 1], [], []>} : vector<16x32xf32>, vector<32x32xf32>, vector<16x32xf32> -> vector<16x32xf32>
    %537 = vector.extract_strided_slice %530 {offsets = [0, 0], sizes = [1, 32], strides = [1, 1]} : vector<1x96xf32> to vector<1x32xf32>
    %538 = vector.broadcast %537 : vector<1x32xf32> to vector<16x32xf32>
    %539 = arith.addf %536, %538 : vector<16x32xf32>
    %540 = vector.extract_strided_slice %528 {offsets = [0, 32], sizes = [32, 32], strides = [1, 1]} : vector<32x96xf32> to vector<32x32xf32>
    %cst_222 = arith.constant dense<0.000000e+00> : vector<16x32xf32>
    %541 = tpu.matmul %385, %540, %cst_222 {dimension_numbers = #tpu.dot_dimension_numbers<[1], [0], [0], [1], [0, 0, 1, 1], [], []>} : vector<16x32xf32>, vector<32x32xf32>, vector<16x32xf32> -> vector<16x32xf32>
    %542 = vector.extract_strided_slice %530 {offsets = [0, 32], sizes = [1, 32], strides = [1, 1]} : vector<1x96xf32> to vector<1x32xf32>
    %543 = vector.broadcast %542 : vector<1x32xf32> to vector<16x32xf32>
    %544 = arith.addf %541, %543 : vector<16x32xf32>
    %545 = vector.extract_strided_slice %528 {offsets = [0, 64], sizes = [32, 32], strides = [1, 1]} : vector<32x96xf32> to vector<32x32xf32>
    %cst_223 = arith.constant dense<0.000000e+00> : vector<16x32xf32>
    %546 = tpu.matmul %385, %545, %cst_223 {dimension_numbers = #tpu.dot_dimension_numbers<[1], [0], [0], [1], [0, 0, 1, 1], [], []>} : vector<16x32xf32>, vector<32x32xf32>, vector<16x32xf32> -> vector<16x32xf32>
    %547 = vector.extract_strided_slice %530 {offsets = [0, 64], sizes = [1, 32], strides = [1, 1]} : vector<1x96xf32> to vector<1x32xf32>
    %548 = vector.broadcast %547 : vector<1x32xf32> to vector<16x32xf32>
    %549 = arith.addf %546, %548 : vector<16x32xf32>
    %550 = vector.extract_strided_slice %539 {offsets = [0, 0], sizes = [16, 8], strides = [1, 1]} : vector<16x32xf32> to vector<16x8xf32>
    %551 = vector.shape_cast %550 : vector<16x8xf32> to vector<2x8x8xf32>
    %552 = vector.extract_strided_slice %544 {offsets = [0, 0], sizes = [16, 8], strides = [1, 1]} : vector<16x32xf32> to vector<16x8xf32>
    %553 = vector.shape_cast %552 : vector<16x8xf32> to vector<2x8x8xf32>
    %554 = vector.extract_strided_slice %549 {offsets = [0, 0], sizes = [16, 8], strides = [1, 1]} : vector<16x32xf32> to vector<16x8xf32>
    %555 = vector.shape_cast %554 : vector<16x8xf32> to vector<2x8x8xf32>
    "tpu.trace_start"() <{level = 10 : i32, message = "bqd,bkd->bqk"}> : () -> ()
    %cst_224 = arith.constant dense<0.000000e+00> : vector<2x8x8xf32>
    %556 = tpu.matmul %551, %553, %cst_224 {dimension_numbers = #tpu.dot_dimension_numbers<[2], [2], [1], [1], [0, 0, 0, 1, 1, 1], [0], [0]>} : vector<2x8x8xf32>, vector<2x8x8xf32>, vector<2x8x8xf32> -> vector<2x8x8xf32>
    "tpu.trace_stop"() : () -> ()
    %cst_225 = arith.constant 0.353553385 : f32
    %557 = vector.broadcast %cst_225 : f32 to vector<2x8x8xf32>
    %558 = arith.mulf %556, %557 : vector<2x8x8xf32>
    %cst_226 = arith.constant dense<0xFF800000> : vector<2x8xf32>
    %559 = vector.multi_reduction <maximumf>, %558, %cst_226 [2] : vector<2x8x8xf32> to vector<2x8xf32>
    %560 = vector.shape_cast %559 : vector<2x8xf32> to vector<2x8x1xf32>
    %561 = vector.broadcast %560 : vector<2x8x1xf32> to vector<2x8x8xf32>
    %562 = arith.subf %558, %561 : vector<2x8x8xf32>
    %563 = math.exp %562 : vector<2x8x8xf32>
    %cst_227 = arith.constant dense<0.000000e+00> : vector<2x8xf32>
    %564 = vector.multi_reduction <add>, %563, %cst_227 [2] : vector<2x8x8xf32> to vector<2x8xf32>
    %565 = vector.shape_cast %564 : vector<2x8xf32> to vector<2x8x1xf32>
    %566 = tpu.reciprocal %565 {approx = true} : vector<2x8x1xf32> -> vector<2x8x1xf32>
    %567 = vector.broadcast %566 : vector<2x8x1xf32> to vector<2x8x8xf32>
    %568 = arith.mulf %563, %567 : vector<2x8x8xf32>
    "tpu.trace_start"() <{level = 10 : i32, message = "bqk,bkd->bqd"}> : () -> ()
    %cst_228 = arith.constant dense<0.000000e+00> : vector<2x8x8xf32>
    %569 = tpu.matmul %568, %555, %cst_228 {dimension_numbers = #tpu.dot_dimension_numbers<[2], [1], [1], [2], [0, 0, 0, 1, 1, 2], [0], [0]>} : vector<2x8x8xf32>, vector<2x8x8xf32>, vector<2x8x8xf32> -> vector<2x8x8xf32>
    "tpu.trace_stop"() : () -> ()
    %570 = vector.shape_cast %569 : vector<2x8x8xf32> to vector<16x8xf32>
    %571 = vector.extract_strided_slice %532 {offsets = [0, 0], sizes = [8, 32], strides = [1, 1]} : vector<32x32xf32> to vector<8x32xf32>
    %cst_229 = arith.constant dense<0.000000e+00> : vector<16x32xf32>
    %572 = tpu.matmul %570, %571, %cst_229 {dimension_numbers = #tpu.dot_dimension_numbers<[1], [0], [0], [1], [0, 0, 1, 1], [], []>} : vector<16x8xf32>, vector<8x32xf32>, vector<16x32xf32> -> vector<16x32xf32>
    %573 = vector.extract_strided_slice %539 {offsets = [0, 8], sizes = [16, 8], strides = [1, 1]} : vector<16x32xf32> to vector<16x8xf32>
    %574 = vector.shape_cast %573 : vector<16x8xf32> to vector<2x8x8xf32>
    %575 = vector.extract_strided_slice %544 {offsets = [0, 8], sizes = [16, 8], strides = [1, 1]} : vector<16x32xf32> to vector<16x8xf32>
    %576 = vector.shape_cast %575 : vector<16x8xf32> to vector<2x8x8xf32>
    %577 = vector.extract_strided_slice %549 {offsets = [0, 8], sizes = [16, 8], strides = [1, 1]} : vector<16x32xf32> to vector<16x8xf32>
    %578 = vector.shape_cast %577 : vector<16x8xf32> to vector<2x8x8xf32>
    "tpu.trace_start"() <{level = 10 : i32, message = "bqd,bkd->bqk"}> : () -> ()
    %cst_230 = arith.constant dense<0.000000e+00> : vector<2x8x8xf32>
    %579 = tpu.matmul %574, %576, %cst_230 {dimension_numbers = #tpu.dot_dimension_numbers<[2], [2], [1], [1], [0, 0, 0, 1, 1, 1], [0], [0]>} : vector<2x8x8xf32>, vector<2x8x8xf32>, vector<2x8x8xf32> -> vector<2x8x8xf32>
    "tpu.trace_stop"() : () -> ()
    %cst_231 = arith.constant 0.353553385 : f32
    %580 = vector.broadcast %cst_231 : f32 to vector<2x8x8xf32>
    %581 = arith.mulf %579, %580 : vector<2x8x8xf32>
    %cst_232 = arith.constant dense<0xFF800000> : vector<2x8xf32>
    %582 = vector.multi_reduction <maximumf>, %581, %cst_232 [2] : vector<2x8x8xf32> to vector<2x8xf32>
    %583 = vector.shape_cast %582 : vector<2x8xf32> to vector<2x8x1xf32>
    %584 = vector.broadcast %583 : vector<2x8x1xf32> to vector<2x8x8xf32>
    %585 = arith.subf %581, %584 : vector<2x8x8xf32>
    %586 = math.exp %585 : vector<2x8x8xf32>
    %cst_233 = arith.constant dense<0.000000e+00> : vector<2x8xf32>
    %587 = vector.multi_reduction <add>, %586, %cst_233 [2] : vector<2x8x8xf32> to vector<2x8xf32>
    %588 = vector.shape_cast %587 : vector<2x8xf32> to vector<2x8x1xf32>
    %589 = tpu.reciprocal %588 {approx = true} : vector<2x8x1xf32> -> vector<2x8x1xf32>
    %590 = vector.broadcast %589 : vector<2x8x1xf32> to vector<2x8x8xf32>
    %591 = arith.mulf %586, %590 : vector<2x8x8xf32>
    "tpu.trace_start"() <{level = 10 : i32, message = "bqk,bkd->bqd"}> : () -> ()
    %cst_234 = arith.constant dense<0.000000e+00> : vector<2x8x8xf32>
    %592 = tpu.matmul %591, %578, %cst_234 {dimension_numbers = #tpu.dot_dimension_numbers<[2], [1], [1], [2], [0, 0, 0, 1, 1, 2], [0], [0]>} : vector<2x8x8xf32>, vector<2x8x8xf32>, vector<2x8x8xf32> -> vector<2x8x8xf32>
    "tpu.trace_stop"() : () -> ()
    %593 = vector.shape_cast %592 : vector<2x8x8xf32> to vector<16x8xf32>
    %594 = vector.extract_strided_slice %532 {offsets = [8, 0], sizes = [8, 32], strides = [1, 1]} : vector<32x32xf32> to vector<8x32xf32>
    %cst_235 = arith.constant dense<0.000000e+00> : vector<16x32xf32>
    %595 = tpu.matmul %593, %594, %cst_235 {dimension_numbers = #tpu.dot_dimension_numbers<[1], [0], [0], [1], [0, 0, 1, 1], [], []>} : vector<16x8xf32>, vector<8x32xf32>, vector<16x32xf32> -> vector<16x32xf32>
    %596 = arith.addf %572, %595 : vector<16x32xf32>
    %597 = vector.extract_strided_slice %539 {offsets = [0, 16], sizes = [16, 8], strides = [1, 1]} : vector<16x32xf32> to vector<16x8xf32>
    %598 = vector.shape_cast %597 : vector<16x8xf32> to vector<2x8x8xf32>
    %599 = vector.extract_strided_slice %544 {offsets = [0, 16], sizes = [16, 8], strides = [1, 1]} : vector<16x32xf32> to vector<16x8xf32>
    %600 = vector.shape_cast %599 : vector<16x8xf32> to vector<2x8x8xf32>
    %601 = vector.extract_strided_slice %549 {offsets = [0, 16], sizes = [16, 8], strides = [1, 1]} : vector<16x32xf32> to vector<16x8xf32>
    %602 = vector.shape_cast %601 : vector<16x8xf32> to vector<2x8x8xf32>
    "tpu.trace_start"() <{level = 10 : i32, message = "bqd,bkd->bqk"}> : () -> ()
    %cst_236 = arith.constant dense<0.000000e+00> : vector<2x8x8xf32>
    %603 = tpu.matmul %598, %600, %cst_236 {dimension_numbers = #tpu.dot_dimension_numbers<[2], [2], [1], [1], [0, 0, 0, 1, 1, 1], [0], [0]>} : vector<2x8x8xf32>, vector<2x8x8xf32>, vector<2x8x8xf32> -> vector<2x8x8xf32>
    "tpu.trace_stop"() : () -> ()
    %cst_237 = arith.constant 0.353553385 : f32
    %604 = vector.broadcast %cst_237 : f32 to vector<2x8x8xf32>
    %605 = arith.mulf %603, %604 : vector<2x8x8xf32>
    %cst_238 = arith.constant dense<0xFF800000> : vector<2x8xf32>
    %606 = vector.multi_reduction <maximumf>, %605, %cst_238 [2] : vector<2x8x8xf32> to vector<2x8xf32>
    %607 = vector.shape_cast %606 : vector<2x8xf32> to vector<2x8x1xf32>
    %608 = vector.broadcast %607 : vector<2x8x1xf32> to vector<2x8x8xf32>
    %609 = arith.subf %605, %608 : vector<2x8x8xf32>
    %610 = math.exp %609 : vector<2x8x8xf32>
    %cst_239 = arith.constant dense<0.000000e+00> : vector<2x8xf32>
    %611 = vector.multi_reduction <add>, %610, %cst_239 [2] : vector<2x8x8xf32> to vector<2x8xf32>
    %612 = vector.shape_cast %611 : vector<2x8xf32> to vector<2x8x1xf32>
    %613 = tpu.reciprocal %612 {approx = true} : vector<2x8x1xf32> -> vector<2x8x1xf32>
    %614 = vector.broadcast %613 : vector<2x8x1xf32> to vector<2x8x8xf32>
    %615 = arith.mulf %610, %614 : vector<2x8x8xf32>
    "tpu.trace_start"() <{level = 10 : i32, message = "bqk,bkd->bqd"}> : () -> ()
    %cst_240 = arith.constant dense<0.000000e+00> : vector<2x8x8xf32>
    %616 = tpu.matmul %615, %602, %cst_240 {dimension_numbers = #tpu.dot_dimension_numbers<[2], [1], [1], [2], [0, 0, 0, 1, 1, 2], [0], [0]>} : vector<2x8x8xf32>, vector<2x8x8xf32>, vector<2x8x8xf32> -> vector<2x8x8xf32>
    "tpu.trace_stop"() : () -> ()
    %617 = vector.shape_cast %616 : vector<2x8x8xf32> to vector<16x8xf32>
    %618 = vector.extract_strided_slice %532 {offsets = [16, 0], sizes = [8, 32], strides = [1, 1]} : vector<32x32xf32> to vector<8x32xf32>
    %cst_241 = arith.constant dense<0.000000e+00> : vector<16x32xf32>
    %619 = tpu.matmul %617, %618, %cst_241 {dimension_numbers = #tpu.dot_dimension_numbers<[1], [0], [0], [1], [0, 0, 1, 1], [], []>} : vector<16x8xf32>, vector<8x32xf32>, vector<16x32xf32> -> vector<16x32xf32>
    %620 = arith.addf %596, %619 : vector<16x32xf32>
    %621 = vector.extract_strided_slice %539 {offsets = [0, 24], sizes = [16, 8], strides = [1, 1]} : vector<16x32xf32> to vector<16x8xf32>
    %622 = vector.shape_cast %621 : vector<16x8xf32> to vector<2x8x8xf32>
    %623 = vector.extract_strided_slice %544 {offsets = [0, 24], sizes = [16, 8], strides = [1, 1]} : vector<16x32xf32> to vector<16x8xf32>
    %624 = vector.shape_cast %623 : vector<16x8xf32> to vector<2x8x8xf32>
    %625 = vector.extract_strided_slice %549 {offsets = [0, 24], sizes = [16, 8], strides = [1, 1]} : vector<16x32xf32> to vector<16x8xf32>
    %626 = vector.shape_cast %625 : vector<16x8xf32> to vector<2x8x8xf32>
    "tpu.trace_start"() <{level = 10 : i32, message = "bqd,bkd->bqk"}> : () -> ()
    %cst_242 = arith.constant dense<0.000000e+00> : vector<2x8x8xf32>
    %627 = tpu.matmul %622, %624, %cst_242 {dimension_numbers = #tpu.dot_dimension_numbers<[2], [2], [1], [1], [0, 0, 0, 1, 1, 1], [0], [0]>} : vector<2x8x8xf32>, vector<2x8x8xf32>, vector<2x8x8xf32> -> vector<2x8x8xf32>
    "tpu.trace_stop"() : () -> ()
    %cst_243 = arith.constant 0.353553385 : f32
    %628 = vector.broadcast %cst_243 : f32 to vector<2x8x8xf32>
    %629 = arith.mulf %627, %628 : vector<2x8x8xf32>
    %cst_244 = arith.constant dense<0xFF800000> : vector<2x8xf32>
    %630 = vector.multi_reduction <maximumf>, %629, %cst_244 [2] : vector<2x8x8xf32> to vector<2x8xf32>
    %631 = vector.shape_cast %630 : vector<2x8xf32> to vector<2x8x1xf32>
    %632 = vector.broadcast %631 : vector<2x8x1xf32> to vector<2x8x8xf32>
    %633 = arith.subf %629, %632 : vector<2x8x8xf32>
    %634 = math.exp %633 : vector<2x8x8xf32>
    %cst_245 = arith.constant dense<0.000000e+00> : vector<2x8xf32>
    %635 = vector.multi_reduction <add>, %634, %cst_245 [2] : vector<2x8x8xf32> to vector<2x8xf32>
    %636 = vector.shape_cast %635 : vector<2x8xf32> to vector<2x8x1xf32>
    %637 = tpu.reciprocal %636 {approx = true} : vector<2x8x1xf32> -> vector<2x8x1xf32>
    %638 = vector.broadcast %637 : vector<2x8x1xf32> to vector<2x8x8xf32>
    %639 = arith.mulf %634, %638 : vector<2x8x8xf32>
    "tpu.trace_start"() <{level = 10 : i32, message = "bqk,bkd->bqd"}> : () -> ()
    %cst_246 = arith.constant dense<0.000000e+00> : vector<2x8x8xf32>
    %640 = tpu.matmul %639, %626, %cst_246 {dimension_numbers = #tpu.dot_dimension_numbers<[2], [1], [1], [2], [0, 0, 0, 1, 1, 2], [0], [0]>} : vector<2x8x8xf32>, vector<2x8x8xf32>, vector<2x8x8xf32> -> vector<2x8x8xf32>
    "tpu.trace_stop"() : () -> ()
    %641 = vector.shape_cast %640 : vector<2x8x8xf32> to vector<16x8xf32>
    %642 = vector.extract_strided_slice %532 {offsets = [24, 0], sizes = [8, 32], strides = [1, 1]} : vector<32x32xf32> to vector<8x32xf32>
    %cst_247 = arith.constant dense<0.000000e+00> : vector<16x32xf32>
    %643 = tpu.matmul %641, %642, %cst_247 {dimension_numbers = #tpu.dot_dimension_numbers<[1], [0], [0], [1], [0, 0, 1, 1], [], []>} : vector<16x8xf32>, vector<8x32xf32>, vector<16x32xf32> -> vector<16x32xf32>
    %644 = arith.addf %620, %643 : vector<16x32xf32>
    %645 = vector.broadcast %534 : vector<1x32xf32> to vector<16x32xf32>
    %646 = arith.addf %644, %645 : vector<16x32xf32>
    %647 = arith.addf %526, %646 : vector<16x32xf32>
    %c0_248 = arith.constant 0 : index
    %c0_249 = arith.constant 0 : index
    %c0_250 = arith.constant 0 : index
    %648 = vector.load %arg14[%c0_248, %c0_249, %c0_250] : memref<2x1x32xf32, #tpu.memory_space<vmem>>, vector<1x1x32xf32>
    %649 = vector.shape_cast %648 : vector<1x1x32xf32> to vector<1x32xf32>
    %c0_251 = arith.constant 0 : index
    %c0_252 = arith.constant 0 : index
    %c0_253 = arith.constant 0 : index
    %650 = vector.load %arg13[%c0_251, %c0_252, %c0_253] : memref<2x1x32xf32, #tpu.memory_space<vmem>>, vector<1x1x32xf32>
    %651 = vector.shape_cast %650 : vector<1x1x32xf32> to vector<1x32xf32>
    %cst_254 = arith.constant dense<0.000000e+00> : vector<16xf32>
    %652 = vector.multi_reduction <add>, %647, %cst_254 [1] : vector<16x32xf32> to vector<16xf32>
    %653 = vector.shape_cast %652 : vector<16xf32> to vector<16x1xf32>
    %cst_255 = arith.constant 3.200000e+01 : f32
    %654 = vector.broadcast %cst_255 : f32 to vector<16x1xf32>
    %655 = arith.divf %653, %654 : vector<16x1xf32>
    %656 = vector.broadcast %655 : vector<16x1xf32> to vector<16x32xf32>
    %657 = arith.subf %647, %656 : vector<16x32xf32>
    %658 = arith.mulf %657, %657 : vector<16x32xf32>
    %cst_256 = arith.constant dense<0.000000e+00> : vector<16xf32>
    %659 = vector.multi_reduction <add>, %658, %cst_256 [1] : vector<16x32xf32> to vector<16xf32>
    %660 = vector.shape_cast %659 : vector<16xf32> to vector<16x1xf32>
    %cst_257 = arith.constant 3.200000e+01 : f32
    %661 = vector.broadcast %cst_257 : f32 to vector<16x1xf32>
    %662 = arith.divf %660, %661 : vector<16x1xf32>
    %cst_258 = arith.constant 9.99999974E-6 : f32
    %663 = vector.broadcast %cst_258 : f32 to vector<16x1xf32>
    %664 = arith.addf %662, %663 : vector<16x1xf32>
    %665 = math.rsqrt %664 : vector<16x1xf32>
    %666 = vector.broadcast %665 : vector<16x1xf32> to vector<16x32xf32>
    %667 = arith.mulf %657, %666 : vector<16x32xf32>
    %668 = vector.broadcast %649 : vector<1x32xf32> to vector<16x32xf32>
    %669 = arith.mulf %667, %668 : vector<16x32xf32>
    %670 = vector.broadcast %651 : vector<1x32xf32> to vector<16x32xf32>
    %671 = arith.addf %669, %670 : vector<16x32xf32>
    %c0_259 = arith.constant 0 : index
    %c0_260 = arith.constant 0 : index
    %c0_261 = arith.constant 0 : index
    %672 = vector.load %arg8[%c0_259, %c0_260, %c0_261] : memref<2x32x64xf32, #tpu.memory_space<vmem>>, vector<1x32x64xf32>
    %673 = vector.shape_cast %672 : vector<1x32x64xf32> to vector<32x64xf32>
    %c0_262 = arith.constant 0 : index
    %c0_263 = arith.constant 0 : index
    %c0_264 = arith.constant 0 : index
    %674 = vector.load %arg7[%c0_262, %c0_263, %c0_264] : memref<2x1x64xf32, #tpu.memory_space<vmem>>, vector<1x1x64xf32>
    %675 = vector.shape_cast %674 : vector<1x1x64xf32> to vector<1x64xf32>
    %c0_265 = arith.constant 0 : index
    %c0_266 = arith.constant 0 : index
    %c0_267 = arith.constant 0 : index
    %676 = vector.load %arg10[%c0_265, %c0_266, %c0_267] : memref<2x64x32xf32, #tpu.memory_space<vmem>>, vector<1x64x32xf32>
    %677 = vector.shape_cast %676 : vector<1x64x32xf32> to vector<64x32xf32>
    %c0_268 = arith.constant 0 : index
    %c0_269 = arith.constant 0 : index
    %c0_270 = arith.constant 0 : index
    %678 = vector.load %arg9[%c0_268, %c0_269, %c0_270] : memref<2x1x32xf32, #tpu.memory_space<vmem>>, vector<1x1x32xf32>
    %679 = vector.shape_cast %678 : vector<1x1x32xf32> to vector<1x32xf32>
    %cst_271 = arith.constant dense<0.000000e+00> : vector<16x64xf32>
    %680 = tpu.matmul %671, %673, %cst_271 {dimension_numbers = #tpu.dot_dimension_numbers<[1], [0], [0], [1], [0, 0, 1, 1], [], []>} : vector<16x32xf32>, vector<32x64xf32>, vector<16x64xf32> -> vector<16x64xf32>
    %681 = vector.broadcast %675 : vector<1x64xf32> to vector<16x64xf32>
    %682 = arith.addf %680, %681 : vector<16x64xf32>
    %cst_272 = arith.constant 0.000000e+00 : f32
    %683 = vector.broadcast %cst_272 : f32 to vector<16x64xf32>
    %684 = arith.maximumf %682, %683 : vector<16x64xf32>
    %cst_273 = arith.constant dense<0.000000e+00> : vector<16x32xf32>
    %685 = tpu.matmul %684, %677, %cst_273 {dimension_numbers = #tpu.dot_dimension_numbers<[1], [0], [0], [1], [0, 0, 1, 1], [], []>} : vector<16x64xf32>, vector<64x32xf32>, vector<16x32xf32> -> vector<16x32xf32>
    %686 = vector.broadcast %679 : vector<1x32xf32> to vector<16x32xf32>
    %687 = arith.addf %685, %686 : vector<16x32xf32>
    %688 = arith.addf %671, %687 : vector<16x32xf32>
    %c0_274 = arith.constant 0 : index
    %c0_275 = arith.constant 0 : index
    %c0_276 = arith.constant 0 : index
    %689 = vector.load %arg16[%c0_274, %c0_275, %c0_276] : memref<2x1x32xf32, #tpu.memory_space<vmem>>, vector<1x1x32xf32>
    %690 = vector.shape_cast %689 : vector<1x1x32xf32> to vector<1x32xf32>
    %c0_277 = arith.constant 0 : index
    %c0_278 = arith.constant 0 : index
    %c0_279 = arith.constant 0 : index
    %691 = vector.load %arg15[%c0_277, %c0_278, %c0_279] : memref<2x1x32xf32, #tpu.memory_space<vmem>>, vector<1x1x32xf32>
    %692 = vector.shape_cast %691 : vector<1x1x32xf32> to vector<1x32xf32>
    %cst_280 = arith.constant dense<0.000000e+00> : vector<16xf32>
    %693 = vector.multi_reduction <add>, %688, %cst_280 [1] : vector<16x32xf32> to vector<16xf32>
    %694 = vector.shape_cast %693 : vector<16xf32> to vector<16x1xf32>
    %cst_281 = arith.constant 3.200000e+01 : f32
    %695 = vector.broadcast %cst_281 : f32 to vector<16x1xf32>
    %696 = arith.divf %694, %695 : vector<16x1xf32>
    %697 = vector.broadcast %696 : vector<16x1xf32> to vector<16x32xf32>
    %698 = arith.subf %688, %697 : vector<16x32xf32>
    %699 = arith.mulf %698, %698 : vector<16x32xf32>
    %cst_282 = arith.constant dense<0.000000e+00> : vector<16xf32>
    %700 = vector.multi_reduction <add>, %699, %cst_282 [1] : vector<16x32xf32> to vector<16xf32>
    %701 = vector.shape_cast %700 : vector<16xf32> to vector<16x1xf32>
    %cst_283 = arith.constant 3.200000e+01 : f32
    %702 = vector.broadcast %cst_283 : f32 to vector<16x1xf32>
    %703 = arith.divf %701, %702 : vector<16x1xf32>
    %cst_284 = arith.constant 9.99999974E-6 : f32
    %704 = vector.broadcast %cst_284 : f32 to vector<16x1xf32>
    %705 = arith.addf %703, %704 : vector<16x1xf32>
    %706 = math.rsqrt %705 : vector<16x1xf32>
    %707 = vector.broadcast %706 : vector<16x1xf32> to vector<16x32xf32>
    %708 = arith.mulf %698, %707 : vector<16x32xf32>
    %709 = vector.broadcast %690 : vector<1x32xf32> to vector<16x32xf32>
    %710 = arith.mulf %708, %709 : vector<16x32xf32>
    %711 = vector.broadcast %692 : vector<1x32xf32> to vector<16x32xf32>
    %712 = arith.addf %710, %711 : vector<16x32xf32>
    %c1_285 = arith.constant 1 : index
    %c0_286 = arith.constant 0 : index
    %c0_287 = arith.constant 0 : index
    %713 = vector.load %arg18[%c1_285, %c0_286, %c0_287] : memref<2x32x96xf32, #tpu.memory_space<vmem>>, vector<1x32x96xf32>
    %714 = vector.shape_cast %713 : vector<1x32x96xf32> to vector<32x96xf32>
    %c1_288 = arith.constant 1 : index
    %c0_289 = arith.constant 0 : index
    %c0_290 = arith.constant 0 : index
    %715 = vector.load %arg17[%c1_288, %c0_289, %c0_290] : memref<2x1x96xf32, #tpu.memory_space<vmem>>, vector<1x1x96xf32>
    %716 = vector.shape_cast %715 : vector<1x1x96xf32> to vector<1x96xf32>
    %c1_291 = arith.constant 1 : index
    %c0_292 = arith.constant 0 : index
    %c0_293 = arith.constant 0 : index
    %717 = vector.load %arg20[%c1_291, %c0_292, %c0_293] : memref<2x32x32xf32, #tpu.memory_space<vmem>>, vector<1x32x32xf32>
    %718 = vector.shape_cast %717 : vector<1x32x32xf32> to vector<32x32xf32>
    %c1_294 = arith.constant 1 : index
    %c0_295 = arith.constant 0 : index
    %c0_296 = arith.constant 0 : index
    %719 = vector.load %arg19[%c1_294, %c0_295, %c0_296] : memref<2x1x32xf32, #tpu.memory_space<vmem>>, vector<1x1x32xf32>
    %720 = vector.shape_cast %719 : vector<1x1x32xf32> to vector<1x32xf32>
    %cst_297 = arith.constant dense<0.000000e+00> : vector<16x96xf32>
    %721 = tpu.matmul %712, %714, %cst_297 {dimension_numbers = #tpu.dot_dimension_numbers<[1], [0], [0], [1], [0, 0, 1, 1], [], []>} : vector<16x32xf32>, vector<32x96xf32>, vector<16x96xf32> -> vector<16x96xf32>
    %722 = vector.broadcast %716 : vector<1x96xf32> to vector<16x96xf32>
    %723 = arith.addf %721, %722 : vector<16x96xf32>
    %724 = vector.extract_strided_slice %723 {offsets = [0, 0], sizes = [16, 32], strides = [1, 1]} : vector<16x96xf32> to vector<16x32xf32>
    %725 = vector.extract_strided_slice %723 {offsets = [0, 32], sizes = [16, 32], strides = [1, 1]} : vector<16x96xf32> to vector<16x32xf32>
    %726 = vector.extract_strided_slice %723 {offsets = [0, 64], sizes = [16, 32], strides = [1, 1]} : vector<16x96xf32> to vector<16x32xf32>
    %727 = vector.extract_strided_slice %724 {offsets = [0, 0], sizes = [16, 8], strides = [1, 1]} : vector<16x32xf32> to vector<16x8xf32>
    %728 = vector.shape_cast %727 : vector<16x8xf32> to vector<2x8x8xf32>
    %729 = vector.extract_strided_slice %725 {offsets = [0, 0], sizes = [16, 8], strides = [1, 1]} : vector<16x32xf32> to vector<16x8xf32>
    %730 = vector.shape_cast %729 : vector<16x8xf32> to vector<2x8x8xf32>
    %731 = vector.extract_strided_slice %726 {offsets = [0, 0], sizes = [16, 8], strides = [1, 1]} : vector<16x32xf32> to vector<16x8xf32>
    %732 = vector.shape_cast %731 : vector<16x8xf32> to vector<2x8x8xf32>
    "tpu.trace_start"() <{level = 10 : i32, message = "bqd,bkd->bqk"}> : () -> ()
    %cst_298 = arith.constant dense<0.000000e+00> : vector<2x8x8xf32>
    %733 = tpu.matmul %728, %730, %cst_298 {dimension_numbers = #tpu.dot_dimension_numbers<[2], [2], [1], [1], [0, 0, 0, 1, 1, 1], [0], [0]>} : vector<2x8x8xf32>, vector<2x8x8xf32>, vector<2x8x8xf32> -> vector<2x8x8xf32>
    "tpu.trace_stop"() : () -> ()
    %cst_299 = arith.constant 0.353553385 : f32
    %734 = vector.broadcast %cst_299 : f32 to vector<2x8x8xf32>
    %735 = arith.mulf %733, %734 : vector<2x8x8xf32>
    %736 = arith.addf %735, %0 : vector<2x8x8xf32>
    %cst_300 = arith.constant dense<0xFF800000> : vector<2x8xf32>
    %737 = vector.multi_reduction <maximumf>, %736, %cst_300 [2] : vector<2x8x8xf32> to vector<2x8xf32>
    %738 = vector.shape_cast %737 : vector<2x8xf32> to vector<2x8x1xf32>
    %739 = vector.broadcast %738 : vector<2x8x1xf32> to vector<2x8x8xf32>
    %740 = arith.subf %736, %739 : vector<2x8x8xf32>
    %741 = math.exp %740 : vector<2x8x8xf32>
    %cst_301 = arith.constant dense<0.000000e+00> : vector<2x8xf32>
    %742 = vector.multi_reduction <add>, %741, %cst_301 [2] : vector<2x8x8xf32> to vector<2x8xf32>
    %743 = vector.shape_cast %742 : vector<2x8xf32> to vector<2x8x1xf32>
    %744 = tpu.reciprocal %743 {approx = true} : vector<2x8x1xf32> -> vector<2x8x1xf32>
    %745 = vector.broadcast %744 : vector<2x8x1xf32> to vector<2x8x8xf32>
    %746 = arith.mulf %741, %745 : vector<2x8x8xf32>
    "tpu.trace_start"() <{level = 10 : i32, message = "bqk,bkd->bqd"}> : () -> ()
    %cst_302 = arith.constant dense<0.000000e+00> : vector<2x8x8xf32>
    %747 = tpu.matmul %746, %732, %cst_302 {dimension_numbers = #tpu.dot_dimension_numbers<[2], [1], [1], [2], [0, 0, 0, 1, 1, 2], [0], [0]>} : vector<2x8x8xf32>, vector<2x8x8xf32>, vector<2x8x8xf32> -> vector<2x8x8xf32>
    "tpu.trace_stop"() : () -> ()
    %748 = vector.shape_cast %747 : vector<2x8x8xf32> to vector<16x8xf32>
    %749 = vector.extract_strided_slice %718 {offsets = [0, 0], sizes = [8, 32], strides = [1, 1]} : vector<32x32xf32> to vector<8x32xf32>
    %cst_303 = arith.constant dense<0.000000e+00> : vector<16x32xf32>
    %750 = tpu.matmul %748, %749, %cst_303 {dimension_numbers = #tpu.dot_dimension_numbers<[1], [0], [0], [1], [0, 0, 1, 1], [], []>} : vector<16x8xf32>, vector<8x32xf32>, vector<16x32xf32> -> vector<16x32xf32>
    %751 = vector.extract_strided_slice %724 {offsets = [0, 8], sizes = [16, 8], strides = [1, 1]} : vector<16x32xf32> to vector<16x8xf32>
    %752 = vector.shape_cast %751 : vector<16x8xf32> to vector<2x8x8xf32>
    %753 = vector.extract_strided_slice %725 {offsets = [0, 8], sizes = [16, 8], strides = [1, 1]} : vector<16x32xf32> to vector<16x8xf32>
    %754 = vector.shape_cast %753 : vector<16x8xf32> to vector<2x8x8xf32>
    %755 = vector.extract_strided_slice %726 {offsets = [0, 8], sizes = [16, 8], strides = [1, 1]} : vector<16x32xf32> to vector<16x8xf32>
    %756 = vector.shape_cast %755 : vector<16x8xf32> to vector<2x8x8xf32>
    "tpu.trace_start"() <{level = 10 : i32, message = "bqd,bkd->bqk"}> : () -> ()
    %cst_304 = arith.constant dense<0.000000e+00> : vector<2x8x8xf32>
    %757 = tpu.matmul %752, %754, %cst_304 {dimension_numbers = #tpu.dot_dimension_numbers<[2], [2], [1], [1], [0, 0, 0, 1, 1, 1], [0], [0]>} : vector<2x8x8xf32>, vector<2x8x8xf32>, vector<2x8x8xf32> -> vector<2x8x8xf32>
    "tpu.trace_stop"() : () -> ()
    %cst_305 = arith.constant 0.353553385 : f32
    %758 = vector.broadcast %cst_305 : f32 to vector<2x8x8xf32>
    %759 = arith.mulf %757, %758 : vector<2x8x8xf32>
    %760 = arith.addf %759, %0 : vector<2x8x8xf32>
    %cst_306 = arith.constant dense<0xFF800000> : vector<2x8xf32>
    %761 = vector.multi_reduction <maximumf>, %760, %cst_306 [2] : vector<2x8x8xf32> to vector<2x8xf32>
    %762 = vector.shape_cast %761 : vector<2x8xf32> to vector<2x8x1xf32>
    %763 = vector.broadcast %762 : vector<2x8x1xf32> to vector<2x8x8xf32>
    %764 = arith.subf %760, %763 : vector<2x8x8xf32>
    %765 = math.exp %764 : vector<2x8x8xf32>
    %cst_307 = arith.constant dense<0.000000e+00> : vector<2x8xf32>
    %766 = vector.multi_reduction <add>, %765, %cst_307 [2] : vector<2x8x8xf32> to vector<2x8xf32>
    %767 = vector.shape_cast %766 : vector<2x8xf32> to vector<2x8x1xf32>
    %768 = tpu.reciprocal %767 {approx = true} : vector<2x8x1xf32> -> vector<2x8x1xf32>
    %769 = vector.broadcast %768 : vector<2x8x1xf32> to vector<2x8x8xf32>
    %770 = arith.mulf %765, %769 : vector<2x8x8xf32>
    "tpu.trace_start"() <{level = 10 : i32, message = "bqk,bkd->bqd"}> : () -> ()
    %cst_308 = arith.constant dense<0.000000e+00> : vector<2x8x8xf32>
    %771 = tpu.matmul %770, %756, %cst_308 {dimension_numbers = #tpu.dot_dimension_numbers<[2], [1], [1], [2], [0, 0, 0, 1, 1, 2], [0], [0]>} : vector<2x8x8xf32>, vector<2x8x8xf32>, vector<2x8x8xf32> -> vector<2x8x8xf32>
    "tpu.trace_stop"() : () -> ()
    %772 = vector.shape_cast %771 : vector<2x8x8xf32> to vector<16x8xf32>
    %773 = vector.extract_strided_slice %718 {offsets = [8, 0], sizes = [8, 32], strides = [1, 1]} : vector<32x32xf32> to vector<8x32xf32>
    %cst_309 = arith.constant dense<0.000000e+00> : vector<16x32xf32>
    %774 = tpu.matmul %772, %773, %cst_309 {dimension_numbers = #tpu.dot_dimension_numbers<[1], [0], [0], [1], [0, 0, 1, 1], [], []>} : vector<16x8xf32>, vector<8x32xf32>, vector<16x32xf32> -> vector<16x32xf32>
    %775 = arith.addf %750, %774 : vector<16x32xf32>
    %776 = vector.extract_strided_slice %724 {offsets = [0, 16], sizes = [16, 8], strides = [1, 1]} : vector<16x32xf32> to vector<16x8xf32>
    %777 = vector.shape_cast %776 : vector<16x8xf32> to vector<2x8x8xf32>
    %778 = vector.extract_strided_slice %725 {offsets = [0, 16], sizes = [16, 8], strides = [1, 1]} : vector<16x32xf32> to vector<16x8xf32>
    %779 = vector.shape_cast %778 : vector<16x8xf32> to vector<2x8x8xf32>
    %780 = vector.extract_strided_slice %726 {offsets = [0, 16], sizes = [16, 8], strides = [1, 1]} : vector<16x32xf32> to vector<16x8xf32>
    %781 = vector.shape_cast %780 : vector<16x8xf32> to vector<2x8x8xf32>
    "tpu.trace_start"() <{level = 10 : i32, message = "bqd,bkd->bqk"}> : () -> ()
    %cst_310 = arith.constant dense<0.000000e+00> : vector<2x8x8xf32>
    %782 = tpu.matmul %777, %779, %cst_310 {dimension_numbers = #tpu.dot_dimension_numbers<[2], [2], [1], [1], [0, 0, 0, 1, 1, 1], [0], [0]>} : vector<2x8x8xf32>, vector<2x8x8xf32>, vector<2x8x8xf32> -> vector<2x8x8xf32>
    "tpu.trace_stop"() : () -> ()
    %cst_311 = arith.constant 0.353553385 : f32
    %783 = vector.broadcast %cst_311 : f32 to vector<2x8x8xf32>
    %784 = arith.mulf %782, %783 : vector<2x8x8xf32>
    %785 = arith.addf %784, %0 : vector<2x8x8xf32>
    %cst_312 = arith.constant dense<0xFF800000> : vector<2x8xf32>
    %786 = vector.multi_reduction <maximumf>, %785, %cst_312 [2] : vector<2x8x8xf32> to vector<2x8xf32>
    %787 = vector.shape_cast %786 : vector<2x8xf32> to vector<2x8x1xf32>
    %788 = vector.broadcast %787 : vector<2x8x1xf32> to vector<2x8x8xf32>
    %789 = arith.subf %785, %788 : vector<2x8x8xf32>
    %790 = math.exp %789 : vector<2x8x8xf32>
    %cst_313 = arith.constant dense<0.000000e+00> : vector<2x8xf32>
    %791 = vector.multi_reduction <add>, %790, %cst_313 [2] : vector<2x8x8xf32> to vector<2x8xf32>
    %792 = vector.shape_cast %791 : vector<2x8xf32> to vector<2x8x1xf32>
    %793 = tpu.reciprocal %792 {approx = true} : vector<2x8x1xf32> -> vector<2x8x1xf32>
    %794 = vector.broadcast %793 : vector<2x8x1xf32> to vector<2x8x8xf32>
    %795 = arith.mulf %790, %794 : vector<2x8x8xf32>
    "tpu.trace_start"() <{level = 10 : i32, message = "bqk,bkd->bqd"}> : () -> ()
    %cst_314 = arith.constant dense<0.000000e+00> : vector<2x8x8xf32>
    %796 = tpu.matmul %795, %781, %cst_314 {dimension_numbers = #tpu.dot_dimension_numbers<[2], [1], [1], [2], [0, 0, 0, 1, 1, 2], [0], [0]>} : vector<2x8x8xf32>, vector<2x8x8xf32>, vector<2x8x8xf32> -> vector<2x8x8xf32>
    "tpu.trace_stop"() : () -> ()
    %797 = vector.shape_cast %796 : vector<2x8x8xf32> to vector<16x8xf32>
    %798 = vector.extract_strided_slice %718 {offsets = [16, 0], sizes = [8, 32], strides = [1, 1]} : vector<32x32xf32> to vector<8x32xf32>
    %cst_315 = arith.constant dense<0.000000e+00> : vector<16x32xf32>
    %799 = tpu.matmul %797, %798, %cst_315 {dimension_numbers = #tpu.dot_dimension_numbers<[1], [0], [0], [1], [0, 0, 1, 1], [], []>} : vector<16x8xf32>, vector<8x32xf32>, vector<16x32xf32> -> vector<16x32xf32>
    %800 = arith.addf %775, %799 : vector<16x32xf32>
    %801 = vector.extract_strided_slice %724 {offsets = [0, 24], sizes = [16, 8], strides = [1, 1]} : vector<16x32xf32> to vector<16x8xf32>
    %802 = vector.shape_cast %801 : vector<16x8xf32> to vector<2x8x8xf32>
    %803 = vector.extract_strided_slice %725 {offsets = [0, 24], sizes = [16, 8], strides = [1, 1]} : vector<16x32xf32> to vector<16x8xf32>
    %804 = vector.shape_cast %803 : vector<16x8xf32> to vector<2x8x8xf32>
    %805 = vector.extract_strided_slice %726 {offsets = [0, 24], sizes = [16, 8], strides = [1, 1]} : vector<16x32xf32> to vector<16x8xf32>
    %806 = vector.shape_cast %805 : vector<16x8xf32> to vector<2x8x8xf32>
    "tpu.trace_start"() <{level = 10 : i32, message = "bqd,bkd->bqk"}> : () -> ()
    %cst_316 = arith.constant dense<0.000000e+00> : vector<2x8x8xf32>
    %807 = tpu.matmul %802, %804, %cst_316 {dimension_numbers = #tpu.dot_dimension_numbers<[2], [2], [1], [1], [0, 0, 0, 1, 1, 1], [0], [0]>} : vector<2x8x8xf32>, vector<2x8x8xf32>, vector<2x8x8xf32> -> vector<2x8x8xf32>
    "tpu.trace_stop"() : () -> ()
    %cst_317 = arith.constant 0.353553385 : f32
    %808 = vector.broadcast %cst_317 : f32 to vector<2x8x8xf32>
    %809 = arith.mulf %807, %808 : vector<2x8x8xf32>
    %810 = arith.addf %809, %0 : vector<2x8x8xf32>
    %cst_318 = arith.constant dense<0xFF800000> : vector<2x8xf32>
    %811 = vector.multi_reduction <maximumf>, %810, %cst_318 [2] : vector<2x8x8xf32> to vector<2x8xf32>
    %812 = vector.shape_cast %811 : vector<2x8xf32> to vector<2x8x1xf32>
    %813 = vector.broadcast %812 : vector<2x8x1xf32> to vector<2x8x8xf32>
    %814 = arith.subf %810, %813 : vector<2x8x8xf32>
    %815 = math.exp %814 : vector<2x8x8xf32>
    %cst_319 = arith.constant dense<0.000000e+00> : vector<2x8xf32>
    %816 = vector.multi_reduction <add>, %815, %cst_319 [2] : vector<2x8x8xf32> to vector<2x8xf32>
    %817 = vector.shape_cast %816 : vector<2x8xf32> to vector<2x8x1xf32>
    %818 = tpu.reciprocal %817 {approx = true} : vector<2x8x1xf32> -> vector<2x8x1xf32>
    %819 = vector.broadcast %818 : vector<2x8x1xf32> to vector<2x8x8xf32>
    %820 = arith.mulf %815, %819 : vector<2x8x8xf32>
    "tpu.trace_start"() <{level = 10 : i32, message = "bqk,bkd->bqd"}> : () -> ()
    %cst_320 = arith.constant dense<0.000000e+00> : vector<2x8x8xf32>
    %821 = tpu.matmul %820, %806, %cst_320 {dimension_numbers = #tpu.dot_dimension_numbers<[2], [1], [1], [2], [0, 0, 0, 1, 1, 2], [0], [0]>} : vector<2x8x8xf32>, vector<2x8x8xf32>, vector<2x8x8xf32> -> vector<2x8x8xf32>
    "tpu.trace_stop"() : () -> ()
    %822 = vector.shape_cast %821 : vector<2x8x8xf32> to vector<16x8xf32>
    %823 = vector.extract_strided_slice %718 {offsets = [24, 0], sizes = [8, 32], strides = [1, 1]} : vector<32x32xf32> to vector<8x32xf32>
    %cst_321 = arith.constant dense<0.000000e+00> : vector<16x32xf32>
    %824 = tpu.matmul %822, %823, %cst_321 {dimension_numbers = #tpu.dot_dimension_numbers<[1], [0], [0], [1], [0, 0, 1, 1], [], []>} : vector<16x8xf32>, vector<8x32xf32>, vector<16x32xf32> -> vector<16x32xf32>
    %825 = arith.addf %800, %824 : vector<16x32xf32>
    %826 = vector.broadcast %720 : vector<1x32xf32> to vector<16x32xf32>
    %827 = arith.addf %825, %826 : vector<16x32xf32>
    %828 = arith.addf %712, %827 : vector<16x32xf32>
    %c1_322 = arith.constant 1 : index
    %c0_323 = arith.constant 0 : index
    %c0_324 = arith.constant 0 : index
    %829 = vector.load %arg12[%c1_322, %c0_323, %c0_324] : memref<2x1x32xf32, #tpu.memory_space<vmem>>, vector<1x1x32xf32>
    %830 = vector.shape_cast %829 : vector<1x1x32xf32> to vector<1x32xf32>
    %c1_325 = arith.constant 1 : index
    %c0_326 = arith.constant 0 : index
    %c0_327 = arith.constant 0 : index
    %831 = vector.load %arg11[%c1_325, %c0_326, %c0_327] : memref<2x1x32xf32, #tpu.memory_space<vmem>>, vector<1x1x32xf32>
    %832 = vector.shape_cast %831 : vector<1x1x32xf32> to vector<1x32xf32>
    %cst_328 = arith.constant dense<0.000000e+00> : vector<16xf32>
    %833 = vector.multi_reduction <add>, %828, %cst_328 [1] : vector<16x32xf32> to vector<16xf32>
    %834 = vector.shape_cast %833 : vector<16xf32> to vector<16x1xf32>
    %cst_329 = arith.constant 3.200000e+01 : f32
    %835 = vector.broadcast %cst_329 : f32 to vector<16x1xf32>
    %836 = arith.divf %834, %835 : vector<16x1xf32>
    %837 = vector.broadcast %836 : vector<16x1xf32> to vector<16x32xf32>
    %838 = arith.subf %828, %837 : vector<16x32xf32>
    %839 = arith.mulf %838, %838 : vector<16x32xf32>
    %cst_330 = arith.constant dense<0.000000e+00> : vector<16xf32>
    %840 = vector.multi_reduction <add>, %839, %cst_330 [1] : vector<16x32xf32> to vector<16xf32>
    %841 = vector.shape_cast %840 : vector<16xf32> to vector<16x1xf32>
    %cst_331 = arith.constant 3.200000e+01 : f32
    %842 = vector.broadcast %cst_331 : f32 to vector<16x1xf32>
    %843 = arith.divf %841, %842 : vector<16x1xf32>
    %cst_332 = arith.constant 9.99999974E-6 : f32
    %844 = vector.broadcast %cst_332 : f32 to vector<16x1xf32>
    %845 = arith.addf %843, %844 : vector<16x1xf32>
    %846 = math.rsqrt %845 : vector<16x1xf32>
    %847 = vector.broadcast %846 : vector<16x1xf32> to vector<16x32xf32>
    %848 = arith.mulf %838, %847 : vector<16x32xf32>
    %849 = vector.broadcast %830 : vector<1x32xf32> to vector<16x32xf32>
    %850 = arith.mulf %848, %849 : vector<16x32xf32>
    %851 = vector.broadcast %832 : vector<1x32xf32> to vector<16x32xf32>
    %852 = arith.addf %850, %851 : vector<16x32xf32>
    %c1_333 = arith.constant 1 : index
    %c0_334 = arith.constant 0 : index
    %c0_335 = arith.constant 0 : index
    %853 = vector.load %arg4[%c1_333, %c0_334, %c0_335] : memref<2x32x96xf32, #tpu.memory_space<vmem>>, vector<1x32x96xf32>
    %854 = vector.shape_cast %853 : vector<1x32x96xf32> to vector<32x96xf32>
    %c1_336 = arith.constant 1 : index
    %c0_337 = arith.constant 0 : index
    %c0_338 = arith.constant 0 : index
    %855 = vector.load %arg3[%c1_336, %c0_337, %c0_338] : memref<2x1x96xf32, #tpu.memory_space<vmem>>, vector<1x1x96xf32>
    %856 = vector.shape_cast %855 : vector<1x1x96xf32> to vector<1x96xf32>
    %c1_339 = arith.constant 1 : index
    %c0_340 = arith.constant 0 : index
    %c0_341 = arith.constant 0 : index
    %857 = vector.load %arg6[%c1_339, %c0_340, %c0_341] : memref<2x32x32xf32, #tpu.memory_space<vmem>>, vector<1x32x32xf32>
    %858 = vector.shape_cast %857 : vector<1x32x32xf32> to vector<32x32xf32>
    %c1_342 = arith.constant 1 : index
    %c0_343 = arith.constant 0 : index
    %c0_344 = arith.constant 0 : index
    %859 = vector.load %arg5[%c1_342, %c0_343, %c0_344] : memref<2x1x32xf32, #tpu.memory_space<vmem>>, vector<1x1x32xf32>
    %860 = vector.shape_cast %859 : vector<1x1x32xf32> to vector<1x32xf32>
    %861 = vector.extract_strided_slice %854 {offsets = [0, 0], sizes = [32, 32], strides = [1, 1]} : vector<32x96xf32> to vector<32x32xf32>
    %cst_345 = arith.constant dense<0.000000e+00> : vector<16x32xf32>
    %862 = tpu.matmul %852, %861, %cst_345 {dimension_numbers = #tpu.dot_dimension_numbers<[1], [0], [0], [1], [0, 0, 1, 1], [], []>} : vector<16x32xf32>, vector<32x32xf32>, vector<16x32xf32> -> vector<16x32xf32>
    %863 = vector.extract_strided_slice %856 {offsets = [0, 0], sizes = [1, 32], strides = [1, 1]} : vector<1x96xf32> to vector<1x32xf32>
    %864 = vector.broadcast %863 : vector<1x32xf32> to vector<16x32xf32>
    %865 = arith.addf %862, %864 : vector<16x32xf32>
    %866 = vector.extract_strided_slice %854 {offsets = [0, 32], sizes = [32, 32], strides = [1, 1]} : vector<32x96xf32> to vector<32x32xf32>
    %cst_346 = arith.constant dense<0.000000e+00> : vector<16x32xf32>
    %867 = tpu.matmul %385, %866, %cst_346 {dimension_numbers = #tpu.dot_dimension_numbers<[1], [0], [0], [1], [0, 0, 1, 1], [], []>} : vector<16x32xf32>, vector<32x32xf32>, vector<16x32xf32> -> vector<16x32xf32>
    %868 = vector.extract_strided_slice %856 {offsets = [0, 32], sizes = [1, 32], strides = [1, 1]} : vector<1x96xf32> to vector<1x32xf32>
    %869 = vector.broadcast %868 : vector<1x32xf32> to vector<16x32xf32>
    %870 = arith.addf %867, %869 : vector<16x32xf32>
    %871 = vector.extract_strided_slice %854 {offsets = [0, 64], sizes = [32, 32], strides = [1, 1]} : vector<32x96xf32> to vector<32x32xf32>
    %cst_347 = arith.constant dense<0.000000e+00> : vector<16x32xf32>
    %872 = tpu.matmul %385, %871, %cst_347 {dimension_numbers = #tpu.dot_dimension_numbers<[1], [0], [0], [1], [0, 0, 1, 1], [], []>} : vector<16x32xf32>, vector<32x32xf32>, vector<16x32xf32> -> vector<16x32xf32>
    %873 = vector.extract_strided_slice %856 {offsets = [0, 64], sizes = [1, 32], strides = [1, 1]} : vector<1x96xf32> to vector<1x32xf32>
    %874 = vector.broadcast %873 : vector<1x32xf32> to vector<16x32xf32>
    %875 = arith.addf %872, %874 : vector<16x32xf32>
    %876 = vector.extract_strided_slice %865 {offsets = [0, 0], sizes = [16, 8], strides = [1, 1]} : vector<16x32xf32> to vector<16x8xf32>
    %877 = vector.shape_cast %876 : vector<16x8xf32> to vector<2x8x8xf32>
    %878 = vector.extract_strided_slice %870 {offsets = [0, 0], sizes = [16, 8], strides = [1, 1]} : vector<16x32xf32> to vector<16x8xf32>
    %879 = vector.shape_cast %878 : vector<16x8xf32> to vector<2x8x8xf32>
    %880 = vector.extract_strided_slice %875 {offsets = [0, 0], sizes = [16, 8], strides = [1, 1]} : vector<16x32xf32> to vector<16x8xf32>
    %881 = vector.shape_cast %880 : vector<16x8xf32> to vector<2x8x8xf32>
    "tpu.trace_start"() <{level = 10 : i32, message = "bqd,bkd->bqk"}> : () -> ()
    %cst_348 = arith.constant dense<0.000000e+00> : vector<2x8x8xf32>
    %882 = tpu.matmul %877, %879, %cst_348 {dimension_numbers = #tpu.dot_dimension_numbers<[2], [2], [1], [1], [0, 0, 0, 1, 1, 1], [0], [0]>} : vector<2x8x8xf32>, vector<2x8x8xf32>, vector<2x8x8xf32> -> vector<2x8x8xf32>
    "tpu.trace_stop"() : () -> ()
    %cst_349 = arith.constant 0.353553385 : f32
    %883 = vector.broadcast %cst_349 : f32 to vector<2x8x8xf32>
    %884 = arith.mulf %882, %883 : vector<2x8x8xf32>
    %cst_350 = arith.constant dense<0xFF800000> : vector<2x8xf32>
    %885 = vector.multi_reduction <maximumf>, %884, %cst_350 [2] : vector<2x8x8xf32> to vector<2x8xf32>
    %886 = vector.shape_cast %885 : vector<2x8xf32> to vector<2x8x1xf32>
    %887 = vector.broadcast %886 : vector<2x8x1xf32> to vector<2x8x8xf32>
    %888 = arith.subf %884, %887 : vector<2x8x8xf32>
    %889 = math.exp %888 : vector<2x8x8xf32>
    %cst_351 = arith.constant dense<0.000000e+00> : vector<2x8xf32>
    %890 = vector.multi_reduction <add>, %889, %cst_351 [2] : vector<2x8x8xf32> to vector<2x8xf32>
    %891 = vector.shape_cast %890 : vector<2x8xf32> to vector<2x8x1xf32>
    %892 = tpu.reciprocal %891 {approx = true} : vector<2x8x1xf32> -> vector<2x8x1xf32>
    %893 = vector.broadcast %892 : vector<2x8x1xf32> to vector<2x8x8xf32>
    %894 = arith.mulf %889, %893 : vector<2x8x8xf32>
    "tpu.trace_start"() <{level = 10 : i32, message = "bqk,bkd->bqd"}> : () -> ()
    %cst_352 = arith.constant dense<0.000000e+00> : vector<2x8x8xf32>
    %895 = tpu.matmul %894, %881, %cst_352 {dimension_numbers = #tpu.dot_dimension_numbers<[2], [1], [1], [2], [0, 0, 0, 1, 1, 2], [0], [0]>} : vector<2x8x8xf32>, vector<2x8x8xf32>, vector<2x8x8xf32> -> vector<2x8x8xf32>
    "tpu.trace_stop"() : () -> ()
    %896 = vector.shape_cast %895 : vector<2x8x8xf32> to vector<16x8xf32>
    %897 = vector.extract_strided_slice %858 {offsets = [0, 0], sizes = [8, 32], strides = [1, 1]} : vector<32x32xf32> to vector<8x32xf32>
    %cst_353 = arith.constant dense<0.000000e+00> : vector<16x32xf32>
    %898 = tpu.matmul %896, %897, %cst_353 {dimension_numbers = #tpu.dot_dimension_numbers<[1], [0], [0], [1], [0, 0, 1, 1], [], []>} : vector<16x8xf32>, vector<8x32xf32>, vector<16x32xf32> -> vector<16x32xf32>
    %899 = vector.extract_strided_slice %865 {offsets = [0, 8], sizes = [16, 8], strides = [1, 1]} : vector<16x32xf32> to vector<16x8xf32>
    %900 = vector.shape_cast %899 : vector<16x8xf32> to vector<2x8x8xf32>
    %901 = vector.extract_strided_slice %870 {offsets = [0, 8], sizes = [16, 8], strides = [1, 1]} : vector<16x32xf32> to vector<16x8xf32>
    %902 = vector.shape_cast %901 : vector<16x8xf32> to vector<2x8x8xf32>
    %903 = vector.extract_strided_slice %875 {offsets = [0, 8], sizes = [16, 8], strides = [1, 1]} : vector<16x32xf32> to vector<16x8xf32>
    %904 = vector.shape_cast %903 : vector<16x8xf32> to vector<2x8x8xf32>
    "tpu.trace_start"() <{level = 10 : i32, message = "bqd,bkd->bqk"}> : () -> ()
    %cst_354 = arith.constant dense<0.000000e+00> : vector<2x8x8xf32>
    %905 = tpu.matmul %900, %902, %cst_354 {dimension_numbers = #tpu.dot_dimension_numbers<[2], [2], [1], [1], [0, 0, 0, 1, 1, 1], [0], [0]>} : vector<2x8x8xf32>, vector<2x8x8xf32>, vector<2x8x8xf32> -> vector<2x8x8xf32>
    "tpu.trace_stop"() : () -> ()
    %cst_355 = arith.constant 0.353553385 : f32
    %906 = vector.broadcast %cst_355 : f32 to vector<2x8x8xf32>
    %907 = arith.mulf %905, %906 : vector<2x8x8xf32>
    %cst_356 = arith.constant dense<0xFF800000> : vector<2x8xf32>
    %908 = vector.multi_reduction <maximumf>, %907, %cst_356 [2] : vector<2x8x8xf32> to vector<2x8xf32>
    %909 = vector.shape_cast %908 : vector<2x8xf32> to vector<2x8x1xf32>
    %910 = vector.broadcast %909 : vector<2x8x1xf32> to vector<2x8x8xf32>
    %911 = arith.subf %907, %910 : vector<2x8x8xf32>
    %912 = math.exp %911 : vector<2x8x8xf32>
    %cst_357 = arith.constant dense<0.000000e+00> : vector<2x8xf32>
    %913 = vector.multi_reduction <add>, %912, %cst_357 [2] : vector<2x8x8xf32> to vector<2x8xf32>
    %914 = vector.shape_cast %913 : vector<2x8xf32> to vector<2x8x1xf32>
    %915 = tpu.reciprocal %914 {approx = true} : vector<2x8x1xf32> -> vector<2x8x1xf32>
    %916 = vector.broadcast %915 : vector<2x8x1xf32> to vector<2x8x8xf32>
    %917 = arith.mulf %912, %916 : vector<2x8x8xf32>
    "tpu.trace_start"() <{level = 10 : i32, message = "bqk,bkd->bqd"}> : () -> ()
    %cst_358 = arith.constant dense<0.000000e+00> : vector<2x8x8xf32>
    %918 = tpu.matmul %917, %904, %cst_358 {dimension_numbers = #tpu.dot_dimension_numbers<[2], [1], [1], [2], [0, 0, 0, 1, 1, 2], [0], [0]>} : vector<2x8x8xf32>, vector<2x8x8xf32>, vector<2x8x8xf32> -> vector<2x8x8xf32>
    "tpu.trace_stop"() : () -> ()
    %919 = vector.shape_cast %918 : vector<2x8x8xf32> to vector<16x8xf32>
    %920 = vector.extract_strided_slice %858 {offsets = [8, 0], sizes = [8, 32], strides = [1, 1]} : vector<32x32xf32> to vector<8x32xf32>
    %cst_359 = arith.constant dense<0.000000e+00> : vector<16x32xf32>
    %921 = tpu.matmul %919, %920, %cst_359 {dimension_numbers = #tpu.dot_dimension_numbers<[1], [0], [0], [1], [0, 0, 1, 1], [], []>} : vector<16x8xf32>, vector<8x32xf32>, vector<16x32xf32> -> vector<16x32xf32>
    %922 = arith.addf %898, %921 : vector<16x32xf32>
    %923 = vector.extract_strided_slice %865 {offsets = [0, 16], sizes = [16, 8], strides = [1, 1]} : vector<16x32xf32> to vector<16x8xf32>
    %924 = vector.shape_cast %923 : vector<16x8xf32> to vector<2x8x8xf32>
    %925 = vector.extract_strided_slice %870 {offsets = [0, 16], sizes = [16, 8], strides = [1, 1]} : vector<16x32xf32> to vector<16x8xf32>
    %926 = vector.shape_cast %925 : vector<16x8xf32> to vector<2x8x8xf32>
    %927 = vector.extract_strided_slice %875 {offsets = [0, 16], sizes = [16, 8], strides = [1, 1]} : vector<16x32xf32> to vector<16x8xf32>
    %928 = vector.shape_cast %927 : vector<16x8xf32> to vector<2x8x8xf32>
    "tpu.trace_start"() <{level = 10 : i32, message = "bqd,bkd->bqk"}> : () -> ()
    %cst_360 = arith.constant dense<0.000000e+00> : vector<2x8x8xf32>
    %929 = tpu.matmul %924, %926, %cst_360 {dimension_numbers = #tpu.dot_dimension_numbers<[2], [2], [1], [1], [0, 0, 0, 1, 1, 1], [0], [0]>} : vector<2x8x8xf32>, vector<2x8x8xf32>, vector<2x8x8xf32> -> vector<2x8x8xf32>
    "tpu.trace_stop"() : () -> ()
    %cst_361 = arith.constant 0.353553385 : f32
    %930 = vector.broadcast %cst_361 : f32 to vector<2x8x8xf32>
    %931 = arith.mulf %929, %930 : vector<2x8x8xf32>
    %cst_362 = arith.constant dense<0xFF800000> : vector<2x8xf32>
    %932 = vector.multi_reduction <maximumf>, %931, %cst_362 [2] : vector<2x8x8xf32> to vector<2x8xf32>
    %933 = vector.shape_cast %932 : vector<2x8xf32> to vector<2x8x1xf32>
    %934 = vector.broadcast %933 : vector<2x8x1xf32> to vector<2x8x8xf32>
    %935 = arith.subf %931, %934 : vector<2x8x8xf32>
    %936 = math.exp %935 : vector<2x8x8xf32>
    %cst_363 = arith.constant dense<0.000000e+00> : vector<2x8xf32>
    %937 = vector.multi_reduction <add>, %936, %cst_363 [2] : vector<2x8x8xf32> to vector<2x8xf32>
    %938 = vector.shape_cast %937 : vector<2x8xf32> to vector<2x8x1xf32>
    %939 = tpu.reciprocal %938 {approx = true} : vector<2x8x1xf32> -> vector<2x8x1xf32>
    %940 = vector.broadcast %939 : vector<2x8x1xf32> to vector<2x8x8xf32>
    %941 = arith.mulf %936, %940 : vector<2x8x8xf32>
    "tpu.trace_start"() <{level = 10 : i32, message = "bqk,bkd->bqd"}> : () -> ()
    %cst_364 = arith.constant dense<0.000000e+00> : vector<2x8x8xf32>
    %942 = tpu.matmul %941, %928, %cst_364 {dimension_numbers = #tpu.dot_dimension_numbers<[2], [1], [1], [2], [0, 0, 0, 1, 1, 2], [0], [0]>} : vector<2x8x8xf32>, vector<2x8x8xf32>, vector<2x8x8xf32> -> vector<2x8x8xf32>
    "tpu.trace_stop"() : () -> ()
    %943 = vector.shape_cast %942 : vector<2x8x8xf32> to vector<16x8xf32>
    %944 = vector.extract_strided_slice %858 {offsets = [16, 0], sizes = [8, 32], strides = [1, 1]} : vector<32x32xf32> to vector<8x32xf32>
    %cst_365 = arith.constant dense<0.000000e+00> : vector<16x32xf32>
    %945 = tpu.matmul %943, %944, %cst_365 {dimension_numbers = #tpu.dot_dimension_numbers<[1], [0], [0], [1], [0, 0, 1, 1], [], []>} : vector<16x8xf32>, vector<8x32xf32>, vector<16x32xf32> -> vector<16x32xf32>
    %946 = arith.addf %922, %945 : vector<16x32xf32>
    %947 = vector.extract_strided_slice %865 {offsets = [0, 24], sizes = [16, 8], strides = [1, 1]} : vector<16x32xf32> to vector<16x8xf32>
    %948 = vector.shape_cast %947 : vector<16x8xf32> to vector<2x8x8xf32>
    %949 = vector.extract_strided_slice %870 {offsets = [0, 24], sizes = [16, 8], strides = [1, 1]} : vector<16x32xf32> to vector<16x8xf32>
    %950 = vector.shape_cast %949 : vector<16x8xf32> to vector<2x8x8xf32>
    %951 = vector.extract_strided_slice %875 {offsets = [0, 24], sizes = [16, 8], strides = [1, 1]} : vector<16x32xf32> to vector<16x8xf32>
    %952 = vector.shape_cast %951 : vector<16x8xf32> to vector<2x8x8xf32>
    "tpu.trace_start"() <{level = 10 : i32, message = "bqd,bkd->bqk"}> : () -> ()
    %cst_366 = arith.constant dense<0.000000e+00> : vector<2x8x8xf32>
    %953 = tpu.matmul %948, %950, %cst_366 {dimension_numbers = #tpu.dot_dimension_numbers<[2], [2], [1], [1], [0, 0, 0, 1, 1, 1], [0], [0]>} : vector<2x8x8xf32>, vector<2x8x8xf32>, vector<2x8x8xf32> -> vector<2x8x8xf32>
    "tpu.trace_stop"() : () -> ()
    %cst_367 = arith.constant 0.353553385 : f32
    %954 = vector.broadcast %cst_367 : f32 to vector<2x8x8xf32>
    %955 = arith.mulf %953, %954 : vector<2x8x8xf32>
    %cst_368 = arith.constant dense<0xFF800000> : vector<2x8xf32>
    %956 = vector.multi_reduction <maximumf>, %955, %cst_368 [2] : vector<2x8x8xf32> to vector<2x8xf32>
    %957 = vector.shape_cast %956 : vector<2x8xf32> to vector<2x8x1xf32>
    %958 = vector.broadcast %957 : vector<2x8x1xf32> to vector<2x8x8xf32>
    %959 = arith.subf %955, %958 : vector<2x8x8xf32>
    %960 = math.exp %959 : vector<2x8x8xf32>
    %cst_369 = arith.constant dense<0.000000e+00> : vector<2x8xf32>
    %961 = vector.multi_reduction <add>, %960, %cst_369 [2] : vector<2x8x8xf32> to vector<2x8xf32>
    %962 = vector.shape_cast %961 : vector<2x8xf32> to vector<2x8x1xf32>
    %963 = tpu.reciprocal %962 {approx = true} : vector<2x8x1xf32> -> vector<2x8x1xf32>
    %964 = vector.broadcast %963 : vector<2x8x1xf32> to vector<2x8x8xf32>
    %965 = arith.mulf %960, %964 : vector<2x8x8xf32>
    "tpu.trace_start"() <{level = 10 : i32, message = "bqk,bkd->bqd"}> : () -> ()
    %cst_370 = arith.constant dense<0.000000e+00> : vector<2x8x8xf32>
    %966 = tpu.matmul %965, %952, %cst_370 {dimension_numbers = #tpu.dot_dimension_numbers<[2], [1], [1], [2], [0, 0, 0, 1, 1, 2], [0], [0]>} : vector<2x8x8xf32>, vector<2x8x8xf32>, vector<2x8x8xf32> -> vector<2x8x8xf32>
    "tpu.trace_stop"() : () -> ()
    %967 = vector.shape_cast %966 : vector<2x8x8xf32> to vector<16x8xf32>
    %968 = vector.extract_strided_slice %858 {offsets = [24, 0], sizes = [8, 32], strides = [1, 1]} : vector<32x32xf32> to vector<8x32xf32>
    %cst_371 = arith.constant dense<0.000000e+00> : vector<16x32xf32>
    %969 = tpu.matmul %967, %968, %cst_371 {dimension_numbers = #tpu.dot_dimension_numbers<[1], [0], [0], [1], [0, 0, 1, 1], [], []>} : vector<16x8xf32>, vector<8x32xf32>, vector<16x32xf32> -> vector<16x32xf32>
    %970 = arith.addf %946, %969 : vector<16x32xf32>
    %971 = vector.broadcast %860 : vector<1x32xf32> to vector<16x32xf32>
    %972 = arith.addf %970, %971 : vector<16x32xf32>
    %973 = arith.addf %852, %972 : vector<16x32xf32>
    %c1_372 = arith.constant 1 : index
    %c0_373 = arith.constant 0 : index
    %c0_374 = arith.constant 0 : index
    %974 = vector.load %arg14[%c1_372, %c0_373, %c0_374] : memref<2x1x32xf32, #tpu.memory_space<vmem>>, vector<1x1x32xf32>
    %975 = vector.shape_cast %974 : vector<1x1x32xf32> to vector<1x32xf32>
    %c1_375 = arith.constant 1 : index
    %c0_376 = arith.constant 0 : index
    %c0_377 = arith.constant 0 : index
    %976 = vector.load %arg13[%c1_375, %c0_376, %c0_377] : memref<2x1x32xf32, #tpu.memory_space<vmem>>, vector<1x1x32xf32>
    %977 = vector.shape_cast %976 : vector<1x1x32xf32> to vector<1x32xf32>
    %cst_378 = arith.constant dense<0.000000e+00> : vector<16xf32>
    %978 = vector.multi_reduction <add>, %973, %cst_378 [1] : vector<16x32xf32> to vector<16xf32>
    %979 = vector.shape_cast %978 : vector<16xf32> to vector<16x1xf32>
    %cst_379 = arith.constant 3.200000e+01 : f32
    %980 = vector.broadcast %cst_379 : f32 to vector<16x1xf32>
    %981 = arith.divf %979, %980 : vector<16x1xf32>
    %982 = vector.broadcast %981 : vector<16x1xf32> to vector<16x32xf32>
    %983 = arith.subf %973, %982 : vector<16x32xf32>
    %984 = arith.mulf %983, %983 : vector<16x32xf32>
    %cst_380 = arith.constant dense<0.000000e+00> : vector<16xf32>
    %985 = vector.multi_reduction <add>, %984, %cst_380 [1] : vector<16x32xf32> to vector<16xf32>
    %986 = vector.shape_cast %985 : vector<16xf32> to vector<16x1xf32>
    %cst_381 = arith.constant 3.200000e+01 : f32
    %987 = vector.broadcast %cst_381 : f32 to vector<16x1xf32>
    %988 = arith.divf %986, %987 : vector<16x1xf32>
    %cst_382 = arith.constant 9.99999974E-6 : f32
    %989 = vector.broadcast %cst_382 : f32 to vector<16x1xf32>
    %990 = arith.addf %988, %989 : vector<16x1xf32>
    %991 = math.rsqrt %990 : vector<16x1xf32>
    %992 = vector.broadcast %991 : vector<16x1xf32> to vector<16x32xf32>
    %993 = arith.mulf %983, %992 : vector<16x32xf32>
    %994 = vector.broadcast %975 : vector<1x32xf32> to vector<16x32xf32>
    %995 = arith.mulf %993, %994 : vector<16x32xf32>
    %996 = vector.broadcast %977 : vector<1x32xf32> to vector<16x32xf32>
    %997 = arith.addf %995, %996 : vector<16x32xf32>
    %c1_383 = arith.constant 1 : index
    %c0_384 = arith.constant 0 : index
    %c0_385 = arith.constant 0 : index
    %998 = vector.load %arg8[%c1_383, %c0_384, %c0_385] : memref<2x32x64xf32, #tpu.memory_space<vmem>>, vector<1x32x64xf32>
    %999 = vector.shape_cast %998 : vector<1x32x64xf32> to vector<32x64xf32>
    %c1_386 = arith.constant 1 : index
    %c0_387 = arith.constant 0 : index
    %c0_388 = arith.constant 0 : index
    %1000 = vector.load %arg7[%c1_386, %c0_387, %c0_388] : memref<2x1x64xf32, #tpu.memory_space<vmem>>, vector<1x1x64xf32>
    %1001 = vector.shape_cast %1000 : vector<1x1x64xf32> to vector<1x64xf32>
    %c1_389 = arith.constant 1 : index
    %c0_390 = arith.constant 0 : index
    %c0_391 = arith.constant 0 : index
    %1002 = vector.load %arg10[%c1_389, %c0_390, %c0_391] : memref<2x64x32xf32, #tpu.memory_space<vmem>>, vector<1x64x32xf32>
    %1003 = vector.shape_cast %1002 : vector<1x64x32xf32> to vector<64x32xf32>
    %c1_392 = arith.constant 1 : index
    %c0_393 = arith.constant 0 : index
    %c0_394 = arith.constant 0 : index
    %1004 = vector.load %arg9[%c1_392, %c0_393, %c0_394] : memref<2x1x32xf32, #tpu.memory_space<vmem>>, vector<1x1x32xf32>
    %1005 = vector.shape_cast %1004 : vector<1x1x32xf32> to vector<1x32xf32>
    %cst_395 = arith.constant dense<0.000000e+00> : vector<16x64xf32>
    %1006 = tpu.matmul %997, %999, %cst_395 {dimension_numbers = #tpu.dot_dimension_numbers<[1], [0], [0], [1], [0, 0, 1, 1], [], []>} : vector<16x32xf32>, vector<32x64xf32>, vector<16x64xf32> -> vector<16x64xf32>
    %1007 = vector.broadcast %1001 : vector<1x64xf32> to vector<16x64xf32>
    %1008 = arith.addf %1006, %1007 : vector<16x64xf32>
    %cst_396 = arith.constant 0.000000e+00 : f32
    %1009 = vector.broadcast %cst_396 : f32 to vector<16x64xf32>
    %1010 = arith.maximumf %1008, %1009 : vector<16x64xf32>
    %cst_397 = arith.constant dense<0.000000e+00> : vector<16x32xf32>
    %1011 = tpu.matmul %1010, %1003, %cst_397 {dimension_numbers = #tpu.dot_dimension_numbers<[1], [0], [0], [1], [0, 0, 1, 1], [], []>} : vector<16x64xf32>, vector<64x32xf32>, vector<16x32xf32> -> vector<16x32xf32>
    %1012 = vector.broadcast %1005 : vector<1x32xf32> to vector<16x32xf32>
    %1013 = arith.addf %1011, %1012 : vector<16x32xf32>
    %1014 = arith.addf %997, %1013 : vector<16x32xf32>
    %c1_398 = arith.constant 1 : index
    %c0_399 = arith.constant 0 : index
    %c0_400 = arith.constant 0 : index
    %1015 = vector.load %arg16[%c1_398, %c0_399, %c0_400] : memref<2x1x32xf32, #tpu.memory_space<vmem>>, vector<1x1x32xf32>
    %1016 = vector.shape_cast %1015 : vector<1x1x32xf32> to vector<1x32xf32>
    %c1_401 = arith.constant 1 : index
    %c0_402 = arith.constant 0 : index
    %c0_403 = arith.constant 0 : index
    %1017 = vector.load %arg15[%c1_401, %c0_402, %c0_403] : memref<2x1x32xf32, #tpu.memory_space<vmem>>, vector<1x1x32xf32>
    %1018 = vector.shape_cast %1017 : vector<1x1x32xf32> to vector<1x32xf32>
    %cst_404 = arith.constant dense<0.000000e+00> : vector<16xf32>
    %1019 = vector.multi_reduction <add>, %1014, %cst_404 [1] : vector<16x32xf32> to vector<16xf32>
    %1020 = vector.shape_cast %1019 : vector<16xf32> to vector<16x1xf32>
    %cst_405 = arith.constant 3.200000e+01 : f32
    %1021 = vector.broadcast %cst_405 : f32 to vector<16x1xf32>
    %1022 = arith.divf %1020, %1021 : vector<16x1xf32>
    %1023 = vector.broadcast %1022 : vector<16x1xf32> to vector<16x32xf32>
    %1024 = arith.subf %1014, %1023 : vector<16x32xf32>
    %1025 = arith.mulf %1024, %1024 : vector<16x32xf32>
    %cst_406 = arith.constant dense<0.000000e+00> : vector<16xf32>
    %1026 = vector.multi_reduction <add>, %1025, %cst_406 [1] : vector<16x32xf32> to vector<16xf32>
    %1027 = vector.shape_cast %1026 : vector<16xf32> to vector<16x1xf32>
    %cst_407 = arith.constant 3.200000e+01 : f32
    %1028 = vector.broadcast %cst_407 : f32 to vector<16x1xf32>
    %1029 = arith.divf %1027, %1028 : vector<16x1xf32>
    %cst_408 = arith.constant 9.99999974E-6 : f32
    %1030 = vector.broadcast %cst_408 : f32 to vector<16x1xf32>
    %1031 = arith.addf %1029, %1030 : vector<16x1xf32>
    %1032 = math.rsqrt %1031 : vector<16x1xf32>
    %1033 = vector.broadcast %1032 : vector<16x1xf32> to vector<16x32xf32>
    %1034 = arith.mulf %1024, %1033 : vector<16x32xf32>
    %1035 = vector.broadcast %1016 : vector<1x32xf32> to vector<16x32xf32>
    %1036 = arith.mulf %1034, %1035 : vector<16x32xf32>
    %1037 = vector.broadcast %1018 : vector<1x32xf32> to vector<16x32xf32>
    %1038 = arith.addf %1036, %1037 : vector<16x32xf32>
    %c0_409 = arith.constant 0 : index
    %c0_410 = arith.constant 0 : index
    %1039 = vector.load %arg22[%c0_409, %c0_410] : memref<1x32xf32, #tpu.memory_space<vmem>>, vector<1x32xf32>
    %c0_411 = arith.constant 0 : index
    %c0_412 = arith.constant 0 : index
    %1040 = vector.load %arg21[%c0_411, %c0_412] : memref<1x32xf32, #tpu.memory_space<vmem>>, vector<1x32xf32>
    %cst_413 = arith.constant dense<0.000000e+00> : vector<16xf32>
    %1041 = vector.multi_reduction <add>, %1038, %cst_413 [1] : vector<16x32xf32> to vector<16xf32>
    %1042 = vector.shape_cast %1041 : vector<16xf32> to vector<16x1xf32>
    %cst_414 = arith.constant 3.200000e+01 : f32
    %1043 = vector.broadcast %cst_414 : f32 to vector<16x1xf32>
    %1044 = arith.divf %1042, %1043 : vector<16x1xf32>
    %1045 = vector.broadcast %1044 : vector<16x1xf32> to vector<16x32xf32>
    %1046 = arith.subf %1038, %1045 : vector<16x32xf32>
    %1047 = arith.mulf %1046, %1046 : vector<16x32xf32>
    %cst_415 = arith.constant dense<0.000000e+00> : vector<16xf32>
    %1048 = vector.multi_reduction <add>, %1047, %cst_415 [1] : vector<16x32xf32> to vector<16xf32>
    %1049 = vector.shape_cast %1048 : vector<16xf32> to vector<16x1xf32>
    %cst_416 = arith.constant 3.200000e+01 : f32
    %1050 = vector.broadcast %cst_416 : f32 to vector<16x1xf32>
    %1051 = arith.divf %1049, %1050 : vector<16x1xf32>
    %cst_417 = arith.constant 9.99999974E-6 : f32
    %1052 = vector.broadcast %cst_417 : f32 to vector<16x1xf32>
    %1053 = arith.addf %1051, %1052 : vector<16x1xf32>
    %1054 = math.rsqrt %1053 : vector<16x1xf32>
    %1055 = vector.broadcast %1054 : vector<16x1xf32> to vector<16x32xf32>
    %1056 = arith.mulf %1046, %1055 : vector<16x32xf32>
    %1057 = vector.broadcast %1039 : vector<1x32xf32> to vector<16x32xf32>
    %1058 = arith.mulf %1056, %1057 : vector<16x32xf32>
    %1059 = vector.broadcast %1040 : vector<1x32xf32> to vector<16x32xf32>
    %1060 = arith.addf %1058, %1059 : vector<16x32xf32>
    %c0_418 = arith.constant 0 : index
    %c0_419 = arith.constant 0 : index
    %1061 = vector.load %arg38[%c0_418, %c0_419] : memref<32x64xf32, #tpu.memory_space<vmem>>, vector<32x64xf32>
    %cst_420 = arith.constant dense<0.000000e+00> : vector<16x64xf32>
    %1062 = tpu.matmul %1060, %1061, %cst_420 {dimension_numbers = #tpu.dot_dimension_numbers<[1], [0], [0], [1], [0, 0, 1, 1], [], []>} : vector<16x32xf32>, vector<32x64xf32>, vector<16x64xf32> -> vector<16x64xf32>
    %c0_421 = arith.constant 0 : index
    %c0_422 = arith.constant 0 : index
    %1063 = vector.load %arg37[%c0_421, %c0_422] : memref<1x64xf32, #tpu.memory_space<vmem>>, vector<1x64xf32>
    %1064 = vector.broadcast %1063 : vector<1x64xf32> to vector<16x64xf32>
    %1065 = arith.addf %1062, %1064 : vector<16x64xf32>
    %c0_423 = arith.constant 0 : index
    %c0_424 = arith.constant 0 : index
    %1066 = vector.load %arg39[%c0_423, %c0_424] : memref<16x64xf32, #tpu.memory_space<vmem>>, vector<16x64xf32>
    tpu.vector_store %arg39[%c0_423, %c0_424], %1065 {strides = array<i32>} : memref<16x64xf32, #tpu.memory_space<vmem>>, vector<16x64xf32>,
    return
  }
}

</mosaic_0001>

<bundles_post_ra>
// kernel: transformer_forward.1
= control target key start
LH: loop header
LB: loop body
LE: loop exit
PB: predicated region body
PF: predicated region fallthrough
CT: control target
= control target key end

     0   :  { %s14769_s6 = smov 1   ;;  %s14770_s10 = smov 2   ;;  %s16352_s0 = inlined_call_operand.smem [shape: u32[40], index: -1, kind: input, shape index: {}] }
   0x1   :  { %s14832_s5 = sld [smem:[%s16352_s0]]   ;;  %s14771_s14 = smov 3  }
   0x2   :  { %s14837_s9 = sld [smem:[%s16352_s0 + %s14769_s6]]   ;;  %s14772_s18 = smov 4  }
   0x3   :  { %s14842_s13 = sld [smem:[%s16352_s0 + %s14770_s10]]   ;;  %s14773_s22 = smov 5  }
   0x4   :  { %s14847_s17 = sld [smem:[%s16352_s0 + %s14771_s14]]   ;;  %s14774_s26 = smov 6  }
   0x5   :  { %s14852_s21 = sld [smem:[%s16352_s0 + %s14772_s18]]   ;;  %s14775_s30 = smov 7  }
   0x6   :  { %s14857_s25 = sld [smem:[%s16352_s0 + %s14773_s22]]   ;;  %s14776_s4 = smov 8  }
   0x7   :  { %s14862_s29 = sld [smem:[%s16352_s0 + %s14774_s26]]   ;;  %s14777_s10 = smov 9  }
   0x8   :  { %16376 = sst [smem:[#allocation5_spill]] %s14837_s9  ;;  %s14778_s15 = smov 10  }
   0x9   :  { %s14867_s3 = sld [smem:[%s16352_s0 + %s14775_s30]]   ;;  %s14779_s20 = smov 11  }
   0xa   :  { %16377 = sst [smem:[#allocation6_spill]] %s14847_s17  ;;  %s14780_s26 = smov 12  }
   0xb   :  { %16378 = sst [smem:[#allocation7_spill]] %s14852_s21  ;;  %s14781_s1 = smov 13  }
   0xc   :  { %16379 = sst [smem:[#allocation8_spill]] %s14857_s25  ;;  %s14782_s7 = smov 14  }
   0xd   :  { %16380 = sst [smem:[#allocation9_spill]] %s14862_s29  ;;  %s14784_s22 = smov 16  }
   0xe   :  { %s14872_s8 = sld [smem:[%s16352_s0 + %s14776_s4]]   ;;  %s14785_s28 = smov 17  }
   0xf   :  { %16381 = sst [smem:[#allocation10_spill]] %s14867_s3 }
  0x10   :  { %s14877_s14 = sld [smem:[%s16352_s0 + %s14777_s10]]  }
  0x11   :  { %s14882_s19 = sld [smem:[%s16352_s0 + %s14778_s15]]   ;;  %s14783_s15 = smov 15  }
  0x12   :  { %s14887_s24 = sld [smem:[%s16352_s0 + %s14779_s20]]  }
  0x13   :  { %s14892_s30 = sld [smem:[%s16352_s0 + %s14780_s26]]  }
  0x14   :  { %16382 = sst [smem:[#allocation11_spill]] %s14872_s8 }
  0x15   :  { %s14897_s6 = sld [smem:[%s16352_s0 + %s14781_s1]]  }
  0x16   :  { %16383 = sst [smem:[#allocation12_spill]] %s14877_s14 }
  0x17   :  { %16384 = sst [smem:[#allocation13_spill]] %s14882_s19 }
  0x18   :  { %16385 = sst [smem:[#allocation14_spill]] %s14887_s24 }
  0x19   :  { %16386 = sst [smem:[#allocation15_spill]] %s14892_s30 }
  0x1a   :  { %s14902_s12 = sld [smem:[%s16352_s0 + %s14782_s7]]   ;;  %s14786_s7 = smov 18  }
  0x1b   :  { %16387 = sst [smem:[#allocation16_spill]] %s14897_s6 }
  0x1c   :  { %s14907_s20 = sld [smem:[%s16352_s0 + %s14783_s15]]   ;;  %s14787_s15 = smov 19  }
  0x1d   :  { %s14912_s27 = sld [smem:[%s16352_s0 + %s14784_s22]]   ;;  %s14788_s22 = smov 20  }
  0x1e   :  { %s14917_s4 = sld [smem:[%s16352_s0 + %s14785_s28]]   ;;  %s14789_s28 = smov 21  }
  0x1f   :  { %s14922_s14 = sld [smem:[%s16352_s0 + %s14786_s7]]   ;;  %s14790_s7 = smov 22  }
  0x20   :  { %16388 = sst [smem:[#allocation17_spill]] %s14902_s12 }
  0x21   :  { %s14937_s3 = sld [smem:[%s16352_s0 + %s14789_s28]]   ;;  %s14793_s28 = smov 25  }
  0x22   :  { %16389 = sst [smem:[#allocation18_spill]] %s14907_s20 }
  0x23   :  { %16390 = sst [smem:[#allocation19_spill]] %s14912_s27 }
  0x24   :  { %16391 = sst [smem:[#allocation20_spill]] %s14917_s4 }
  0x25   :  { %16392 = sst [smem:[#allocation21_spill]] %s14922_s14 }
  0x26   :  { %s14927_s20 = sld [smem:[%s16352_s0 + %s14787_s15]]   ;;  %s14791_s15 = smov 23  }
  0x27   :  { %s14932_s27 = sld [smem:[%s16352_s0 + %s14788_s22]]   ;;  %s14792_s22 = smov 24  }
  0x28   :  { %16395 = sst [smem:[#allocation24_spill]] %s14937_s3 }
  0x29   :  { %s14942_s6 = sld [smem:[%s16352_s0 + %s14790_s7]]   ;;  %s14794_s7 = smov 26  }
  0x2a   :  { %s14947_s12 = sld [smem:[%s16352_s0 + %s14791_s15]]   ;;  %s14795_s15 = smov 27  }
  0x2b   :  { %s14952_s19 = sld [smem:[%s16352_s0 + %s14792_s22]]   ;;  %s14796_s22 = smov 28  }
  0x2c   :  { %16393 = sst [smem:[#allocation22_spill]] %s14927_s20 }
  0x2d   :  { %16394 = sst [smem:[#allocation23_spill]] %s14932_s27 }
  0x2e   :  { %s14957_s3 = sld [smem:[%s16352_s0 + %s14793_s28]]   ;;  %s14797_s28 = smov 29  }
  0x2f   :  { %16396 = sst [smem:[#allocation25_spill]] %s14942_s6 }
  0x30   :  { %s14962_s6 = sld [smem:[%s16352_s0 + %s14794_s7]]   ;;  %s14798_s7 = smov 30  }
  0x31   :  { %s14967_s8 = sld [smem:[%s16352_s0 + %s14795_s15]]   ;;  %s14799_s15 = smov 31  }
  0x32   :  { %s14972_s25 = sld [smem:[%s16352_s0 + %s14796_s22]]   ;;  %s14800_s22 = smov 32  }
  0x33   :  { %s14977_s29 = sld [smem:[%s16352_s0 + %s14797_s28]]   ;;  %s14801_s28 = smov 33  }
  0x34   :  { %s14982_s24 = sld [smem:[%s16352_s0 + %s14798_s7]]   ;;  %s14802_s7 = smov 34  }
  0x35   :  { %s14987_s30 = sld [smem:[%s16352_s0 + %s14799_s15]]   ;;  %s14803_s15 = smov 35  }
  0x36   :  { %s14992_s17 = sld [smem:[%s16352_s0 + %s14800_s22]]   ;;  %s14804_s22 = smov 36  }
  0x37   :  { %s14997_s21 = sld [smem:[%s16352_s0 + %s14801_s28]]   ;;  %s14805_s28 = smov 37  }
  0x38   :  { %s15002_s20 = sld [smem:[%s16352_s0 + %s14802_s7]]   ;;  %s14806_s7 = smov 38  }
  0x39   :  { %s15007_s27 = sld [smem:[%s16352_s0 + %s14803_s15]]   ;;  %s14807_s15 = smov 39  }
  0x3a   :  { %s15012_s4 = sld [smem:[%s16352_s0 + %s14804_s22]]  }
  0x3b   :  { %s15017_s9 = sld [smem:[%s16352_s0 + %s14805_s28]]  }
  0x3c   :  { %s15022_s14 = sld [smem:[%s16352_s0 + %s14806_s7]]  }
  0x3f   :  { %16397 = sst [smem:[#allocation26_spill]] %s15007_s27 }
  0x40   :  { %s15027_s27 = sld [smem:[%s16352_s0 + %s14807_s15]]  }
  0x41   :  { %v167_v0 = vld [vmem:[%s14952_s19] sm:$0xff]  ;;  %v168_v1 = vld [vmem:[%s14952_s19 + $0x8] sm:$0xff]  ;;  %v169_v2 = vld [vmem:[%s14952_s19 + $0x10] sm:$0xff]  ;;  %vm183_vm0 = vcmask 261120  }
  0x42   :  { %v14186_v3 = vpack.c.bf16 %v168_v1, %v167_v0  ;;  %v170_v4 = vld [vmem:[%s14952_s19 + $0x18] sm:$0xff]  ;;  %v15034_v5 = vld [vmem:[%s14832_s5] sm:$0xff] }
  0x43   :  { %v14190_v6 = vpack.c.bf16 %v170_v4, %v169_v2  ;;  %13353 = vmatprep.mubr.msk.f32.mxu0 %vm183_vm0, %v15034_v5 }
  0x44   :  { %84 = vsyncpa [#allocation3], 0  ;;  %14187 = vmatprep.subr.bf16.mxu0 %v14186_v3  ;;  %v15039_v7 = vld [vmem:[%s14832_s5 + $0x8] sm:$0xff]  ;;  %v14808_v8 = vmov 0.0   ;;  %vm14809_vm1 = vmmov 0   ;;  %s14810_s0 = smov 96  }
  0x45   :  { %14189 = vmatpush3.bf16.msra.mxu0 %v14186_v3  ;;  %13356 = vmatprep.subr.mxu1 %v14808_v8  ;;  %v12608_v9 = vld [vmem:[%s14947_s12] ss:$0 sm:$0xff]  ;;  %vm268_vm2 = vcmask 64512   ;;  %v15075_v22 = vld [vmem:[%s14842_s13 + $0x8] sm:$0xff]  ;;  %s14811_s5 = smov 64   ;;  %s14812_s22 = smov 88  }
  0x46   :  { %14191 = vmatprep.subr.bf16.mxu0 %v14190_v6  ;;  %13358 = vmatprep.mubr.msk.f32.mxu1 %vm14809_vm1, %v14808_v8  ;;  %v15071_v17 = vld [vmem:[%s14842_s13] sm:$0xff]  ;;  %s14813_s23 = smov 120   ;;  %s14814_s26 = smov 56   ;;  %vm2092_vm3 = vcmask 523264  }
  0x47   :  { %s14815_s28 = smov 112   ;;  %s14816_s1 = smov 80  }
  0x48   :  { %s14817_s2 = smov 48   ;;  %s14818_s7 = smov 72  }
  0x49   :  { %14193 = vmatpush3.bf16.msra.mxu0 %v14190_v6  ;;  %s16374_s10 = smov 104   ;;  %s16372_s11 = smov 40  }
  0x4a   :  { %13376 = vmatprep.subr.mxu0 %v14808_v8  ;;  %s16411_s15 = sld [smem:[#allocation13_spill]]  ;;  %s16412_s16 = sld [smem:[#allocation17_spill]] }
  0x4b   :  { %s16413_s18 = sld [smem:[#allocation16_spill]] }
  0x4c   :  { %13354 = vmatmul.mubr.msk.f32.vlgmr.msra.gmra.mrb[0].mxu0 %vm183_vm0, %v15039_v7 }
  0x4d   :  { %13378 = vmatprep.mubr.msk.f32.mxu0 %vm14809_vm1, %v14808_v8 }
 0x11f   :  { %v13355_v10 = vpop.f32.mrb[0].mxu0 }
 0x120   :  { %v256_v11 = vpop.f32.mrb[1].mxu0  ;;  %v15054_v13 = vadd.f32 %v13355_v10, %v12608_v9 }
 0x121   :  { %v15050_v12 = vadd.f32 %v12608_v9, %v256_v11 }
 0x123   :  { %266 = vrot.lane.b32.xlu0 %v15050_v12, %s14810_s0 }
 0x127   :  { %344 = vrot.lane.b32.xlu0 %v15054_v13, %s14810_s0 }
 0x195   :  { %v267_v14 = vpop.permute.xlu0 %266 }
 0x196   :  { %13357 = vmatpush3.xpose.msk.msra.mxu1 %vm268_vm2, %v267_v14 }
 0x197   :  { %13361 = vmatprep.subr.mxu1 %v14808_v8 }
 0x199   :  { %13359 = vmatmul.mubr.msk.f32.vlgmr.msra.gmra.mrb[0].mxu1 %vm268_vm2, %v15050_v12  ;;  %v345_v15 = vpop.permute.xlu0 %344 }
 0x19a   :  { %13362 = vmatpush3.xpose.msk.msra.mxu1 %vm268_vm2, %v345_v15  ;;  %13363 = vmatprep.mubr.msk.f32.mxu1 %vm14809_vm1, %v14808_v8 }
 0x19b   :  { %13366 = vmatprep.subr.mxu1 %v14808_v8 }
 0x19d   :  { %13364 = vmatmul.mubr.msk.f32.vlgmr.msra.gmra.mrb[2].mxu1 %vm268_vm2, %v15054_v13 }
 0x19e   :  { %13368 = vmatprep.mubr.msk.f32.mxu1 %vm14809_vm1, %v14808_v8 }
 0x26c   :  { %v339_v16 = vpop.f32.mrb[0].mxu1 }
 0x26d   :  { %v420_v18 = vmul.f32 0.35355338, %v339_v16  ;;  %v13360_v19 = vpop.f32.mrb[1].mxu1 }
 0x26f   :  { %v422_v20 = vadd.f32 %v420_v18, %v15071_v17 }
 0x270   :  { %v416_v21 = vpop.f32.mrb[2].mxu1 }
 0x271   :  { %v421_v23 = vmul.f32 0.35355338, %v416_v21  ;;  %v13365_v24 = vpop.f32.mrb[3].mxu1  ;;  %v424_v25 = vsel %vm268_vm2, %v422_v20, -inf }
 0x272   :  { %425 = vmax.xlane.f32.xlu1 %v424_v25 }
 0x273   :  { %v423_v26 = vadd.f32 %v421_v23, %v15075_v22 }
 0x275   :  { %v427_v27 = vsel %vm268_vm2, %v423_v26, -inf }
 0x276   :  { %428 = vmax.xlane.f32.xlu1 %v427_v27 }
 0x287   :  { %446 = vrot.lane.b32.xlu1 %v15050_v12, %s14811_s5 }
 0x28b   :  { %522 = vrot.lane.b32.xlu1 %v15054_v13, %s14811_s5 }
 0x28f   :  { %678 = vrot.lane.b32.xlu1 %v15054_v13, %s14812_s22 }
 0x2ff   :  { %v426_v28 = vpop.xlane.xlu1 %425 }
 0x300   :  { %v430_v29 = vsub.f32 %v422_v20, %v426_v28 }
 0x302   :  { %v432_v30 = vmul.f32 1.442695, %v430_v29 }
 0x303   :  { %v429_v31 = vpop.xlane.xlu1 %428 }
 0x304   :  { %14501 = vpow2.f32 %v432_v30  ;;  %v431_v32 = vsub.f32 %v423_v26, %v429_v31  ;;  %v173_v30 = vld [vmem:[%s15002_s20 + $0x8] sm:$0xff]  ;;  %v172_v31 = vld [vmem:[%s15002_s20] sm:$0xff] }
 0x306   :  { %v434_v33 = vmul.f32 1.442695, %v431_v32 }
 0x307   :  { %v447_v34 = vpop.permute.xlu1 %446 }
 0x308   :  { %14503 = vpow2.f32 %v434_v33  ;;  %13367 = vmatpush3.msra.mxu1 %v447_v34 }
 0x309   :  { %13371 = vmatprep.subr.mxu1 %v14808_v8 }
 0x30b   :  { %v523_v39 = vpop.permute.xlu1 %522 }
 0x30e   :  { %v14502_v35 = vpop.eup %14501 }
 0x30f   :  { %v436_v36 = vsel %vm268_vm2, %v14502_v35, 0.0  ;;  %v679_v40 = vpop.permute.xlu1 %678 }
 0x310   :  { %437 = vadd.xlane.f32.xlu0 %v436_v36 }
 0x312   :  { %v14504_v37 = vpop.eup %14503 }
 0x313   :  { %v439_v38 = vsel %vm268_vm2, %v14504_v37, 0.0 }
 0x314   :  { %440 = vadd.xlane.f32.xlu1 %v439_v38 }
 0x325   :  { %676 = vrot.lane.b32.xlu1 %v15054_v13, %s14813_s23 }
 0x326   :  { %600 = vrot.lane.b32.xlu0 %v15050_v12, %s14812_s22 }
 0x329   :  { %598 = vrot.lane.b32.xlu1 %v15050_v12, %s14813_s23 }
 0x39d   :  { %v438_v41 = vpop.xlane.xlu0 %437 }
 0x39e   :  { %14505 = vrcp.f32 %v438_v41 }
 0x3a1   :  { %v601_v42 = vpop.permute.xlu0 %600  ;;  %v441_v43 = vpop.xlane.xlu1 %440 }
 0x3a2   :  { %14507 = vrcp.f32 %v441_v43  ;;  %13377 = vmatpush3.xpose.msk.msra.mxu0 %vm268_vm2, %v601_v42 }
 0x3a3   :  { %13386 = vmatprep.subr.mxu0 %v14808_v8 }
 0x3a5   :  { %v677_v44 = vpop.permute.xlu1 %676 }
 0x3a8   :  { %v14506_v45 = vpop.eup %14505 }
 0x3a9   :  { %v599_v46 = vpop.permute.xlu1 %598  ;;  %v444_v47 = vmul.f32 %v14506_v45, %v14502_v35 }
 0x3aa   :  { %13379 = vmatmul.mubr.msk.f32.vlgmr.msra.gmra.mrb[2].mxu0 %vm268_vm2, %v599_v46 }
 0x3ab   :  { %13369 = vmatmul.mubr.msk.f32.vlgmr.msra.gmra.mrb[4].mxu1 %vm268_vm2, %v444_v47  ;;  %13388 = vmatprep.mubr.msk.f32.mxu0 %vm14809_vm1, %v14808_v8 }
 0x3ac   :  { %v14508_v48 = vpop.eup %14507  ;;  %13372 = vmatpush3.msra.mxu1 %v523_v39  ;;  %13373 = vmatprep.mubr.msk.f32.mxu1 %vm14809_vm1, %v14808_v8 }
 0x3ad   :  { %v445_v49 = vmul.f32 %v14508_v48, %v14504_v37  ;;  %13381 = vmatprep.subr.mxu1 %v14808_v8 }
 0x3af   :  { %13374 = vmatmul.mubr.msk.f32.vlgmr.msra.gmra.mrb[6].mxu1 %vm268_vm2, %v445_v49 }
 0x3b0   :  { %13383 = vmatprep.mubr.msk.f32.mxu1 %vm14809_vm1, %v14808_v8 }
 0x3b3   :  { %13382 = vmatpush3.xpose.msk.msra.mxu1 %vm268_vm2, %v679_v40 }
 0x3b4   :  { %13391 = vmatprep.subr.mxu1 %v14808_v8 }
 0x3b6   :  { %13384 = vmatmul.mubr.msk.f32.vlgmr.msra.gmra.mrb[8].mxu1 %vm268_vm2, %v677_v44 }
 0x3b7   :  { %13393 = vmatprep.mubr.msk.f32.mxu1 %vm14809_vm1, %v14808_v8 }
 0x47d   :  { %v672_v50 = vpop.f32.mrb[2].mxu0 }
 0x47e   :  { %v15112_v51 = vpop.f32.mrb[4].mxu1  ;;  %v13380_v52 = vpop.f32.mrb[3].mxu0  ;;  %v754_v61 = vmul.f32 0.35355338, %v672_v50 }
 0x47f   :  { %v13370_v53 = vpop.f32.mrb[5].mxu1 }
 0x480   :  { %v756_v62 = vadd.f32 %v754_v61, %v15071_v17 }
 0x482   :  { %v15114_v54 = vpop.f32.mrb[6].mxu1  ;;  %v758_v63 = vsel %vm268_vm2, %v756_v62, -inf }
 0x483   :  { %v13375_v55 = vpop.f32.mrb[7].mxu1 }
 0x489   :  { %v750_v56 = vpop.f32.mrb[8].mxu1 }
 0x48a   :  { %v755_v57 = vmul.f32 0.35355338, %v750_v56  ;;  %v13385_v58 = vpop.f32.mrb[9].mxu1 }
 0x48b   :  { %v174_v58 = vld [vmem:[%s15002_s20 + $0x10] sm:$0xff] }
 0x48c   :  { %v757_v59 = vadd.f32 %v755_v57, %v15075_v22 }
 0x48e   :  { %v761_v60 = vsel %vm268_vm2, %v757_v59, -inf }
 0x48f   :  { %762 = vmax.xlane.f32.xlu1 %v761_v60 }
 0x4a0   :  { %856 = vrot.lane.b32.xlu1 %v15054_v13, %s14814_s26 }
 0x4a4   :  { %1094 = vrot.lane.b32.xlu1 %v15050_v12, %s14815_s28 }
 0x4a8   :  { %1174 = vrot.lane.b32.xlu1 %v15054_v13, %s14816_s1 }
 0x4ac   :  { %1172 = vrot.lane.b32.xlu1 %v15054_v13, %s14815_s28 }
 0x4d0   :  { %759 = vmax.xlane.f32.xlu1 %v758_v63 }
 0x51c   :  { %v763_v0 = vpop.xlane.xlu1 %762 }
 0x51d   :  { %v765_v1 = vsub.f32 %v757_v59, %v763_v0 }
 0x51f   :  { %v768_v2 = vmul.f32 1.442695, %v765_v1 }
 0x520   :  { %v857_v3 = vpop.permute.xlu1 %856 }
 0x521   :  { %14509 = vpow2.f32 %v768_v2  ;;  %13392 = vmatpush3.msra.mxu1 %v857_v3 }
 0x522   :  { %13406 = vmatprep.subr.mxu1 %v14808_v8 }
 0x524   :  { %v1095_v9 = vpop.permute.xlu1 %1094 }
 0x528   :  { %v1175_v10 = vpop.permute.xlu1 %1174 }
 0x52b   :  { %v14510_v4 = vpop.eup %14509 }
 0x52c   :  { %v773_v6 = vsel %vm268_vm2, %v14510_v4, 0.0  ;;  %v1173_v11 = vpop.permute.xlu1 %1172 }
 0x52d   :  { %774 = vadd.xlane.f32.xlu0 %v773_v6 }
 0x543   :  { %1096 = vrot.lane.b32.xlu0 %v15050_v12, %s14816_s1 }
 0x55d   :  { %v760_v14 = vpop.xlane.xlu1 %759 }
 0x55e   :  { %v764_v15 = vsub.f32 %v756_v62, %v760_v14 }
 0x560   :  { %v766_v16 = vmul.f32 1.442695, %v764_v15 }
 0x562   :  { %14511 = vpow2.f32 %v766_v16 }
 0x56c   :  { %v14512_v18 = vpop.eup %14511 }
 0x56d   :  { %v770_v19 = vsel %vm268_vm2, %v14512_v18, 0.0 }
 0x56e   :  { %771 = vadd.xlane.f32.xlu0 %v770_v19 }
 0x584   :  { %780 = vrot.lane.b32.xlu0 %v15050_v12, %s14814_s26 }
 0x588   :  { %1352 = vrot.lane.b32.xlu0 %v15054_v13, %s14817_s2 }
 0x58c   :  { %1513 = vrot.lane.b32.xlu0 %v15050_v12, %s14818_s7 }
 0x590   :  { %1591 = vrot.lane.b32.xlu0 %v15054_v13, %s14818_s7 }
 0x594   :  { %1511 = vrot.lane.b32.xlu0 %v15050_v12, %s16374_s10 }
 0x5ba   :  { %v775_v20 = vpop.xlane.xlu0 %774 }
 0x5bb   :  { %14513 = vrcp.f32 %v775_v20 }
 0x5be   :  { %v1097_v24 = vpop.permute.xlu0 %1096 }
 0x5c5   :  { %v14514_v21 = vpop.eup %14513 }
 0x5c6   :  { %v779_v23 = vmul.f32 %v14514_v21, %v14510_v4 }
 0x5c8   :  { %13394 = vmatmul.mubr.msk.f32.vlgmr.msra.gmra.mrb[10].mxu1 %vm268_vm2, %v779_v23 }
 0x5c9   :  { %13407 = vmatpush3.xpose.msk.msra.mxu1 %vm268_vm2, %v1097_v24  ;;  %13408 = vmatprep.mubr.msk.f32.mxu1 %vm14809_vm1, %v14808_v8 }
 0x5ca   :  { %13411 = vmatprep.subr.mxu1 %v14808_v8 }
 0x5cc   :  { %13409 = vmatmul.mubr.msk.f32.vlgmr.msra.gmra.mrb[12].mxu1 %vm268_vm2, %v1095_v9 }
 0x5cd   :  { %13412 = vmatpush3.xpose.msk.msra.mxu1 %vm268_vm2, %v1175_v10  ;;  %13413 = vmatprep.mubr.msk.f32.mxu1 %vm14809_vm1, %v14808_v8 }
 0x5ce   :  { %13421 = vmatprep.subr.mxu1 %v14808_v8 }
 0x5d0   :  { %13414 = vmatmul.mubr.msk.f32.vlgmr.msra.gmra.mrb[14].mxu1 %vm268_vm2, %v1173_v11 }
 0x5d1   :  { %13423 = vmatprep.mubr.msk.f32.mxu1 %vm14809_vm1, %v14808_v8 }
 0x5fb   :  { %v772_v25 = vpop.xlane.xlu0 %771 }
 0x5fc   :  { %14515 = vrcp.f32 %v772_v25 }
 0x5ff   :  { %v781_v26 = vpop.permute.xlu0 %780 }
 0x600   :  { %13387 = vmatpush3.msra.mxu0 %v781_v26 }
 0x601   :  { %13396 = vmatprep.subr.mxu0 %v173_v30 }
 0x603   :  { %v1353_v27 = vpop.permute.xlu0 %1352 }
 0x604   :  { %13422 = vmatpush3.msra.mxu1 %v1353_v27 }
 0x605   :  { %13431 = vmatprep.subr.mxu1 %v14808_v8 }
 0x606   :  { %v14516_v28 = vpop.eup %14515 }
 0x607   :  { %v778_v29 = vmul.f32 %v14516_v28, %v14512_v18  ;;  %v1514_v60 = vpop.permute.xlu0 %1513 }
 0x609   :  { %13389 = vmatmul.mubr.msk.f32.vlgmr.msra.gmra.mrb[4].mxu0 %vm268_vm2, %v778_v29 }
 0x60a   :  { %13397 = vmatpush3.msra.mxu0 %v173_v30 }
 0x60b   :  { %13401 = vmatprep.subr.mxu0 %v172_v31  ;;  %v1592_v0 = vpop.permute.xlu0 %1591 }
 0x60f   :  { %v1512_v2 = vpop.permute.xlu0 %1511 }
 0x69b   :  { %v928_v32 = vpop.f32.mrb[10].mxu1 }
 0x69c   :  { %v13395_v33 = vpop.f32.mrb[11].mxu1 }
 0x69f   :  { %v1168_v34 = vpop.f32.mrb[12].mxu1 }
 0x6a0   :  { %v1250_v35 = vmul.f32 0.35355338, %v1168_v34  ;;  %v13410_v36 = vpop.f32.mrb[13].mxu1 }
 0x6a2   :  { %v1252_v37 = vadd.f32 %v1250_v35, %v15071_v17 }
 0x6a3   :  { %v1246_v38 = vpop.f32.mrb[14].mxu1 }
 0x6a4   :  { %v1251_v39 = vmul.f32 0.35355338, %v1246_v38  ;;  %v13415_v40 = vpop.f32.mrb[15].mxu1  ;;  %v1254_v41 = vsel %vm268_vm2, %v1252_v37, -inf }
 0x6a5   :  { %1255 = vmax.xlane.f32.xlu1 %v1254_v41 }
 0x6a6   :  { %v1253_v42 = vadd.f32 %v1251_v39, %v15075_v22  ;;  %v175_v39 = vld [vmem:[%s15002_s20 + $0x18] sm:$0xff] }
 0x6a8   :  { %v1257_v43 = vsel %vm268_vm2, %v1253_v42, -inf }
 0x6a9   :  { %1258 = vmax.xlane.f32.xlu1 %v1257_v43 }
 0x6dc   :  { %v852_v44 = vpop.f32.mrb[4].mxu0 }
 0x6dd   :  { %v13390_v45 = vpop.f32.mrb[5].mxu0  ;;  %13398 = vmatprep.mubr.msk.f32.mxu0 %vm268_vm2, %v852_v44 }
 0x6de   :  { %13399 = vmatmul.mubr.msk.f32.vlgmr.msra.gmra.mrb[6].mxu0 %vm268_vm2, %v928_v32 }
 0x6df   :  { %13403 = vmatprep.mubr.msk.f32.mxu0 %vm268_vm2, %v15112_v51  ;;  %13402 = vmatpush3.msra.mxu0 %v172_v31 }
 0x6e0   :  { %13416 = vmatprep.subr.mxu0 %v14808_v8 }
 0x6e6   :  { %13404 = vmatmul.mubr.msk.f32.vlgmr.msra.gmra.mrb[6].mxu0 %vm268_vm2, %v15114_v54 }
 0x6e7   :  { %13418 = vmatprep.mubr.msk.f32.mxu0 %vm14809_vm1, %v14808_v8 }
 0x732   :  { %v1256_v46 = vpop.xlane.xlu1 %1255 }
 0x733   :  { %v1260_v47 = vsub.f32 %v1252_v37, %v1256_v46 }
 0x735   :  { %v1262_v48 = vmul.f32 1.442695, %v1260_v47 }
 0x736   :  { %v1259_v49 = vpop.xlane.xlu1 %1258 }
 0x737   :  { %14517 = vpow2.f32 %v1262_v48  ;;  %v1261_v50 = vsub.f32 %v1253_v42, %v1259_v49 }
 0x739   :  { %v1264_v52 = vmul.f32 1.442695, %v1261_v50 }
 0x73b   :  { %14519 = vpow2.f32 %v1264_v52 }
 0x741   :  { %v14518_v53 = vpop.eup %14517 }
 0x742   :  { %v1266_v51 = vsel %vm268_vm2, %v14518_v53, 0.0 }
 0x743   :  { %1267 = vadd.xlane.f32.xlu1 %v1266_v51 }
 0x745   :  { %v14520_v55 = vpop.eup %14519 }
 0x746   :  { %v1269_v56 = vsel %vm268_vm2, %v14520_v55, 0.0 }
 0x747   :  { %1270 = vadd.xlane.f32.xlu1 %v1269_v56 }
 0x758   :  { %1276 = vrot.lane.b32.xlu1 %v15050_v12, %s14817_s2 }
 0x75c   :  { %1589 = vrot.lane.b32.xlu1 %v15054_v13, %s16374_s10 }
 0x7d0   :  { %v1268_v54 = vpop.xlane.xlu1 %1267 }
 0x7d1   :  { %14521 = vrcp.f32 %v1268_v54 }
 0x7d4   :  { %v1271_v57 = vpop.xlane.xlu1 %1270 }
 0x7d5   :  { %14523 = vrcp.f32 %v1271_v57 }
 0x7d8   :  { %v1277_v59 = vpop.permute.xlu1 %1276 }
 0x7d9   :  { %13417 = vmatpush3.msra.mxu0 %v1277_v59 }
 0x7da   :  { %13426 = vmatprep.subr.mxu0 %v174_v58 }
 0x7db   :  { %v14522_v61 = vpop.eup %14521 }
 0x7dc   :  { %v1274_v62 = vmul.f32 %v14522_v61, %v14518_v53  ;;  %v1590_v10 = vpop.permute.xlu1 %1589 }
 0x7de   :  { %13419 = vmatmul.mubr.msk.f32.vlgmr.msra.gmra.mrb[8].mxu0 %vm268_vm2, %v1274_v62 }
 0x7df   :  { %v14524_v63 = vpop.eup %14523  ;;  %13427 = vmatpush3.msra.mxu0 %v174_v58 }
 0x7e0   :  { %v1275_v1 = vmul.f32 %v14524_v63, %v14520_v55  ;;  %13436 = vmatprep.subr.mxu0 %v14808_v8  ;;  %v1983_v63 = vld [vmem:[%s14962_s6] sm:$0xff] }
 0x7e2   :  { %13424 = vmatmul.mubr.msk.f32.vlgmr.msra.gmra.mrb[16].mxu1 %vm268_vm2, %v1275_v1  ;;  %v1985_v1 = vld [vmem:[%s14962_s6 + $0x10] sm:$0xff] }
 0x7e3   :  { %13432 = vmatpush3.xpose.msk.msra.mxu1 %vm268_vm2, %v1514_v60  ;;  %13433 = vmatprep.mubr.msk.f32.mxu1 %vm14809_vm1, %v14808_v8 }
 0x7e4   :  { %13441 = vmatprep.subr.mxu1 %v14808_v8 }
 0x7e6   :  { %13434 = vmatmul.mubr.msk.f32.vlgmr.msra.gmra.mrb[18].mxu1 %vm268_vm2, %v1512_v2 }
 0x7e7   :  { %13443 = vmatprep.mubr.msk.f32.mxu1 %vm14809_vm1, %v14808_v8 }
 0x8b1   :  { %v1348_v3 = vpop.f32.mrb[8].mxu0 }
 0x8b2   :  { %v13420_v4 = vpop.f32.mrb[9].mxu0  ;;  %13428 = vmatprep.mubr.msk.f32.mxu0 %vm268_vm2, %v1348_v3  ;;  %v1986_v3 = vld [vmem:[%s14962_s6 + $0x18] sm:$0xff] }
 0x8b3   :  { %v14198_v4 = vpack.c.bf16 %v1986_v3, %v1985_v1 }
 0x8b5   :  { %v1424_v6 = vpop.f32.mrb[16].mxu1 }
 0x8b6   :  { %v13425_v9 = vpop.f32.mrb[17].mxu1  ;;  %13429 = vmatmul.mubr.msk.f32.vlgmr.msra.gmra.mrb[6].mxu0 %vm268_vm2, %v1424_v6  ;;  %v1988_v6 = vld [vmem:[%s14972_s25] sm:$0xff] }
 0x8b7   :  { %13437 = vmatpush3.xpose.msk.msra.mxu0 %vm268_vm2, %v1592_v0  ;;  %13438 = vmatprep.mubr.msk.f32.mxu0 %vm14809_vm1, %v14808_v8  ;;  %v1984_v0 = vld [vmem:[%s14962_s6 + $0x8] sm:$0xff] }
 0x8b8   :  { %13446 = vmatprep.subr.mxu0 %v14808_v8  ;;  %v14194_v2 = vpack.c.bf16 %v1984_v0, %v1983_v63  ;;  %v1989_v9 = vld [vmem:[%s14972_s25 + $0x8] sm:$0xff]  ;;  %v12656_v0 = vld [vmem:[%s14952_s19 + $0x30] sm:$0xff] }
 0x8b9   :  { %v1585_v11 = vpop.f32.mrb[18].mxu1  ;;  %v12655_v63 = vld [vmem:[%s14952_s19 + $0x28] sm:$0xff] }
 0x8ba   :  { %v1667_v14 = vmul.f32 0.35355338, %v1585_v11  ;;  %v13435_v15 = vpop.f32.mrb[19].mxu1  ;;  %13439 = vmatmul.mubr.msk.f32.vlgmr.msra.gmra.mrb[10].mxu0 %vm268_vm2, %v1590_v10  ;;  %v1990_v10 = vld [vmem:[%s14972_s25 + $0x10] sm:$0xff]  ;;  %v14202_v11 = vpack.c.bf16 %v1989_v9, %v1988_v6 }
 0x8bb   :  { %13448 = vmatprep.mubr.msk.f32.mxu0 %vm14809_vm1, %v14808_v8 }
 0x8bc   :  { %v1669_v16 = vadd.f32 %v1667_v14, %v15071_v17  ;;  %v1991_v14 = vld [vmem:[%s14972_s25 + $0x18] sm:$0xff] }
 0x8bd   :  { %v14206_v15 = vpack.c.bf16 %v1991_v14, %v1990_v10 }
 0x8be   :  { %v1671_v18 = vsel %vm268_vm2, %v1669_v16, -inf }
 0x8bf   :  { %1672 = vmax.xlane.f32.xlu0 %v1671_v18  ;;  %v1993_v18 = vld [vmem:[%s14972_s25 + $0x28] sm:$0xff] }
 0x94c   :  { %v1673_v19 = vpop.xlane.xlu0 %1672 }
 0x94d   :  { %v1677_v20 = vsub.f32 %v1669_v16, %v1673_v19  ;;  %v1992_v16 = vld [vmem:[%s14972_s25 + $0x20] sm:$0xff] }
 0x94e   :  { %v14210_v19 = vpack.c.bf16 %v1993_v18, %v1992_v16  ;;  %v12652_v16 = vld [vmem:[%s14992_s17] ss:$0 sm:$0xff] }
 0x94f   :  { %v1679_v21 = vmul.f32 1.442695, %v1677_v20 }
 0x951   :  { %14525 = vpow2.f32 %v1679_v21 }
 0x95b   :  { %v14526_v23 = vpop.eup %14525 }
 0x95c   :  { %v1683_v24 = vsel %vm268_vm2, %v14526_v23, 0.0 }
 0x95d   :  { %1684 = vadd.xlane.f32.xlu0 %v1683_v24 }
 0x98d   :  { %v1663_v25 = vpop.f32.mrb[10].mxu0 }
 0x98e   :  { %v1668_v26 = vmul.f32 0.35355338, %v1663_v25  ;;  %v13440_v27 = vpop.f32.mrb[11].mxu0 }
 0x990   :  { %v1670_v28 = vadd.f32 %v1668_v26, %v15075_v22 }
 0x992   :  { %v1674_v29 = vsel %vm268_vm2, %v1670_v28, -inf }
 0x993   :  { %1675 = vmax.xlane.f32.xlu1 %v1674_v29 }
 0x9a4   :  { %1693 = vrot.lane.b32.xlu1 %v15050_v12, %s16372_s11 }
 0x9ea   :  { %v1685_v30 = vpop.xlane.xlu0 %1684 }
 0x9eb   :  { %14527 = vrcp.f32 %v1685_v30 }
 0x9f5   :  { %v14528_v32 = vpop.eup %14527 }
 0x9f6   :  { %v1691_v36 = vmul.f32 %v14528_v32, %v14526_v23  ;;  %v12645_v32 = vld [vmem:[%s14977_s29] ss:$0 sm:$0xff] }
 0xa20   :  { %v1676_v31 = vpop.xlane.xlu1 %1675 }
 0xa21   :  { %v1678_v33 = vsub.f32 %v1670_v28, %v1676_v31  ;;  %v12644_v28 = vld [vmem:[%s14982_s24] ss:$0 sm:$0xff] }
 0xa23   :  { %v1681_v34 = vmul.f32 1.442695, %v1678_v33 }
 0xa24   :  { %v1694_v35 = vpop.permute.xlu1 %1693 }
 0xa25   :  { %14529 = vpow2.f32 %v1681_v34  ;;  %13442 = vmatpush3.msra.mxu1 %v1694_v35 }
 0xa26   :  { %13444 = vmatmul.mubr.msk.f32.vlgmr.msra.gmra.mrb[20].mxu1 %vm268_vm2, %v1691_v36  ;;  %14195 = vmatprep.subr.bf16.mxu1 %v14194_v2 }
 0xa27   :  { %14197 = vmatpush3.bf16.msra.mxu1 %v14194_v2  ;;  %v12657_v2 = vld [vmem:[%s14952_s19 + $0x38] sm:$0xff] }
 0xa28   :  { %14199 = vmatprep.subr.bf16.mxu1 %v14198_v4  ;;  %v14222_v3 = vpack.c.bf16 %v12657_v2, %v12656_v0 }
 0xa2b   :  { %14201 = vmatpush3.bf16.msra.mxu1 %v14198_v4 }
 0xa2f   :  { %v14530_v37 = vpop.eup %14529 }
 0xa30   :  { %v1686_v38 = vsel %vm268_vm2, %v14530_v37, 0.0 }
 0xa31   :  { %1687 = vadd.xlane.f32.xlu0 %v1686_v38  ;;  %v1995_v38 = vld [vmem:[%s14972_s25 + $0x38] sm:$0xff] }
 0xa47   :  { %1769 = vrot.lane.b32.xlu0 %v15054_v13, %s16372_s11  ;;  %v12643_v13 = vld [vmem:[%s14997_s21] ss:$0 sm:$0xff] }
 0xabe   :  { %v1688_v12 = vpop.xlane.xlu0 %1687 }
 0xabf   :  { %14531 = vrcp.f32 %v1688_v12 }
 0xac2   :  { %v1770_v40 = vpop.permute.xlu0 %1769 }
 0xac3   :  { %13447 = vmatpush3.msra.mxu0 %v1770_v40 }
 0xac4   :  { %13451 = vmatprep.subr.mxu0 %v175_v39 }
 0xac9   :  { %v14532_v41 = vpop.eup %14531 }
 0xaca   :  { %v1692_v42 = vmul.f32 %v14532_v41, %v14530_v37  ;;  %v1994_v37 = vld [vmem:[%s14972_s25 + $0x30] sm:$0xff] }
 0xacb   :  { %v14214_v12 = vpack.c.bf16 %v1995_v38, %v1994_v37 }
 0xacc   :  { %13449 = vmatmul.mubr.msk.f32.vlgmr.msra.gmra.mrb[12].mxu0 %vm268_vm2, %v1692_v42 }
 0xacd   :  { %13452 = vmatpush3.msra.mxu0 %v175_v39  ;;  %v12646_v39 = vld [vmem:[%s14957_s3] ss:$0 sm:$0xff] }
 0xace   :  { %14203 = vmatprep.subr.bf16.mxu0 %v14202_v11 }
 0xaf9   :  { %v1765_v43 = vpop.f32.mrb[20].mxu1 }
 0xafa   :  { %v13445_v44 = vpop.f32.mrb[21].mxu1  ;;  %13453 = vmatprep.mubr.msk.f32.mxu0 %vm268_vm2, %v1765_v43 }
 0xb9f   :  { %v1841_v45 = vpop.f32.mrb[12].mxu0 }
 0xba0   :  { %v13450_v46 = vpop.f32.mrb[13].mxu0  ;;  %13454 = vmatmul.mubr.msk.f32.vlgmr.msra.gmra.mrb[6].mxu0 %vm268_vm2, %v1841_v45 }
 0xba1   :  { %14205 = vmatpush3.bf16.msra.mxu0 %v14202_v11  ;;  %v12649_v46 = vld [vmem:[%s14967_s8] ss:$0 sm:$0xff] }
 0xba2   :  { %14207 = vmatprep.subr.bf16.mxu0 %v14206_v15 }
 0xba5   :  { %14209 = vmatpush3.bf16.msra.mxu0 %v14206_v15 }
 0xba6   :  { %14211 = vmatprep.subr.bf16.mxu0 %v14210_v19 }
 0xba9   :  { %14213 = vmatpush3.bf16.msra.mxu0 %v14210_v19 }
 0xbaa   :  { %14215 = vmatprep.subr.bf16.mxu0 %v14214_v12 }
 0xbad   :  { %14217 = vmatpush3.bf16.msra.mxu0 %v14214_v12 }
 0xbae   :  { %13507 = vmatprep.subr.mxu0 %v14808_v8 }
 0xc73   :  { %v13455_v47 = vpop.f32.mrb[6].mxu0 }
 0xc74   :  { %v1935_v48 = vadd.f32 %v13455_v47, %v12643_v13  ;;  %v1917_v49 = vpop.f32.mrb[7].mxu0 }
 0xc75   :  { %v1934_v50 = vadd.f32 %v12643_v13, %v1917_v49 }
 0xc76   :  { %v1937_v52 = vadd.f32 %v1935_v48, %v15039_v7 }
 0xc77   :  { %v1936_v53 = vadd.f32 %v1934_v50, %v15034_v5 }
 0xc78   :  { %v1943_v51 = vsel %vm183_vm0, %v1937_v52, 0.0 }
 0xc79   :  { %1944 = vadd.xlane.f32.xlu0 %v1943_v51  ;;  %v1940_v55 = vsel %vm183_vm0, %v1936_v53, 0.0 }
 0xc7a   :  { %1941 = vadd.xlane.f32.xlu1 %v1940_v55 }
 0xd06   :  { %v1945_v56 = vpop.xlane.xlu0 %1944 }
 0xd07   :  { %v1948_v54 = vmul.f32 0.03125, %v1945_v56  ;;  %v1942_v57 = vpop.xlane.xlu1 %1941 }
 0xd08   :  { %v1947_v58 = vmul.f32 0.03125, %v1942_v57 }
 0xd09   :  { %v1950_v59 = vsub.f32 %v1937_v52, %v1948_v54 }
 0xd0a   :  { %v1949_v60 = vsub.f32 %v1936_v53, %v1947_v58 }
 0xd0b   :  { %v1952_v61 = vmul.f32 %v1950_v59, %v1950_v59 }
 0xd0c   :  { %v1951_v7 = vmul.f32 %v1949_v60, %v1949_v60 }
 0xd0d   :  { %v1956_v5 = vsel %vm183_vm0, %v1952_v61, 0.0 }
 0xd0e   :  { %1957 = vadd.xlane.f32.xlu0 %v1956_v5  ;;  %v1953_v62 = vsel %vm183_vm0, %v1951_v7, 0.0 }
 0xd0f   :  { %1954 = vadd.xlane.f32.xlu1 %v1953_v62  ;;  %v12654_v62 = vld [vmem:[%s14952_s19 + $0x20] sm:$0xff]  ;;  %s16399_s19 = sld [smem:[#allocation5_spill]] }
 0xd10   :  { %v14218_v1 = vpack.c.bf16 %v12655_v63, %v12654_v62 }
 0xd12   :  { %14219 = vmatprep.subr.bf16.mxu1 %v14218_v1 }
 0xd9b   :  { %v1958_v20 = vpop.xlane.xlu0 %1957 }
 0xd9c   :  { %v1960_v21 = vmul.f32 0.03125, %v1958_v20  ;;  %v1955_v23 = vpop.xlane.xlu1 %1954 }
 0xd9d   :  { %v1959_v24 = vmul.f32 0.03125, %v1955_v23 }
 0xd9e   :  { %v1962_v25 = vadd.f32 1e-05, %v1960_v21  ;;  %v12653_v21 = vld [vmem:[%s14987_s30] ss:$0 sm:$0xff] }
 0xd9f   :  { %v1961_v26 = vadd.f32 1e-05, %v1959_v24 }
 0xda0   :  { %14533 = vrsqrt.f32 %v1962_v25 }
 0xda1   :  { %14535 = vrsqrt.f32 %v1961_v26 }
 0xdaa   :  { %v14534_v27 = vpop.eup %14533 }
 0xdab   :  { %v14536_v29 = vpop.eup %14535  ;;  %v1966_v30 = vmul.f32 %v14534_v27, %v1950_v59  ;;  %v12664_v27 = vld [vmem:[%s14947_s12 + $0x1] ss:$0 sm:$0xff]  ;;  %s16408_s12 = sld [smem:[#allocation9_spill]] }
 0xdac   :  { %v1965_v31 = vmul.f32 %v14536_v29, %v1949_v60 }
 0xdad   :  { %v1974_v33 = vmul.f32 %v12644_v28, %v1966_v30 }
 0xdae   :  { %v1973_v34 = vmul.f32 %v12644_v28, %v1965_v31 }
 0xdaf   :  { %v1982_v36 = vadd.f32 %v12645_v32, %v1974_v33 }
 0xdb0   :  { %v1981_v35 = vadd.f32 %v12645_v32, %v1973_v34 }
 0xdb2   :  { %13464 = vmatprep.mubr.msk.f32.mxu1 %vm183_vm0, %v1981_v35 }
 0xdb3   :  { %13465 = vmatmul.mubr.msk.f32.vlgmr.msra.gmra.mrb[22].mxu1 %vm183_vm0, %v1982_v36 }
 0xdb4   :  { %14221 = vmatpush3.bf16.msra.mxu1 %v14218_v1 }
 0xdb5   :  { %14223 = vmatprep.subr.bf16.mxu1 %v14222_v3 }
 0xdb8   :  { %14225 = vmatpush3.bf16.msra.mxu1 %v14222_v3 }
 0xdb9   :  { %13497 = vmatprep.subr.mxu1 %v14808_v8 }
 0xe86   :  { %v13466_v40 = vpop.f32.mrb[22].mxu1 }
 0xe87   :  { %v2081_v41 = vadd.f32 %v13466_v40, %v12646_v39  ;;  %v2075_v42 = vpop.f32.mrb[23].mxu1 }
 0xe88   :  { %v2076_v43 = vadd.f32 %v12646_v39, %v2075_v42 }
 0xe89   :  { %v2085_v45 = vmax.f32 %v2081_v41, 0.0 }
 0xe8a   :  { %v2084_v44 = vmax.f32 %v2076_v43, 0.0 }
 0xe8c   :  { %13483 = vmatprep.mubr.msk.f32.mxu0 %vm2092_vm3, %v2084_v44 }
 0xe8d   :  { %13484 = vmatmul.mubr.msk.f32.vlgmr.msra.gmra.mrb[14].mxu0 %vm2092_vm3, %v2085_v45 }
 0xe8e   :  { %13509 = vmatprep.mubr.msk.f32.mxu0 %vm14809_vm1, %v14808_v8 }
 0xf60   :  { %v13485_v13 = vpop.f32.mrb[14].mxu0 }
 0xf61   :  { %v2171_v47 = vadd.f32 %v13485_v13, %v12649_v46  ;;  %v2165_v48 = vpop.f32.mrb[15].mxu0 }
 0xf62   :  { %v2166_v49 = vadd.f32 %v12649_v46, %v2165_v48 }
 0xf63   :  { %v2175_v50 = vadd.f32 %v2171_v47, %v1982_v36 }
 0xf64   :  { %v2174_v52 = vadd.f32 %v2166_v49, %v1981_v35 }
 0xf65   :  { %v2181_v53 = vsel %vm183_vm0, %v2175_v50, 0.0 }
 0xf66   :  { %2182 = vadd.xlane.f32.xlu0 %v2181_v53  ;;  %v2178_v51 = vsel %vm183_vm0, %v2174_v52, 0.0 }
 0xf67   :  { %2179 = vadd.xlane.f32.xlu1 %v2178_v51 }
 0xff3   :  { %v2183_v55 = vpop.xlane.xlu0 %2182 }
 0xff4   :  { %v2185_v56 = vmul.f32 0.03125, %v2183_v55  ;;  %v2180_v54 = vpop.xlane.xlu1 %2179 }
 0xff5   :  { %v2184_v57 = vmul.f32 0.03125, %v2180_v54 }
 0xff6   :  { %v2187_v58 = vsub.f32 %v2175_v50, %v2185_v56 }
 0xff7   :  { %v2186_v59 = vsub.f32 %v2174_v52, %v2184_v57 }
 0xff8   :  { %v2189_v60 = vmul.f32 %v2187_v58, %v2187_v58 }
 0xff9   :  { %v2188_v61 = vmul.f32 %v2186_v59, %v2186_v59 }
 0xffa   :  { %v2193_v7 = vsel %vm183_vm0, %v2189_v60, 0.0 }
 0xffb   :  { %2194 = vadd.xlane.f32.xlu0 %v2193_v7  ;;  %v2190_v5 = vsel %vm183_vm0, %v2188_v61, 0.0 }
 0xffc   :  { %2191 = vadd.xlane.f32.xlu1 %v2190_v5 }
0x1088   :  { %v2195_v4 = vpop.xlane.xlu0 %2194 }
0x1089   :  { %v2197_v6 = vmul.f32 0.03125, %v2195_v4  ;;  %v2192_v9 = vpop.xlane.xlu1 %2191 }
0x108a   :  { %v2196_v10 = vmul.f32 0.03125, %v2192_v9 }
0x108b   :  { %v2199_v11 = vadd.f32 1e-05, %v2197_v6 }
0x108c   :  { %v2198_v14 = vadd.f32 1e-05, %v2196_v10 }
0x108d   :  { %14537 = vrsqrt.f32 %v2199_v11 }
0x108e   :  { %14539 = vrsqrt.f32 %v2198_v14 }
0x1097   :  { %v14538_v15 = vpop.eup %14537 }
0x1098   :  { %v14540_v18 = vpop.eup %14539  ;;  %v2203_v19 = vmul.f32 %v14538_v15, %v2187_v58 }
0x1099   :  { %v2202_v20 = vmul.f32 %v14540_v18, %v2186_v59 }
0x109a   :  { %v2211_v23 = vmul.f32 %v12652_v16, %v2203_v19 }
0x109b   :  { %v2210_v24 = vmul.f32 %v12652_v16, %v2202_v20  ;;  %v15341_v20 = vld [vmem:[%s14842_s13] sm:$0xff] }
0x109c   :  { %v15257_v26 = vadd.f32 %v12653_v21, %v2211_v23 }
0x109d   :  { %v15255_v25 = vadd.f32 %v12653_v21, %v2210_v24 }
0x109f   :  { %13494 = vmatprep.mubr.msk.f32.mxu1 %vm183_vm0, %v15255_v25 }
0x10a0   :  { %13495 = vmatmul.mubr.msk.f32.vlgmr.msra.gmra.mrb[24].mxu1 %vm183_vm0, %v15257_v26 }
0x10a1   :  { %13499 = vmatprep.mubr.msk.f32.mxu1 %vm14809_vm1, %v14808_v8 }
0x1173   :  { %v13496_v28 = vpop.f32.mrb[24].mxu1 }
0x1174   :  { %v15266_v29 = vadd.f32 %v13496_v28, %v12664_v27  ;;  %v2312_v30 = vpop.f32.mrb[25].mxu1 }
0x1175   :  { %v15268_v31 = vadd.f32 %v12664_v27, %v2312_v30 }
0x1176   :  { %2399 = vrot.lane.b32.xlu0 %v15266_v29, %s14810_s0 }
0x1177   :  { %2322 = vrot.lane.b32.xlu1 %v15268_v31, %s14810_s0 }
0x11e8   :  { %v2400_v33 = vpop.permute.xlu0 %2399 }
0x11e9   :  { %v2323_v32 = vpop.permute.xlu1 %2322 }
0x11ea   :  { %13498 = vmatpush3.xpose.msk.msra.mxu1 %vm268_vm2, %v2323_v32 }
0x11eb   :  { %13502 = vmatprep.subr.mxu1 %v14808_v8 }
0x11ed   :  { %13500 = vmatmul.mubr.msk.f32.vlgmr.msra.gmra.mrb[26].mxu1 %vm268_vm2, %v15268_v31 }
0x11ee   :  { %13503 = vmatpush3.xpose.msk.msra.mxu1 %vm268_vm2, %v2400_v33  ;;  %13504 = vmatprep.mubr.msk.f32.mxu1 %vm14809_vm1, %v14808_v8 }
0x11ef   :  { %13512 = vmatprep.subr.mxu1 %v14808_v8 }
0x11f1   :  { %13505 = vmatmul.mubr.msk.f32.vlgmr.msra.gmra.mrb[28].mxu1 %vm268_vm2, %v15266_v29 }
0x11f2   :  { %13514 = vmatprep.mubr.msk.f32.mxu1 %vm14809_vm1, %v14808_v8 }
0x12c0   :  { %v2394_v34 = vpop.f32.mrb[26].mxu1 }
0x12c1   :  { %v13501_v35 = vpop.f32.mrb[27].mxu1  ;;  %v2475_v40 = vmul.f32 0.35355338, %v2394_v34 }
0x12c3   :  { %v2477_v41 = vadd.f32 %v2475_v40, %v15071_v17 }
0x12c4   :  { %v2471_v36 = vpop.f32.mrb[28].mxu1 }
0x12c5   :  { %v2476_v37 = vmul.f32 0.35355338, %v2471_v36  ;;  %v13506_v38 = vpop.f32.mrb[29].mxu1  ;;  %v2479_v42 = vsel %vm268_vm2, %v2477_v41, -inf }
0x12c7   :  { %v2478_v12 = vadd.f32 %v2476_v37, %v15075_v22 }
0x12c9   :  { %v2482_v39 = vsel %vm268_vm2, %v2478_v12, -inf }
0x12ca   :  { %2483 = vmax.xlane.f32.xlu1 %v2482_v39 }
0x12db   :  { %2577 = vrot.lane.b32.xlu1 %v15266_v29, %s14811_s5 }
0x12df   :  { %2731 = vrot.lane.b32.xlu1 %v15266_v29, %s14813_s23 }
0x1303   :  { %2480 = vmax.xlane.f32.xlu1 %v2479_v42 }
0x1314   :  { %2655 = vrot.lane.b32.xlu1 %v15268_v31, %s14812_s22 }
0x1318   :  { %2653 = vrot.lane.b32.xlu1 %v15268_v31, %s14813_s23 }
0x131c   :  { %3151 = vrot.lane.b32.xlu1 %v15268_v31, %s14816_s1 }
0x1357   :  { %v2484_v43 = vpop.xlane.xlu1 %2483 }
0x1358   :  { %v2486_v44 = vsub.f32 %v2478_v12, %v2484_v43 }
0x135a   :  { %v2489_v45 = vmul.f32 1.442695, %v2486_v44 }
0x135b   :  { %v2578_v46 = vpop.permute.xlu1 %2577 }
0x135c   :  { %14541 = vpow2.f32 %v2489_v45  ;;  %13513 = vmatpush3.msra.mxu1 %v2578_v46 }
0x135d   :  { %13522 = vmatprep.subr.mxu1 %v14808_v8 }
0x135f   :  { %v2732_v47 = vpop.permute.xlu1 %2731 }
0x1366   :  { %v14542_v17 = vpop.eup %14541 }
0x1367   :  { %v2494_v13 = vsel %vm268_vm2, %v14542_v17, 0.0 }
0x1368   :  { %2495 = vadd.xlane.f32.xlu0 %v2494_v13 }
0x137e   :  { %2733 = vrot.lane.b32.xlu0 %v15266_v29, %s14812_s22 }
0x1390   :  { %v2481_v48 = vpop.xlane.xlu1 %2480 }
0x1391   :  { %v2485_v49 = vsub.f32 %v2477_v41, %v2481_v48 }
0x1393   :  { %v2487_v50 = vmul.f32 1.442695, %v2485_v49 }
0x1394   :  { %v2656_v60 = vpop.permute.xlu1 %2655 }
0x1395   :  { %14543 = vpow2.f32 %v2487_v50 }
0x1398   :  { %v2654_v7 = vpop.permute.xlu1 %2653 }
0x139c   :  { %v3152_v24 = vpop.permute.xlu1 %3151 }
0x139f   :  { %v14544_v52 = vpop.eup %14543 }
0x13a0   :  { %v2491_v53 = vsel %vm268_vm2, %v14544_v52, 0.0 }
0x13a1   :  { %2492 = vadd.xlane.f32.xlu0 %v2491_v53  ;;  %v15374_v53 = vld [vmem:[%s14842_s13 + $0x8] sm:$0xff] }
0x13b7   :  { %2501 = vrot.lane.b32.xlu0 %v15268_v31, %s14811_s5 }
0x13f5   :  { %v2496_v51 = vpop.xlane.xlu0 %2495 }
0x13f6   :  { %14545 = vrcp.f32 %v2496_v51 }
0x13f9   :  { %v2734_v54 = vpop.permute.xlu0 %2733 }
0x1400   :  { %v14546_v55 = vpop.eup %14545 }
0x1401   :  { %v2500_v56 = vmul.f32 %v14546_v55, %v14542_v17 }
0x1403   :  { %13515 = vmatmul.mubr.msk.f32.vlgmr.msra.gmra.mrb[30].mxu1 %vm268_vm2, %v2500_v56  ;;  %v12660_v56 = vld [vmem:[%s15002_s20 + $0x28] sm:$0xff] }
0x1404   :  { %13523 = vmatpush3.xpose.msk.msra.mxu1 %vm268_vm2, %v2734_v54  ;;  %13524 = vmatprep.mubr.msk.f32.mxu1 %vm14809_vm1, %v14808_v8  ;;  %v12659_v54 = vld [vmem:[%s15002_s20 + $0x20] sm:$0xff] }
0x1405   :  { %13532 = vmatprep.subr.mxu1 %v14808_v8 }
0x1407   :  { %13525 = vmatmul.mubr.msk.f32.vlgmr.msra.gmra.mrb[32].mxu1 %vm268_vm2, %v2732_v47 }
0x1408   :  { %13534 = vmatprep.mubr.msk.f32.mxu1 %vm14809_vm1, %v14808_v8 }
0x142e   :  { %v2493_v57 = vpop.xlane.xlu0 %2492 }
0x142f   :  { %14547 = vrcp.f32 %v2493_v57 }
0x1432   :  { %v2502_v58 = vpop.permute.xlu0 %2501 }
0x1433   :  { %13508 = vmatpush3.msra.mxu0 %v2502_v58 }
0x1434   :  { %13517 = vmatprep.subr.mxu0 %v14808_v8 }
0x1439   :  { %v14548_v59 = vpop.eup %14547 }
0x143a   :  { %v2499_v61 = vmul.f32 %v14548_v59, %v14544_v52 }
0x143c   :  { %13510 = vmatmul.mubr.msk.f32.vlgmr.msra.gmra.mrb[16].mxu0 %vm268_vm2, %v2499_v61 }
0x143d   :  { %13518 = vmatpush3.xpose.msk.msra.mxu0 %vm268_vm2, %v2656_v60  ;;  %13519 = vmatprep.mubr.msk.f32.mxu0 %vm14809_vm1, %v14808_v8 }
0x143e   :  { %13527 = vmatprep.subr.mxu0 %v14808_v8 }
0x1440   :  { %13520 = vmatmul.mubr.msk.f32.vlgmr.msra.gmra.mrb[18].mxu0 %vm268_vm2, %v2654_v7 }
0x1441   :  { %13529 = vmatprep.mubr.msk.f32.mxu0 %vm14809_vm1, %v14808_v8 }
0x14d6   :  { %v15324_v5 = vpop.f32.mrb[30].mxu1 }
0x14d7   :  { %v13516_v62 = vpop.f32.mrb[31].mxu1 }
0x14da   :  { %v2805_v63 = vpop.f32.mrb[32].mxu1 }
0x14db   :  { %v2810_v0 = vmul.f32 0.35355338, %v2805_v63  ;;  %v13526_v1 = vpop.f32.mrb[33].mxu1 }
0x14dd   :  { %v2812_v2 = vadd.f32 %v2810_v0, %v15075_v22 }
0x14df   :  { %v2816_v3 = vsel %vm268_vm2, %v2812_v2, -inf }
0x14e0   :  { %2817 = vmax.xlane.f32.xlu0 %v2816_v3 }
0x14f6   :  { %2911 = vrot.lane.b32.xlu0 %v15266_v29, %s14814_s26 }
0x14fa   :  { %3149 = vrot.lane.b32.xlu0 %v15268_v31, %s14815_s28 }
0x14fe   :  { %3227 = vrot.lane.b32.xlu0 %v15266_v29, %s14815_s28 }
0x150f   :  { %v15334_v4 = vpop.f32.mrb[16].mxu0 }
0x1510   :  { %v13511_v6 = vpop.f32.mrb[17].mxu0 }
0x1513   :  { %v2727_v9 = vpop.f32.mrb[18].mxu0 }
0x1514   :  { %v13521_v10 = vpop.f32.mrb[19].mxu0  ;;  %v2809_v19 = vmul.f32 0.35355338, %v2727_v9 }
0x1515   :  { %v12661_v10 = vld [vmem:[%s15002_s20 + $0x30] sm:$0xff] }
0x1516   :  { %v2811_v21 = vadd.f32 %v15341_v20, %v2809_v19 }
0x1518   :  { %v2813_v23 = vsel %vm268_vm2, %v2811_v21, -inf }
0x156d   :  { %v2818_v11 = vpop.xlane.xlu0 %2817 }
0x156e   :  { %v2820_v22 = vsub.f32 %v2812_v2, %v2818_v11 }
0x1570   :  { %v2823_v14 = vmul.f32 1.442695, %v2820_v22 }
0x1571   :  { %v2912_v15 = vpop.permute.xlu0 %2911 }
0x1572   :  { %14549 = vpow2.f32 %v2823_v14  ;;  %13533 = vmatpush3.msra.mxu1 %v2912_v15 }
0x1573   :  { %13547 = vmatprep.subr.mxu1 %v14808_v8 }
0x1575   :  { %v3150_v32 = vpop.permute.xlu0 %3149 }
0x1579   :  { %v3228_v34 = vpop.permute.xlu0 %3227 }
0x157c   :  { %v14550_v16 = vpop.eup %14549 }
0x157d   :  { %v2828_v18 = vsel %vm268_vm2, %v14550_v16, 0.0 }
0x157e   :  { %2829 = vadd.xlane.f32.xlu1 %v2828_v18 }
0x158f   :  { %3229 = vrot.lane.b32.xlu1 %v15266_v29, %s14816_s1 }
0x15b3   :  { %2814 = vmax.xlane.f32.xlu1 %v2813_v23 }
0x160b   :  { %v2830_v27 = vpop.xlane.xlu1 %2829 }
0x160c   :  { %14551 = vrcp.f32 %v2830_v27 }
0x160f   :  { %v3230_v33 = vpop.permute.xlu1 %3229 }
0x1616   :  { %v14552_v28 = vpop.eup %14551 }
0x1617   :  { %v2834_v30 = vmul.f32 %v14552_v28, %v14550_v16 }
0x1619   :  { %13535 = vmatmul.mubr.msk.f32.vlgmr.msra.gmra.mrb[34].mxu1 %vm268_vm2, %v2834_v30 }
0x161a   :  { %13548 = vmatpush3.xpose.msk.msra.mxu1 %vm268_vm2, %v3152_v24  ;;  %13549 = vmatprep.mubr.msk.f32.mxu1 %vm14809_vm1, %v14808_v8 }
0x161b   :  { %13552 = vmatprep.subr.mxu1 %v14808_v8 }
0x161d   :  { %13550 = vmatmul.mubr.msk.f32.vlgmr.msra.gmra.mrb[36].mxu1 %vm268_vm2, %v3150_v32 }
0x161e   :  { %13553 = vmatpush3.xpose.msk.msra.mxu1 %vm268_vm2, %v3230_v33  ;;  %13554 = vmatprep.mubr.msk.f32.mxu1 %vm14809_vm1, %v14808_v8 }
0x161f   :  { %13562 = vmatprep.subr.mxu1 %v14808_v8 }
0x1621   :  { %13555 = vmatmul.mubr.msk.f32.vlgmr.msra.gmra.mrb[38].mxu1 %vm268_vm2, %v3228_v34 }
0x1622   :  { %13564 = vmatprep.mubr.msk.f32.mxu1 %vm14809_vm1, %v14808_v8 }
0x1640   :  { %v2815_v35 = vpop.xlane.xlu1 %2814 }
0x1641   :  { %v2819_v36 = vsub.f32 %v2811_v21, %v2815_v35 }
0x1643   :  { %v2821_v37 = vmul.f32 1.442695, %v2819_v36 }
0x1645   :  { %14553 = vpow2.f32 %v2821_v37 }
0x164f   :  { %v14554_v38 = vpop.eup %14553 }
0x1650   :  { %v2825_v12 = vsel %vm268_vm2, %v14554_v38, 0.0 }
0x1651   :  { %2826 = vadd.xlane.f32.xlu0 %v2825_v12 }
0x1667   :  { %2835 = vrot.lane.b32.xlu0 %v15268_v31, %s14814_s26 }
0x166b   :  { %3407 = vrot.lane.b32.xlu0 %v15266_v29, %s14817_s2 }
0x166f   :  { %3568 = vrot.lane.b32.xlu0 %v15268_v31, %s14818_s7 }
0x1673   :  { %3646 = vrot.lane.b32.xlu0 %v15266_v29, %s14818_s7 }
0x1677   :  { %3566 = vrot.lane.b32.xlu0 %v15268_v31, %s16374_s10 }
0x16de   :  { %v2827_v39 = vpop.xlane.xlu0 %2826 }
0x16df   :  { %14555 = vrcp.f32 %v2827_v39 }
0x16e2   :  { %v2836_v40 = vpop.permute.xlu0 %2835 }
0x16e3   :  { %13528 = vmatpush3.msra.mxu0 %v2836_v40 }
0x16e4   :  { %13537 = vmatprep.subr.mxu0 %v12660_v56 }
0x16e6   :  { %v3408_v41 = vpop.permute.xlu0 %3407 }
0x16e7   :  { %13563 = vmatpush3.msra.mxu1 %v3408_v41 }
0x16e8   :  { %13572 = vmatprep.subr.mxu1 %v14808_v8 }
0x16e9   :  { %v14556_v42 = vpop.eup %14555 }
0x16ea   :  { %v2833_v43 = vmul.f32 %v14556_v42, %v14554_v38  ;;  %v3569_v22 = vpop.permute.xlu0 %3568 }
0x16ec   :  { %13530 = vmatmul.mubr.msk.f32.vlgmr.msra.gmra.mrb[20].mxu0 %vm268_vm2, %v2833_v43  ;;  %v2983_v44 = vpop.f32.mrb[34].mxu1 }
0x16ed   :  { %v13536_v45 = vpop.f32.mrb[35].mxu1  ;;  %13538 = vmatpush3.msra.mxu0 %v12660_v56 }
0x16ee   :  { %13542 = vmatprep.subr.mxu0 %v12659_v54  ;;  %v3647_v16 = vpop.permute.xlu0 %3646 }
0x16f0   :  { %v3223_v46 = vpop.f32.mrb[36].mxu1 }
0x16f1   :  { %v3305_v17 = vmul.f32 0.35355338, %v3223_v46  ;;  %v13551_v13 = vpop.f32.mrb[37].mxu1 }
0x16f2   :  { %v3567_v18 = vpop.permute.xlu0 %3566 }
0x16f3   :  { %v3307_v47 = vadd.f32 %v15341_v20, %v3305_v17 }
0x16f4   :  { %v3301_v48 = vpop.f32.mrb[38].mxu1 }
0x16f5   :  { %v3306_v49 = vmul.f32 0.35355338, %v3301_v48  ;;  %v13556_v50 = vpop.f32.mrb[39].mxu1  ;;  %v3309_v52 = vsel %vm268_vm2, %v3307_v47, -inf }
0x16f6   :  { %3310 = vmax.xlane.f32.xlu1 %v3309_v52  ;;  %v12662_v52 = vld [vmem:[%s15002_s20 + $0x38] sm:$0xff]  ;;  %s16409_s20 = sld [smem:[#allocation8_spill]] }
0x16f7   :  { %v3308_v51 = vadd.f32 %v15374_v53, %v3306_v49 }
0x16f9   :  { %v3312_v55 = vsel %vm268_vm2, %v3308_v51, -inf }
0x16fa   :  { %3313 = vmax.xlane.f32.xlu1 %v3312_v55 }
0x1783   :  { %v3311_v57 = vpop.xlane.xlu1 %3310 }
0x1784   :  { %v3315_v58 = vsub.f32 %v3307_v47, %v3311_v57 }
0x1786   :  { %v3317_v59 = vmul.f32 1.442695, %v3315_v58 }
0x1787   :  { %v3314_v60 = vpop.xlane.xlu1 %3313 }
0x1788   :  { %14557 = vpow2.f32 %v3317_v59  ;;  %v3316_v61 = vsub.f32 %v3308_v51, %v3314_v60 }
0x178a   :  { %v3319_v7 = vmul.f32 1.442695, %v3316_v61 }
0x178c   :  { %14559 = vpow2.f32 %v3319_v7 }
0x1792   :  { %v14558_v62 = vpop.eup %14557 }
0x1793   :  { %v3321_v63 = vsel %vm268_vm2, %v14558_v62, 0.0 }
0x1794   :  { %3322 = vadd.xlane.f32.xlu1 %v3321_v63 }
0x1796   :  { %v14560_v0 = vpop.eup %14559 }
0x1797   :  { %v3324_v1 = vsel %vm268_vm2, %v14560_v0, 0.0 }
0x1798   :  { %3325 = vadd.xlane.f32.xlu1 %v3324_v1 }
0x17a9   :  { %3331 = vrot.lane.b32.xlu1 %v15268_v31, %s14817_s2 }
0x17ad   :  { %3644 = vrot.lane.b32.xlu1 %v15266_v29, %s16374_s10 }
0x17bf   :  { %v2907_v2 = vpop.f32.mrb[20].mxu0 }
0x17c0   :  { %v13531_v3 = vpop.f32.mrb[21].mxu0  ;;  %13539 = vmatprep.mubr.msk.f32.mxu0 %vm268_vm2, %v2907_v2 }
0x17c1   :  { %13540 = vmatmul.mubr.msk.f32.vlgmr.msra.gmra.mrb[22].mxu0 %vm268_vm2, %v2983_v44 }
0x17c2   :  { %13544 = vmatprep.mubr.msk.f32.mxu0 %vm268_vm2, %v15334_v4  ;;  %13543 = vmatpush3.msra.mxu0 %v12659_v54 }
0x17c3   :  { %13557 = vmatprep.subr.mxu0 %v14808_v8 }
0x17c9   :  { %13545 = vmatmul.mubr.msk.f32.vlgmr.msra.gmra.mrb[22].mxu0 %vm268_vm2, %v15324_v5 }
0x17ca   :  { %13559 = vmatprep.mubr.msk.f32.mxu0 %vm14809_vm1, %v14808_v8 }
0x1821   :  { %v3323_v6 = vpop.xlane.xlu1 %3322 }
0x1822   :  { %14561 = vrcp.f32 %v3323_v6 }
0x1825   :  { %v3326_v9 = vpop.xlane.xlu1 %3325 }
0x1826   :  { %14563 = vrcp.f32 %v3326_v9 }
0x1829   :  { %v3332_v11 = vpop.permute.xlu1 %3331 }
0x182a   :  { %13558 = vmatpush3.msra.mxu0 %v3332_v11 }
0x182b   :  { %13567 = vmatprep.subr.mxu0 %v12661_v10 }
0x182c   :  { %v14562_v14 = vpop.eup %14561 }
0x182d   :  { %v3329_v4 = vmul.f32 %v14562_v14, %v14558_v62  ;;  %v3645_v27 = vpop.permute.xlu1 %3644 }
0x182f   :  { %13560 = vmatmul.mubr.msk.f32.vlgmr.msra.gmra.mrb[24].mxu0 %vm268_vm2, %v3329_v4 }
0x1830   :  { %v14564_v15 = vpop.eup %14563  ;;  %13568 = vmatpush3.msra.mxu0 %v12661_v10 }
0x1831   :  { %v3330_v5 = vmul.f32 %v14564_v15, %v14560_v0  ;;  %13577 = vmatprep.subr.mxu0 %v14808_v8  ;;  %v12704_v15 = vld [vmem:[%s14962_s6 + $0x20] sm:$0xff] }
0x1833   :  { %13565 = vmatmul.mubr.msk.f32.vlgmr.msra.gmra.mrb[40].mxu1 %vm268_vm2, %v3330_v5  ;;  %v12706_v5 = vld [vmem:[%s14962_s6 + $0x30] sm:$0xff] }
0x1834   :  { %13573 = vmatpush3.xpose.msk.msra.mxu1 %vm268_vm2, %v3569_v22  ;;  %13574 = vmatprep.mubr.msk.f32.mxu1 %vm14809_vm1, %v14808_v8 }
0x1835   :  { %13582 = vmatprep.subr.mxu1 %v14808_v8 }
0x1837   :  { %13575 = vmatmul.mubr.msk.f32.vlgmr.msra.gmra.mrb[42].mxu1 %vm268_vm2, %v3567_v18 }
0x1838   :  { %13584 = vmatprep.mubr.msk.f32.mxu1 %vm14809_vm1, %v14808_v8 }
0x1902   :  { %v3403_v19 = vpop.f32.mrb[24].mxu0 }
0x1903   :  { %v13561_v21 = vpop.f32.mrb[25].mxu0  ;;  %13569 = vmatprep.mubr.msk.f32.mxu0 %vm268_vm2, %v3403_v19  ;;  %v12707_v19 = vld [vmem:[%s14962_s6 + $0x38] sm:$0xff] }
0x1904   :  { %v14230_v21 = vpack.c.bf16 %v12707_v19, %v12706_v5 }
0x1906   :  { %v3479_v23 = vpop.f32.mrb[40].mxu1 }
0x1907   :  { %v13566_v24 = vpop.f32.mrb[41].mxu1  ;;  %13570 = vmatmul.mubr.msk.f32.vlgmr.msra.gmra.mrb[22].mxu0 %vm268_vm2, %v3479_v23 }
0x1908   :  { %13578 = vmatpush3.xpose.msk.msra.mxu0 %vm268_vm2, %v3647_v16  ;;  %13579 = vmatprep.mubr.msk.f32.mxu0 %vm14809_vm1, %v14808_v8  ;;  %v12705_v16 = vld [vmem:[%s14962_s6 + $0x28] sm:$0xff]  ;;  %s16407_s6 = sld [smem:[#allocation14_spill]] }
0x1909   :  { %13587 = vmatprep.subr.mxu0 %v14808_v8  ;;  %v14226_v18 = vpack.c.bf16 %v12705_v16, %v12704_v15 }
0x190a   :  { %v3640_v28 = vpop.f32.mrb[42].mxu1 }
0x190b   :  { %v3722_v30 = vmul.f32 0.35355338, %v3640_v28  ;;  %v13576_v32 = vpop.f32.mrb[43].mxu1  ;;  %13580 = vmatmul.mubr.msk.f32.vlgmr.msra.gmra.mrb[26].mxu0 %vm268_vm2, %v3645_v27  ;;  %v12709_v28 = vld [vmem:[%s14972_s25 + $0x40] sm:$0xff] }
0x190c   :  { %13589 = vmatprep.mubr.msk.f32.mxu0 %vm14809_vm1, %v14808_v8  ;;  %v12711_v32 = vld [vmem:[%s14972_s25 + $0x50] sm:$0xff] }
0x190d   :  { %v3724_v33 = vadd.f32 %v15341_v20, %v3722_v30  ;;  %v12710_v30 = vld [vmem:[%s14972_s25 + $0x48] sm:$0xff] }
0x190f   :  { %v3726_v34 = vsel %vm268_vm2, %v3724_v33, -inf }
0x1910   :  { %3727 = vmax.xlane.f32.xlu0 %v3726_v34  ;;  %v12712_v34 = vld [vmem:[%s14972_s25 + $0x58] sm:$0xff] }
0x199d   :  { %v3728_v35 = vpop.xlane.xlu0 %3727 }
0x199e   :  { %v3732_v36 = vsub.f32 %v3724_v33, %v3728_v35  ;;  %v14234_v33 = vpack.c.bf16 %v12710_v30, %v12709_v28  ;;  %v14238_v35 = vpack.c.bf16 %v12712_v34, %v12711_v32 }
0x19a0   :  { %v3734_v37 = vmul.f32 1.442695, %v3732_v36  ;;  %v12713_v36 = vld [vmem:[%s14972_s25 + $0x60] sm:$0xff] }
0x19a2   :  { %14565 = vpow2.f32 %v3734_v37  ;;  %v12714_v37 = vld [vmem:[%s14972_s25 + $0x68] sm:$0xff] }
0x19ac   :  { %v14566_v38 = vpop.eup %14565 }
0x19ad   :  { %v3738_v12 = vsel %vm268_vm2, %v14566_v38, 0.0 }
0x19ae   :  { %3739 = vadd.xlane.f32.xlu0 %v3738_v12 }
0x19de   :  { %v3718_v39 = vpop.f32.mrb[26].mxu0 }
0x19df   :  { %v3723_v40 = vmul.f32 0.35355338, %v3718_v39  ;;  %v13581_v41 = vpop.f32.mrb[27].mxu0 }
0x19e1   :  { %v3725_v42 = vadd.f32 %v15374_v53, %v3723_v40 }
0x19e3   :  { %v3729_v43 = vsel %vm268_vm2, %v3725_v42, -inf }
0x19e4   :  { %3730 = vmax.xlane.f32.xlu1 %v3729_v43 }
0x19f5   :  { %3748 = vrot.lane.b32.xlu1 %v15268_v31, %s16372_s11 }
0x1a3b   :  { %v3740_v44 = vpop.xlane.xlu0 %3739 }
0x1a3c   :  { %14567 = vrcp.f32 %v3740_v44 }
0x1a46   :  { %v14568_v46 = vpop.eup %14567 }
0x1a47   :  { %v3746_v48 = vmul.f32 %v14568_v46, %v14566_v38  ;;  %v14242_v38 = vpack.c.bf16 %v12714_v37, %v12713_v36 }
0x1a71   :  { %v3731_v45 = vpop.xlane.xlu1 %3730 }
0x1a72   :  { %v3733_v17 = vsub.f32 %v3725_v42, %v3731_v45  ;;  %v12702_v45 = vld [vmem:[%s14982_s24 + $0x1] ss:$0 sm:$0xff]  ;;  %s16405_s24 = sld [smem:[#allocation6_spill]] }
0x1a74   :  { %v3736_v13 = vmul.f32 1.442695, %v3733_v17 }
0x1a75   :  { %v3749_v47 = vpop.permute.xlu1 %3748 }
0x1a76   :  { %14569 = vpow2.f32 %v3736_v13  ;;  %13583 = vmatpush3.msra.mxu1 %v3749_v47  ;;  %v12703_v47 = vld [vmem:[%s14977_s29 + $0x1] ss:$0 sm:$0xff]  ;;  %s16400_s29 = sld [smem:[#allocation20_spill]] }
0x1a77   :  { %13585 = vmatmul.mubr.msk.f32.vlgmr.msra.gmra.mrb[44].mxu1 %vm268_vm2, %v3746_v48  ;;  %14227 = vmatprep.subr.bf16.mxu1 %v14226_v18 }
0x1a78   :  { %14229 = vmatpush3.bf16.msra.mxu1 %v14226_v18 }
0x1a79   :  { %14231 = vmatprep.subr.bf16.mxu1 %v14230_v21 }
0x1a7c   :  { %14233 = vmatpush3.bf16.msra.mxu1 %v14230_v21 }
0x1a80   :  { %v14570_v49 = vpop.eup %14569 }
0x1a81   :  { %v3741_v50 = vsel %vm268_vm2, %v14570_v49, 0.0 }
0x1a82   :  { %3742 = vadd.xlane.f32.xlu0 %v3741_v50 }
0x1a98   :  { %3824 = vrot.lane.b32.xlu0 %v15266_v29, %s16372_s11  ;;  %v12699_v29 = vld [vmem:[%s14997_s21 + $0x1] ss:$0 sm:$0xff]  ;;  %s16398_s21 = sld [smem:[#allocation21_spill]] }
0x1a9e   :  { %v4327_v23 = vld [vmem:[%s16398_s21] sm:$0xff]  ;;  %v4328_v24 = vld [vmem:[%s16398_s21 + $0x8] sm:$0xff]  ;;  %v4329_v50 = vld [vmem:[%s16398_s21 + $0x10] sm:$0xff] }
0x1a9f   :  { %v14250_v27 = vpack.c.bf16 %v4328_v24, %v4327_v23 }
0x1aa1   :  { %14251 = vmatprep.subr.bf16.mxu1 %v14250_v27 }
0x1b0f   :  { %v3743_v31 = vpop.xlane.xlu0 %3742 }
0x1b10   :  { %14571 = vrcp.f32 %v3743_v31  ;;  %v4330_v31 = vld [vmem:[%s16398_s21 + $0x18] sm:$0xff] }
0x1b13   :  { %v3825_v51 = vpop.permute.xlu0 %3824 }
0x1b14   :  { %13588 = vmatpush3.msra.mxu0 %v3825_v51 }
0x1b15   :  { %13592 = vmatprep.subr.mxu0 %v12662_v52 }
0x1b1a   :  { %v14572_v55 = vpop.eup %14571 }
0x1b1b   :  { %v3747_v56 = vmul.f32 %v14572_v55, %v14570_v49  ;;  %v14254_v55 = vpack.c.bf16 %v4330_v31, %v4329_v50 }
0x1b1d   :  { %13590 = vmatmul.mubr.msk.f32.vlgmr.msra.gmra.mrb[28].mxu0 %vm268_vm2, %v3747_v56  ;;  %v15458_v56 = vld [vmem:[%s16399_s19] sm:$0xff] }
0x1b1e   :  { %13593 = vmatpush3.msra.mxu0 %v12662_v52 }
0x1b1f   :  { %14235 = vmatprep.subr.bf16.mxu0 %v14234_v33 }
0x1b4a   :  { %v3820_v54 = vpop.f32.mrb[44].mxu1 }
0x1b4b   :  { %v13586_v57 = vpop.f32.mrb[45].mxu1  ;;  %13594 = vmatprep.mubr.msk.f32.mxu0 %vm268_vm2, %v3820_v54  ;;  %v15467_v54 = vld [vmem:[%s16399_s19 + $0x8] sm:$0xff]  ;;  %s16414_s19 = sld [smem:[#allocation10_spill]] }
0x1b4c   :  { %v12715_v57 = vld [vmem:[%s14972_s25 + $0x70] sm:$0xff] }
0x1bf0   :  { %v3896_v58 = vpop.f32.mrb[28].mxu0 }
0x1bf1   :  { %v13591_v59 = vpop.f32.mrb[29].mxu0  ;;  %13595 = vmatmul.mubr.msk.f32.vlgmr.msra.gmra.mrb[22].mxu0 %vm268_vm2, %v3896_v58  ;;  %v12716_v58 = vld [vmem:[%s14972_s25 + $0x78] sm:$0xff]  ;;  %s16401_s25 = sld [smem:[#allocation23_spill]] }
0x1bf2   :  { %14237 = vmatpush3.bf16.msra.mxu0 %v14234_v33  ;;  %v14246_v59 = vpack.c.bf16 %v12716_v58, %v12715_v57 }
0x1bf3   :  { %14239 = vmatprep.subr.bf16.mxu0 %v14238_v35 }
0x1bf6   :  { %14241 = vmatpush3.bf16.msra.mxu0 %v14238_v35 }
0x1bf7   :  { %14243 = vmatprep.subr.bf16.mxu0 %v14242_v38 }
0x1bfa   :  { %14245 = vmatpush3.bf16.msra.mxu0 %v14242_v38 }
0x1bfb   :  { %14247 = vmatprep.subr.bf16.mxu0 %v14246_v59 }
0x1bfe   :  { %14249 = vmatpush3.bf16.msra.mxu0 %v14246_v59 }
0x1bff   :  { %13648 = vmatprep.subr.mxu0 %v14808_v8 }
0x1cc4   :  { %v13596_v60 = vpop.f32.mrb[22].mxu0 }
0x1cc5   :  { %v3990_v61 = vadd.f32 %v13596_v60, %v12699_v29  ;;  %v3972_v7 = vpop.f32.mrb[23].mxu0 }
0x1cc6   :  { %v3989_v62 = vadd.f32 %v12699_v29, %v3972_v7  ;;  %v12718_v29 = vld [vmem:[%s14957_s3 + $0x1] ss:$0 sm:$0xff]  ;;  %s16402_s3 = sld [smem:[#allocation22_spill]] }
0x1cc7   :  { %v3992_v63 = vadd.f32 %v3990_v61, %v15257_v26 }
0x1cc8   :  { %v3991_v0 = vadd.f32 %v3989_v62, %v15255_v25 }
0x1cc9   :  { %v4000_v1 = vsel %vm183_vm0, %v3992_v63, 0.0 }
0x1cca   :  { %4001 = vadd.xlane.f32.xlu0 %v4000_v1  ;;  %v3997_v2 = vsel %vm183_vm0, %v3991_v0, 0.0  ;;  %v12730_v1 = vld [vmem:[%s16400_s29] ss:$0 sm:$0xff] }
0x1ccb   :  { %3998 = vadd.xlane.f32.xlu1 %v3997_v2 }
0x1d57   :  { %v4002_v3 = vpop.xlane.xlu0 %4001 }
0x1d58   :  { %v4004_v6 = vmul.f32 0.03125, %v4002_v3  ;;  %v3999_v9 = vpop.xlane.xlu1 %3998 }
0x1d59   :  { %v4003_v10 = vmul.f32 0.03125, %v3999_v9 }
0x1d5a   :  { %v4006_v11 = vsub.f32 %v3992_v63, %v4004_v6 }
0x1d5b   :  { %v4005_v22 = vsub.f32 %v3991_v0, %v4003_v10 }
0x1d5c   :  { %v4008_v14 = vmul.f32 %v4006_v11, %v4006_v11 }
0x1d5d   :  { %v4007_v26 = vmul.f32 %v4005_v22, %v4005_v22 }
0x1d5e   :  { %v4012_v25 = vsel %vm183_vm0, %v4008_v14, 0.0 }
0x1d5f   :  { %4013 = vadd.xlane.f32.xlu0 %v4012_v25  ;;  %v4009_v4 = vsel %vm183_vm0, %v4007_v26, 0.0 }
0x1d60   :  { %4010 = vadd.xlane.f32.xlu1 %v4009_v4 }
0x1dec   :  { %v4014_v12 = vpop.xlane.xlu0 %4013 }
0x1ded   :  { %v4016_v39 = vmul.f32 0.03125, %v4014_v12  ;;  %v4011_v40 = vpop.xlane.xlu1 %4010 }
0x1dee   :  { %v4015_v41 = vmul.f32 0.03125, %v4011_v40 }
0x1def   :  { %v4018_v42 = vadd.f32 1e-05, %v4016_v39 }
0x1df0   :  { %v4017_v43 = vadd.f32 1e-05, %v4015_v41 }
0x1df1   :  { %14573 = vrsqrt.f32 %v4018_v42 }
0x1df2   :  { %14575 = vrsqrt.f32 %v4017_v43 }
0x1dfb   :  { %v14574_v44 = vpop.eup %14573 }
0x1dfc   :  { %v14576_v46 = vpop.eup %14575  ;;  %v4022_v17 = vmul.f32 %v14574_v44, %v4006_v11 }
0x1dfd   :  { %v4021_v13 = vmul.f32 %v14576_v46, %v4005_v22  ;;  %v15504_v22 = vld [vmem:[%s14967_s8 + $0x1] ss:$0 sm:$0xff]  ;;  %s16404_s8 = sld [smem:[#allocation26_spill]] }
0x1dfe   :  { %v4030_v48 = vmul.f32 %v12702_v45, %v4022_v17 }
0x1dff   :  { %v4029_v49 = vmul.f32 %v12702_v45, %v4021_v13 }
0x1e00   :  { %v15455_v51 = vadd.f32 %v12703_v47, %v4030_v48 }
0x1e01   :  { %v15453_v52 = vadd.f32 %v12703_v47, %v4029_v49 }
0x1e03   :  { %13605 = vmatprep.mubr.msk.f32.mxu1 %vm183_vm0, %v15453_v52 }
0x1e04   :  { %13606 = vmatmul.mubr.msk.f32.vlgmr.msra.gmra.mrb[46].mxu1 %vm183_vm0, %v15455_v51 }
0x1e05   :  { %14253 = vmatpush3.bf16.msra.mxu1 %v14250_v27  ;;  %13635 = vmatprep.mubr.msk.f32.mxu1 %vm183_vm0, %v15458_v56 }
0x1e06   :  { %14255 = vmatprep.subr.bf16.mxu1 %v14254_v55 }
0x1e09   :  { %14257 = vmatpush3.bf16.msra.mxu1 %v14254_v55 }
0x1e0a   :  { %13638 = vmatprep.subr.mxu1 %v14808_v8 }
0x1e0c   :  { %13636 = vmatmul.mubr.msk.f32.vlgmr.msra.gmra.mrb[48].mxu1 %vm183_vm0, %v15467_v54 }
0x1e0d   :  { %13640 = vmatprep.mubr.msk.f32.mxu1 %vm14809_vm1, %v14808_v8 }
0x1ed7   :  { %v13607_v60 = vpop.f32.mrb[46].mxu1 }
0x1ed8   :  { %v4141_v61 = vadd.f32 %v13607_v60, %v12718_v29  ;;  %v4135_v7 = vpop.f32.mrb[47].mxu1 }
0x1ed9   :  { %v4136_v62 = vadd.f32 %v12718_v29, %v4135_v7 }
0x1eda   :  { %v4145_v0 = vmax.f32 %v4141_v61, 0.0 }
0x1edb   :  { %v4144_v63 = vmax.f32 %v4136_v62, 0.0 }
0x1edd   :  { %13624 = vmatprep.mubr.msk.f32.mxu0 %vm2092_vm3, %v4144_v63 }
0x1ede   :  { %13625 = vmatmul.mubr.msk.f32.vlgmr.msra.gmra.mrb[30].mxu0 %vm2092_vm3, %v4145_v0 }
0x1edf   :  { %v13637_v2 = vpop.f32.mrb[48].mxu1  ;;  %13650 = vmatprep.mubr.msk.f32.mxu0 %vm14809_vm1, %v14808_v8 }
0x1ee0   :  { %v15483_v3 = vadd.f32 %v13637_v2, %v12730_v1  ;;  %v4415_v6 = vpop.f32.mrb[49].mxu1 }
0x1ee1   :  { %v15485_v9 = vadd.f32 %v12730_v1, %v4415_v6 }
0x1ee2   :  { %4502 = vrot.lane.b32.xlu0 %v15483_v3, %s14810_s0 }
0x1ee3   :  { %4425 = vrot.lane.b32.xlu1 %v15485_v9, %s14810_s0 }
0x1f54   :  { %v4503_v11 = vpop.permute.xlu0 %4502 }
0x1f55   :  { %v4426_v10 = vpop.permute.xlu1 %4425 }
0x1f56   :  { %13639 = vmatpush3.xpose.msk.msra.mxu1 %vm268_vm2, %v4426_v10 }
0x1f57   :  { %13643 = vmatprep.subr.mxu1 %v14808_v8 }
0x1f59   :  { %13641 = vmatmul.mubr.msk.f32.vlgmr.msra.gmra.mrb[50].mxu1 %vm268_vm2, %v15485_v9 }
0x1f5a   :  { %13644 = vmatpush3.xpose.msk.msra.mxu1 %vm268_vm2, %v4503_v11  ;;  %13645 = vmatprep.mubr.msk.f32.mxu1 %vm14809_vm1, %v14808_v8 }
0x1f5b   :  { %13653 = vmatprep.subr.mxu1 %v14808_v8 }
0x1f5d   :  { %13646 = vmatmul.mubr.msk.f32.vlgmr.msra.gmra.mrb[52].mxu1 %vm268_vm2, %v15483_v3 }
0x1f5e   :  { %13655 = vmatprep.mubr.msk.f32.mxu1 %vm14809_vm1, %v14808_v8 }
0x1fb1   :  { %v13626_v14 = vpop.f32.mrb[30].mxu0 }
0x1fb2   :  { %v15507_v26 = vadd.f32 %v13626_v14, %v15504_v22  ;;  %v15509_v25 = vpop.f32.mrb[31].mxu0 }
0x202c   :  { %v4497_v4 = vpop.f32.mrb[50].mxu1 }
0x202d   :  { %v13642_v15 = vpop.f32.mrb[51].mxu1  ;;  %v4578_v23 = vmul.f32 0.35355338, %v4497_v4 }
0x202f   :  { %v4580_v24 = vadd.f32 %v15341_v20, %v4578_v23 }
0x2030   :  { %v4574_v16 = vpop.f32.mrb[52].mxu1 }
0x2031   :  { %v4579_v5 = vmul.f32 0.35355338, %v4574_v16  ;;  %v13647_v18 = vpop.f32.mrb[53].mxu1  ;;  %v4582_v27 = vsel %vm268_vm2, %v4580_v24, -inf }
0x2033   :  { %v4581_v19 = vadd.f32 %v15374_v53, %v4579_v5 }
0x2035   :  { %v4585_v21 = vsel %vm268_vm2, %v4581_v19, -inf }
0x2036   :  { %4586 = vmax.xlane.f32.xlu1 %v4585_v21 }
0x2047   :  { %4680 = vrot.lane.b32.xlu1 %v15483_v3, %s14811_s5 }
0x204b   :  { %4834 = vrot.lane.b32.xlu1 %v15483_v3, %s14813_s23 }
0x206f   :  { %4583 = vmax.xlane.f32.xlu1 %v4582_v27 }
0x2080   :  { %4758 = vrot.lane.b32.xlu1 %v15485_v9, %s14812_s22 }
0x2084   :  { %4756 = vrot.lane.b32.xlu1 %v15485_v9, %s14813_s23 }
0x2088   :  { %5254 = vrot.lane.b32.xlu1 %v15485_v9, %s14816_s1 }
0x20c3   :  { %v4587_v28 = vpop.xlane.xlu1 %4586 }
0x20c4   :  { %v4589_v30 = vsub.f32 %v4581_v19, %v4587_v28 }
0x20c6   :  { %v4592_v32 = vmul.f32 1.442695, %v4589_v30 }
0x20c7   :  { %v4681_v33 = vpop.permute.xlu1 %4680 }
0x20c8   :  { %14577 = vpow2.f32 %v4592_v32  ;;  %13654 = vmatpush3.msra.mxu1 %v4681_v33 }
0x20c9   :  { %13663 = vmatprep.subr.mxu1 %v14808_v8 }
0x20cb   :  { %v4835_v36 = vpop.permute.xlu1 %4834 }
0x20d2   :  { %v14578_v34 = vpop.eup %14577 }
0x20d3   :  { %v4597_v35 = vsel %vm268_vm2, %v14578_v34, 0.0 }
0x20d4   :  { %4598 = vadd.xlane.f32.xlu0 %v4597_v35 }
0x20ea   :  { %4836 = vrot.lane.b32.xlu0 %v15483_v3, %s14812_s22 }
0x20fc   :  { %v4584_v37 = vpop.xlane.xlu1 %4583 }
0x20fd   :  { %v4588_v38 = vsub.f32 %v4580_v24, %v4584_v37 }
0x20ff   :  { %v4590_v12 = vmul.f32 1.442695, %v4588_v38 }
0x2100   :  { %v4759_v13 = vpop.permute.xlu1 %4758 }
0x2101   :  { %14579 = vpow2.f32 %v4590_v12 }
0x2104   :  { %v4757_v48 = vpop.permute.xlu1 %4756 }
0x2108   :  { %v5255_v4 = vpop.permute.xlu1 %5254 }
0x210b   :  { %v14580_v39 = vpop.eup %14579 }
0x210c   :  { %v4594_v40 = vsel %vm268_vm2, %v14580_v39, 0.0 }
0x210d   :  { %4595 = vadd.xlane.f32.xlu0 %v4594_v40 }
0x2123   :  { %4604 = vrot.lane.b32.xlu0 %v15485_v9, %s14811_s5 }
0x2161   :  { %v4599_v41 = vpop.xlane.xlu0 %4598 }
0x2162   :  { %14581 = vrcp.f32 %v4599_v41 }
0x2165   :  { %v4837_v44 = vpop.permute.xlu0 %4836 }
0x216c   :  { %v14582_v42 = vpop.eup %14581 }
0x216d   :  { %v4603_v43 = vmul.f32 %v14582_v42, %v14578_v34 }
0x216f   :  { %13656 = vmatmul.mubr.msk.f32.vlgmr.msra.gmra.mrb[54].mxu1 %vm268_vm2, %v4603_v43 }
0x2170   :  { %13664 = vmatpush3.xpose.msk.msra.mxu1 %vm268_vm2, %v4837_v44  ;;  %13665 = vmatprep.mubr.msk.f32.mxu1 %vm14809_vm1, %v14808_v8 }
0x2171   :  { %13673 = vmatprep.subr.mxu1 %v14808_v8 }
0x2173   :  { %13666 = vmatmul.mubr.msk.f32.vlgmr.msra.gmra.mrb[56].mxu1 %vm268_vm2, %v4835_v36 }
0x2174   :  { %13675 = vmatprep.mubr.msk.f32.mxu1 %vm14809_vm1, %v14808_v8 }
0x219a   :  { %v4596_v45 = vpop.xlane.xlu0 %4595 }
0x219b   :  { %14583 = vrcp.f32 %v4596_v45 }
0x219e   :  { %v4605_v46 = vpop.permute.xlu0 %4604 }
0x219f   :  { %13649 = vmatpush3.msra.mxu0 %v4605_v46 }
0x21a0   :  { %13658 = vmatprep.subr.mxu0 %v14808_v8 }
0x21a5   :  { %v14584_v17 = vpop.eup %14583 }
0x21a6   :  { %v4602_v47 = vmul.f32 %v14584_v17, %v14580_v39 }
0x21a8   :  { %13651 = vmatmul.mubr.msk.f32.vlgmr.msra.gmra.mrb[32].mxu0 %vm268_vm2, %v4602_v47  ;;  %v4332_v47 = vld [vmem:[%s16401_s25] sm:$0xff] }
0x21a9   :  { %13659 = vmatpush3.xpose.msk.msra.mxu0 %vm268_vm2, %v4759_v13  ;;  %13660 = vmatprep.mubr.msk.f32.mxu0 %vm14809_vm1, %v14808_v8  ;;  %v4333_v13 = vld [vmem:[%s16401_s25 + $0x8] sm:$0xff] }
0x21aa   :  { %13668 = vmatprep.subr.mxu0 %v14808_v8 }
0x21ac   :  { %13661 = vmatmul.mubr.msk.f32.vlgmr.msra.gmra.mrb[34].mxu0 %vm268_vm2, %v4757_v48 }
0x21ad   :  { %13670 = vmatprep.mubr.msk.f32.mxu0 %vm14809_vm1, %v14808_v8 }
0x2242   :  { %v15549_v49 = vpop.f32.mrb[54].mxu1 }
0x2243   :  { %v13657_v50 = vpop.f32.mrb[55].mxu1 }
0x2246   :  { %v4908_v31 = vpop.f32.mrb[56].mxu1 }
0x2247   :  { %v4913_v55 = vmul.f32 0.35355338, %v4908_v31  ;;  %v13667_v57 = vpop.f32.mrb[57].mxu1 }
0x2249   :  { %v4915_v58 = vadd.f32 %v15374_v53, %v4913_v55 }
0x224b   :  { %v4919_v59 = vsel %vm268_vm2, %v4915_v58, -inf }
0x224c   :  { %4920 = vmax.xlane.f32.xlu0 %v4919_v59 }
0x2262   :  { %5014 = vrot.lane.b32.xlu0 %v15483_v3, %s14814_s26 }
0x2266   :  { %5252 = vrot.lane.b32.xlu0 %v15485_v9, %s14815_s28 }
0x226a   :  { %5330 = vrot.lane.b32.xlu0 %v15483_v3, %s14815_s28 }
0x227b   :  { %v15559_v29 = vpop.f32.mrb[32].mxu0 }
0x227c   :  { %v13652_v60 = vpop.f32.mrb[33].mxu0 }
0x227f   :  { %v4830_v61 = vpop.f32.mrb[34].mxu0 }
0x2280   :  { %v13662_v7 = vpop.f32.mrb[35].mxu0  ;;  %v4912_v10 = vmul.f32 0.35355338, %v4830_v61 }
0x2282   :  { %v4914_v11 = vadd.f32 %v15341_v20, %v4912_v10 }
0x2284   :  { %v4916_v14 = vsel %vm268_vm2, %v4914_v11, -inf }
0x22d9   :  { %v4921_v62 = vpop.xlane.xlu0 %4920 }
0x22da   :  { %v4923_v63 = vsub.f32 %v4915_v58, %v4921_v62 }
0x22dc   :  { %v4926_v0 = vmul.f32 1.442695, %v4923_v63 }
0x22dd   :  { %v5015_v1 = vpop.permute.xlu0 %5014 }
0x22de   :  { %14585 = vpow2.f32 %v4926_v0  ;;  %13674 = vmatpush3.msra.mxu1 %v5015_v1 }
0x22df   :  { %13688 = vmatprep.subr.mxu1 %v14808_v8 }
0x22e1   :  { %v5253_v18 = vpop.permute.xlu0 %5252 }
0x22e5   :  { %v5331_v21 = vpop.permute.xlu0 %5330 }
0x22e8   :  { %v14586_v2 = vpop.eup %14585 }
0x22e9   :  { %v4931_v6 = vsel %vm268_vm2, %v14586_v2, 0.0 }
0x22ea   :  { %4932 = vadd.xlane.f32.xlu1 %v4931_v6 }
0x22fb   :  { %5332 = vrot.lane.b32.xlu1 %v15483_v3, %s14816_s1 }
0x231f   :  { %4917 = vmax.xlane.f32.xlu1 %v4916_v14 }
0x2377   :  { %v4933_v15 = vpop.xlane.xlu1 %4932 }
0x2378   :  { %14587 = vrcp.f32 %v4933_v15 }
0x237b   :  { %v5333_v19 = vpop.permute.xlu1 %5332 }
0x2382   :  { %v14588_v16 = vpop.eup %14587 }
0x2383   :  { %v4937_v5 = vmul.f32 %v14588_v16, %v14586_v2  ;;  %v4334_v2 = vld [vmem:[%s16401_s25 + $0x10] sm:$0xff] }
0x2385   :  { %13676 = vmatmul.mubr.msk.f32.vlgmr.msra.gmra.mrb[58].mxu1 %vm268_vm2, %v4937_v5 }
0x2386   :  { %13689 = vmatpush3.xpose.msk.msra.mxu1 %vm268_vm2, %v5255_v4  ;;  %13690 = vmatprep.mubr.msk.f32.mxu1 %vm14809_vm1, %v14808_v8 }
0x2387   :  { %13693 = vmatprep.subr.mxu1 %v14808_v8 }
0x2389   :  { %13691 = vmatmul.mubr.msk.f32.vlgmr.msra.gmra.mrb[60].mxu1 %vm268_vm2, %v5253_v18 }
0x238a   :  { %13694 = vmatpush3.xpose.msk.msra.mxu1 %vm268_vm2, %v5333_v19  ;;  %13695 = vmatprep.mubr.msk.f32.mxu1 %vm14809_vm1, %v14808_v8 }
0x238b   :  { %13703 = vmatprep.subr.mxu1 %v14808_v8 }
0x238d   :  { %13696 = vmatmul.mubr.msk.f32.vlgmr.msra.gmra.mrb[62].mxu1 %vm268_vm2, %v5331_v21 }
0x238e   :  { %13705 = vmatprep.mubr.msk.f32.mxu1 %vm14809_vm1, %v14808_v8 }
0x23ac   :  { %v4918_v23 = vpop.xlane.xlu1 %4917 }
0x23ad   :  { %v4922_v24 = vsub.f32 %v4914_v11, %v4918_v23 }
0x23af   :  { %v4924_v27 = vmul.f32 1.442695, %v4922_v24 }
0x23b1   :  { %14589 = vpow2.f32 %v4924_v27 }
0x23bb   :  { %v14590_v28 = vpop.eup %14589 }
0x23bc   :  { %v4928_v30 = vsel %vm268_vm2, %v14590_v28, 0.0 }
0x23bd   :  { %4929 = vadd.xlane.f32.xlu0 %v4928_v30 }
0x23d3   :  { %4938 = vrot.lane.b32.xlu0 %v15485_v9, %s14814_s26 }
0x23d7   :  { %5510 = vrot.lane.b32.xlu0 %v15483_v3, %s14817_s2 }
0x23db   :  { %5671 = vrot.lane.b32.xlu0 %v15485_v9, %s14818_s7 }
0x23df   :  { %5749 = vrot.lane.b32.xlu0 %v15483_v3, %s14818_s7 }
0x23e3   :  { %5669 = vrot.lane.b32.xlu0 %v15485_v9, %s16374_s10 }
0x244a   :  { %v4930_v32 = vpop.xlane.xlu0 %4929 }
0x244b   :  { %14591 = vrcp.f32 %v4930_v32 }
0x244e   :  { %v4939_v33 = vpop.permute.xlu0 %4938 }
0x244f   :  { %13669 = vmatpush3.msra.mxu0 %v4939_v33 }
0x2450   :  { %13678 = vmatprep.subr.mxu0 %v4333_v13 }
0x2452   :  { %v5511_v34 = vpop.permute.xlu0 %5510 }
0x2453   :  { %13704 = vmatpush3.msra.mxu1 %v5511_v34 }
0x2454   :  { %13713 = vmatprep.subr.mxu1 %v14808_v8 }
0x2455   :  { %v14592_v35 = vpop.eup %14591 }
0x2456   :  { %v4936_v36 = vmul.f32 %v14592_v35, %v14590_v28  ;;  %v5672_v10 = vpop.permute.xlu0 %5671 }
0x2458   :  { %13671 = vmatmul.mubr.msk.f32.vlgmr.msra.gmra.mrb[36].mxu0 %vm268_vm2, %v4936_v36  ;;  %v5086_v37 = vpop.f32.mrb[58].mxu1 }
0x2459   :  { %v13677_v38 = vpop.f32.mrb[59].mxu1  ;;  %13679 = vmatpush3.msra.mxu0 %v4333_v13 }
0x245a   :  { %13683 = vmatprep.subr.mxu0 %v4332_v47  ;;  %v5750_v4 = vpop.permute.xlu0 %5749 }
0x245c   :  { %v5326_v12 = vpop.f32.mrb[60].mxu1 }
0x245d   :  { %v5408_v39 = vmul.f32 0.35355338, %v5326_v12  ;;  %v13692_v40 = vpop.f32.mrb[61].mxu1 }
0x245e   :  { %v5670_v15 = vpop.permute.xlu0 %5669 }
0x245f   :  { %v5410_v41 = vadd.f32 %v15341_v20, %v5408_v39 }
0x2460   :  { %v5404_v42 = vpop.f32.mrb[62].mxu1 }
0x2461   :  { %v5409_v43 = vmul.f32 0.35355338, %v5404_v42  ;;  %v13697_v44 = vpop.f32.mrb[63].mxu1  ;;  %v5412_v45 = vsel %vm268_vm2, %v5410_v41, -inf }
0x2462   :  { %5413 = vmax.xlane.f32.xlu1 %v5412_v45 }
0x2463   :  { %v5411_v46 = vadd.f32 %v15374_v53, %v5409_v43 }
0x2465   :  { %v5415_v17 = vsel %vm268_vm2, %v5411_v46, -inf }
0x2466   :  { %5416 = vmax.xlane.f32.xlu1 %v5415_v17 }
0x24ef   :  { %v5414_v48 = vpop.xlane.xlu1 %5413 }
0x24f0   :  { %v5418_v50 = vsub.f32 %v5410_v41, %v5414_v48 }
0x24f2   :  { %v5420_v31 = vmul.f32 1.442695, %v5418_v50 }
0x24f3   :  { %v5417_v55 = vpop.xlane.xlu1 %5416 }
0x24f4   :  { %14593 = vpow2.f32 %v5420_v31  ;;  %v5419_v57 = vsub.f32 %v5411_v46, %v5417_v55  ;;  %v4234_v31 = vadd.f32 %v15507_v26, %v15455_v51 }
0x24f6   :  { %v5422_v58 = vmul.f32 1.442695, %v5419_v57  ;;  %v4242_v55 = vsel %vm183_vm0, %v4234_v31, 0.0 }
0x24f8   :  { %14595 = vpow2.f32 %v5422_v58 }
0x24fe   :  { %v14594_v59 = vpop.eup %14593 }
0x24ff   :  { %v5424_v60 = vsel %vm268_vm2, %v14594_v59, 0.0 }
0x2500   :  { %5425 = vadd.xlane.f32.xlu1 %v5424_v60 }
0x2502   :  { %v14596_v61 = vpop.eup %14595 }
0x2503   :  { %v5427_v7 = vsel %vm268_vm2, %v14596_v61, 0.0 }
0x2504   :  { %5428 = vadd.xlane.f32.xlu1 %v5427_v7 }
0x2515   :  { %5434 = vrot.lane.b32.xlu1 %v15485_v9, %s14817_s2 }
0x2519   :  { %5747 = vrot.lane.b32.xlu1 %v15483_v3, %s16374_s10 }
0x252b   :  { %v5010_v62 = vpop.f32.mrb[36].mxu0 }
0x252c   :  { %v13672_v63 = vpop.f32.mrb[37].mxu0  ;;  %13680 = vmatprep.mubr.msk.f32.mxu0 %vm268_vm2, %v5010_v62 }
0x252d   :  { %13681 = vmatmul.mubr.msk.f32.vlgmr.msra.gmra.mrb[38].mxu0 %vm268_vm2, %v5086_v37 }
0x252e   :  { %13685 = vmatprep.mubr.msk.f32.mxu0 %vm268_vm2, %v15559_v29  ;;  %13684 = vmatpush3.msra.mxu0 %v4332_v47 }
0x252f   :  { %13698 = vmatprep.subr.mxu0 %v14808_v8 }
0x2535   :  { %13686 = vmatmul.mubr.msk.f32.vlgmr.msra.gmra.mrb[38].mxu0 %vm268_vm2, %v15549_v49 }
0x2536   :  { %13700 = vmatprep.mubr.msk.f32.mxu0 %vm14809_vm1, %v14808_v8 }
0x258d   :  { %v5426_v0 = vpop.xlane.xlu1 %5425 }
0x258e   :  { %14597 = vrcp.f32 %v5426_v0 }
0x2591   :  { %v5429_v1 = vpop.xlane.xlu1 %5428 }
0x2592   :  { %14599 = vrcp.f32 %v5429_v1 }
0x2595   :  { %v5435_v6 = vpop.permute.xlu1 %5434 }
0x2596   :  { %13699 = vmatpush3.msra.mxu0 %v5435_v6 }
0x2597   :  { %13708 = vmatprep.subr.mxu0 %v4334_v2 }
0x2598   :  { %v14598_v11 = vpop.eup %14597 }
0x2599   :  { %v5432_v29 = vmul.f32 %v14598_v11, %v14594_v59  ;;  %v5748_v21 = vpop.permute.xlu1 %5747 }
0x259b   :  { %13701 = vmatmul.mubr.msk.f32.vlgmr.msra.gmra.mrb[40].mxu0 %vm268_vm2, %v5432_v29  ;;  %v12727_v29 = vld [vmem:[%s14987_s30 + $0x1] ss:$0 sm:$0xff]  ;;  %s16406_s30 = sld [smem:[#allocation15_spill]] }
0x259c   :  { %v14600_v14 = vpop.eup %14599  ;;  %13709 = vmatpush3.msra.mxu0 %v4334_v2  ;;  %v12726_v2 = vld [vmem:[%s14992_s17 + $0x1] ss:$0 sm:$0xff]  ;;  %s16403_s17 = sld [smem:[#allocation7_spill]] }
0x259d   :  { %v5433_v49 = vmul.f32 %v14600_v14, %v14596_v61  ;;  %13718 = vmatprep.subr.mxu0 %v14808_v8 }
0x259f   :  { %13706 = vmatmul.mubr.msk.f32.vlgmr.msra.gmra.mrb[64].mxu1 %vm268_vm2, %v5433_v49 }
0x25a0   :  { %13714 = vmatpush3.xpose.msk.msra.mxu1 %vm268_vm2, %v5672_v10  ;;  %13715 = vmatprep.mubr.msk.f32.mxu1 %vm14809_vm1, %v14808_v8 }
0x25a1   :  { %13723 = vmatprep.subr.mxu1 %v14808_v8 }
0x25a3   :  { %13716 = vmatmul.mubr.msk.f32.vlgmr.msra.gmra.mrb[66].mxu1 %vm268_vm2, %v5670_v15  ;;  %v4335_v15 = vld [vmem:[%s16401_s25 + $0x18] sm:$0xff] }
0x25a4   :  { %13725 = vmatprep.mubr.msk.f32.mxu1 %vm14809_vm1, %v14808_v8 }
0x266e   :  { %v5506_v16 = vpop.f32.mrb[40].mxu0 }
0x266f   :  { %v13702_v5 = vpop.f32.mrb[41].mxu0  ;;  %13710 = vmatprep.mubr.msk.f32.mxu0 %vm268_vm2, %v5506_v16 }
0x2672   :  { %v5582_v18 = vpop.f32.mrb[64].mxu1 }
0x2673   :  { %v13707_v19 = vpop.f32.mrb[65].mxu1  ;;  %13711 = vmatmul.mubr.msk.f32.vlgmr.msra.gmra.mrb[38].mxu0 %vm268_vm2, %v5582_v18 }
0x2674   :  { %13719 = vmatpush3.xpose.msk.msra.mxu0 %vm268_vm2, %v5750_v4  ;;  %13720 = vmatprep.mubr.msk.f32.mxu0 %vm14809_vm1, %v14808_v8 }
0x2675   :  { %13728 = vmatprep.subr.mxu0 %v14808_v8 }
0x2676   :  { %v5743_v23 = vpop.f32.mrb[66].mxu1 }
0x2677   :  { %v5825_v24 = vmul.f32 0.35355338, %v5743_v23  ;;  %v13717_v27 = vpop.f32.mrb[67].mxu1  ;;  %13721 = vmatmul.mubr.msk.f32.vlgmr.msra.gmra.mrb[42].mxu0 %vm268_vm2, %v5748_v21 }
0x2678   :  { %13730 = vmatprep.mubr.msk.f32.mxu0 %vm14809_vm1, %v14808_v8 }
0x2679   :  { %v5827_v28 = vadd.f32 %v15341_v20, %v5825_v24  ;;  %v4225_v20 = vadd.f32 %v15504_v22, %v15509_v25 }
0x267b   :  { %v5829_v30 = vsel %vm268_vm2, %v5827_v28, -inf  ;;  %v4233_v41 = vadd.f32 %v4225_v20, %v15453_v52 }
0x267c   :  { %5830 = vmax.xlane.f32.xlu0 %v5829_v30 }
0x267d   :  { %v4239_v42 = vsel %vm183_vm0, %v4233_v41, 0.0 }
0x2709   :  { %v5831_v32 = vpop.xlane.xlu0 %5830 }
0x270a   :  { %v5835_v33 = vsub.f32 %v5827_v28, %v5831_v32 }
0x270c   :  { %v5837_v34 = vmul.f32 1.442695, %v5835_v33 }
0x270e   :  { %14601 = vpow2.f32 %v5837_v34 }
0x2718   :  { %v14602_v35 = vpop.eup %14601 }
0x2719   :  { %v5841_v36 = vsel %vm268_vm2, %v14602_v35, 0.0 }
0x271a   :  { %5842 = vadd.xlane.f32.xlu0 %v5841_v36  ;;  %v12765_v36 = vld [vmem:[%s16402_s3] ss:$0 sm:$0xff] }
0x274a   :  { %v5821_v37 = vpop.f32.mrb[42].mxu0 }
0x274b   :  { %v5826_v38 = vmul.f32 0.35355338, %v5821_v37  ;;  %v13722_v12 = vpop.f32.mrb[43].mxu0 }
0x274d   :  { %v5828_v39 = vadd.f32 %v15374_v53, %v5826_v38 }
0x274f   :  { %v5832_v40 = vsel %vm268_vm2, %v5828_v39, -inf }
0x2750   :  { %5833 = vmax.xlane.f32.xlu1 %v5832_v40 }
0x2761   :  { %5851 = vrot.lane.b32.xlu1 %v15485_v9, %s16372_s11 }
0x2785   :  { %4240 = vadd.xlane.f32.xlu1 %v4239_v42 }
0x27a7   :  { %v5843_v43 = vpop.xlane.xlu0 %5842 }
0x27a8   :  { %14603 = vrcp.f32 %v5843_v43 }
0x27b2   :  { %v14604_v45 = vpop.eup %14603 }
0x27b3   :  { %v5849_v13 = vmul.f32 %v14604_v45, %v14602_v35 }
0x27dd   :  { %v5834_v44 = vpop.xlane.xlu1 %5833 }
0x27de   :  { %v5836_v46 = vsub.f32 %v5828_v39, %v5834_v44 }
0x27e0   :  { %v5839_v53 = vmul.f32 1.442695, %v5836_v46 }
0x27e1   :  { %v5852_v17 = vpop.permute.xlu1 %5851 }
0x27e2   :  { %14605 = vpow2.f32 %v5839_v53  ;;  %13724 = vmatpush3.msra.mxu1 %v5852_v17 }
0x27e3   :  { %13726 = vmatmul.mubr.msk.f32.vlgmr.msra.gmra.mrb[68].mxu1 %vm268_vm2, %v5849_v13 }
0x27ec   :  { %v14606_v9 = vpop.eup %14605 }
0x27ed   :  { %v5844_v22 = vsel %vm268_vm2, %v14606_v9, 0.0 }
0x27ee   :  { %5845 = vadd.xlane.f32.xlu0 %v5844_v22 }
0x2804   :  { %5927 = vrot.lane.b32.xlu0 %v15483_v3, %s16372_s11  ;;  %s16416_s11 = sld [smem:[#allocation19_spill]] }
0x2812   :  { %v4241_v52 = vpop.xlane.xlu1 %4240 }
0x2813   :  { %v4245_v25 = vmul.f32 0.03125, %v4241_v52 }
0x2815   :  { %v4247_v47 = vsub.f32 %v4233_v41, %v4245_v25 }
0x2817   :  { %v4249_v48 = vmul.f32 %v4247_v47, %v4247_v47 }
0x2819   :  { %v4251_v50 = vsel %vm183_vm0, %v4249_v48, 0.0 }
0x281a   :  { %4252 = vadd.xlane.f32.xlu1 %v4251_v50 }
0x2823   :  { %4243 = vadd.xlane.f32.xlu0 %v4242_v55 }
0x287b   :  { %v5846_v57 = vpop.xlane.xlu0 %5845 }
0x287c   :  { %14607 = vrcp.f32 %v5846_v57 }
0x287f   :  { %v5928_v58 = vpop.permute.xlu0 %5927 }
0x2880   :  { %13729 = vmatpush3.msra.mxu0 %v5928_v58 }
0x2881   :  { %13733 = vmatprep.subr.mxu0 %v4335_v15 }
0x2886   :  { %v14608_v59 = vpop.eup %14607 }
0x2887   :  { %v5850_v3 = vmul.f32 %v14608_v59, %v14606_v9 }
0x2889   :  { %13731 = vmatmul.mubr.msk.f32.vlgmr.msra.gmra.mrb[44].mxu0 %vm268_vm2, %v5850_v3 }
0x288a   :  { %13734 = vmatpush3.msra.mxu0 %v4335_v15 }
0x28a7   :  { %v4253_v60 = vpop.xlane.xlu1 %4252 }
0x28a8   :  { %v4257_v61 = vmul.f32 0.03125, %v4253_v60 }
0x28aa   :  { %v4259_v7 = vadd.f32 1e-05, %v4257_v61  ;;  %v12728_v61 = vld [vmem:[%s15012_s4] ss:$0 sm:$0xff]  ;;  %s16410_s4 = sld [smem:[#allocation11_spill]] }
0x28ac   :  { %14609 = vrsqrt.f32 %v4259_v7  ;;  %v6140_v7 = vld [vmem:[%s16403_s17] sm:$0xff] }
0x28b0   :  { %v4244_v62 = vpop.xlane.xlu0 %4243 }
0x28b1   :  { %v4246_v63 = vmul.f32 0.03125, %v4244_v62  ;;  %v6141_v62 = vld [vmem:[%s16403_s17 + $0x8] sm:$0xff] }
0x28b3   :  { %v4248_v51 = vsub.f32 %v4234_v31, %v4246_v63 }
0x28b5   :  { %v4250_v26 = vmul.f32 %v4248_v51, %v4248_v51 }
0x28b6   :  { %v14610_v0 = vpop.eup %14609  ;;  %v5923_v1 = vpop.f32.mrb[68].mxu1 }
0x28b7   :  { %v13727_v6 = vpop.f32.mrb[69].mxu1  ;;  %13735 = vmatprep.mubr.msk.f32.mxu0 %vm268_vm2, %v5923_v1  ;;  %v4254_v10 = vsel %vm183_vm0, %v4250_v26, 0.0  ;;  %v4263_v11 = vmul.f32 %v14610_v0, %v4247_v47  ;;  %v12729_v26 = vld [vmem:[%s16404_s8] ss:$0 sm:$0xff]  ;;  %s16415_s8 = sld [smem:[#allocation12_spill]] }
0x28b8   :  { %4255 = vadd.xlane.f32.xlu0 %v4254_v10  ;;  %v6142_v10 = vld [vmem:[%s16403_s17 + $0x10] sm:$0xff] }
0x28b9   :  { %v4271_v14 = vmul.f32 %v12726_v2, %v4263_v11  ;;  %v6143_v11 = vld [vmem:[%s16403_s17 + $0x18] sm:$0xff] }
0x28ba   :  { %v14262_v15 = vpack.c.bf16 %v6143_v11, %v6142_v10 }
0x28bb   :  { %v4279_v4 = vadd.f32 %v12727_v29, %v4271_v14 }
0x28bd   :  { %v4283_v49 = vsel %vm183_vm0, %v4279_v4, 0.0 }
0x28be   :  { %4284 = vadd.xlane.f32.xlu1 %v4283_v49  ;;  %v14258_v49 = vpack.c.bf16 %v6141_v62, %v6140_v7 }
0x28c0   :  { %14259 = vmatprep.subr.bf16.mxu1 %v14258_v49 }
0x28c1   :  { %14261 = vmatpush3.bf16.msra.mxu1 %v14258_v49 }
0x28c2   :  { %14263 = vmatprep.subr.bf16.mxu1 %v14262_v15 }
0x28c5   :  { %14265 = vmatpush3.bf16.msra.mxu1 %v14262_v15 }
0x2945   :  { %v4256_v16 = vpop.xlane.xlu0 %4255 }
0x2946   :  { %v4258_v5 = vmul.f32 0.03125, %v4256_v16  ;;  %v15696_v16 = vld [vmem:[%s16405_s24] ss:$0 sm:$0xff] }
0x2948   :  { %v4260_v18 = vadd.f32 1e-05, %v4258_v5 }
0x294a   :  { %14611 = vrsqrt.f32 %v4260_v18 }
0x294b   :  { %v4285_v33 = vpop.xlane.xlu1 %4284 }
0x294c   :  { %v4289_v35 = vmul.f32 0.03125, %v4285_v33 }
0x294e   :  { %v4291_v40 = vsub.f32 %v4279_v4, %v4289_v35  ;;  %v14466_v4 = vpack.i.bf16 %v6143_v11, %v6142_v10 }
0x2950   :  { %v4293_v46 = vmul.f32 %v4291_v40, %v4291_v40 }
0x2952   :  { %v4295_v17 = vsel %vm183_vm0, %v4293_v46, 0.0 }
0x2954   :  { %v14612_v19 = vpop.eup %14611 }
0x2955   :  { %v4264_v21 = vmul.f32 %v14612_v19, %v4248_v51 }
0x2957   :  { %v4272_v23 = vmul.f32 %v12726_v2, %v4264_v21  ;;  %v14461_v2 = vpack.i.bf16 %v6141_v62, %v6140_v7 }
0x2959   :  { %v4280_v24 = vadd.f32 %v12727_v29, %v4272_v23 }
0x295b   :  { %v4286_v27 = vsel %vm183_vm0, %v4280_v24, 0.0 }
0x295c   :  { %4287 = vadd.xlane.f32.xlu0 %v4286_v27  ;;  %v5999_v28 = vpop.f32.mrb[44].mxu0 }
0x295d   :  { %v13732_v30 = vpop.f32.mrb[45].mxu0  ;;  %13736 = vmatmul.mubr.msk.f32.vlgmr.msra.gmra.mrb[38].mxu0 %vm268_vm2, %v5999_v28 }
0x29e9   :  { %v4288_v32 = vpop.xlane.xlu0 %4287 }
0x29ea   :  { %v4290_v34 = vmul.f32 0.03125, %v4288_v32 }
0x29ec   :  { %v4292_v38 = vsub.f32 %v4280_v24, %v4290_v34 }
0x29ee   :  { %v4294_v44 = vmul.f32 %v4292_v38, %v4292_v38 }
0x29f0   :  { %v4298_v53 = vsel %vm183_vm0, %v4294_v44, 0.0 }
0x2a30   :  { %v13737_v37 = vpop.f32.mrb[38].mxu0 }
0x2a31   :  { %v6093_v12 = vadd.f32 %v13737_v37, %v12765_v36  ;;  %v6075_v39 = vpop.f32.mrb[39].mxu0 }
0x2a32   :  { %v6092_v20 = vadd.f32 %v12765_v36, %v6075_v39 }
0x2a33   :  { %v6095_v41 = vadd.f32 %v6093_v12, %v15467_v54 }
0x2a34   :  { %v6094_v42 = vadd.f32 %v6092_v20, %v15458_v56 }
0x2a35   :  { %v6101_v43 = vsel %vm183_vm0, %v6095_v41, 0.0 }
0x2a36   :  { %6102 = vadd.xlane.f32.xlu0 %v6101_v43  ;;  %v6098_v45 = vsel %vm183_vm0, %v6094_v42, 0.0 }
0x2a37   :  { %6099 = vadd.xlane.f32.xlu1 %v6098_v45 }
0x2a3a   :  { %4299 = vadd.xlane.f32.xlu0 %v4298_v53  ;;  %v12767_v53 = vld [vmem:[%s16407_s6] ss:$0 sm:$0xff] }
0x2a3b   :  { %4296 = vadd.xlane.f32.xlu1 %v4295_v17 }
0x2ac3   :  { %v6103_v13 = vpop.xlane.xlu0 %6102 }
0x2ac4   :  { %v6105_v9 = vmul.f32 0.03125, %v6103_v13  ;;  %v6100_v22 = vpop.xlane.xlu1 %6099 }
0x2ac5   :  { %v6104_v54 = vmul.f32 0.03125, %v6100_v22 }
0x2ac6   :  { %v15669_v52 = vsub.f32 %v6095_v41, %v6105_v9  ;;  %v12766_v41 = vld [vmem:[%s16406_s30] ss:$0 sm:$0xff] }
0x2ac7   :  { %v15671_v56 = vsub.f32 %v6094_v42, %v6104_v54  ;;  %v4300_v25 = vpop.xlane.xlu0 %4299 }
0x2ac8   :  { %v4302_v47 = vmul.f32 0.03125, %v4300_v25  ;;  %v4297_v48 = vpop.xlane.xlu1 %4296  ;;  %v6109_v50 = vmul.f32 %v15669_v52, %v15669_v52 }
0x2ac9   :  { %v4301_v31 = vmul.f32 0.03125, %v4297_v48  ;;  %v6108_v55 = vmul.f32 %v15671_v56, %v15671_v56 }
0x2aca   :  { %v4304_v57 = vadd.f32 1e-05, %v4302_v47  ;;  %v6113_v58 = vsel %vm183_vm0, %v6109_v50, 0.0 }
0x2acb   :  { %v4303_v59 = vadd.f32 1e-05, %v4301_v31  ;;  %6114 = vadd.xlane.f32.xlu0 %v6113_v58  ;;  %v6110_v3 = vsel %vm183_vm0, %v6108_v55, 0.0 }
0x2acc   :  { %14613 = vrsqrt.f32 %v4304_v57  ;;  %6111 = vadd.xlane.f32.xlu1 %v6110_v3 }
0x2acd   :  { %14615 = vrsqrt.f32 %v4303_v59 }
0x2ad6   :  { %v14614_v60 = vpop.eup %14613 }
0x2ad7   :  { %v14616_v63 = vpop.eup %14615  ;;  %v4308_v51 = vmul.f32 %v14614_v60, %v4292_v38 }
0x2ad8   :  { %v4307_v0 = vmul.f32 %v14616_v63, %v4291_v40 }
0x2ad9   :  { %v4316_v1 = vmul.f32 %v12728_v61, %v4308_v51 }
0x2ada   :  { %v4315_v6 = vmul.f32 %v12728_v61, %v4307_v0 }
0x2adb   :  { %v15685_v29 = vadd.f32 %v12729_v26, %v4316_v1 }
0x2adc   :  { %v15687_v14 = vadd.f32 %v12729_v26, %v4315_v6 }
0x2add   :  { %14462 = vrot.lane.b32.xlu1 %v14461_v2, %s14810_s0 }
0x2ade   :  { %13757 = vmatprep.mubr.msk.f32.mxu0 %vm183_vm0, %v15687_v14 }
0x2ae1   :  { %14467 = vrot.lane.b32.xlu0 %v14466_v4, %s14810_s0  ;;  %14472 = vrot.lane.b32.xlu1 %v14461_v2, %s14811_s5 }
0x2ae5   :  { %14477 = vrot.lane.b32.xlu1 %v14466_v4, %s14811_s5  ;;  %6253 = vrot.lane.b32.xlu0 %v15696_v16, %s14810_s0 }
0x2b58   :  { %v6115_v5 = vpop.xlane.xlu0 %6114 }
0x2b59   :  { %v6117_v18 = vmul.f32 0.03125, %v6115_v5  ;;  %v6112_v19 = vpop.xlane.xlu1 %6111 }
0x2b5a   :  { %v6116_v21 = vmul.f32 0.03125, %v6112_v19 }
0x2b5b   :  { %v6119_v23 = vadd.f32 1e-05, %v6117_v18 }
0x2b5c   :  { %v6118_v24 = vadd.f32 1e-05, %v6116_v21  ;;  %v14468_v27 = vpop.permute.xlu0 %14467 }
0x2b5d   :  { %14617 = vrsqrt.f32 %v6119_v23  ;;  %v14463_v28 = vpop.permute.xlu1 %14462  ;;  %v14470_v30 = vunpack.i.h.bf16 %v14468_v27  ;;  %v14469_v32 = vunpack.i.l.bf16 %v14468_v27 }
0x2b5e   :  { %14619 = vrsqrt.f32 %v6118_v24  ;;  %v14465_v33 = vunpack.i.h.bf16 %v14463_v28  ;;  %v14464_v34 = vunpack.i.l.bf16 %v14463_v28 }
0x2b5f   :  { %v14270_v36 = vpack.c.bf16 %v14470_v30, %v14469_v32 }
0x2b60   :  { %v14266_v35 = vpack.c.bf16 %v14465_v33, %v14464_v34 }
0x2b61   :  { %v14473_v37 = vpop.permute.xlu1 %14472 }
0x2b62   :  { %14267 = vmatprep.subr.bf16.mxu0 %v14266_v35  ;;  %v14475_v38 = vunpack.i.h.bf16 %v14473_v37  ;;  %v14474_v12 = vunpack.i.l.bf16 %v14473_v37 }
0x2b63   :  { %14269 = vmatpush3.bf16.msra.mxu0 %v14266_v35 }
0x2b64   :  { %14271 = vmatprep.subr.bf16.mxu0 %v14270_v36  ;;  %v14274_v39 = vpack.c.bf16 %v14475_v38, %v14474_v12 }
0x2b65   :  { %v14478_v20 = vpop.permute.xlu1 %14477 }
0x2b66   :  { %14275 = vmatprep.subr.bf16.mxu1 %v14274_v39  ;;  %v14480_v45 = vunpack.i.h.bf16 %v14478_v20  ;;  %v14479_v46 = vunpack.i.l.bf16 %v14478_v20 }
0x2b67   :  { %v14618_v40 = vpop.eup %14617  ;;  %14273 = vmatpush3.bf16.msra.mxu0 %v14270_v36 }
0x2b68   :  { %v14620_v42 = vpop.eup %14619  ;;  %v6123_v43 = vmul.f32 %v14618_v40, %v15669_v52  ;;  %13771 = vmatprep.subr.mxu0 %v14808_v8  ;;  %v14278_v54 = vpack.c.bf16 %v14480_v45, %v14479_v46  ;;  %v6254_v52 = vpop.permute.xlu0 %6253 }
0x2b69   :  { %v6122_v44 = vmul.f32 %v14620_v42, %v15671_v56 }
0x2b6a   :  { %13758 = vmatmul.mubr.msk.f32.vlgmr.msra.gmra.mrb[46].mxu0 %vm183_vm0, %v15685_v29  ;;  %v6131_v17 = vmul.f32 %v12766_v41, %v6123_v43 }
0x2b6b   :  { %v6130_v13 = vmul.f32 %v12766_v41, %v6122_v44  ;;  %13773 = vmatprep.mubr.msk.f32.mxu0 %vm14809_vm1, %v14808_v8 }
0x2b6c   :  { %v15711_v22 = vadd.f32 %v12767_v53, %v6131_v17 }
0x2b6d   :  { %v15709_v9 = vadd.f32 %v12767_v53, %v6130_v13 }
0x2b6f   :  { %13746 = vmatprep.mubr.msk.f32.mxu1 %vm183_vm0, %v15709_v9 }
0x2b70   :  { %13747 = vmatmul.mubr.msk.f32.vlgmr.msra.gmra.mrb[70].mxu1 %vm183_vm0, %v15711_v22 }
0x2b71   :  { %14277 = vmatpush3.bf16.msra.mxu1 %v14274_v39  ;;  %13768 = vmatprep.mubr.msk.f32.mxu1 %vm183_vm0, %v15687_v14 }
0x2b72   :  { %14279 = vmatprep.subr.bf16.mxu1 %v14278_v54 }
0x2b75   :  { %14281 = vmatpush3.bf16.msra.mxu1 %v14278_v54 }
0x2b76   :  { %13776 = vmatprep.subr.mxu1 %v14808_v8 }
0x2b78   :  { %13769 = vmatmul.mubr.msk.f32.vlgmr.msra.gmra.mrb[72].mxu1 %vm183_vm0, %v15685_v29 }
0x2b79   :  { %13778 = vmatprep.mubr.msk.f32.mxu1 %vm14809_vm1, %v14808_v8 }
0x2c3d   :  { %v13759_v56 = vpop.f32.mrb[46].mxu0 }
0x2c3e   :  { %v15724_v25 = vadd.f32 %v13759_v56, %v6254_v52  ;;  %v6328_v47 = vpop.f32.mrb[47].mxu0 }
0x2c3f   :  { %v15726_v48 = vadd.f32 %v6328_v47, %v6254_v52 }
0x2c40   :  { %13777 = vmatpush3.xpose.msk.msra.mxu1 %vm268_vm2, %v15724_v25 }
0x2c41   :  { %13772 = vmatpush3.xpose.msk.msra.mxu0 %vm268_vm2, %v15726_v48  ;;  %13786 = vmatprep.subr.mxu1 %v14808_v8 }
0x2c42   :  { %13781 = vmatprep.subr.mxu0 %v14808_v8 }
0x2c43   :  { %v13748_v50 = vpop.f32.mrb[70].mxu1 }
0x2c44   :  { %v15735_v31 = vadd.f32 %v13748_v50, %v15696_v16  ;;  %v6228_v55 = vpop.f32.mrb[71].mxu1 }
0x2c45   :  { %v15738_v57 = vadd.f32 %v15696_v16, %v6228_v55 }
0x2c46   :  { %13779 = vmatmul.mubr.msk.f32.vlgmr.msra.gmra.mrb[74].mxu1 %vm268_vm2, %v15735_v31 }
0x2c47   :  { %13774 = vmatmul.mubr.msk.f32.vlgmr.msra.gmra.mrb[48].mxu0 %vm268_vm2, %v15738_v57  ;;  %13788 = vmatprep.mubr.msk.f32.mxu1 %vm14809_vm1, %v14808_v8 }
0x2c48   :  { %13783 = vmatprep.mubr.msk.f32.mxu0 %vm14809_vm1, %v14808_v8 }
0x2c4b   :  { %v13770_v58 = vpop.f32.mrb[72].mxu1 }
0x2c4c   :  { %v6418_v59 = vpop.f32.mrb[73].mxu1 }
0x2d19   :  { %v6575_v3 = vpop.f32.mrb[74].mxu1 }
0x2d1a   :  { %v6580_v60 = vmul.f32 0.35355338, %v6575_v3  ;;  %v6499_v61 = vpop.f32.mrb[48].mxu0  ;;  %v13780_v7 = vpop.f32.mrb[75].mxu1 }
0x2d1b   :  { %v13775_v62 = vpop.f32.mrb[49].mxu0  ;;  %v6579_v6 = vmul.f32 0.35355338, %v6499_v61 }
0x2d1c   :  { %v6584_v63 = vsel %vm268_vm2, %v6580_v60, -inf }
0x2d1d   :  { %6585 = vmax.xlane.f32.xlu1 %v6584_v63  ;;  %v6581_v10 = vsel %vm268_vm2, %v6579_v6, -inf }
0x2d2e   :  { %6829 = vrot.lane.b32.xlu1 %v15724_v25, %s14813_s23 }
0x2d32   :  { %6827 = vrot.lane.b32.xlu1 %v15735_v31, %s14813_s23 }
0x2daa   :  { %v6586_v51 = vpop.xlane.xlu1 %6585 }
0x2dab   :  { %v6588_v26 = vsub.f32 %v6580_v60, %v6586_v51 }
0x2dad   :  { %v6591_v0 = vmul.f32 1.442695, %v6588_v26 }
0x2dae   :  { %v6830_v5 = vpop.permute.xlu1 %6829 }
0x2daf   :  { %14621 = vpow2.f32 %v6591_v0 }
0x2db2   :  { %v6828_v19 = vpop.permute.xlu1 %6827 }
0x2db9   :  { %v14622_v1 = vpop.eup %14621 }
0x2dba   :  { %v6596_v2 = vsel %vm268_vm2, %v14622_v1, 0.0 }
0x2dbb   :  { %6597 = vadd.xlane.f32.xlu0 %v6596_v2 }
0x2dd1   :  { %6349 = vrot.lane.b32.xlu0 %v15696_v16, %s14811_s5 }
0x2df0   :  { %6582 = vmax.xlane.f32.xlu0 %v6581_v10 }
0x2e06   :  { %6751 = vrot.lane.b32.xlu0 %v15726_v48, %s14813_s23 }
0x2e48   :  { %v6598_v11 = vpop.xlane.xlu0 %6597 }
0x2e49   :  { %14623 = vrcp.f32 %v6598_v11 }
0x2e4c   :  { %v6350_v4 = vpop.permute.xlu0 %6349 }
0x2e4d   :  { %v15759_v49 = vadd.f32 %v6418_v59, %v6350_v4  ;;  %v15761_v15 = vadd.f32 %v13770_v58, %v6350_v4 }
0x2e4f   :  { %13782 = vmatpush3.msra.mxu0 %v15759_v49  ;;  %13787 = vmatpush3.msra.mxu1 %v15761_v15 }
0x2e50   :  { %13796 = vmatprep.subr.mxu1 %v14808_v8  ;;  %13791 = vmatprep.subr.mxu0 %v14808_v8 }
0x2e53   :  { %v14624_v16 = vpop.eup %14623 }
0x2e54   :  { %v6602_v18 = vmul.f32 %v14624_v16, %v14622_v1 }
0x2e56   :  { %13789 = vmatmul.mubr.msk.f32.vlgmr.msra.gmra.mrb[76].mxu1 %vm268_vm2, %v6602_v18 }
0x2e57   :  { %13797 = vmatpush3.xpose.msk.msra.mxu1 %vm268_vm2, %v6830_v5  ;;  %13798 = vmatprep.mubr.msk.f32.mxu1 %vm14809_vm1, %v14808_v8 }
0x2e58   :  { %13806 = vmatprep.subr.mxu1 %v14808_v8 }
0x2e5a   :  { %13799 = vmatmul.mubr.msk.f32.vlgmr.msra.gmra.mrb[78].mxu1 %vm268_vm2, %v6828_v19  ;;  %v6146_v19 = vld [vmem:[%s16408_s12 + $0x8] sm:$0xff] }
0x2e5b   :  { %13808 = vmatprep.mubr.msk.f32.mxu1 %vm14809_vm1, %v14808_v8 }
0x2e7d   :  { %v6583_v21 = vpop.xlane.xlu0 %6582 }
0x2e7e   :  { %v6587_v23 = vsub.f32 %v6579_v6, %v6583_v21  ;;  %v6145_v21 = vld [vmem:[%s16408_s12] sm:$0xff] }
0x2e80   :  { %v6589_v24 = vmul.f32 1.442695, %v6587_v23 }
0x2e81   :  { %v6752_v34 = vpop.permute.xlu0 %6751 }
0x2e82   :  { %14625 = vpow2.f32 %v6589_v24 }
0x2e8c   :  { %v14626_v27 = vpop.eup %14625 }
0x2e8d   :  { %v6593_v28 = vsel %vm268_vm2, %v14626_v27, 0.0 }
0x2e8e   :  { %6594 = vadd.xlane.f32.xlu1 %v6593_v28 }
0x2e9f   :  { %6749 = vrot.lane.b32.xlu1 %v15738_v57, %s14813_s23 }
0x2ea3   :  { %7247 = vrot.lane.b32.xlu1 %v15726_v48, %s14815_s28 }
0x2f1b   :  { %v6595_v30 = vpop.xlane.xlu1 %6594 }
0x2f1c   :  { %14627 = vrcp.f32 %v6595_v30 }
0x2f1f   :  { %v6750_v37 = vpop.permute.xlu1 %6749 }
0x2f23   :  { %v7248_v56 = vpop.permute.xlu1 %7247 }
0x2f26   :  { %v14628_v32 = vpop.eup %14627 }
0x2f27   :  { %v6601_v33 = vmul.f32 %v14628_v32, %v14626_v27 }
0x2f29   :  { %13784 = vmatmul.mubr.msk.f32.vlgmr.msra.gmra.mrb[50].mxu0 %vm268_vm2, %v6601_v33  ;;  %v15781_v35 = vpop.f32.mrb[76].mxu1 }
0x2f2a   :  { %13792 = vmatpush3.xpose.msk.msra.mxu0 %vm268_vm2, %v6752_v34  ;;  %v13790_v36 = vpop.f32.mrb[77].mxu1  ;;  %13793 = vmatprep.mubr.msk.f32.mxu0 %vm14809_vm1, %v14808_v8 }
0x2f2b   :  { %13801 = vmatprep.subr.mxu0 %v14808_v8 }
0x2f2d   :  { %13794 = vmatmul.mubr.msk.f32.vlgmr.msra.gmra.mrb[52].mxu0 %vm268_vm2, %v6750_v37  ;;  %v6901_v38 = vpop.f32.mrb[78].mxu1 }
0x2f2e   :  { %v6906_v12 = vmul.f32 0.35355338, %v6901_v38  ;;  %v13800_v39 = vpop.f32.mrb[79].mxu1  ;;  %13803 = vmatprep.mubr.msk.f32.mxu0 %vm14809_vm1, %v14808_v8 }
0x2f30   :  { %v6910_v40 = vsel %vm268_vm2, %v6906_v12, -inf }
0x2f31   :  { %6911 = vmax.xlane.f32.xlu0 %v6910_v40  ;;  %v6147_v40 = vld [vmem:[%s16408_s12 + $0x10] sm:$0xff] }
0x2f47   :  { %7007 = vrot.lane.b32.xlu0 %v15761_v15, %s14813_s23 }
0x2f4b   :  { %7245 = vrot.lane.b32.xlu0 %v15738_v57, %s14815_s28 }
0x2f4f   :  { %7323 = vrot.lane.b32.xlu0 %v15735_v31, %s14815_s28 }
0x2fbe   :  { %v6912_v20 = vpop.xlane.xlu0 %6911 }
0x2fbf   :  { %v6914_v41 = vsub.f32 %v6906_v12, %v6912_v20 }
0x2fc1   :  { %v6917_v42 = vmul.f32 1.442695, %v6914_v41 }
0x2fc2   :  { %v7008_v43 = vpop.permute.xlu0 %7007 }
0x2fc3   :  { %14629 = vpow2.f32 %v6917_v42  ;;  %13807 = vmatpush3.msra.mxu1 %v7008_v43 }
0x2fc4   :  { %13821 = vmatprep.subr.mxu1 %v14808_v8 }
0x2fc6   :  { %v7246_v58 = vpop.permute.xlu0 %7245 }
0x2fca   :  { %v7324_v3 = vpop.permute.xlu0 %7323 }
0x2fcd   :  { %v14630_v44 = vpop.eup %14629 }
0x2fce   :  { %v6922_v45 = vsel %vm268_vm2, %v14630_v44, 0.0 }
0x2fcf   :  { %6923 = vadd.xlane.f32.xlu1 %v6922_v45 }
0x2fe0   :  { %7325 = vrot.lane.b32.xlu1 %v15724_v25, %s14815_s28 }
0x2ffc   :  { %v15801_v46 = vpop.f32.mrb[50].mxu0 }
0x2ffd   :  { %v13785_v53 = vpop.f32.mrb[51].mxu0 }
0x3000   :  { %v6823_v17 = vpop.f32.mrb[52].mxu0 }
0x3001   :  { %v6905_v13 = vmul.f32 0.35355338, %v6823_v17  ;;  %v13795_v54 = vpop.f32.mrb[53].mxu0 }
0x3003   :  { %v6907_v52 = vsel %vm268_vm2, %v6905_v13, -inf }
0x3004   :  { %6908 = vmax.xlane.f32.xlu1 %v6907_v52 }
0x305c   :  { %v6924_v47 = vpop.xlane.xlu1 %6923 }
0x305d   :  { %14631 = vrcp.f32 %v6924_v47 }
0x3060   :  { %v7326_v59 = vpop.permute.xlu1 %7325 }
0x3067   :  { %v14632_v50 = vpop.eup %14631 }
0x3068   :  { %v6928_v55 = vmul.f32 %v14632_v50, %v14630_v44 }
0x306a   :  { %13809 = vmatmul.mubr.msk.f32.vlgmr.msra.gmra.mrb[80].mxu1 %vm268_vm2, %v6928_v55 }
0x306b   :  { %13822 = vmatpush3.xpose.msk.msra.mxu1 %vm268_vm2, %v7248_v56  ;;  %13823 = vmatprep.mubr.msk.f32.mxu1 %vm14809_vm1, %v14808_v8 }
0x306c   :  { %13826 = vmatprep.subr.mxu1 %v14808_v8 }
0x306e   :  { %13824 = vmatmul.mubr.msk.f32.vlgmr.msra.gmra.mrb[82].mxu1 %vm268_vm2, %v7246_v58 }
0x306f   :  { %13827 = vmatpush3.xpose.msk.msra.mxu1 %vm268_vm2, %v7326_v59  ;;  %13828 = vmatprep.mubr.msk.f32.mxu1 %vm14809_vm1, %v14808_v8 }
0x3070   :  { %13836 = vmatprep.subr.mxu1 %v14808_v8 }
0x3072   :  { %13829 = vmatmul.mubr.msk.f32.vlgmr.msra.gmra.mrb[84].mxu1 %vm268_vm2, %v7324_v3 }
0x3073   :  { %13838 = vmatprep.mubr.msk.f32.mxu1 %vm14809_vm1, %v14808_v8 }
0x3091   :  { %v6909_v60 = vpop.xlane.xlu1 %6908 }
0x3092   :  { %v6913_v61 = vsub.f32 %v6905_v13, %v6909_v60 }
0x3094   :  { %v6915_v7 = vmul.f32 1.442695, %v6913_v61 }
0x3096   :  { %14633 = vpow2.f32 %v6915_v7 }
0x30a0   :  { %v14634_v62 = vpop.eup %14633 }
0x30a1   :  { %v6919_v63 = vsel %vm268_vm2, %v14634_v62, 0.0 }
0x30a2   :  { %6920 = vadd.xlane.f32.xlu0 %v6919_v63 }
0x30b8   :  { %6930 = vrot.lane.b32.xlu0 %v15759_v49, %s14813_s23 }
0x30bc   :  { %7501 = vrot.lane.b32.xlu0 %v15761_v15, %s14815_s28 }
0x30c0   :  { %7662 = vrot.lane.b32.xlu0 %v15726_v48, %s16374_s10 }
0x30c4   :  { %7740 = vrot.lane.b32.xlu0 %v15724_v25, %s16374_s10 }
0x30c8   :  { %7660 = vrot.lane.b32.xlu0 %v15738_v57, %s16374_s10 }
0x312f   :  { %v6921_v51 = vpop.xlane.xlu0 %6920 }
0x3130   :  { %14635 = vrcp.f32 %v6921_v51 }
0x3133   :  { %v6931_v26 = vpop.permute.xlu0 %6930 }
0x3134   :  { %13802 = vmatpush3.msra.mxu0 %v6931_v26 }
0x3135   :  { %13811 = vmatprep.subr.mxu0 %v6146_v19 }
0x3137   :  { %v7502_v0 = vpop.permute.xlu0 %7501 }
0x3138   :  { %13837 = vmatpush3.msra.mxu1 %v7502_v0 }
0x3139   :  { %13846 = vmatprep.subr.mxu1 %v14808_v8 }
0x313a   :  { %v14636_v1 = vpop.eup %14635 }
0x313b   :  { %v6927_v2 = vmul.f32 %v14636_v1, %v14634_v62  ;;  %v7663_v41 = vpop.permute.xlu0 %7662 }
0x313d   :  { %13804 = vmatmul.mubr.msk.f32.vlgmr.msra.gmra.mrb[54].mxu0 %vm268_vm2, %v6927_v2  ;;  %v7079_v48 = vpop.f32.mrb[80].mxu1 }
0x313e   :  { %v13810_v6 = vpop.f32.mrb[81].mxu1  ;;  %13812 = vmatpush3.msra.mxu0 %v6146_v19 }
0x313f   :  { %13816 = vmatprep.subr.mxu0 %v6145_v21  ;;  %v7741_v45 = vpop.permute.xlu0 %7740 }
0x3141   :  { %v7319_v25 = vpop.f32.mrb[82].mxu1 }
0x3142   :  { %v7401_v10 = vmul.f32 0.35355338, %v7319_v25  ;;  %v13825_v11 = vpop.f32.mrb[83].mxu1 }
0x3144   :  { %v7403_v57 = vsel %vm268_vm2, %v7401_v10, -inf }
0x3145   :  { %v7397_v4 = vpop.f32.mrb[84].mxu1  ;;  %7404 = vmax.xlane.f32.xlu1 %v7403_v57  ;;  %v6148_v57 = vld [vmem:[%s16408_s12 + $0x18] sm:$0xff] }
0x3146   :  { %v7402_v16 = vmul.f32 0.35355338, %v7397_v4  ;;  %v13830_v5 = vpop.f32.mrb[85].mxu1 }
0x3148   :  { %v7406_v18 = vsel %vm268_vm2, %v7402_v16, -inf }
0x3149   :  { %7407 = vmax.xlane.f32.xlu1 %v7406_v18 }
0x31d2   :  { %v7405_v23 = vpop.xlane.xlu1 %7404 }
0x31d3   :  { %v7409_v24 = vsub.f32 %v7401_v10, %v7405_v23 }
0x31d5   :  { %v7411_v27 = vmul.f32 1.442695, %v7409_v24 }
0x31d6   :  { %v7408_v28 = vpop.xlane.xlu1 %7407 }
0x31d7   :  { %14637 = vpow2.f32 %v7411_v27  ;;  %v7410_v30 = vsub.f32 %v7402_v16, %v7408_v28 }
0x31d9   :  { %v7413_v32 = vmul.f32 1.442695, %v7410_v30 }
0x31db   :  { %14639 = vpow2.f32 %v7413_v32 }
0x31e1   :  { %v14638_v33 = vpop.eup %14637 }
0x31e2   :  { %v7415_v34 = vsel %vm268_vm2, %v14638_v33, 0.0 }
0x31e3   :  { %7416 = vadd.xlane.f32.xlu1 %v7415_v34 }
0x31e5   :  { %v14640_v36 = vpop.eup %14639 }
0x31e6   :  { %v7418_v37 = vsel %vm268_vm2, %v14640_v36, 0.0 }
0x31e7   :  { %7419 = vadd.xlane.f32.xlu1 %v7418_v37 }
0x31f8   :  { %7425 = vrot.lane.b32.xlu1 %v15759_v49, %s14815_s28 }
0x31fc   :  { %7738 = vrot.lane.b32.xlu1 %v15735_v31, %s16374_s10 }
0x3210   :  { %v7002_v38 = vpop.f32.mrb[54].mxu0 }
0x3211   :  { %v13805_v12 = vpop.f32.mrb[55].mxu0  ;;  %13813 = vmatprep.mubr.msk.f32.mxu0 %vm268_vm2, %v7002_v38 }
0x3212   :  { %13814 = vmatmul.mubr.msk.f32.vlgmr.msra.gmra.mrb[56].mxu0 %vm268_vm2, %v7079_v48 }
0x3213   :  { %13818 = vmatprep.mubr.msk.f32.mxu0 %vm268_vm2, %v15801_v46  ;;  %13817 = vmatpush3.msra.mxu0 %v6145_v21  ;;  %v7661_v46 = vpop.permute.xlu0 %7660 }
0x3214   :  { %13831 = vmatprep.subr.mxu0 %v14808_v8 }
0x321a   :  { %13819 = vmatmul.mubr.msk.f32.vlgmr.msra.gmra.mrb[56].mxu0 %vm268_vm2, %v15781_v35 }
0x321b   :  { %13833 = vmatprep.mubr.msk.f32.mxu0 %vm14809_vm1, %v14808_v8 }
0x3270   :  { %v7417_v39 = vpop.xlane.xlu1 %7416 }
0x3271   :  { %14641 = vrcp.f32 %v7417_v39 }
0x3274   :  { %v7420_v31 = vpop.xlane.xlu1 %7419 }
0x3275   :  { %14643 = vrcp.f32 %v7420_v31 }
0x3278   :  { %v7426_v20 = vpop.permute.xlu1 %7425 }
0x3279   :  { %13832 = vmatpush3.msra.mxu0 %v7426_v20 }
0x327a   :  { %13841 = vmatprep.subr.mxu0 %v6147_v40 }
0x327b   :  { %v14642_v42 = vpop.eup %14641 }
0x327c   :  { %v7423_v43 = vmul.f32 %v14642_v42, %v14638_v33  ;;  %v7739_v52 = vpop.permute.xlu1 %7738  ;;  %v8129_v42 = vld [vmem:[%s16410_s4] sm:$0xff] }
0x327e   :  { %13834 = vmatmul.mubr.msk.f32.vlgmr.msra.gmra.mrb[58].mxu0 %vm268_vm2, %v7423_v43  ;;  %v8130_v43 = vld [vmem:[%s16410_s4 + $0x8] sm:$0xff] }
0x327f   :  { %v14644_v44 = vpop.eup %14643  ;;  %13842 = vmatpush3.msra.mxu0 %v6147_v40 }
0x3280   :  { %v7424_v35 = vmul.f32 %v14644_v44, %v14640_v36  ;;  %13851 = vmatprep.subr.mxu0 %v14808_v8  ;;  %v8131_v44 = vld [vmem:[%s16410_s4 + $0x10] sm:$0xff] }
0x3282   :  { %13839 = vmatmul.mubr.msk.f32.vlgmr.msra.gmra.mrb[86].mxu1 %vm268_vm2, %v7424_v35  ;;  %v8132_v35 = vld [vmem:[%s16410_s4 + $0x18] sm:$0xff] }
0x3283   :  { %13847 = vmatpush3.xpose.msk.msra.mxu1 %vm268_vm2, %v7663_v41  ;;  %13848 = vmatprep.mubr.msk.f32.mxu1 %vm14809_vm1, %v14808_v8 }
0x3284   :  { %13856 = vmatprep.subr.mxu1 %v14808_v8 }
0x3286   :  { %13849 = vmatmul.mubr.msk.f32.vlgmr.msra.gmra.mrb[88].mxu1 %vm268_vm2, %v7661_v46  ;;  %v14286_v46 = vpack.c.bf16 %v8132_v35, %v8131_v44  ;;  %v12820_v44 = vld [vmem:[%s16398_s21 + $0x30] sm:$0xff] }
0x3287   :  { %13858 = vmatprep.mubr.msk.f32.mxu1 %vm14809_vm1, %v14808_v8 }
0x3351   :  { %v7497_v53 = vpop.f32.mrb[58].mxu0 }
0x3352   :  { %v13835_v17 = vpop.f32.mrb[59].mxu0  ;;  %13843 = vmatprep.mubr.msk.f32.mxu0 %vm268_vm2, %v7497_v53  ;;  %v8134_v53 = vld [vmem:[%s16411_s15] sm:$0xff] }
0x3353   :  { %v8135_v17 = vld [vmem:[%s16411_s15 + $0x8] sm:$0xff] }
0x3355   :  { %v7573_v13 = vpop.f32.mrb[86].mxu1 }
0x3356   :  { %v13840_v54 = vpop.f32.mrb[87].mxu1  ;;  %13844 = vmatmul.mubr.msk.f32.vlgmr.msra.gmra.mrb[56].mxu0 %vm268_vm2, %v7573_v13  ;;  %v8136_v13 = vld [vmem:[%s16411_s15 + $0x10] sm:$0xff] }
0x3357   :  { %13852 = vmatpush3.xpose.msk.msra.mxu0 %vm268_vm2, %v7741_v45  ;;  %13853 = vmatprep.mubr.msk.f32.mxu0 %vm14809_vm1, %v14808_v8  ;;  %v14282_v45 = vpack.c.bf16 %v8130_v43, %v8129_v42  ;;  %v14290_v54 = vpack.c.bf16 %v8135_v17, %v8134_v53  ;;  %v12819_v42 = vld [vmem:[%s16398_s21 + $0x28] sm:$0xff] }
0x3358   :  { %13861 = vmatprep.subr.mxu0 %v14808_v8 }
0x3359   :  { %v7734_v56 = vpop.f32.mrb[88].mxu1 }
0x335a   :  { %v7816_v47 = vmul.f32 0.35355338, %v7734_v56  ;;  %v13850_v50 = vpop.f32.mrb[89].mxu1  ;;  %13854 = vmatmul.mubr.msk.f32.vlgmr.msra.gmra.mrb[60].mxu0 %vm268_vm2, %v7739_v52  ;;  %v8137_v52 = vld [vmem:[%s16411_s15 + $0x18] sm:$0xff] }
0x335b   :  { %13863 = vmatprep.mubr.msk.f32.mxu0 %vm14809_vm1, %v14808_v8  ;;  %v14294_v56 = vpack.c.bf16 %v8137_v52, %v8136_v13  ;;  %v8139_v50 = vld [vmem:[%s16411_s15 + $0x28] sm:$0xff] }
0x335c   :  { %v7818_v55 = vsel %vm268_vm2, %v7816_v47, -inf }
0x335d   :  { %7819 = vmax.xlane.f32.xlu0 %v7818_v55 }
0x33ea   :  { %v7820_v58 = vpop.xlane.xlu0 %7819 }
0x33eb   :  { %v7824_v59 = vsub.f32 %v7816_v47, %v7820_v58  ;;  %v8138_v47 = vld [vmem:[%s16411_s15 + $0x20] sm:$0xff] }
0x33ec   :  { %v14298_v55 = vpack.c.bf16 %v8139_v50, %v8138_v47  ;;  %v12816_v47 = vld [vmem:[%s16416_s11] ss:$0 sm:$0xff] }
0x33ed   :  { %v7826_v3 = vmul.f32 1.442695, %v7824_v59 }
0x33ef   :  { %14645 = vpow2.f32 %v7826_v3 }
0x33f9   :  { %v14646_v60 = vpop.eup %14645 }
0x33fa   :  { %v7830_v61 = vsel %vm268_vm2, %v14646_v60, 0.0 }
0x33fb   :  { %7831 = vadd.xlane.f32.xlu0 %v7830_v61 }
0x342d   :  { %v7812_v7 = vpop.f32.mrb[60].mxu0 }
0x342e   :  { %v7817_v62 = vmul.f32 0.35355338, %v7812_v7  ;;  %v13855_v63 = vpop.f32.mrb[61].mxu0 }
0x342f   :  { %v12808_v63 = vld [vmem:[%s16412_s16] ss:$0 sm:$0xff] }
0x3430   :  { %v7821_v51 = vsel %vm268_vm2, %v7817_v62, -inf }
0x3431   :  { %7822 = vmax.xlane.f32.xlu1 %v7821_v51 }
0x3442   :  { %7840 = vrot.lane.b32.xlu1 %v15759_v49, %s16374_s10 }
0x3488   :  { %v7832_v26 = vpop.xlane.xlu0 %7831 }
0x3489   :  { %14647 = vrcp.f32 %v7832_v26 }
0x3493   :  { %v14648_v1 = vpop.eup %14647 }
0x3494   :  { %v7838_v25 = vmul.f32 %v14648_v1, %v14646_v60  ;;  %v12809_v1 = vld [vmem:[%s16413_s18] ss:$0 sm:$0xff] }
0x34be   :  { %v7823_v0 = vpop.xlane.xlu1 %7822 }
0x34bf   :  { %v7825_v2 = vsub.f32 %v7817_v62, %v7823_v0 }
0x34c1   :  { %v7828_v48 = vmul.f32 1.442695, %v7825_v2 }
0x34c2   :  { %v7841_v6 = vpop.permute.xlu1 %7840 }
0x34c3   :  { %14649 = vpow2.f32 %v7828_v48  ;;  %13857 = vmatpush3.msra.mxu1 %v7841_v6 }
0x34c4   :  { %13859 = vmatmul.mubr.msk.f32.vlgmr.msra.gmra.mrb[90].mxu1 %vm268_vm2, %v7838_v25  ;;  %14283 = vmatprep.subr.bf16.mxu1 %v14282_v45 }
0x34c5   :  { %14285 = vmatpush3.bf16.msra.mxu1 %v14282_v45  ;;  %v12821_v45 = vld [vmem:[%s16398_s21 + $0x38] sm:$0xff] }
0x34c6   :  { %14287 = vmatprep.subr.bf16.mxu1 %v14286_v46  ;;  %v14310_v35 = vpack.c.bf16 %v12821_v45, %v12820_v44 }
0x34c9   :  { %14289 = vmatpush3.bf16.msra.mxu1 %v14286_v46 }
0x34cd   :  { %v14650_v10 = vpop.eup %14649 }
0x34ce   :  { %v7833_v11 = vsel %vm268_vm2, %v14650_v10, 0.0 }
0x34cf   :  { %7834 = vadd.xlane.f32.xlu0 %v7833_v11  ;;  %v8141_v11 = vld [vmem:[%s16411_s15 + $0x38] sm:$0xff] }
0x34e5   :  { %7916 = vrot.lane.b32.xlu0 %v15761_v15, %s16374_s10  ;;  %v12807_v15 = vld [vmem:[%s16409_s20] ss:$0 sm:$0xff]  ;;  %s16417_s10 = sld [smem:[#allocation18_spill]] }
0x355c   :  { %v7835_v49 = vpop.xlane.xlu0 %7834 }
0x355d   :  { %14651 = vrcp.f32 %v7835_v49 }
0x3560   :  { %v7917_v4 = vpop.permute.xlu0 %7916 }
0x3561   :  { %13862 = vmatpush3.msra.mxu0 %v7917_v4 }
0x3562   :  { %13866 = vmatprep.subr.mxu0 %v6148_v57 }
0x3567   :  { %v14652_v16 = vpop.eup %14651 }
0x3568   :  { %v7839_v5 = vmul.f32 %v14652_v16, %v14650_v10  ;;  %v8140_v10 = vld [vmem:[%s16411_s15 + $0x30] sm:$0xff] }
0x3569   :  { %v14302_v49 = vpack.c.bf16 %v8141_v11, %v8140_v10 }
0x356a   :  { %13864 = vmatmul.mubr.msk.f32.vlgmr.msra.gmra.mrb[62].mxu0 %vm268_vm2, %v7839_v5 }
0x356b   :  { %13867 = vmatpush3.msra.mxu0 %v6148_v57  ;;  %v12810_v57 = vld [vmem:[%s16414_s19] ss:$0 sm:$0xff] }
0x356c   :  { %14291 = vmatprep.subr.bf16.mxu0 %v14290_v54 }
0x3597   :  { %v7912_v18 = vpop.f32.mrb[90].mxu1 }
0x3598   :  { %v13860_v19 = vpop.f32.mrb[91].mxu1  ;;  %13868 = vmatprep.mubr.msk.f32.mxu0 %vm268_vm2, %v7912_v18 }
0x363d   :  { %v7988_v21 = vpop.f32.mrb[62].mxu0 }
0x363e   :  { %v13865_v23 = vpop.f32.mrb[63].mxu0  ;;  %13869 = vmatmul.mubr.msk.f32.vlgmr.msra.gmra.mrb[56].mxu0 %vm268_vm2, %v7988_v21 }
0x363f   :  { %14293 = vmatpush3.bf16.msra.mxu0 %v14290_v54  ;;  %v12813_v23 = vld [vmem:[%s16415_s8] ss:$0 sm:$0xff] }
0x3640   :  { %14295 = vmatprep.subr.bf16.mxu0 %v14294_v56 }
0x3643   :  { %14297 = vmatpush3.bf16.msra.mxu0 %v14294_v56 }
0x3644   :  { %14299 = vmatprep.subr.bf16.mxu0 %v14298_v55 }
0x3647   :  { %14301 = vmatpush3.bf16.msra.mxu0 %v14298_v55 }
0x3648   :  { %14303 = vmatprep.subr.bf16.mxu0 %v14302_v49 }
0x364b   :  { %14305 = vmatpush3.bf16.msra.mxu0 %v14302_v49  ;;  %v15955_v49 = vld [vmem:[%s14842_s13 + $0x8] sm:$0xff] }
0x364c   :  { %13922 = vmatprep.subr.mxu0 %v14808_v8 }
0x3711   :  { %v13870_v24 = vpop.f32.mrb[56].mxu0 }
0x3712   :  { %v8082_v27 = vadd.f32 %v13870_v24, %v12807_v15  ;;  %v8064_v28 = vpop.f32.mrb[57].mxu0 }
0x3713   :  { %v8081_v30 = vadd.f32 %v12807_v15, %v8064_v28 }
0x3714   :  { %v8084_v32 = vadd.f32 %v8082_v27, %v15711_v22 }
0x3715   :  { %v8083_v33 = vadd.f32 %v8081_v30, %v15709_v9 }
0x3716   :  { %v8090_v34 = vsel %vm183_vm0, %v8084_v32, 0.0 }
0x3717   :  { %8091 = vadd.xlane.f32.xlu0 %v8090_v34  ;;  %v8087_v36 = vsel %vm183_vm0, %v8083_v33, 0.0 }
0x3718   :  { %8088 = vadd.xlane.f32.xlu1 %v8087_v36 }
0x37a4   :  { %v8092_v37 = vpop.xlane.xlu0 %8091 }
0x37a5   :  { %v8094_v38 = vmul.f32 0.03125, %v8092_v37  ;;  %v8089_v12 = vpop.xlane.xlu1 %8088 }
0x37a6   :  { %v8093_v39 = vmul.f32 0.03125, %v8089_v12 }
0x37a7   :  { %v8096_v31 = vsub.f32 %v8084_v32, %v8094_v38 }
0x37a8   :  { %v8095_v40 = vsub.f32 %v8083_v33, %v8093_v39 }
0x37a9   :  { %v8098_v20 = vmul.f32 %v8096_v31, %v8096_v31 }
0x37aa   :  { %v8097_v22 = vmul.f32 %v8095_v40, %v8095_v40 }
0x37ab   :  { %v8102_v9 = vsel %vm183_vm0, %v8098_v20, 0.0 }
0x37ac   :  { %8103 = vadd.xlane.f32.xlu0 %v8102_v9  ;;  %v8099_v41 = vsel %vm183_vm0, %v8097_v22, 0.0 }
0x37ad   :  { %8100 = vadd.xlane.f32.xlu1 %v8099_v41  ;;  %v12818_v41 = vld [vmem:[%s16398_s21 + $0x20] sm:$0xff] }
0x37ae   :  { %v14306_v43 = vpack.c.bf16 %v12819_v42, %v12818_v41 }
0x37b0   :  { %14307 = vmatprep.subr.bf16.mxu1 %v14306_v43 }
0x3839   :  { %v8104_v58 = vpop.xlane.xlu0 %8103 }
0x383a   :  { %v8106_v59 = vmul.f32 0.03125, %v8104_v58  ;;  %v8101_v3 = vpop.xlane.xlu1 %8100 }
0x383b   :  { %v8105_v60 = vmul.f32 0.03125, %v8101_v3 }
0x383c   :  { %v8108_v61 = vadd.f32 1e-05, %v8106_v59  ;;  %v12817_v59 = vld [vmem:[%s16417_s10] ss:$0 sm:$0xff] }
0x383d   :  { %v8107_v7 = vadd.f32 1e-05, %v8105_v60 }
0x383e   :  { %14653 = vrsqrt.f32 %v8108_v61 }
0x383f   :  { %14655 = vrsqrt.f32 %v8107_v7 }
0x3848   :  { %v14654_v62 = vpop.eup %14653 }
0x3849   :  { %v14656_v51 = vpop.eup %14655  ;;  %v8112_v26 = vmul.f32 %v14654_v62, %v8096_v31  ;;  %v12828_v62 = vld [vmem:[%s16400_s29 + $0x1] ss:$0 sm:$0xff] }
0x384a   :  { %v8111_v0 = vmul.f32 %v14656_v51, %v8095_v40 }
0x384b   :  { %v8120_v2 = vmul.f32 %v12808_v63, %v8112_v26 }
0x384c   :  { %v8119_v48 = vmul.f32 %v12808_v63, %v8111_v0 }
0x384d   :  { %v8128_v25 = vadd.f32 %v12809_v1, %v8120_v2 }
0x384e   :  { %v8127_v6 = vadd.f32 %v12809_v1, %v8119_v48 }
0x3850   :  { %13879 = vmatprep.mubr.msk.f32.mxu1 %vm183_vm0, %v8127_v6 }
0x3851   :  { %13880 = vmatmul.mubr.msk.f32.vlgmr.msra.gmra.mrb[92].mxu1 %vm183_vm0, %v8128_v25 }
0x3852   :  { %14309 = vmatpush3.bf16.msra.mxu1 %v14306_v43 }
0x3853   :  { %14311 = vmatprep.subr.bf16.mxu1 %v14310_v35 }
0x3856   :  { %14313 = vmatpush3.bf16.msra.mxu1 %v14310_v35 }
0x3857   :  { %13912 = vmatprep.subr.mxu1 %v14808_v8 }
0x3924   :  { %v13881_v4 = vpop.f32.mrb[92].mxu1 }
0x3925   :  { %v8227_v16 = vadd.f32 %v13881_v4, %v12810_v57  ;;  %v8221_v5 = vpop.f32.mrb[93].mxu1 }
0x3926   :  { %v8222_v18 = vadd.f32 %v12810_v57, %v8221_v5  ;;  %v15964_v5 = vld [vmem:[%s14842_s13] sm:$0xff]  ;;  %s16418_s13 = smov 104  }
0x3927   :  { %v8231_v21 = vmax.f32 %v8227_v16, 0.0 }
0x3928   :  { %v8230_v19 = vmax.f32 %v8222_v18, 0.0 }
0x392a   :  { %13898 = vmatprep.mubr.msk.f32.mxu0 %vm2092_vm3, %v8230_v19 }
0x392b   :  { %13899 = vmatmul.mubr.msk.f32.vlgmr.msra.gmra.mrb[64].mxu0 %vm2092_vm3, %v8231_v21 }
0x392c   :  { %13924 = vmatprep.mubr.msk.f32.mxu0 %vm14809_vm1, %v14808_v8 }
0x39fe   :  { %v13900_v15 = vpop.f32.mrb[64].mxu0 }
0x39ff   :  { %v8316_v24 = vadd.f32 %v13900_v15, %v12813_v23  ;;  %v8310_v27 = vpop.f32.mrb[65].mxu0 }
0x3a00   :  { %v8311_v28 = vadd.f32 %v12813_v23, %v8310_v27 }
0x3a01   :  { %v8320_v30 = vadd.f32 %v8316_v24, %v8128_v25 }
0x3a02   :  { %v8319_v32 = vadd.f32 %v8311_v28, %v8127_v6 }
0x3a03   :  { %v8326_v33 = vsel %vm183_vm0, %v8320_v30, 0.0 }
0x3a04   :  { %8327 = vadd.xlane.f32.xlu0 %v8326_v33  ;;  %v8323_v34 = vsel %vm183_vm0, %v8319_v32, 0.0 }
0x3a05   :  { %8324 = vadd.xlane.f32.xlu1 %v8323_v34 }
0x3a91   :  { %v8328_v36 = vpop.xlane.xlu0 %8327 }
0x3a92   :  { %v8330_v37 = vmul.f32 0.03125, %v8328_v36  ;;  %v8325_v38 = vpop.xlane.xlu1 %8324 }
0x3a93   :  { %v8329_v12 = vmul.f32 0.03125, %v8325_v38 }
0x3a94   :  { %v8332_v39 = vsub.f32 %v8320_v30, %v8330_v37 }
0x3a95   :  { %v8331_v31 = vsub.f32 %v8319_v32, %v8329_v12 }
0x3a96   :  { %v8334_v40 = vmul.f32 %v8332_v39, %v8332_v39 }
0x3a97   :  { %v8333_v20 = vmul.f32 %v8331_v31, %v8331_v31 }
0x3a98   :  { %v8338_v22 = vsel %vm183_vm0, %v8334_v40, 0.0 }
0x3a99   :  { %8339 = vadd.xlane.f32.xlu0 %v8338_v22  ;;  %v8335_v9 = vsel %vm183_vm0, %v8333_v20, 0.0 }
0x3a9a   :  { %8336 = vadd.xlane.f32.xlu1 %v8335_v9 }
0x3b26   :  { %v8340_v46 = vpop.xlane.xlu0 %8339 }
0x3b27   :  { %v8342_v53 = vmul.f32 0.03125, %v8340_v46  ;;  %v8337_v17 = vpop.xlane.xlu1 %8336 }
0x3b28   :  { %v8341_v13 = vmul.f32 0.03125, %v8337_v17 }
0x3b29   :  { %v8344_v54 = vadd.f32 1e-05, %v8342_v53 }
0x3b2a   :  { %v8343_v52 = vadd.f32 1e-05, %v8341_v13 }
0x3b2b   :  { %14657 = vrsqrt.f32 %v8344_v54 }
0x3b2c   :  { %14659 = vrsqrt.f32 %v8343_v52 }
0x3b35   :  { %v14658_v56 = vpop.eup %14657 }
0x3b36   :  { %v14660_v50 = vpop.eup %14659  ;;  %v8348_v55 = vmul.f32 %v14658_v56, %v8332_v39 }
0x3b37   :  { %v8347_v58 = vmul.f32 %v14660_v50, %v8331_v31 }
0x3b38   :  { %v8356_v3 = vmul.f32 %v12816_v47, %v8348_v55 }
0x3b39   :  { %v8355_v60 = vmul.f32 %v12816_v47, %v8347_v58 }
0x3b3a   :  { %v15925_v7 = vadd.f32 %v12817_v59, %v8356_v3 }
0x3b3b   :  { %v15923_v61 = vadd.f32 %v12817_v59, %v8355_v60 }
0x3b3d   :  { %13909 = vmatprep.mubr.msk.f32.mxu1 %vm183_vm0, %v15923_v61 }
0x3b3e   :  { %13910 = vmatmul.mubr.msk.f32.vlgmr.msra.gmra.mrb[94].mxu1 %vm183_vm0, %v15925_v7 }
0x3b3f   :  { %13914 = vmatprep.mubr.msk.f32.mxu1 %vm14809_vm1, %v14808_v8 }
0x3c11   :  { %v13911_v63 = vpop.f32.mrb[94].mxu1 }
0x3c12   :  { %v15934_v51 = vadd.f32 %v13911_v63, %v12828_v62  ;;  %v8457_v26 = vpop.f32.mrb[95].mxu1 }
0x3c13   :  { %v15936_v0 = vadd.f32 %v12828_v62, %v8457_v26 }
0x3c14   :  { %8544 = vrot.lane.b32.xlu0 %v15934_v51, %s14810_s0 }
0x3c15   :  { %8467 = vrot.lane.b32.xlu1 %v15936_v0, %s14810_s0 }
0x3c86   :  { %v8545_v2 = vpop.permute.xlu0 %8544 }
0x3c87   :  { %v8468_v1 = vpop.permute.xlu1 %8467 }
0x3c88   :  { %13913 = vmatpush3.xpose.msk.msra.mxu1 %vm268_vm2, %v8468_v1 }
0x3c89   :  { %13917 = vmatprep.subr.mxu1 %v14808_v8 }
0x3c8b   :  { %13915 = vmatmul.mubr.msk.f32.vlgmr.msra.gmra.mrb[96].mxu1 %vm268_vm2, %v15936_v0 }
0x3c8c   :  { %13918 = vmatpush3.xpose.msk.msra.mxu1 %vm268_vm2, %v8545_v2  ;;  %13919 = vmatprep.mubr.msk.f32.mxu1 %vm14809_vm1, %v14808_v8 }
0x3c8d   :  { %13927 = vmatprep.subr.mxu1 %v14808_v8 }
0x3c8f   :  { %13920 = vmatmul.mubr.msk.f32.vlgmr.msra.gmra.mrb[98].mxu1 %vm268_vm2, %v15934_v51 }
0x3c90   :  { %13929 = vmatprep.mubr.msk.f32.mxu1 %vm14809_vm1, %v14808_v8 }
0x3d5e   :  { %v8539_v48 = vpop.f32.mrb[96].mxu1 }
0x3d5f   :  { %v13916_v6 = vpop.f32.mrb[97].mxu1  ;;  %v8620_v16 = vmul.f32 0.35355338, %v8539_v48 }
0x3d61   :  { %v8622_v18 = vadd.f32 %v15964_v5, %v8620_v16 }
0x3d62   :  { %v8616_v25 = vpop.f32.mrb[98].mxu1 }
0x3d63   :  { %v8621_v10 = vmul.f32 0.35355338, %v8616_v25  ;;  %v13921_v11 = vpop.f32.mrb[99].mxu1  ;;  %v8624_v19 = vsel %vm268_vm2, %v8622_v18, -inf }
0x3d65   :  { %v8623_v57 = vadd.f32 %v15955_v49, %v8621_v10 }
0x3d67   :  { %v8627_v4 = vsel %vm268_vm2, %v8623_v57, -inf }
0x3d68   :  { %8628 = vmax.xlane.f32.xlu1 %v8627_v4 }
0x3d79   :  { %8722 = vrot.lane.b32.xlu1 %v15934_v51, %s14811_s5 }
0x3d7d   :  { %8876 = vrot.lane.b32.xlu1 %v15934_v51, %s14813_s23 }
0x3da1   :  { %8625 = vmax.xlane.f32.xlu1 %v8624_v19 }
0x3db2   :  { %8800 = vrot.lane.b32.xlu1 %v15936_v0, %s14812_s22 }
0x3db6   :  { %8798 = vrot.lane.b32.xlu1 %v15936_v0, %s14813_s23 }
0x3dba   :  { %9296 = vrot.lane.b32.xlu1 %v15936_v0, %s14816_s1 }
0x3df5   :  { %v8629_v21 = vpop.xlane.xlu1 %8628 }
0x3df6   :  { %v8631_v23 = vsub.f32 %v8623_v57, %v8629_v21 }
0x3df8   :  { %v8634_v15 = vmul.f32 1.442695, %v8631_v23 }
0x3df9   :  { %v8723_v24 = vpop.permute.xlu1 %8722 }
0x3dfa   :  { %14661 = vpow2.f32 %v8634_v15  ;;  %13928 = vmatpush3.msra.mxu1 %v8723_v24 }
0x3dfb   :  { %13937 = vmatprep.subr.mxu1 %v14808_v8 }
0x3dfd   :  { %v8877_v30 = vpop.permute.xlu1 %8876 }
0x3e04   :  { %v14662_v27 = vpop.eup %14661 }
0x3e05   :  { %v8639_v28 = vsel %vm268_vm2, %v14662_v27, 0.0 }
0x3e06   :  { %8640 = vadd.xlane.f32.xlu0 %v8639_v28 }
0x3e1c   :  { %8878 = vrot.lane.b32.xlu0 %v15934_v51, %s14812_s22  ;;  %s16419_s22 = smov 40  }
0x3e2e   :  { %v8626_v32 = vpop.xlane.xlu1 %8625 }
0x3e2f   :  { %v8630_v33 = vsub.f32 %v8622_v18, %v8626_v32 }
0x3e31   :  { %v8632_v34 = vmul.f32 1.442695, %v8630_v33 }
0x3e32   :  { %v8801_v9 = vpop.permute.xlu1 %8800 }
0x3e33   :  { %14663 = vpow2.f32 %v8632_v34 }
0x3e36   :  { %v8799_v42 = vpop.permute.xlu1 %8798 }
0x3e3a   :  { %v9297_v26 = vpop.permute.xlu1 %9296 }
0x3e3d   :  { %v14664_v36 = vpop.eup %14663 }
0x3e3e   :  { %v8636_v37 = vsel %vm268_vm2, %v14664_v36, 0.0 }
0x3e3f   :  { %8637 = vadd.xlane.f32.xlu0 %v8636_v37 }
0x3e55   :  { %8646 = vrot.lane.b32.xlu0 %v15936_v0, %s14811_s5 }
0x3e93   :  { %v8641_v38 = vpop.xlane.xlu0 %8640 }
0x3e94   :  { %14665 = vrcp.f32 %v8641_v38 }
0x3e97   :  { %v8879_v31 = vpop.permute.xlu0 %8878 }
0x3e9e   :  { %v14666_v12 = vpop.eup %14665 }
0x3e9f   :  { %v8645_v39 = vmul.f32 %v14666_v12, %v14662_v27 }
0x3ea1   :  { %13930 = vmatmul.mubr.msk.f32.vlgmr.msra.gmra.mrb[100].mxu1 %vm268_vm2, %v8645_v39 }
0x3ea2   :  { %13938 = vmatpush3.xpose.msk.msra.mxu1 %vm268_vm2, %v8879_v31  ;;  %13939 = vmatprep.mubr.msk.f32.mxu1 %vm14809_vm1, %v14808_v8 }
0x3ea3   :  { %13947 = vmatprep.subr.mxu1 %v14808_v8 }
0x3ea5   :  { %13940 = vmatmul.mubr.msk.f32.vlgmr.msra.gmra.mrb[102].mxu1 %vm268_vm2, %v8877_v30 }
0x3ea6   :  { %13949 = vmatprep.mubr.msk.f32.mxu1 %vm14809_vm1, %v14808_v8 }
0x3ecc   :  { %v8638_v40 = vpop.xlane.xlu0 %8637 }
0x3ecd   :  { %14667 = vrcp.f32 %v8638_v40  ;;  %v12824_v40 = vld [vmem:[%s16401_s25 + $0x28] sm:$0xff] }
0x3ed0   :  { %v8647_v20 = vpop.permute.xlu0 %8646 }
0x3ed1   :  { %13923 = vmatpush3.msra.mxu0 %v8647_v20  ;;  %v12823_v20 = vld [vmem:[%s16401_s25 + $0x20] sm:$0xff] }
0x3ed2   :  { %13932 = vmatprep.subr.mxu0 %v14808_v8 }
0x3ed7   :  { %v14668_v22 = vpop.eup %14667 }
0x3ed8   :  { %v8644_v41 = vmul.f32 %v14668_v22, %v14664_v36 }
0x3eda   :  { %13925 = vmatmul.mubr.msk.f32.vlgmr.msra.gmra.mrb[66].mxu0 %vm268_vm2, %v8644_v41 }
0x3edb   :  { %13933 = vmatpush3.xpose.msk.msra.mxu0 %vm268_vm2, %v8801_v9  ;;  %13934 = vmatprep.mubr.msk.f32.mxu0 %vm14809_vm1, %v14808_v8 }
0x3edc   :  { %13942 = vmatprep.subr.mxu0 %v14808_v8 }
0x3ede   :  { %13935 = vmatmul.mubr.msk.f32.vlgmr.msra.gmra.mrb[68].mxu0 %vm268_vm2, %v8799_v42 }
0x3edf   :  { %13944 = vmatprep.mubr.msk.f32.mxu0 %vm14809_vm1, %v14808_v8 }
0x3f74   :  { %v15998_v43 = vpop.f32.mrb[100].mxu1 }
0x3f75   :  { %v13931_v44 = vpop.f32.mrb[101].mxu1 }
0x3f78   :  { %v8950_v45 = vpop.f32.mrb[102].mxu1 }
0x3f79   :  { %v8955_v35 = vmul.f32 0.35355338, %v8950_v45  ;;  %v13941_v46 = vpop.f32.mrb[103].mxu1 }
0x3f7b   :  { %v8957_v53 = vadd.f32 %v15955_v49, %v8955_v35 }
0x3f7d   :  { %v8961_v17 = vsel %vm268_vm2, %v8957_v53, -inf }
0x3f7e   :  { %8962 = vmax.xlane.f32.xlu0 %v8961_v17 }
0x3f94   :  { %9056 = vrot.lane.b32.xlu0 %v15934_v51, %s14814_s26 }
0x3f98   :  { %9294 = vrot.lane.b32.xlu0 %v15936_v0, %s14815_s28 }
0x3f9c   :  { %9372 = vrot.lane.b32.xlu0 %v15934_v51, %s14815_s28 }
0x3fad   :  { %v16008_v13 = vpop.f32.mrb[66].mxu0 }
0x3fae   :  { %v13926_v54 = vpop.f32.mrb[67].mxu0 }
0x3fb1   :  { %v8872_v52 = vpop.f32.mrb[68].mxu0 }
0x3fb2   :  { %v13936_v56 = vpop.f32.mrb[69].mxu0  ;;  %v8954_v60 = vmul.f32 0.35355338, %v8872_v52 }
0x3fb4   :  { %v8956_v62 = vadd.f32 %v15964_v5, %v8954_v60 }
0x3fb6   :  { %v8958_v63 = vsel %vm268_vm2, %v8956_v62, -inf }
0x400b   :  { %v8963_v47 = vpop.xlane.xlu0 %8962 }
0x400c   :  { %v8965_v50 = vsub.f32 %v8957_v53, %v8963_v47 }
0x400e   :  { %v8968_v55 = vmul.f32 1.442695, %v8965_v50  ;;  %v12825_v50 = vld [vmem:[%s16401_s25 + $0x30] sm:$0xff] }
0x400f   :  { %v9057_v58 = vpop.permute.xlu0 %9056 }
0x4010   :  { %14669 = vpow2.f32 %v8968_v55  ;;  %13948 = vmatpush3.msra.mxu1 %v9057_v58 }
0x4011   :  { %13962 = vmatprep.subr.mxu1 %v14808_v8 }
0x4013   :  { %v9295_v6 = vpop.permute.xlu0 %9294 }
0x4017   :  { %v9373_v10 = vpop.permute.xlu0 %9372 }
0x401a   :  { %v14670_v59 = vpop.eup %14669 }
0x401b   :  { %v8973_v3 = vsel %vm268_vm2, %v14670_v59, 0.0 }
0x401c   :  { %8974 = vadd.xlane.f32.xlu1 %v8973_v3 }
0x402d   :  { %9374 = vrot.lane.b32.xlu1 %v15934_v51, %s14816_s1 }
0x4051   :  { %8959 = vmax.xlane.f32.xlu1 %v8958_v63 }
0x40a9   :  { %v8975_v1 = vpop.xlane.xlu1 %8974 }
0x40aa   :  { %14671 = vrcp.f32 %v8975_v1 }
0x40ad   :  { %v9375_v25 = vpop.permute.xlu1 %9374 }
0x40b4   :  { %v14672_v2 = vpop.eup %14671 }
0x40b5   :  { %v8979_v48 = vmul.f32 %v14672_v2, %v14670_v59 }
0x40b7   :  { %13950 = vmatmul.mubr.msk.f32.vlgmr.msra.gmra.mrb[104].mxu1 %vm268_vm2, %v8979_v48 }
0x40b8   :  { %13963 = vmatpush3.xpose.msk.msra.mxu1 %vm268_vm2, %v9297_v26  ;;  %13964 = vmatprep.mubr.msk.f32.mxu1 %vm14809_vm1, %v14808_v8 }
0x40b9   :  { %13967 = vmatprep.subr.mxu1 %v14808_v8 }
0x40bb   :  { %13965 = vmatmul.mubr.msk.f32.vlgmr.msra.gmra.mrb[106].mxu1 %vm268_vm2, %v9295_v6 }
0x40bc   :  { %13968 = vmatpush3.xpose.msk.msra.mxu1 %vm268_vm2, %v9375_v25  ;;  %13969 = vmatprep.mubr.msk.f32.mxu1 %vm14809_vm1, %v14808_v8 }
0x40bd   :  { %13977 = vmatprep.subr.mxu1 %v14808_v8 }
0x40bf   :  { %13970 = vmatmul.mubr.msk.f32.vlgmr.msra.gmra.mrb[108].mxu1 %vm268_vm2, %v9373_v10 }
0x40c0   :  { %13979 = vmatprep.mubr.msk.f32.mxu1 %vm14809_vm1, %v14808_v8 }
0x40de   :  { %v8960_v11 = vpop.xlane.xlu1 %8959 }
0x40df   :  { %v8964_v57 = vsub.f32 %v8956_v62, %v8960_v11 }
0x40e1   :  { %v8966_v4 = vmul.f32 1.442695, %v8964_v57 }
0x40e3   :  { %14673 = vpow2.f32 %v8966_v4 }
0x40ed   :  { %v14674_v16 = vpop.eup %14673 }
0x40ee   :  { %v8970_v18 = vsel %vm268_vm2, %v14674_v16, 0.0 }
0x40ef   :  { %8971 = vadd.xlane.f32.xlu0 %v8970_v18 }
0x4105   :  { %8980 = vrot.lane.b32.xlu0 %v15936_v0, %s14814_s26 }
0x4109   :  { %9552 = vrot.lane.b32.xlu0 %v15934_v51, %s14817_s2 }
0x410d   :  { %9713 = vrot.lane.b32.xlu0 %v15936_v0, %s14818_s7 }
0x4111   :  { %9791 = vrot.lane.b32.xlu0 %v15934_v51, %s14818_s7 }
0x4115   :  { %9711 = vrot.lane.b32.xlu0 %v15936_v0, %s16418_s13 }
0x417c   :  { %v8972_v19 = vpop.xlane.xlu0 %8971 }
0x417d   :  { %14675 = vrcp.f32 %v8972_v19 }
0x4180   :  { %v8981_v21 = vpop.permute.xlu0 %8980 }
0x4181   :  { %13943 = vmatpush3.msra.mxu0 %v8981_v21 }
0x4182   :  { %13952 = vmatprep.subr.mxu0 %v12824_v40 }
0x4184   :  { %v9553_v23 = vpop.permute.xlu0 %9552 }
0x4185   :  { %13978 = vmatpush3.msra.mxu1 %v9553_v23 }
0x4186   :  { %13987 = vmatprep.subr.mxu1 %v14808_v8 }
0x4187   :  { %v14676_v15 = vpop.eup %14675 }
0x4188   :  { %v8978_v24 = vmul.f32 %v14676_v15, %v14674_v16  ;;  %v9714_v58 = vpop.permute.xlu0 %9713 }
0x418a   :  { %13945 = vmatmul.mubr.msk.f32.vlgmr.msra.gmra.mrb[70].mxu0 %vm268_vm2, %v8978_v24  ;;  %v9128_v27 = vpop.f32.mrb[104].mxu1 }
0x418b   :  { %v13951_v28 = vpop.f32.mrb[105].mxu1  ;;  %13953 = vmatpush3.msra.mxu0 %v12824_v40 }
0x418c   :  { %13957 = vmatprep.subr.mxu0 %v12823_v20  ;;  %v9792_v60 = vpop.permute.xlu0 %9791 }
0x418e   :  { %v9368_v30 = vpop.f32.mrb[106].mxu1 }
0x418f   :  { %v9450_v32 = vmul.f32 0.35355338, %v9368_v30  ;;  %v13966_v33 = vpop.f32.mrb[107].mxu1 }
0x4190   :  { %v9712_v62 = vpop.permute.xlu0 %9711 }
0x4191   :  { %v9452_v34 = vadd.f32 %v15964_v5, %v9450_v32 }
0x4192   :  { %v9446_v36 = vpop.f32.mrb[108].mxu1 }
0x4193   :  { %v9451_v37 = vmul.f32 0.35355338, %v9446_v36  ;;  %v13971_v38 = vpop.f32.mrb[109].mxu1  ;;  %v9454_v12 = vsel %vm268_vm2, %v9452_v34, -inf }
0x4194   :  { %9455 = vmax.xlane.f32.xlu1 %v9454_v12  ;;  %v12826_v12 = vld [vmem:[%s16401_s25 + $0x38] sm:$0xff] }
0x4195   :  { %v9453_v39 = vadd.f32 %v15955_v49, %v9451_v37 }
0x4197   :  { %v9457_v31 = vsel %vm268_vm2, %v9453_v39, -inf }
0x4198   :  { %9458 = vmax.xlane.f32.xlu1 %v9457_v31 }
0x4221   :  { %v9456_v22 = vpop.xlane.xlu1 %9455 }
0x4222   :  { %v9460_v9 = vsub.f32 %v9452_v34, %v9456_v22 }
0x4224   :  { %v9462_v41 = vmul.f32 1.442695, %v9460_v9 }
0x4225   :  { %v9459_v42 = vpop.xlane.xlu1 %9458 }
0x4226   :  { %14677 = vpow2.f32 %v9462_v41  ;;  %v9461_v44 = vsub.f32 %v9453_v39, %v9459_v42 }
0x4228   :  { %v9464_v45 = vmul.f32 1.442695, %v9461_v44 }
0x422a   :  { %14679 = vpow2.f32 %v9464_v45 }
0x4230   :  { %v14678_v35 = vpop.eup %14677 }
0x4231   :  { %v9466_v46 = vsel %vm268_vm2, %v14678_v35, 0.0 }
0x4232   :  { %9467 = vadd.xlane.f32.xlu1 %v9466_v46 }
0x4234   :  { %v14680_v53 = vpop.eup %14679 }
0x4235   :  { %v9469_v17 = vsel %vm268_vm2, %v14680_v53, 0.0 }
0x4236   :  { %9470 = vadd.xlane.f32.xlu1 %v9469_v17 }
0x4247   :  { %9476 = vrot.lane.b32.xlu1 %v15936_v0, %s14817_s2 }
0x424b   :  { %9789 = vrot.lane.b32.xlu1 %v15934_v51, %s16418_s13 }
0x425d   :  { %v9052_v54 = vpop.f32.mrb[70].mxu0 }
0x425e   :  { %v13946_v52 = vpop.f32.mrb[71].mxu0  ;;  %13954 = vmatprep.mubr.msk.f32.mxu0 %vm268_vm2, %v9052_v54 }
0x425f   :  { %13955 = vmatmul.mubr.msk.f32.vlgmr.msra.gmra.mrb[72].mxu0 %vm268_vm2, %v9128_v27 }
0x4260   :  { %13959 = vmatprep.mubr.msk.f32.mxu0 %vm268_vm2, %v16008_v13  ;;  %13958 = vmatpush3.msra.mxu0 %v12823_v20 }
0x4261   :  { %13972 = vmatprep.subr.mxu0 %v14808_v8 }
0x4267   :  { %13960 = vmatmul.mubr.msk.f32.vlgmr.msra.gmra.mrb[72].mxu0 %vm268_vm2, %v15998_v43 }
0x4268   :  { %13974 = vmatprep.mubr.msk.f32.mxu0 %vm14809_vm1, %v14808_v8 }
0x42bf   :  { %v9468_v56 = vpop.xlane.xlu1 %9467 }
0x42c0   :  { %14681 = vrcp.f32 %v9468_v56 }
0x42c3   :  { %v9471_v47 = vpop.xlane.xlu1 %9470 }
0x42c4   :  { %14683 = vrcp.f32 %v9471_v47 }
0x42c7   :  { %v9477_v55 = vpop.permute.xlu1 %9476 }
0x42c8   :  { %13973 = vmatpush3.msra.mxu0 %v9477_v55 }
0x42c9   :  { %13982 = vmatprep.subr.mxu0 %v12825_v50 }
0x42ca   :  { %v14682_v59 = vpop.eup %14681 }
0x42cb   :  { %v9474_v13 = vmul.f32 %v14682_v59, %v14678_v35  ;;  %v9790_v48 = vpop.permute.xlu1 %9789 }
0x42cd   :  { %13975 = vmatmul.mubr.msk.f32.vlgmr.msra.gmra.mrb[74].mxu0 %vm268_vm2, %v9474_v13 }
0x42ce   :  { %v14684_v3 = vpop.eup %14683  ;;  %13983 = vmatpush3.msra.mxu0 %v12825_v50 }
0x42cf   :  { %v9475_v43 = vmul.f32 %v14684_v3, %v14680_v53  ;;  %13992 = vmatprep.subr.mxu0 %v14808_v8  ;;  %v12868_v3 = vld [vmem:[%s16403_s17 + $0x20] sm:$0xff] }
0x42d1   :  { %13980 = vmatmul.mubr.msk.f32.vlgmr.msra.gmra.mrb[110].mxu1 %vm268_vm2, %v9475_v43 }
0x42d2   :  { %13988 = vmatpush3.xpose.msk.msra.mxu1 %vm268_vm2, %v9714_v58  ;;  %13989 = vmatprep.mubr.msk.f32.mxu1 %vm14809_vm1, %v14808_v8 }
0x42d3   :  { %13997 = vmatprep.subr.mxu1 %v14808_v8 }
0x42d5   :  { %13990 = vmatmul.mubr.msk.f32.vlgmr.msra.gmra.mrb[112].mxu1 %vm268_vm2, %v9712_v62  ;;  %v12870_v62 = vld [vmem:[%s16403_s17 + $0x30] sm:$0xff] }
0x42d6   :  { %13999 = vmatprep.mubr.msk.f32.mxu1 %vm14809_vm1, %v14808_v8 }
0x43a0   :  { %v9548_v63 = vpop.f32.mrb[74].mxu0 }
0x43a1   :  { %v13976_v26 = vpop.f32.mrb[75].mxu0  ;;  %13984 = vmatprep.mubr.msk.f32.mxu0 %vm268_vm2, %v9548_v63  ;;  %v12871_v63 = vld [vmem:[%s16403_s17 + $0x38] sm:$0xff] }
0x43a2   :  { %v14486_v26 = vpack.i.bf16 %v12871_v63, %v12870_v62 }
0x43a4   :  { %v9624_v1 = vpop.f32.mrb[110].mxu1 }
0x43a5   :  { %v13981_v2 = vpop.f32.mrb[111].mxu1  ;;  %13985 = vmatmul.mubr.msk.f32.vlgmr.msra.gmra.mrb[72].mxu0 %vm268_vm2, %v9624_v1 }
0x43a6   :  { %13993 = vmatpush3.xpose.msk.msra.mxu0 %vm268_vm2, %v9792_v60  ;;  %13994 = vmatprep.mubr.msk.f32.mxu0 %vm14809_vm1, %v14808_v8  ;;  %v12869_v60 = vld [vmem:[%s16403_s17 + $0x28] sm:$0xff]  ;;  %v14318_v2 = vpack.c.bf16 %v12871_v63, %v12870_v62 }
0x43a7   :  { %14002 = vmatprep.subr.mxu0 %v14808_v8  ;;  %v14481_v43 = vpack.i.bf16 %v12869_v60, %v12868_v3  ;;  %v14314_v1 = vpack.c.bf16 %v12869_v60, %v12868_v3 }
0x43a8   :  { %v9785_v6 = vpop.f32.mrb[112].mxu1 }
0x43a9   :  { %v9867_v25 = vmul.f32 0.35355338, %v9785_v6  ;;  %v13991_v10 = vpop.f32.mrb[113].mxu1  ;;  %13995 = vmatmul.mubr.msk.f32.vlgmr.msra.gmra.mrb[76].mxu0 %vm268_vm2, %v9790_v48  ;;  %v16116_v48 = vld [vmem:[%s16405_s24 + $0x1] ss:$0 sm:$0xff] }
0x43aa   :  { %14004 = vmatprep.mubr.msk.f32.mxu0 %vm14809_vm1, %v14808_v8 }
0x43ab   :  { %v9869_v11 = vadd.f32 %v15964_v5, %v9867_v25 }
0x43ad   :  { %v9871_v57 = vsel %vm268_vm2, %v9869_v11, -inf }
0x43ae   :  { %9872 = vmax.xlane.f32.xlu0 %v9871_v57 }
0x443b   :  { %v9873_v4 = vpop.xlane.xlu0 %9872 }
0x443c   :  { %v9877_v16 = vsub.f32 %v9869_v11, %v9873_v4 }
0x443e   :  { %v9879_v18 = vmul.f32 1.442695, %v9877_v16 }
0x4440   :  { %14685 = vpow2.f32 %v9879_v18 }
0x444a   :  { %v14686_v19 = vpop.eup %14685 }
0x444b   :  { %v9883_v21 = vsel %vm268_vm2, %v14686_v19, 0.0 }
0x444c   :  { %9884 = vadd.xlane.f32.xlu0 %v9883_v21 }
0x447c   :  { %v9863_v23 = vpop.f32.mrb[76].mxu0 }
0x447d   :  { %v9868_v15 = vmul.f32 0.35355338, %v9863_v23  ;;  %v13996_v24 = vpop.f32.mrb[77].mxu0 }
0x447f   :  { %v9870_v27 = vadd.f32 %v15955_v49, %v9868_v15 }
0x4481   :  { %v9874_v28 = vsel %vm268_vm2, %v9870_v27, -inf }
0x4482   :  { %9875 = vmax.xlane.f32.xlu1 %v9874_v28 }
0x4493   :  { %9893 = vrot.lane.b32.xlu1 %v15936_v0, %s16419_s22 }
0x44d9   :  { %v9885_v5 = vpop.xlane.xlu0 %9884 }
0x44da   :  { %14687 = vrcp.f32 %v9885_v5 }
0x44e4   :  { %v14688_v32 = vpop.eup %14687 }
0x44e5   :  { %v9891_v36 = vmul.f32 %v14688_v32, %v14686_v19 }
0x450f   :  { %v9876_v30 = vpop.xlane.xlu1 %9875 }
0x4510   :  { %v9878_v33 = vsub.f32 %v9870_v27, %v9876_v30 }
0x4512   :  { %v9881_v34 = vmul.f32 1.442695, %v9878_v33 }
0x4513   :  { %v9894_v37 = vpop.permute.xlu1 %9893 }
0x4514   :  { %14689 = vpow2.f32 %v9881_v34  ;;  %13998 = vmatpush3.msra.mxu1 %v9894_v37 }
0x4515   :  { %14000 = vmatmul.mubr.msk.f32.vlgmr.msra.gmra.mrb[114].mxu1 %vm268_vm2, %v9891_v36  ;;  %14315 = vmatprep.subr.bf16.mxu1 %v14314_v1  ;;  %v12866_v36 = vld [vmem:[%s16406_s30 + $0x1] ss:$0 sm:$0xff] }
0x4516   :  { %14317 = vmatpush3.bf16.msra.mxu1 %v14314_v1 }
0x4517   :  { %14319 = vmatprep.subr.bf16.mxu1 %v14318_v2 }
0x451a   :  { %14321 = vmatpush3.bf16.msra.mxu1 %v14318_v2 }
0x451e   :  { %v14690_v49 = vpop.eup %14689 }
0x451f   :  { %v9886_v38 = vsel %vm268_vm2, %v14690_v49, 0.0 }
0x4520   :  { %9887 = vadd.xlane.f32.xlu0 %v9886_v38 }
0x4536   :  { %9969 = vrot.lane.b32.xlu0 %v15934_v51, %s16419_s22  ;;  %v12863_v51 = vld [vmem:[%s16402_s3 + $0x1] ss:$0 sm:$0xff] }
0x45ad   :  { %v9888_v0 = vpop.xlane.xlu0 %9887 }
0x45ae   :  { %14691 = vrcp.f32 %v9888_v0 }
0x45b1   :  { %v9970_v39 = vpop.permute.xlu0 %9969 }
0x45b2   :  { %14003 = vmatpush3.msra.mxu0 %v9970_v39  ;;  %v12867_v39 = vld [vmem:[%s16407_s6 + $0x1] ss:$0 sm:$0xff] }
0x45b3   :  { %14007 = vmatprep.subr.mxu0 %v12826_v12 }
0x45b8   :  { %v14692_v31 = vpop.eup %14691 }
0x45b9   :  { %v9892_v40 = vmul.f32 %v14692_v31, %v14690_v49 }
0x45bb   :  { %14005 = vmatmul.mubr.msk.f32.vlgmr.msra.gmra.mrb[78].mxu0 %vm268_vm2, %v9892_v40 }
0x45bc   :  { %14008 = vmatpush3.msra.mxu0 %v12826_v12 }
0x45e8   :  { %v9965_v20 = vpop.f32.mrb[114].mxu1 }
0x45e9   :  { %v14001_v22 = vpop.f32.mrb[115].mxu1  ;;  %14009 = vmatprep.mubr.msk.f32.mxu0 %vm268_vm2, %v9965_v20 }
0x468e   :  { %v10041_v9 = vpop.f32.mrb[78].mxu0 }
0x468f   :  { %v14006_v41 = vpop.f32.mrb[79].mxu0  ;;  %14010 = vmatmul.mubr.msk.f32.vlgmr.msra.gmra.mrb[72].mxu0 %vm268_vm2, %v10041_v9 }
0x4690   :  { %14031 = vmatprep.mubr.msk.f32.mxu0 %vm183_vm0, %v15687_v14 }
0x4762   :  { %v14011_v42 = vpop.f32.mrb[72].mxu0 }
0x4763   :  { %v10135_v44 = vadd.f32 %v14011_v42, %v12863_v51  ;;  %v10117_v45 = vpop.f32.mrb[73].mxu0 }
0x4764   :  { %v10134_v35 = vadd.f32 %v12863_v51, %v10117_v45 }
0x4765   :  { %v10137_v46 = vadd.f32 %v10135_v44, %v15925_v7 }
0x4766   :  { %v10136_v53 = vadd.f32 %v10134_v35, %v15923_v61 }
0x4767   :  { %v10145_v17 = vsel %vm183_vm0, %v10137_v46, 0.0 }
0x4768   :  { %10146 = vadd.xlane.f32.xlu0 %v10145_v17  ;;  %v10142_v54 = vsel %vm183_vm0, %v10136_v53, 0.0 }
0x4769   :  { %10143 = vadd.xlane.f32.xlu1 %v10142_v54 }
0x47f5   :  { %v10147_v52 = vpop.xlane.xlu0 %10146 }
0x47f6   :  { %v10149_v56 = vmul.f32 0.03125, %v10147_v52  ;;  %v10144_v47 = vpop.xlane.xlu1 %10143 }
0x47f7   :  { %v10148_v50 = vmul.f32 0.03125, %v10144_v47 }
0x47f8   :  { %v10151_v55 = vsub.f32 %v10137_v46, %v10149_v56 }
0x47f9   :  { %v10150_v58 = vsub.f32 %v10136_v53, %v10148_v50 }
0x47fa   :  { %v10153_v59 = vmul.f32 %v10151_v55, %v10151_v55 }
0x47fb   :  { %v10152_v7 = vmul.f32 %v10150_v58, %v10150_v58 }
0x47fc   :  { %v10157_v61 = vsel %vm183_vm0, %v10153_v59, 0.0 }
0x47fd   :  { %10158 = vadd.xlane.f32.xlu0 %v10157_v61  ;;  %v10154_v13 = vsel %vm183_vm0, %v10152_v7, 0.0 }
0x47fe   :  { %10155 = vadd.xlane.f32.xlu1 %v10154_v13 }
0x480f   :  { %14482 = vrot.lane.b32.xlu1 %v14481_v43, %s14810_s0 }
0x4813   :  { %14487 = vrot.lane.b32.xlu0 %v14486_v26, %s14810_s0  ;;  %14492 = vrot.lane.b32.xlu1 %v14481_v43, %s14811_s5 }
0x4817   :  { %14497 = vrot.lane.b32.xlu1 %v14486_v26, %s14811_s5  ;;  %10301 = vrot.lane.b32.xlu0 %v16116_v48, %s14810_s0  ;;  %s16420_s0 = sld [smem:[#allocation25_spill]] }
0x488a   :  { %v10159_v6 = vpop.xlane.xlu0 %10158 }
0x488b   :  { %v10161_v25 = vmul.f32 0.03125, %v10159_v6  ;;  %v10156_v10 = vpop.xlane.xlu1 %10155 }
0x488c   :  { %v10160_v11 = vmul.f32 0.03125, %v10156_v10 }
0x488d   :  { %v10163_v57 = vadd.f32 1e-05, %v10161_v25 }
0x488e   :  { %v10162_v4 = vadd.f32 1e-05, %v10160_v11  ;;  %v14488_v16 = vpop.permute.xlu0 %14487 }
0x488f   :  { %14693 = vrsqrt.f32 %v10163_v57  ;;  %v14483_v18 = vpop.permute.xlu1 %14482  ;;  %v14490_v19 = vunpack.i.h.bf16 %v14488_v16  ;;  %v14489_v21 = vunpack.i.l.bf16 %v14488_v16 }
0x4890   :  { %14695 = vrsqrt.f32 %v10162_v4  ;;  %v14485_v23 = vunpack.i.h.bf16 %v14483_v18  ;;  %v14484_v15 = vunpack.i.l.bf16 %v14483_v18 }
0x4891   :  { %v14326_v27 = vpack.c.bf16 %v14490_v19, %v14489_v21 }
0x4892   :  { %v14322_v24 = vpack.c.bf16 %v14485_v23, %v14484_v15  ;;  %v10302_v41 = vpop.permute.xlu0 %10301 }
0x4893   :  { %v14493_v28 = vpop.permute.xlu1 %14492 }
0x4894   :  { %14323 = vmatprep.subr.bf16.mxu0 %v14322_v24  ;;  %v14495_v5 = vunpack.i.h.bf16 %v14493_v28  ;;  %v14494_v30 = vunpack.i.l.bf16 %v14493_v28 }
0x4895   :  { %14325 = vmatpush3.bf16.msra.mxu0 %v14322_v24 }
0x4896   :  { %14327 = vmatprep.subr.bf16.mxu0 %v14326_v27  ;;  %v14330_v32 = vpack.c.bf16 %v14495_v5, %v14494_v30 }
0x4897   :  { %v14498_v34 = vpop.permute.xlu1 %14497 }
0x4898   :  { %14331 = vmatprep.subr.bf16.mxu1 %v14330_v32  ;;  %v14500_v0 = vunpack.i.h.bf16 %v14498_v34  ;;  %v14499_v12 = vunpack.i.l.bf16 %v14498_v34 }
0x4899   :  { %v14694_v33 = vpop.eup %14693  ;;  %14329 = vmatpush3.bf16.msra.mxu0 %v14326_v27 }
0x489a   :  { %v14696_v37 = vpop.eup %14695  ;;  %v10167_v49 = vmul.f32 %v14694_v33, %v10151_v55  ;;  %14045 = vmatprep.subr.mxu0 %v14808_v8  ;;  %v14334_v22 = vpack.c.bf16 %v14500_v0, %v14499_v12 }
0x489b   :  { %v10166_v38 = vmul.f32 %v14696_v37, %v10150_v58 }
0x489c   :  { %14032 = vmatmul.mubr.msk.f32.vlgmr.msra.gmra.mrb[80].mxu0 %vm183_vm0, %v15685_v29  ;;  %v10175_v31 = vmul.f32 %v12866_v36, %v10167_v49 }
0x489d   :  { %v10174_v40 = vmul.f32 %v12866_v36, %v10166_v38  ;;  %14047 = vmatprep.mubr.msk.f32.mxu0 %vm14809_vm1, %v14808_v8 }
0x489e   :  { %v16129_v9 = vadd.f32 %v12867_v39, %v10175_v31 }
0x489f   :  { %v16127_v20 = vadd.f32 %v12867_v39, %v10174_v40 }
0x48a1   :  { %14020 = vmatprep.mubr.msk.f32.mxu1 %vm183_vm0, %v16127_v20 }
0x48a2   :  { %14021 = vmatmul.mubr.msk.f32.vlgmr.msra.gmra.mrb[116].mxu1 %vm183_vm0, %v16129_v9 }
0x48a3   :  { %14333 = vmatpush3.bf16.msra.mxu1 %v14330_v32  ;;  %14042 = vmatprep.mubr.msk.f32.mxu1 %vm183_vm0, %v15687_v14 }
0x48a4   :  { %14335 = vmatprep.subr.bf16.mxu1 %v14334_v22 }
0x48a7   :  { %14337 = vmatpush3.bf16.msra.mxu1 %v14334_v22 }
0x48a8   :  { %14050 = vmatprep.subr.mxu1 %v14808_v8 }
0x48aa   :  { %14043 = vmatmul.mubr.msk.f32.vlgmr.msra.gmra.mrb[118].mxu1 %vm183_vm0, %v15685_v29 }
0x48ab   :  { %14052 = vmatprep.mubr.msk.f32.mxu1 %vm14809_vm1, %v14808_v8 }
0x496f   :  { %v14033_v51 = vpop.f32.mrb[80].mxu0 }
0x4970   :  { %v16142_v42 = vadd.f32 %v14033_v51, %v10302_v41  ;;  %v10370_v44 = vpop.f32.mrb[81].mxu0 }
0x4971   :  { %v16144_v45 = vadd.f32 %v10370_v44, %v10302_v41 }
0x4972   :  { %14051 = vmatpush3.xpose.msk.msra.mxu1 %vm268_vm2, %v16142_v42 }
0x4973   :  { %14046 = vmatpush3.xpose.msk.msra.mxu0 %vm268_vm2, %v16144_v45  ;;  %14060 = vmatprep.subr.mxu1 %v14808_v8 }
0x4974   :  { %14055 = vmatprep.subr.mxu0 %v14808_v8 }
0x4975   :  { %v14022_v29 = vpop.f32.mrb[116].mxu1 }
0x4976   :  { %v16153_v14 = vadd.f32 %v14022_v29, %v16116_v48  ;;  %v10276_v35 = vpop.f32.mrb[117].mxu1 }
0x4977   :  { %v16156_v46 = vadd.f32 %v16116_v48, %v10276_v35 }
0x4978   :  { %14053 = vmatmul.mubr.msk.f32.vlgmr.msra.gmra.mrb[120].mxu1 %vm268_vm2, %v16153_v14 }
0x4979   :  { %14048 = vmatmul.mubr.msk.f32.vlgmr.msra.gmra.mrb[82].mxu0 %vm268_vm2, %v16156_v46  ;;  %14062 = vmatprep.mubr.msk.f32.mxu1 %vm14809_vm1, %v14808_v8 }
0x497a   :  { %14057 = vmatprep.mubr.msk.f32.mxu0 %vm14809_vm1, %v14808_v8 }
0x497d   :  { %v14044_v53 = vpop.f32.mrb[118].mxu1 }
0x497e   :  { %v10460_v17 = vpop.f32.mrb[119].mxu1 }
0x4a4b   :  { %v10617_v54 = vpop.f32.mrb[120].mxu1 }
0x4a4c   :  { %v10622_v52 = vmul.f32 0.35355338, %v10617_v54  ;;  %v10541_v56 = vpop.f32.mrb[82].mxu0  ;;  %v14054_v47 = vpop.f32.mrb[121].mxu1 }
0x4a4d   :  { %v14049_v50 = vpop.f32.mrb[83].mxu0  ;;  %v10621_v3 = vmul.f32 0.35355338, %v10541_v56 }
0x4a4e   :  { %v10626_v55 = vsel %vm268_vm2, %v10622_v52, -inf }
0x4a4f   :  { %10627 = vmax.xlane.f32.xlu1 %v10626_v55  ;;  %v10623_v60 = vsel %vm268_vm2, %v10621_v3, -inf }
0x4a60   :  { %10871 = vrot.lane.b32.xlu1 %v16142_v42, %s14813_s23 }
0x4a64   :  { %10869 = vrot.lane.b32.xlu1 %v16153_v14, %s14813_s23 }
0x4adc   :  { %v10628_v58 = vpop.xlane.xlu1 %10627 }
0x4add   :  { %v10630_v59 = vsub.f32 %v10622_v52, %v10628_v58 }
0x4adf   :  { %v10633_v7 = vmul.f32 1.442695, %v10630_v59 }
0x4ae0   :  { %v10872_v2 = vpop.permute.xlu1 %10871 }
0x4ae1   :  { %14697 = vpow2.f32 %v10633_v7 }
0x4ae4   :  { %v10870_v6 = vpop.permute.xlu1 %10869 }
0x4aeb   :  { %v14698_v61 = vpop.eup %14697 }
0x4aec   :  { %v10638_v13 = vsel %vm268_vm2, %v14698_v61, 0.0 }
0x4aed   :  { %10639 = vadd.xlane.f32.xlu0 %v10638_v13 }
0x4b03   :  { %10391 = vrot.lane.b32.xlu0 %v16116_v48, %s14811_s5  ;;  %s16421_s5 = sld [smem:[#allocation24_spill]] }
0x4b22   :  { %10624 = vmax.xlane.f32.xlu0 %v10623_v60 }
0x4b38   :  { %10793 = vrot.lane.b32.xlu0 %v16144_v45, %s14813_s23 }
0x4b7a   :  { %v10640_v43 = vpop.xlane.xlu0 %10639 }
0x4b7b   :  { %14699 = vrcp.f32 %v10640_v43 }
0x4b7e   :  { %v10392_v62 = vpop.permute.xlu0 %10391 }
0x4b7f   :  { %v16177_v63 = vadd.f32 %v10460_v17, %v10392_v62  ;;  %v16179_v26 = vadd.f32 %v14044_v53, %v10392_v62 }
0x4b81   :  { %14056 = vmatpush3.msra.mxu0 %v16177_v63  ;;  %14061 = vmatpush3.msra.mxu1 %v16179_v26 }
0x4b82   :  { %14070 = vmatprep.subr.mxu1 %v14808_v8  ;;  %14065 = vmatprep.subr.mxu0 %v14808_v8 }
0x4b85   :  { %v14700_v1 = vpop.eup %14699 }
0x4b86   :  { %v10644_v48 = vmul.f32 %v14700_v1, %v14698_v61 }
0x4b88   :  { %14063 = vmatmul.mubr.msk.f32.vlgmr.msra.gmra.mrb[122].mxu1 %vm268_vm2, %v10644_v48  ;;  %v12873_v48 = vld [vmem:[%s16408_s12 + $0x20] sm:$0xff] }
0x4b89   :  { %14071 = vmatpush3.xpose.msk.msra.mxu1 %vm268_vm2, %v10872_v2  ;;  %14072 = vmatprep.mubr.msk.f32.mxu1 %vm14809_vm1, %v14808_v8  ;;  %v12874_v2 = vld [vmem:[%s16408_s12 + $0x28] sm:$0xff] }
0x4b8a   :  { %14080 = vmatprep.subr.mxu1 %v14808_v8 }
0x4b8c   :  { %14073 = vmatmul.mubr.msk.f32.vlgmr.msra.gmra.mrb[124].mxu1 %vm268_vm2, %v10870_v6 }
0x4b8d   :  { %14082 = vmatprep.mubr.msk.f32.mxu1 %vm14809_vm1, %v14808_v8 }
0x4baf   :  { %v10625_v25 = vpop.xlane.xlu0 %10624 }
0x4bb0   :  { %v10629_v10 = vsub.f32 %v10621_v3, %v10625_v25 }
0x4bb2   :  { %v10631_v11 = vmul.f32 1.442695, %v10629_v10 }
0x4bb3   :  { %v10794_v21 = vpop.permute.xlu0 %10793 }
0x4bb4   :  { %14701 = vpow2.f32 %v10631_v11 }
0x4bbe   :  { %v14702_v57 = vpop.eup %14701 }
0x4bbf   :  { %v10635_v4 = vsel %vm268_vm2, %v14702_v57, 0.0 }
0x4bc0   :  { %10636 = vadd.xlane.f32.xlu1 %v10635_v4 }
0x4bd1   :  { %10791 = vrot.lane.b32.xlu1 %v16156_v46, %s14813_s23 }
0x4bd5   :  { %11289 = vrot.lane.b32.xlu1 %v16144_v45, %s14815_s28 }
0x4c4d   :  { %v10637_v16 = vpop.xlane.xlu1 %10636 }
0x4c4e   :  { %14703 = vrcp.f32 %v10637_v16 }
0x4c51   :  { %v10792_v24 = vpop.permute.xlu1 %10791 }
0x4c55   :  { %v11290_v22 = vpop.permute.xlu1 %11289 }
0x4c58   :  { %v14704_v18 = vpop.eup %14703 }
0x4c59   :  { %v10643_v19 = vmul.f32 %v14704_v18, %v14702_v57 }
0x4c5b   :  { %14058 = vmatmul.mubr.msk.f32.vlgmr.msra.gmra.mrb[84].mxu0 %vm268_vm2, %v10643_v19  ;;  %v16199_v23 = vpop.f32.mrb[122].mxu1 }
0x4c5c   :  { %14066 = vmatpush3.xpose.msk.msra.mxu0 %vm268_vm2, %v10794_v21  ;;  %v14064_v15 = vpop.f32.mrb[123].mxu1  ;;  %14067 = vmatprep.mubr.msk.f32.mxu0 %vm14809_vm1, %v14808_v8 }
0x4c5d   :  { %14075 = vmatprep.subr.mxu0 %v14808_v8 }
0x4c5f   :  { %14068 = vmatmul.mubr.msk.f32.vlgmr.msra.gmra.mrb[86].mxu0 %vm268_vm2, %v10792_v24  ;;  %v10943_v27 = vpop.f32.mrb[124].mxu1 }
0x4c60   :  { %v10948_v28 = vmul.f32 0.35355338, %v10943_v27  ;;  %v14074_v5 = vpop.f32.mrb[125].mxu1  ;;  %14077 = vmatprep.mubr.msk.f32.mxu0 %vm14809_vm1, %v14808_v8 }
0x4c62   :  { %v10952_v30 = vsel %vm268_vm2, %v10948_v28, -inf }
0x4c63   :  { %10953 = vmax.xlane.f32.xlu0 %v10952_v30 }
0x4c79   :  { %11049 = vrot.lane.b32.xlu0 %v16179_v26, %s14813_s23 }
0x4c7d   :  { %11287 = vrot.lane.b32.xlu0 %v16156_v46, %s14815_s28 }
0x4c81   :  { %11365 = vrot.lane.b32.xlu0 %v16153_v14, %s14815_s28 }
0x4cf0   :  { %v10954_v32 = vpop.xlane.xlu0 %10953 }
0x4cf1   :  { %v10956_v33 = vsub.f32 %v10948_v28, %v10954_v32  ;;  %v12875_v28 = vld [vmem:[%s16408_s12 + $0x30] sm:$0xff] }
0x4cf3   :  { %v10959_v34 = vmul.f32 1.442695, %v10956_v33 }
0x4cf4   :  { %v11050_v36 = vpop.permute.xlu0 %11049 }
0x4cf5   :  { %14705 = vpow2.f32 %v10959_v34  ;;  %14081 = vmatpush3.msra.mxu1 %v11050_v36 }
0x4cf6   :  { %14095 = vmatprep.subr.mxu1 %v14808_v8 }
0x4cf8   :  { %v11288_v29 = vpop.permute.xlu0 %11287 }
0x4cfc   :  { %v11366_v53 = vpop.permute.xlu0 %11365 }
0x4cff   :  { %v14706_v37 = vpop.eup %14705 }
0x4d00   :  { %v10964_v49 = vsel %vm268_vm2, %v14706_v37, 0.0 }
0x4d01   :  { %10965 = vadd.xlane.f32.xlu1 %v10964_v49 }
0x4d12   :  { %11367 = vrot.lane.b32.xlu1 %v16142_v42, %s14815_s28 }
0x4d2e   :  { %v16219_v38 = vpop.f32.mrb[84].mxu0 }
0x4d2f   :  { %v14059_v0 = vpop.f32.mrb[85].mxu0 }
0x4d32   :  { %v10865_v12 = vpop.f32.mrb[86].mxu0 }
0x4d33   :  { %v10947_v39 = vmul.f32 0.35355338, %v10865_v12  ;;  %v14069_v31 = vpop.f32.mrb[87].mxu0 }
0x4d35   :  { %v10949_v40 = vsel %vm268_vm2, %v10947_v39, -inf }
0x4d36   :  { %10950 = vmax.xlane.f32.xlu1 %v10949_v40 }
0x4d8e   :  { %v10966_v41 = vpop.xlane.xlu1 %10965 }
0x4d8f   :  { %14707 = vrcp.f32 %v10966_v41 }
0x4d92   :  { %v11368_v35 = vpop.permute.xlu1 %11367 }
0x4d99   :  { %v14708_v51 = vpop.eup %14707 }
0x4d9a   :  { %v10970_v44 = vmul.f32 %v14708_v51, %v14706_v37 }
0x4d9c   :  { %14083 = vmatmul.mubr.msk.f32.vlgmr.msra.gmra.mrb[126].mxu1 %vm268_vm2, %v10970_v44 }
0x4d9d   :  { %14096 = vmatpush3.xpose.msk.msra.mxu1 %vm268_vm2, %v11290_v22  ;;  %14097 = vmatprep.mubr.msk.f32.mxu1 %vm14809_vm1, %v14808_v8 }
0x4d9e   :  { %14100 = vmatprep.subr.mxu1 %v14808_v8 }
0x4da0   :  { %14098 = vmatmul.mubr.msk.f32.vlgmr.msra.gmra.mrb[128].mxu1 %vm268_vm2, %v11288_v29 }
0x4da1   :  { %14101 = vmatpush3.xpose.msk.msra.mxu1 %vm268_vm2, %v11368_v35  ;;  %14102 = vmatprep.mubr.msk.f32.mxu1 %vm14809_vm1, %v14808_v8 }
0x4da2   :  { %14110 = vmatprep.subr.mxu1 %v14808_v8 }
0x4da4   :  { %14103 = vmatmul.mubr.msk.f32.vlgmr.msra.gmra.mrb[130].mxu1 %vm268_vm2, %v11366_v53 }
0x4da5   :  { %14112 = vmatprep.mubr.msk.f32.mxu1 %vm14809_vm1, %v14808_v8 }
0x4dc3   :  { %v10951_v17 = vpop.xlane.xlu1 %10950 }
0x4dc4   :  { %v10955_v54 = vsub.f32 %v10947_v39, %v10951_v17 }
0x4dc6   :  { %v10957_v52 = vmul.f32 1.442695, %v10955_v54 }
0x4dc8   :  { %14709 = vpow2.f32 %v10957_v52 }
0x4dd2   :  { %v14710_v56 = vpop.eup %14709 }
0x4dd3   :  { %v10961_v47 = vsel %vm268_vm2, %v14710_v56, 0.0 }
0x4dd4   :  { %10962 = vadd.xlane.f32.xlu0 %v10961_v47 }
0x4dea   :  { %10972 = vrot.lane.b32.xlu0 %v16177_v63, %s14813_s23 }
0x4dee   :  { %11543 = vrot.lane.b32.xlu0 %v16179_v26, %s14815_s28 }
0x4df2   :  { %11704 = vrot.lane.b32.xlu0 %v16144_v45, %s16418_s13 }
0x4df6   :  { %11782 = vrot.lane.b32.xlu0 %v16142_v42, %s16418_s13 }
0x4dfa   :  { %11702 = vrot.lane.b32.xlu0 %v16156_v46, %s16418_s13 }
0x4e61   :  { %v10963_v50 = vpop.xlane.xlu0 %10962 }
0x4e62   :  { %14711 = vrcp.f32 %v10963_v50 }
0x4e65   :  { %v10973_v55 = vpop.permute.xlu0 %10972 }
0x4e66   :  { %14076 = vmatpush3.msra.mxu0 %v10973_v55 }
0x4e67   :  { %14085 = vmatprep.subr.mxu0 %v12874_v2 }
0x4e69   :  { %v11544_v58 = vpop.permute.xlu0 %11543 }
0x4e6a   :  { %14111 = vmatpush3.msra.mxu1 %v11544_v58 }
0x4e6b   :  { %14120 = vmatprep.subr.mxu1 %v14808_v8 }
0x4e6c   :  { %v14712_v59 = vpop.eup %14711 }
0x4e6d   :  { %v10969_v7 = vmul.f32 %v14712_v59, %v14710_v56  ;;  %v11705_v30 = vpop.permute.xlu0 %11704 }
0x4e6f   :  { %14078 = vmatmul.mubr.msk.f32.vlgmr.msra.gmra.mrb[88].mxu0 %vm268_vm2, %v10969_v7  ;;  %v11121_v45 = vpop.f32.mrb[126].mxu1 }
0x4e70   :  { %v14084_v61 = vpop.f32.mrb[127].mxu1  ;;  %14086 = vmatpush3.msra.mxu0 %v12874_v2 }
0x4e71   :  { %14090 = vmatprep.subr.mxu0 %v12873_v48  ;;  %v11783_v36 = vpop.permute.xlu0 %11782 }
0x4e73   :  { %v11361_v42 = vpop.f32.mrb[128].mxu1 }
0x4e74   :  { %v11443_v13 = vmul.f32 0.35355338, %v11361_v42  ;;  %v14099_v3 = vpop.f32.mrb[129].mxu1  ;;  %v12876_v42 = vld [vmem:[%s16408_s12 + $0x38] sm:$0xff] }
0x4e75   :  { %v11703_v37 = vpop.permute.xlu0 %11702 }
0x4e76   :  { %v11445_v46 = vsel %vm268_vm2, %v11443_v13, -inf }
0x4e77   :  { %v11439_v60 = vpop.f32.mrb[130].mxu1  ;;  %11446 = vmax.xlane.f32.xlu1 %v11445_v46 }
0x4e78   :  { %v11444_v43 = vmul.f32 0.35355338, %v11439_v60  ;;  %v14104_v62 = vpop.f32.mrb[131].mxu1 }
0x4e7a   :  { %v11448_v1 = vsel %vm268_vm2, %v11444_v43, -inf }
0x4e7b   :  { %11449 = vmax.xlane.f32.xlu1 %v11448_v1 }
0x4f04   :  { %v11447_v6 = vpop.xlane.xlu1 %11446 }
0x4f05   :  { %v11451_v25 = vsub.f32 %v11443_v13, %v11447_v6 }
0x4f07   :  { %v11453_v10 = vmul.f32 1.442695, %v11451_v25 }
0x4f08   :  { %v11450_v11 = vpop.xlane.xlu1 %11449 }
0x4f09   :  { %14713 = vpow2.f32 %v11453_v10  ;;  %v11452_v57 = vsub.f32 %v11444_v43, %v11450_v11 }
0x4f0b   :  { %v11455_v4 = vmul.f32 1.442695, %v11452_v57 }
0x4f0d   :  { %14715 = vpow2.f32 %v11455_v4 }
0x4f13   :  { %v14714_v16 = vpop.eup %14713 }
0x4f14   :  { %v11457_v18 = vsel %vm268_vm2, %v14714_v16, 0.0 }
0x4f15   :  { %11458 = vadd.xlane.f32.xlu1 %v11457_v18 }
0x4f17   :  { %v14716_v19 = vpop.eup %14715 }
0x4f18   :  { %v11460_v21 = vsel %vm268_vm2, %v14716_v19, 0.0 }
0x4f19   :  { %11461 = vadd.xlane.f32.xlu1 %v11460_v21 }
0x4f2a   :  { %11467 = vrot.lane.b32.xlu1 %v16177_v63, %s14815_s28 }
0x4f2e   :  { %11780 = vrot.lane.b32.xlu1 %v16153_v14, %s16418_s13 }
0x4f42   :  { %v11044_v15 = vpop.f32.mrb[88].mxu0 }
0x4f43   :  { %v14079_v24 = vpop.f32.mrb[89].mxu0  ;;  %14087 = vmatprep.mubr.msk.f32.mxu0 %vm268_vm2, %v11044_v15 }
0x4f44   :  { %14088 = vmatmul.mubr.msk.f32.vlgmr.msra.gmra.mrb[90].mxu0 %vm268_vm2, %v11121_v45 }
0x4f45   :  { %14092 = vmatprep.mubr.msk.f32.mxu0 %vm268_vm2, %v16219_v38  ;;  %14091 = vmatpush3.msra.mxu0 %v12873_v48 }
0x4f46   :  { %14105 = vmatprep.subr.mxu0 %v14808_v8 }
0x4f4c   :  { %14093 = vmatmul.mubr.msk.f32.vlgmr.msra.gmra.mrb[90].mxu0 %vm268_vm2, %v16199_v23 }
0x4f4d   :  { %14107 = vmatprep.mubr.msk.f32.mxu0 %vm14809_vm1, %v14808_v8 }
0x4fa2   :  { %v11459_v27 = vpop.xlane.xlu1 %11458 }
0x4fa3   :  { %14717 = vrcp.f32 %v11459_v27 }
0x4fa6   :  { %v11462_v14 = vpop.xlane.xlu1 %11461 }
0x4fa7   :  { %14719 = vrcp.f32 %v11462_v14 }
0x4faa   :  { %v11468_v5 = vpop.permute.xlu1 %11467 }
0x4fab   :  { %14106 = vmatpush3.msra.mxu0 %v11468_v5  ;;  %v12923_v5 = vld [vmem:[%s16410_s4 + $0x28] sm:$0xff] }
0x4fac   :  { %14115 = vmatprep.subr.mxu0 %v12875_v28 }
0x4fad   :  { %v14718_v32 = vpop.eup %14717 }
0x4fae   :  { %v11465_v33 = vmul.f32 %v14718_v32, %v14714_v16  ;;  %v11781_v39 = vpop.permute.xlu1 %11780  ;;  %v12924_v32 = vld [vmem:[%s16410_s4 + $0x30] sm:$0xff] }
0x4fb0   :  { %14108 = vmatmul.mubr.msk.f32.vlgmr.msra.gmra.mrb[92].mxu0 %vm268_vm2, %v11465_v33  ;;  %v12925_v33 = vld [vmem:[%s16410_s4 + $0x38] sm:$0xff] }
0x4fb1   :  { %v14720_v34 = vpop.eup %14719  ;;  %14116 = vmatpush3.msra.mxu0 %v12875_v28  ;;  %v12922_v28 = vld [vmem:[%s16410_s4 + $0x20] sm:$0xff] }
0x4fb2   :  { %v11466_v23 = vmul.f32 %v14720_v34, %v14716_v19  ;;  %14125 = vmatprep.subr.mxu0 %v14808_v8  ;;  %v14342_v34 = vpack.c.bf16 %v12925_v33, %v12924_v32  ;;  %v12944_v32 = vld [vmem:[%s16416_s11 + $0x1] ss:$0 sm:$0xff] }
0x4fb4   :  { %14113 = vmatmul.mubr.msk.f32.vlgmr.msra.gmra.mrb[132].mxu1 %vm268_vm2, %v11466_v23  ;;  %v12928_v23 = vld [vmem:[%s16411_s15 + $0x48] sm:$0xff] }
0x4fb5   :  { %14121 = vmatpush3.xpose.msk.msra.mxu1 %vm268_vm2, %v11705_v30  ;;  %14122 = vmatprep.mubr.msk.f32.mxu1 %vm14809_vm1, %v14808_v8  ;;  %v14338_v30 = vpack.c.bf16 %v12923_v5, %v12922_v28 }
0x4fb6   :  { %14130 = vmatprep.subr.mxu1 %v14808_v8 }
0x4fb8   :  { %14123 = vmatmul.mubr.msk.f32.vlgmr.msra.gmra.mrb[134].mxu1 %vm268_vm2, %v11703_v37  ;;  %v12929_v37 = vld [vmem:[%s16411_s15 + $0x50] sm:$0xff] }
0x4fb9   :  { %14132 = vmatprep.mubr.msk.f32.mxu1 %vm14809_vm1, %v14808_v8 }
0x5083   :  { %v11539_v49 = vpop.f32.mrb[92].mxu0 }
0x5084   :  { %v14109_v38 = vpop.f32.mrb[93].mxu0  ;;  %14117 = vmatprep.mubr.msk.f32.mxu0 %vm268_vm2, %v11539_v49 }
0x5085   :  { %v12930_v38 = vld [vmem:[%s16411_s15 + $0x58] sm:$0xff] }
0x5087   :  { %v11615_v0 = vpop.f32.mrb[132].mxu1 }
0x5088   :  { %v14114_v12 = vpop.f32.mrb[133].mxu1  ;;  %14118 = vmatmul.mubr.msk.f32.vlgmr.msra.gmra.mrb[90].mxu0 %vm268_vm2, %v11615_v0  ;;  %v14350_v0 = vpack.c.bf16 %v12930_v38, %v12929_v37 }
0x5089   :  { %14126 = vmatpush3.xpose.msk.msra.mxu0 %vm268_vm2, %v11783_v36  ;;  %14127 = vmatprep.mubr.msk.f32.mxu0 %vm14809_vm1, %v14808_v8  ;;  %v12927_v36 = vld [vmem:[%s16411_s15 + $0x40] sm:$0xff] }
0x508a   :  { %14135 = vmatprep.subr.mxu0 %v14808_v8  ;;  %v14346_v49 = vpack.c.bf16 %v12928_v23, %v12927_v36  ;;  %v12931_v12 = vld [vmem:[%s16411_s15 + $0x60] sm:$0xff] }
0x508b   :  { %v11776_v31 = vpop.f32.mrb[134].mxu1  ;;  %v12945_v36 = vld [vmem:[%s16417_s10 + $0x1] ss:$0 sm:$0xff] }
0x508c   :  { %v11858_v40 = vmul.f32 0.35355338, %v11776_v31  ;;  %v14124_v22 = vpop.f32.mrb[135].mxu1  ;;  %14128 = vmatmul.mubr.msk.f32.vlgmr.msra.gmra.mrb[94].mxu0 %vm268_vm2, %v11781_v39  ;;  %v12932_v39 = vld [vmem:[%s16411_s15 + $0x68] sm:$0xff] }
0x508d   :  { %14137 = vmatprep.mubr.msk.f32.mxu0 %vm14809_vm1, %v14808_v8  ;;  %v14354_v31 = vpack.c.bf16 %v12932_v39, %v12931_v12 }
0x508e   :  { %v11860_v41 = vsel %vm268_vm2, %v11858_v40, -inf }
0x508f   :  { %11861 = vmax.xlane.f32.xlu0 %v11860_v41 }
0x511c   :  { %v11862_v51 = vpop.xlane.xlu0 %11861 }
0x511d   :  { %v11866_v44 = vsub.f32 %v11858_v40, %v11862_v51 }
0x511f   :  { %v11868_v29 = vmul.f32 1.442695, %v11866_v44 }
0x5121   :  { %14721 = vpow2.f32 %v11868_v29 }
0x512b   :  { %v14722_v35 = vpop.eup %14721 }
0x512c   :  { %v11872_v53 = vsel %vm268_vm2, %v14722_v35, 0.0 }
0x512d   :  { %11873 = vadd.xlane.f32.xlu0 %v11872_v53  ;;  %v12920_v53 = vld [vmem:[%s16412_s16 + $0x1] ss:$0 sm:$0xff] }
0x515f   :  { %v11854_v17 = vpop.f32.mrb[94].mxu0 }
0x5160   :  { %v11859_v54 = vmul.f32 0.35355338, %v11854_v17  ;;  %v14129_v52 = vpop.f32.mrb[95].mxu0 }
0x5162   :  { %v11863_v56 = vsel %vm268_vm2, %v11859_v54, -inf }
0x5163   :  { %11864 = vmax.xlane.f32.xlu1 %v11863_v56  ;;  %v12921_v56 = vld [vmem:[%s16413_s18 + $0x1] ss:$0 sm:$0xff] }
0x5174   :  { %11882 = vrot.lane.b32.xlu1 %v16177_v63, %s16418_s13 }
0x51ba   :  { %v11874_v8 = vpop.xlane.xlu0 %11873 }
0x51bb   :  { %14723 = vrcp.f32 %v11874_v8 }
0x51c5   :  { %v14724_v50 = vpop.eup %14723 }
0x51c6   :  { %v11880_v59 = vmul.f32 %v14724_v50, %v14722_v35 }
0x51f0   :  { %v11865_v47 = vpop.xlane.xlu1 %11864 }
0x51f1   :  { %v11867_v55 = vsub.f32 %v11859_v54, %v11865_v47 }
0x51f3   :  { %v11870_v58 = vmul.f32 1.442695, %v11867_v55 }
0x51f4   :  { %v11883_v7 = vpop.permute.xlu1 %11882 }
0x51f5   :  { %14725 = vpow2.f32 %v11870_v58  ;;  %14131 = vmatpush3.msra.mxu1 %v11883_v7  ;;  %v12933_v58 = vld [vmem:[%s16411_s15 + $0x70] sm:$0xff] }
0x51f6   :  { %14133 = vmatmul.mubr.msk.f32.vlgmr.msra.gmra.mrb[136].mxu1 %vm268_vm2, %v11880_v59  ;;  %14339 = vmatprep.subr.bf16.mxu1 %v14338_v30  ;;  %v12934_v59 = vld [vmem:[%s16411_s15 + $0x78] sm:$0xff] }
0x51f7   :  { %14341 = vmatpush3.bf16.msra.mxu1 %v14338_v30  ;;  %v14358_v7 = vpack.c.bf16 %v12934_v59, %v12933_v58 }
0x51f8   :  { %14343 = vmatprep.subr.bf16.mxu1 %v14342_v34 }
0x51fb   :  { %14345 = vmatpush3.bf16.msra.mxu1 %v14342_v34 }
0x51ff   :  { %v14726_v45 = vpop.eup %14725 }
0x5200   :  { %v11875_v61 = vsel %vm268_vm2, %v14726_v45, 0.0 }
0x5201   :  { %11876 = vadd.xlane.f32.xlu0 %v11875_v61 }
0x5217   :  { %11958 = vrot.lane.b32.xlu0 %v16179_v26, %s16418_s13  ;;  %v12917_v26 = vld [vmem:[%s16409_s20 + $0x1] ss:$0 sm:$0xff] }
0x528e   :  { %v11877_v63 = vpop.xlane.xlu0 %11876 }
0x528f   :  { %14727 = vrcp.f32 %v11877_v63 }
0x5292   :  { %v11959_v13 = vpop.permute.xlu0 %11958 }
0x5293   :  { %14136 = vmatpush3.msra.mxu0 %v11959_v13 }
0x5294   :  { %14140 = vmatprep.subr.mxu0 %v12876_v42 }
0x5299   :  { %v14728_v3 = vpop.eup %14727 }
0x529a   :  { %v11881_v46 = vmul.f32 %v14728_v3, %v14726_v45  ;;  %v12936_v45 = vld [vmem:[%s16414_s19 + $0x1] ss:$0 sm:$0xff] }
0x529c   :  { %14138 = vmatmul.mubr.msk.f32.vlgmr.msra.gmra.mrb[96].mxu0 %vm268_vm2, %v11881_v46 }
0x529d   :  { %14141 = vmatpush3.msra.mxu0 %v12876_v42 }
0x529e   :  { %14347 = vmatprep.subr.bf16.mxu0 %v14346_v49 }
0x52c9   :  { %v11954_v60 = vpop.f32.mrb[136].mxu1 }
0x52ca   :  { %v14134_v43 = vpop.f32.mrb[137].mxu1  ;;  %14142 = vmatprep.mubr.msk.f32.mxu0 %vm268_vm2, %v11954_v60  ;;  %v12939_v60 = vld [vmem:[%s16415_s8 + $0x1] ss:$0 sm:$0xff] }
0x536f   :  { %v12030_v62 = vpop.f32.mrb[96].mxu0 }
0x5370   :  { %v14139_v1 = vpop.f32.mrb[97].mxu0  ;;  %14143 = vmatmul.mubr.msk.f32.vlgmr.msra.gmra.mrb[90].mxu0 %vm268_vm2, %v12030_v62 }
0x5371   :  { %14349 = vmatpush3.bf16.msra.mxu0 %v14346_v49 }
0x5372   :  { %14351 = vmatprep.subr.bf16.mxu0 %v14350_v0 }
0x5375   :  { %14353 = vmatpush3.bf16.msra.mxu0 %v14350_v0 }
0x5376   :  { %14355 = vmatprep.subr.bf16.mxu0 %v14354_v31 }
0x5379   :  { %14357 = vmatpush3.bf16.msra.mxu0 %v14354_v31 }
0x537a   :  { %14359 = vmatprep.subr.bf16.mxu0 %v14358_v7 }
0x537d   :  { %14361 = vmatpush3.bf16.msra.mxu0 %v14358_v7 }
0x5443   :  { %v14144_v2 = vpop.f32.mrb[90].mxu0 }
0x5444   :  { %v12124_v48 = vadd.f32 %v14144_v2, %v12917_v26  ;;  %v12106_v6 = vpop.f32.mrb[91].mxu0 }
0x5445   :  { %v12123_v25 = vadd.f32 %v12917_v26, %v12106_v6 }
0x5446   :  { %v12126_v10 = vadd.f32 %v12124_v48, %v16129_v9 }
0x5447   :  { %v12125_v11 = vadd.f32 %v12123_v25, %v16127_v20 }
0x5448   :  { %v12134_v57 = vsel %vm183_vm0, %v12126_v10, 0.0 }
0x5449   :  { %12135 = vadd.xlane.f32.xlu0 %v12134_v57  ;;  %v12131_v4 = vsel %vm183_vm0, %v12125_v11, 0.0 }
0x544a   :  { %12132 = vadd.xlane.f32.xlu1 %v12131_v4 }
0x54d6   :  { %v12136_v16 = vpop.xlane.xlu0 %12135 }
0x54d7   :  { %v12138_v18 = vmul.f32 0.03125, %v12136_v16  ;;  %v12133_v19 = vpop.xlane.xlu1 %12132 }
0x54d8   :  { %v12137_v21 = vmul.f32 0.03125, %v12133_v19 }
0x54d9   :  { %v12140_v15 = vsub.f32 %v12126_v10, %v12138_v18 }
0x54da   :  { %v12139_v24 = vsub.f32 %v12125_v11, %v12137_v21 }
0x54db   :  { %v12142_v27 = vmul.f32 %v12140_v15, %v12140_v15 }
0x54dc   :  { %v12141_v9 = vmul.f32 %v12139_v24, %v12139_v24 }
0x54dd   :  { %v12146_v20 = vsel %vm183_vm0, %v12142_v27, 0.0 }
0x54de   :  { %12147 = vadd.xlane.f32.xlu0 %v12146_v20  ;;  %v12143_v14 = vsel %vm183_vm0, %v12141_v9, 0.0 }
0x54df   :  { %12144 = vadd.xlane.f32.xlu1 %v12143_v14 }
0x556b   :  { %v12148_v40 = vpop.xlane.xlu0 %12147 }
0x556c   :  { %v12150_v22 = vmul.f32 0.03125, %v12148_v40  ;;  %v12145_v41 = vpop.xlane.xlu1 %12144 }
0x556d   :  { %v12149_v51 = vmul.f32 0.03125, %v12145_v41 }
0x556e   :  { %v12152_v44 = vadd.f32 1e-05, %v12150_v22 }
0x556f   :  { %v12151_v29 = vadd.f32 1e-05, %v12149_v51 }
0x5570   :  { %14729 = vrsqrt.f32 %v12152_v44 }
0x5571   :  { %14731 = vrsqrt.f32 %v12151_v29 }
0x557a   :  { %v14730_v35 = vpop.eup %14729 }
0x557b   :  { %v14732_v17 = vpop.eup %14731  ;;  %v12156_v54 = vmul.f32 %v14730_v35, %v12140_v15 }
0x557c   :  { %v12155_v52 = vmul.f32 %v14732_v17, %v12139_v24 }
0x557d   :  { %v12164_v8 = vmul.f32 %v12920_v53, %v12156_v54  ;;  %v12459_v54 = vld [vmem:[%s15022_s14] sm:$0xff] }
0x557e   :  { %v12163_v47 = vmul.f32 %v12920_v53, %v12155_v52  ;;  %v12460_v52 = vld [vmem:[%s15022_s14 + $0x8] sm:$0xff] }
0x557f   :  { %v12172_v55 = vadd.f32 %v12921_v56, %v12164_v8  ;;  %v12461_v8 = vld [vmem:[%s15022_s14 + $0x10] sm:$0xff] }
0x5580   :  { %v12171_v50 = vadd.f32 %v12921_v56, %v12163_v47  ;;  %v14362_v56 = vpack.c.bf16 %v12460_v52, %v12459_v54  ;;  %v12462_v47 = vld [vmem:[%s15022_s14 + $0x18] sm:$0xff]  ;;  %s14821_s14 = smov [#allocation2]  }
0x5581   :  { %s12558_s23 = sshll.u32 %s14821_s14, 4  ;;  %s12559_s23 = int_to_ptr.vmem [resolvable:$true] %s12558_s23 }
0x5582   :  { %14153 = vmatprep.mubr.msk.f32.mxu1 %vm183_vm0, %v12171_v50  ;;  %14363 = vmatprep.subr.bf16.mxu1 %v14362_v56  ;;  %s14745_s26 = scalar_lea.vmem %s12559_s23, 256  ;;  %p14750_p1 = scmp.lt.s32.totalorder %s12559_s23, %s12559_s23 }
0x5583   :  { %14154 = vmatmul.mubr.msk.f32.vlgmr.msra.gmra.mrb[138].mxu1 %vm183_vm0, %v12172_v55  ;;  %p14746_p0 = scmp.ne.s32.totalorder %s12559_s23, %s14745_s26  ;;  %p14751_p2 = scmp.lt.s32.totalorder %s14745_s26, %s14745_s26 }
0x5584   :  { %14365 = vmatpush3.bf16.msra.mxu1 %v14362_v56 }
0x5585   :  { %p14752_p3 = por %p14751_p2, %p14750_p1 }
0x5587   :  { %p14753_p4 = pnand %p14752_p3, %p14746_p0 }
0x5656   :  { %v14155_v61 = vpop.f32.mrb[138].mxu1 }
0x5657   :  { %v12275_v63 = vadd.f32 %v14155_v61, %v12936_v45  ;;  %v12269_v42 = vpop.f32.mrb[139].mxu1 }
0x5658   :  { %v12270_v13 = vadd.f32 %v12936_v45, %v12269_v42  ;;  %v12946_v42 = vld [vmem:[%s16420_s0] ss:$0 sm:$0xff] }
0x5659   :  { %v12279_v46 = vmax.f32 %v12275_v63, 0.0 }
0x565a   :  { %v12278_v3 = vmax.f32 %v12270_v13, 0.0 }
0x565c   :  { %14172 = vmatprep.mubr.msk.f32.mxu0 %vm2092_vm3, %v12278_v3 }
0x565d   :  { %14173 = vmatmul.mubr.msk.f32.vlgmr.msra.gmra.mrb[98].mxu0 %vm2092_vm3, %v12279_v46 }
0x5730   :  { %v14174_v43 = vpop.f32.mrb[98].mxu0 }
0x5731   :  { %v12364_v62 = vadd.f32 %v14174_v43, %v12939_v60  ;;  %v12358_v1 = vpop.f32.mrb[99].mxu0 }
0x5732   :  { %v12359_v26 = vadd.f32 %v12939_v60, %v12358_v1  ;;  %v12947_v60 = vld [vmem:[%s16421_s5] ss:$0 sm:$0xff] }
0x5733   :  { %v12368_v2 = vadd.f32 %v12364_v62, %v12172_v55 }
0x5734   :  { %v12367_v48 = vadd.f32 %v12359_v26, %v12171_v50  ;;  %v14366_v50 = vpack.c.bf16 %v12462_v47, %v12461_v8 }
0x5735   :  { %v12376_v6 = vsel %vm183_vm0, %v12368_v2, 0.0 }
0x5736   :  { %12377 = vadd.xlane.f32.xlu0 %v12376_v6  ;;  %v12373_v25 = vsel %vm183_vm0, %v12367_v48, 0.0  ;;  %14367 = vmatprep.subr.bf16.mxu1 %v14366_v50 }
0x5737   :  { %12374 = vadd.xlane.f32.xlu1 %v12373_v25  ;;  %14369 = vmatpush3.bf16.msra.mxu1 %v14366_v50 }
0x57c3   :  { %v12378_v10 = vpop.xlane.xlu0 %12377 }
0x57c4   :  { %v12380_v11 = vmul.f32 0.03125, %v12378_v10  ;;  %v12375_v57 = vpop.xlane.xlu1 %12374 }
0x57c5   :  { %v12379_v4 = vmul.f32 0.03125, %v12375_v57 }
0x57c6   :  { %v12382_v16 = vsub.f32 %v12368_v2, %v12380_v11  ;;  %v12948_v2 = vld [vmem:[%s15017_s9] ss:$0 sm:$0xff] }
0x57c7   :  { %v12381_v18 = vsub.f32 %v12367_v48, %v12379_v4 }
0x57c8   :  { %v12384_v19 = vmul.f32 %v12382_v16, %v12382_v16 }
0x57c9   :  { %v12383_v21 = vmul.f32 %v12381_v18, %v12381_v18 }
0x57ca   :  { %v12388_v15 = vsel %vm183_vm0, %v12384_v19, 0.0 }
0x57cb   :  { %12389 = vadd.xlane.f32.xlu0 %v12388_v15  ;;  %v12385_v24 = vsel %vm183_vm0, %v12383_v21, 0.0 }
0x57cc   :  { %12386 = vadd.xlane.f32.xlu1 %v12385_v24 }
0x5858   :  { %v12390_v27 = vpop.xlane.xlu0 %12389 }
0x5859   :  { %v12392_v9 = vmul.f32 0.03125, %v12390_v27  ;;  %v12387_v20 = vpop.xlane.xlu1 %12386 }
0x585a   :  { %v12391_v14 = vmul.f32 0.03125, %v12387_v20 }
0x585b   :  { %v12394_v28 = vadd.f32 1e-05, %v12392_v9 }
0x585c   :  { %v12393_v5 = vadd.f32 1e-05, %v12391_v14 }
0x585d   :  { %14733 = vrsqrt.f32 %v12394_v28 }
0x585e   :  { %14735 = vrsqrt.f32 %v12393_v5 }
0x5867   :  { %v14734_v30 = vpop.eup %14733 }
0x5868   :  { %v14736_v33 = vpop.eup %14735  ;;  %v12398_v34 = vmul.f32 %v14734_v30, %v12382_v16 }
0x5869   :  { %v12397_v23 = vmul.f32 %v14736_v33, %v12381_v18 }
0x586a   :  { %v12406_v37 = vmul.f32 %v12944_v32, %v12398_v34 }
0x586b   :  { %v12405_v49 = vmul.f32 %v12944_v32, %v12397_v23 }
0x586c   :  { %v12414_v38 = vadd.f32 %v12945_v36, %v12406_v37 }
0x586d   :  { %v12413_v0 = vadd.f32 %v12945_v36, %v12405_v49 }
0x586e   :  { %v12420_v12 = vsel %vm183_vm0, %v12414_v38, 0.0 }
0x586f   :  { %12421 = vadd.xlane.f32.xlu0 %v12420_v12  ;;  %v12417_v39 = vsel %vm183_vm0, %v12413_v0, 0.0 }
0x5870   :  { %12418 = vadd.xlane.f32.xlu1 %v12417_v39 }
0x58fc   :  { %v12422_v31 = vpop.xlane.xlu0 %12421 }
0x58fd   :  { %v12424_v40 = vmul.f32 0.03125, %v12422_v31  ;;  %v12419_v22 = vpop.xlane.xlu1 %12418 }
0x58fe   :  { %v12423_v41 = vmul.f32 0.03125, %v12419_v22 }
0x58ff   :  { %v12426_v51 = vsub.f32 %v12414_v38, %v12424_v40 }
0x5900   :  { %v12425_v44 = vsub.f32 %v12413_v0, %v12423_v41 }
0x5901   :  { %v12428_v29 = vmul.f32 %v12426_v51, %v12426_v51 }
0x5902   :  { %v12427_v35 = vmul.f32 %v12425_v44, %v12425_v44 }
0x5903   :  { %v12432_v53 = vsel %vm183_vm0, %v12428_v29, 0.0 }
0x5904   :  { %12433 = vadd.xlane.f32.xlu0 %v12432_v53  ;;  %v12429_v17 = vsel %vm183_vm0, %v12427_v35, 0.0 }
0x5905   :  { %12430 = vadd.xlane.f32.xlu1 %v12429_v17 }
0x5991   :  { %v12434_v55 = vpop.xlane.xlu0 %12433 }
0x5992   :  { %v12436_v58 = vmul.f32 0.03125, %v12434_v55  ;;  %v12431_v59 = vpop.xlane.xlu1 %12430 }
0x5993   :  { %v12435_v7 = vmul.f32 0.03125, %v12431_v59 }
0x5994   :  { %v12438_v45 = vadd.f32 1e-05, %v12436_v58 }
0x5995   :  { %v12437_v61 = vadd.f32 1e-05, %v12435_v7 }
0x5996   :  { %14737 = vrsqrt.f32 %v12438_v45 }
0x5997   :  { %14739 = vrsqrt.f32 %v12437_v61 }
0x59a0   :  { %v14738_v63 = vpop.eup %14737 }
0x59a1   :  { %v14740_v13 = vpop.eup %14739  ;;  %v12442_v3 = vmul.f32 %v14738_v63, %v12426_v51 }
0x59a2   :  { %v12441_v46 = vmul.f32 %v14740_v13, %v12425_v44 }
0x59a3   :  { %v12450_v43 = vmul.f32 %v12946_v42, %v12442_v3 }
0x59a4   :  { %v12449_v62 = vmul.f32 %v12946_v42, %v12441_v46 }
0x59a5   :  { %v12458_v26 = vadd.f32 %v12947_v60, %v12450_v43 }
0x59a6   :  { %v12457_v1 = vadd.f32 %v12947_v60, %v12449_v62 }
0x59a8   :  { %14183 = vmatprep.mubr.msk.f32.mxu1 %vm183_vm0, %v12457_v1 }
0x59a9   :  { %14184 = vmatmul.mubr.msk.f32.vlgmr.msra.gmra.mrb[140].mxu1 %vm183_vm0, %v12458_v26 }
0x5a7c   :  { %v14185_v48 = vpop.f32.mrb[140].mxu1 }
0x5a7d   :  { %v12548_v6 = vadd.f32 %v14185_v48, %v12948_v2  ;;  %v12542_v25 = vpop.f32.mrb[141].mxu1 }
0x5a7e   :  { %v12543_v10 = vadd.f32 %v12948_v2, %v12542_v25 }
0x5a7f   :  { %12552 = vst.msk [vmem:[#allocation2 + $0x8] sm:$0xff] %vm2092_vm3, %v12548_v6 }
0x5a80   :  { %12551 = vst.msk [vmem:[#allocation2] sm:$0xff] %vm2092_vm3, %v12543_v10 }
0x5a81   :  { %14756 = shalt.err (!%p14753_p4)
}
0x5a82   :  { %s14757_s9 = scalar_lea.hbm %s15027_s27, 256 }
0x5a83   :  { %p14758_p5 = scmp.ne.s32.totalorder %s15027_s27, %s14757_s9  ;;  %p14761_p6 = scmp.lt.u32.totalorder %s14757_s9, %s15027_s27 }
0x5a85   :  { %p14763_p7 = pnand %p14761_p6, %p14758_p5 }
0x5a87   :  { %14766 = shalt.err (!%p14763_p7)
}
0x5a88   :  { %s14822_s28 = smov 128   ;;  %s14823_s1 = smov 8  }
0x5a89   :  { %12564 = dma.vmem_to_hbm [thread:$0]  %s12559_s23, 256, %s15027_s27, [#allocation3], %s14822_s28, %s14822_s28, %s14823_s1  }
0x5a8a   :  { %14767 = dma.done.wait [#allocation3], 256  }
0x5a8b   :  { %14768 = vsyncadd [#allocation3], 4294967040 }
0x5a8c   :  { %12568 = vsyncpa [#allocation3], 1 }

</bundles_post_ra>
